<compile_context>
chip_gen: v7x
topology: tpu7x:2x2x1
jax: 0.10.0
libtpu: 0.0.40
codegen_flags: <defaults>
</compile_context>

<pallas_src>
import numpy as np
import jax
import jax.numpy as jnp
from jax import lax
from jax.experimental import pallas as pl
from jax.experimental.pallas import tpu as pltpu

NUM_TRANSFORMS = 4


# ----------------------------------------------------------------------------
# Pallas kernels
# ----------------------------------------------------------------------------
def _conv_relu_pool_body(x_ref, w_ref, b_ref):
    """GroupConv3x3 (mean over transforms folded into weights) + bias + ReLU + 2x2 maxpool.

    x_ref : (1, H+2, W+2, T*Cin)  padded activation, transforms stacked on channels (bf16)
    w_ref : (9*T*Cin, Cout)       conv weight tiled over transforms, scaled by 1/T (bf16)
    b_ref : (1, Cout)             bias (f32)
    Returns the pooled activation value of shape (H//2, W//2, Cout), f32.
    """
    H = x_ref.shape[1] - 2
    W = x_ref.shape[2] - 2
    TC = x_ref.shape[3]
    Cout = w_ref.shape[1]
    Ho, Wo = H // 2, W // 2

    x = x_ref[0].astype(jnp.float32)
    # Build the nine 3x3 taps with static slices (no HBM im2col tensor).
    slabs = [x[kh:kh + H, kw:kw + W, :] for kh in range(3) for kw in range(3)]
    patches = jnp.concatenate(slabs, axis=-1).reshape(H * W, 9 * TC)

    # One fused MXU matmul over (taps x transforms x Cin); f32 accumulation.
    y = jnp.dot(patches.astype(jnp.bfloat16), w_ref[...],
                preferred_element_type=jnp.float32)
    y = jnp.maximum(y + b_ref[...], 0.0)                      # bias + ReLU

    # 2x2 max-pool, minor (lane) dim untouched throughout.
    y = y.reshape(H * Wo, 2, Cout)
    y = jnp.max(y, axis=1)                                    # pool along W
    y = y.reshape(Ho, 2, Wo, Cout)
    y = jnp.max(y, axis=1)                                    # pool along H
    return y                                                  # (Ho, Wo, Cout) f32


def gconv_relu_pool_kernel(x_ref, w_ref, b_ref, o_ref):
    o_ref[0] = _conv_relu_pool_body(x_ref, w_ref, b_ref).astype(o_ref.dtype)


def gconv_pool_fc_kernel(x_ref, w_ref, b_ref, w1_ref, b1_ref, w2_ref, b2_ref, o_ref):
    """Last conv stage with the FC head fused in the epilogue (features stay in VMEM)."""
    y = _conv_relu_pool_body(x_ref, w_ref, b_ref)             # (Ho, Wo, Cout) f32
    Ho, Wo, Cout = y.shape
    y = y.reshape(Ho * Wo, Cout)                              # minor dim preserved

    # fc1: contract over pooled position AND channel.  fc1 rows were pre-permuted
    # in the wrapper so this matches torch's NCHW x.view(N, -1) order exactly.
    hid = jnp.zeros((1, w1_ref.shape[2]), jnp.float32)
    for p in range(Ho * Wo):
        hid = hid + jnp.dot(y[p:p + 1, :], w1_ref[p],
                            preferred_element_type=jnp.float32)
    hid = jnp.maximum(hid + b1_ref[...], 0.0)

    # fc2 (weights/bias zero-padded to 128 output lanes -> lane-dense store).
    o_ref[0] = jnp.dot(hid, w2_ref[...],
                       preferred_element_type=jnp.float32) + b2_ref[...]


# ----------------------------------------------------------------------------
# Pallas wrappers
# ----------------------------------------------------------------------------
def gconv_relu_pool(x_pad, w_stack, b_row):
    N, Hp, Wp, TC = x_pad.shape
    H, W = Hp - 2, Wp - 2
    K, Cout = w_stack.shape
    Ho, Wo = H // 2, W // 2
    return pl.pallas_call(
        gconv_relu_pool_kernel,
        out_shape=jax.ShapeDtypeStruct((N, Ho, Wo, Cout), jnp.float32),
        grid=(N,),
        in_specs=[
            pl.BlockSpec((1, Hp, Wp, TC), lambda n: (n, 0, 0, 0)),
            pl.BlockSpec((K, Cout), lambda n: (0, 0)),
            pl.BlockSpec((1, Cout), lambda n: (0, 0)),
        ],
        out_specs=pl.BlockSpec((1, Ho, Wo, Cout), lambda n: (n, 0, 0, 0)),
        compiler_params=pltpu.CompilerParams(dimension_semantics=("parallel",)),
    )(x_pad, w_stack, b_row)


def gconv_pool_fc(x_pad, w_stack, b_row, w1r, b1_row, w2_pad, b2_pad):
    N, Hp, Wp, TC = x_pad.shape
    K, Cout = w_stack.shape
    P, _, HID = w1r.shape
    OUTP = w2_pad.shape[1]
    out = pl.pallas_call(
        gconv_pool_fc_kernel,
        out_shape=jax.ShapeDtypeStruct((N, 1, OUTP), jnp.float32),
        grid=(N,),
        in_specs=[
            pl.BlockSpec((1, Hp, Wp, TC), lambda n: (n, 0, 0, 0)),
            pl.BlockSpec((K, Cout), lambda n: (0, 0)),
            pl.BlockSpec((1, Cout), lambda n: (0, 0)),
            pl.BlockSpec((P, Cout, HID), lambda n: (0, 0, 0)),
            pl.BlockSpec((1, HID), lambda n: (0, 0)),
            pl.BlockSpec((HID, OUTP), lambda n: (0, 0)),
            pl.BlockSpec((1, OUTP), lambda n: (0, 0)),
        ],
        out_specs=pl.BlockSpec((1, 1, OUTP), lambda n: (n, 0, 0)),
        compiler_params=pltpu.CompilerParams(dimension_semantics=("parallel",)),
    )(x_pad, w_stack, b_row, w1r, b1_row, w2_pad, b2_pad)
    return out.reshape(N, OUTP)


# ----------------------------------------------------------------------------
# Glue (plain JAX, no hot-path compute)
# ----------------------------------------------------------------------------
def tf_transforms_nhwc(x):
    # Assumed transform group: identity, freq-flip (H), time-flip (W), both.
    return [x, x[:, ::-1, :, :], x[:, :, ::-1, :], x[:, ::-1, ::-1, :]]


def _stage_inputs(x_nhwc, w, b):
    """Transforms stacked on channels, 1px spatial pad, weight tiled over transforms
    with the 1/T mean folded in.  Matmul operands in bf16, bias in f32."""
    T = NUM_TRANSFORMS
    Cin, Cout = w.shape[2], w.shape[3]
    x_all = jnp.concatenate(tf_transforms_nhwc(x_nhwc), axis=-1)      # (N,H,W,T*Cin)
    x_pad = jnp.pad(x_all, ((0, 0), (1, 1), (1, 1), (0, 0))).astype(jnp.bfloat16)
    w_stack = (jnp.tile(w.reshape(9, 1, Cin, Cout), (1, T, 1, 1))
               .reshape(9 * T * Cin, Cout) * (1.0 / T)).astype(jnp.bfloat16)
    b_row = b.reshape(1, Cout).astype(jnp.float32)
    return x_pad, w_stack, b_row


def audio_gcnn_forward(x_nchw, params):
    x = jnp.transpose(x_nchw, (0, 2, 3, 1)).astype(jnp.float32)       # NCHW -> NHWC
    N, H, W, _ = x.shape
    assert H % 8 == 0 and W % 8 == 0, "spatial dims must be divisible by 8 (3 pools)"

    convs = params["convs"]
    for (w, b) in convs[:-1]:
        x_pad, w_stack, b_row = _stage_inputs(x, w, b)
        x = gconv_relu_pool(x_pad, w_stack, b_row)

    # Last conv stage fused with the FC head.
    w, b = convs[-1]
    Cout = w.shape[3]
    Ho, Wo = x.shape[1] // 2, x.shape[2] // 2
    x_pad, w_stack, b_row = _stage_inputs(x, w, b)

    HID = params["fc1_w"].shape[1]
    nc = params["fc2_w"].shape[1]
    OUTP = ((nc + 127) // 128) * 128
    # Re-order fc1 rows from torch NCHW-flatten order (c*Ho*Wo + h*Wo + w) to
    # (p = h*Wo + w, c) so the kernel can consume HWC-ordered pooled features.
    w1r = (params["fc1_w"].reshape(Cout, Ho, Wo, HID)
           .transpose(1, 2, 0, 3).reshape(Ho * Wo, Cout, HID)).astype(jnp.float32)
    b1_row = params["fc1_b"].reshape(1, HID).astype(jnp.float32)
    w2_pad = jnp.zeros((HID, OUTP), jnp.float32).at[:, :nc].set(params["fc2_w"])
    b2_pad = jnp.zeros((1, OUTP), jnp.float32).at[:, :nc].set(
        params["fc2_b"].reshape(1, nc))

    out = gconv_pool_fc(x_pad, w_stack, b_row, w1r, b1_row, w2_pad, b2_pad)
    return out[:, :nc]


# ----------------------------------------------------------------------------
# Pure-JAX f32 reference (for correctness check)
# ----------------------------------------------------------------------------
def ref_forward(x_nchw, params):
    def gconv(x, w, b):
        versions = [x, x[:, :, ::-1, :], x[:, :, :, ::-1], x[:, :, ::-1, ::-1]]
        outs = [lax.conv_general_dilated(
                    v, w, (1, 1), "SAME",
                    dimension_numbers=("NCHW", "HWIO", "NCHW")) for v in versions]
        return sum(outs) / len(outs) + b[None, :, None, None]

    def pool(x):
        return lax.reduce_window(x, -jnp.inf, lax.max,
                                 (1, 1, 2, 2), (1, 1, 2, 2), "VALID")

    x = x_nchw.astype(jnp.float32)
    for (w, b) in params["convs"]:
        x = pool(jax.nn.relu(gconv(x, w, b)))
    N = x.shape[0]
    flat = x.reshape(N, -1)
    h = jax.nn.relu(flat @ params["fc1_w"] + params["fc1_b"])
    return h @ params["fc2_w"] + params["fc2_b"]


# ----------------------------------------------------------------------------
# Deterministic synthetic parameters
# ----------------------------------------------------------------------------
def init_params(key, input_shape=(16, 16), num_classes=2):
    ks = jax.random.split(key, 10)
    params = {"convs": []}
    cin = 1
    idx = 0
    for cout in (16, 32, 64):
        bound = 1.0 / np.sqrt(cin * 9)
        w = jax.random.uniform(ks[idx], (3, 3, cin, cout), jnp.float32, -bound, bound)
        b = jax.random.uniform(ks[idx + 1], (cout,), jnp.float32, -bound, bound)
        params["convs"].append((w, b))
        cin = cout
        idx += 2
    flat_dim = 64 * (input_shape[0] // 8) * (input_shape[1] // 8)
    bound = 1.0 / np.sqrt(flat_dim)
    params["fc1_w"] = jax.random.uniform(ks[6], (flat_dim, 128), jnp.float32, -bound, bound)
    params["fc1_b"] = jax.random.uniform(ks[7], (128,), jnp.float32, -bound, bound)
    bound = 1.0 / np.sqrt(128)
    params["fc2_w"] = jax.random.uniform(ks[8], (128, num_classes), jnp.float32, -bound, bound)
    params["fc2_b"] = jax.random.uniform(ks[9], (num_classes,), jnp.float32, -bound, bound)
    return params


# ----------------------------------------------------------------------------
if __name__ == "__main__":
    key = jax.random.PRNGKey(0)
    k_x, k_p = jax.random.split(key)

    N, H, W = 2, 16, 16                      # small spatial size (must be /8)
    x = jax.random.normal(k_x, (N, 1, H, W), jnp.float32)
    params = init_params(k_p, input_shape=(H, W), num_classes=2)

    out = jax.jit(audio_gcnn_forward)(x, params)
    jax.block_until_ready(out)

    ref = jax.jit(ref_forward)(x, params)
    # Tolerance accounts for bf16 MXU operands (f32 accumulation) in the conv stages.
    np.testing.assert_allclose(np.asarray(out), np.asarray(ref), rtol=2e-2, atol=2e-2)

    print("KERNEL_OK")
</pallas_src>

<mosaic_0001>
module attributes {stable_mosaic.version = 11 : i64} {
  func.func @gconv_relu_pool_kernel(%arg0: i32, %arg1: memref<1x18x18x4xbf16, #tpu.memory_space<vmem>>, %arg2: memref<36x16xbf16, #tpu.memory_space<vmem>>, %arg3: memref<1x16xf32, #tpu.memory_space<vmem>>, %arg4: memref<1x8x8x16xf32, #tpu.memory_space<vmem>>) attributes {dimension_semantics = [#tpu.dimension_semantics<parallel>], iteration_bounds = array<i64: 2>, scalar_prefetch = 0 : i64, scratch_operands = 0 : i64, tpu.core_type = #tpu.core_type<tc>, window_params = [{transform_indices = @transform_0, window_bounds = array<i64: 1, 18, 18, 4>}, {pipeline_mode = #tpu.pipeline_mode<synchronous>, transform_indices = @transform_1, window_bounds = array<i64: 36, 16>}, {pipeline_mode = #tpu.pipeline_mode<synchronous>, transform_indices = @transform_2, window_bounds = array<i64: 1, 16>}, {transform_indices = @transform_3, window_bounds = array<i64: 1, 8, 8, 16>}]} {
    %c0 = arith.constant 0 : index
    %c0_0 = arith.constant 0 : index
    %c0_1 = arith.constant 0 : index
    %c0_2 = arith.constant 0 : index
    %0 = vector.load %arg1[%c0, %c0_0, %c0_1, %c0_2] : memref<1x18x18x4xbf16, #tpu.memory_space<vmem>>, vector<1x18x18x4xbf16>
    %1 = vector.shape_cast %0 : vector<1x18x18x4xbf16> to vector<18x18x4xbf16>
    %2 = arith.extf %1 : vector<18x18x4xbf16> to vector<18x18x4xf32>
    %3 = vector.extract_strided_slice %2 {offsets = [0, 0, 0], sizes = [16, 16, 4], strides = [1, 1, 1]} : vector<18x18x4xf32> to vector<16x16x4xf32>
    %4 = vector.extract_strided_slice %2 {offsets = [0, 1, 0], sizes = [16, 16, 4], strides = [1, 1, 1]} : vector<18x18x4xf32> to vector<16x16x4xf32>
    %5 = vector.extract_strided_slice %2 {offsets = [0, 2, 0], sizes = [16, 16, 4], strides = [1, 1, 1]} : vector<18x18x4xf32> to vector<16x16x4xf32>
    %6 = vector.extract_strided_slice %2 {offsets = [1, 0, 0], sizes = [16, 16, 4], strides = [1, 1, 1]} : vector<18x18x4xf32> to vector<16x16x4xf32>
    %7 = vector.extract_strided_slice %2 {offsets = [1, 1, 0], sizes = [16, 16, 4], strides = [1, 1, 1]} : vector<18x18x4xf32> to vector<16x16x4xf32>
    %8 = vector.extract_strided_slice %2 {offsets = [1, 2, 0], sizes = [16, 16, 4], strides = [1, 1, 1]} : vector<18x18x4xf32> to vector<16x16x4xf32>
    %9 = vector.extract_strided_slice %2 {offsets = [2, 0, 0], sizes = [16, 16, 4], strides = [1, 1, 1]} : vector<18x18x4xf32> to vector<16x16x4xf32>
    %10 = vector.extract_strided_slice %2 {offsets = [2, 1, 0], sizes = [16, 16, 4], strides = [1, 1, 1]} : vector<18x18x4xf32> to vector<16x16x4xf32>
    %11 = vector.extract_strided_slice %2 {offsets = [2, 2, 0], sizes = [16, 16, 4], strides = [1, 1, 1]} : vector<18x18x4xf32> to vector<16x16x4xf32>
    %12 = tpu.concatenate %3, %4, %5, %6, %7, %8, %9, %10, %11 in 2 : vector<16x16x4xf32>, vector<16x16x4xf32>, vector<16x16x4xf32>, vector<16x16x4xf32>, vector<16x16x4xf32>, vector<16x16x4xf32>, vector<16x16x4xf32>, vector<16x16x4xf32>, vector<16x16x4xf32> -> vector<16x16x36xf32>
    %13 = vector.shape_cast %12 : vector<16x16x36xf32> to vector<256x36xf32>
    %14 = arith.truncf %13 : vector<256x36xf32> to vector<256x36xbf16>
    %c0_3 = arith.constant 0 : index
    %c0_4 = arith.constant 0 : index
    %15 = vector.load %arg2[%c0_3, %c0_4] : memref<36x16xbf16, #tpu.memory_space<vmem>>, vector<36x16xbf16>
    %cst = arith.constant dense<0.000000e+00> : vector<256x16xf32>
    %16 = tpu.matmul %14, %15, %cst {dimension_numbers = #tpu.dot_dimension_numbers<[1], [0], [0], [1], [0, 0, 1, 1], [], []>} : vector<256x36xbf16>, vector<36x16xbf16>, vector<256x16xf32> -> vector<256x16xf32>
    %c0_5 = arith.constant 0 : index
    %c0_6 = arith.constant 0 : index
    %17 = vector.load %arg3[%c0_5, %c0_6] : memref<1x16xf32, #tpu.memory_space<vmem>>, vector<1x16xf32>
    %18 = vector.broadcast %17 : vector<1x16xf32> to vector<256x16xf32>
    %19 = arith.addf %16, %18 : vector<256x16xf32>
    %cst_7 = arith.constant 0.000000e+00 : f32
    %20 = vector.broadcast %cst_7 : f32 to vector<256x16xf32>
    %21 = arith.maximumf %19, %20 : vector<256x16xf32>
    %22 = vector.shape_cast %21 : vector<256x16xf32> to vector<128x2x16xf32>
    %cst_8 = arith.constant dense<0xFF800000> : vector<128x16xf32>
    %23 = vector.multi_reduction <maximumf>, %22, %cst_8 [1] : vector<128x2x16xf32> to vector<128x16xf32>
    %24 = vector.shape_cast %23 : vector<128x16xf32> to vector<8x2x8x16xf32>
    %cst_9 = arith.constant dense<0xFF800000> : vector<8x8x16xf32>
    %25 = vector.multi_reduction <maximumf>, %24, %cst_9 [1] : vector<8x2x8x16xf32> to vector<8x8x16xf32>
    %c0_10 = arith.constant 0 : index
    %c0_11 = arith.constant 0 : index
    %c0_12 = arith.constant 0 : index
    %c0_13 = arith.constant 0 : index
    %26 = vector.load %arg4[%c0_10, %c0_11, %c0_12, %c0_13] : memref<1x8x8x16xf32, #tpu.memory_space<vmem>>, vector<1x8x8x16xf32>
    %27 = vector.shape_cast %26 : vector<1x8x8x16xf32> to vector<8x8x16xf32>
    %28 = vector.shape_cast %25 : vector<8x8x16xf32> to vector<1x8x8x16xf32>
    tpu.vector_store %arg4[%c0_10, %c0_11, %c0_12, %c0_13], %28 {strides = array<i32>} : memref<1x8x8x16xf32, #tpu.memory_space<vmem>>, vector<1x8x8x16xf32>,
    return
  }
  func.func @transform_0(%arg0: i32) -> (i32, i32, i32, i32) {
    %c0_i32 = arith.constant 0 : i32
    %c0_i32_0 = arith.constant 0 : i32
    %c0_i32_1 = arith.constant 0 : i32
    %c0_i32_2 = arith.constant 0 : i32
    return %arg0, %c0_i32, %c0_i32_0, %c0_i32_1 : i32, i32, i32, i32
  }
  func.func @transform_1(%arg0: i32) -> (i32, i32) {
    %c0_i32 = arith.constant 0 : i32
    %c0_i32_0 = arith.constant 0 : i32
    %c0_i32_1 = arith.constant 0 : i32
    return %c0_i32, %c0_i32_0 : i32, i32
  }
  func.func @transform_2(%arg0: i32) -> (i32, i32) {
    %c0_i32 = arith.constant 0 : i32
    %c0_i32_0 = arith.constant 0 : i32
    %c0_i32_1 = arith.constant 0 : i32
    return %c0_i32, %c0_i32_0 : i32, i32
  }
  func.func @transform_3(%arg0: i32) -> (i32, i32, i32, i32) {
    %c0_i32 = arith.constant 0 : i32
    %c0_i32_0 = arith.constant 0 : i32
    %c0_i32_1 = arith.constant 0 : i32
    %c0_i32_2 = arith.constant 0 : i32
    return %arg0, %c0_i32, %c0_i32_0, %c0_i32_1 : i32, i32, i32, i32
  }
}

module attributes {stable_mosaic.version = 11 : i64} {
  func.func @gconv_relu_pool_kernel(%arg0: i32, %arg1: memref<1x10x10x64xbf16, #tpu.memory_space<vmem>>, %arg2: memref<576x32xbf16, #tpu.memory_space<vmem>>, %arg3: memref<1x32xf32, #tpu.memory_space<vmem>>, %arg4: memref<1x4x4x32xf32, #tpu.memory_space<vmem>>) attributes {dimension_semantics = [#tpu.dimension_semantics<parallel>], iteration_bounds = array<i64: 2>, scalar_prefetch = 0 : i64, scratch_operands = 0 : i64, tpu.core_type = #tpu.core_type<tc>, window_params = [{transform_indices = @transform_0, window_bounds = array<i64: 1, 10, 10, 64>}, {pipeline_mode = #tpu.pipeline_mode<synchronous>, transform_indices = @transform_1, window_bounds = array<i64: 576, 32>}, {pipeline_mode = #tpu.pipeline_mode<synchronous>, transform_indices = @transform_2, window_bounds = array<i64: 1, 32>}, {transform_indices = @transform_3, window_bounds = array<i64: 1, 4, 4, 32>}]} {
    %c0 = arith.constant 0 : index
    %c0_0 = arith.constant 0 : index
    %c0_1 = arith.constant 0 : index
    %c0_2 = arith.constant 0 : index
    %0 = vector.load %arg1[%c0, %c0_0, %c0_1, %c0_2] : memref<1x10x10x64xbf16, #tpu.memory_space<vmem>>, vector<1x10x10x64xbf16>
    %1 = vector.shape_cast %0 : vector<1x10x10x64xbf16> to vector<10x10x64xbf16>
    %2 = arith.extf %1 : vector<10x10x64xbf16> to vector<10x10x64xf32>
    %3 = vector.extract_strided_slice %2 {offsets = [0, 0, 0], sizes = [8, 8, 64], strides = [1, 1, 1]} : vector<10x10x64xf32> to vector<8x8x64xf32>
    %4 = vector.extract_strided_slice %2 {offsets = [0, 1, 0], sizes = [8, 8, 64], strides = [1, 1, 1]} : vector<10x10x64xf32> to vector<8x8x64xf32>
    %5 = vector.extract_strided_slice %2 {offsets = [0, 2, 0], sizes = [8, 8, 64], strides = [1, 1, 1]} : vector<10x10x64xf32> to vector<8x8x64xf32>
    %6 = vector.extract_strided_slice %2 {offsets = [1, 0, 0], sizes = [8, 8, 64], strides = [1, 1, 1]} : vector<10x10x64xf32> to vector<8x8x64xf32>
    %7 = vector.extract_strided_slice %2 {offsets = [1, 1, 0], sizes = [8, 8, 64], strides = [1, 1, 1]} : vector<10x10x64xf32> to vector<8x8x64xf32>
    %8 = vector.extract_strided_slice %2 {offsets = [1, 2, 0], sizes = [8, 8, 64], strides = [1, 1, 1]} : vector<10x10x64xf32> to vector<8x8x64xf32>
    %9 = vector.extract_strided_slice %2 {offsets = [2, 0, 0], sizes = [8, 8, 64], strides = [1, 1, 1]} : vector<10x10x64xf32> to vector<8x8x64xf32>
    %10 = vector.extract_strided_slice %2 {offsets = [2, 1, 0], sizes = [8, 8, 64], strides = [1, 1, 1]} : vector<10x10x64xf32> to vector<8x8x64xf32>
    %11 = vector.extract_strided_slice %2 {offsets = [2, 2, 0], sizes = [8, 8, 64], strides = [1, 1, 1]} : vector<10x10x64xf32> to vector<8x8x64xf32>
    %12 = tpu.concatenate %3, %4, %5, %6, %7, %8, %9, %10, %11 in 2 : vector<8x8x64xf32>, vector<8x8x64xf32>, vector<8x8x64xf32>, vector<8x8x64xf32>, vector<8x8x64xf32>, vector<8x8x64xf32>, vector<8x8x64xf32>, vector<8x8x64xf32>, vector<8x8x64xf32> -> vector<8x8x576xf32>
    %13 = vector.shape_cast %12 : vector<8x8x576xf32> to vector<64x576xf32>
    %14 = arith.truncf %13 : vector<64x576xf32> to vector<64x576xbf16>
    %c0_3 = arith.constant 0 : index
    %c0_4 = arith.constant 0 : index
    %15 = vector.load %arg2[%c0_3, %c0_4] : memref<576x32xbf16, #tpu.memory_space<vmem>>, vector<576x32xbf16>
    %cst = arith.constant dense<0.000000e+00> : vector<64x32xf32>
    %16 = tpu.matmul %14, %15, %cst {dimension_numbers = #tpu.dot_dimension_numbers<[1], [0], [0], [1], [0, 0, 1, 1], [], []>} : vector<64x576xbf16>, vector<576x32xbf16>, vector<64x32xf32> -> vector<64x32xf32>
    %c0_5 = arith.constant 0 : index
    %c0_6 = arith.constant 0 : index
    %17 = vector.load %arg3[%c0_5, %c0_6] : memref<1x32xf32, #tpu.memory_space<vmem>>, vector<1x32xf32>
    %18 = vector.broadcast %17 : vector<1x32xf32> to vector<64x32xf32>
    %19 = arith.addf %16, %18 : vector<64x32xf32>
    %cst_7 = arith.constant 0.000000e+00 : f32
    %20 = vector.broadcast %cst_7 : f32 to vector<64x32xf32>
    %21 = arith.maximumf %19, %20 : vector<64x32xf32>
    %22 = vector.shape_cast %21 : vector<64x32xf32> to vector<32x2x32xf32>
    %cst_8 = arith.constant dense<0xFF800000> : vector<32x32xf32>
    %23 = vector.multi_reduction <maximumf>, %22, %cst_8 [1] : vector<32x2x32xf32> to vector<32x32xf32>
    %24 = vector.shape_cast %23 : vector<32x32xf32> to vector<4x2x4x32xf32>
    %cst_9 = arith.constant dense<0xFF800000> : vector<4x4x32xf32>
    %25 = vector.multi_reduction <maximumf>, %24, %cst_9 [1] : vector<4x2x4x32xf32> to vector<4x4x32xf32>
    %c0_10 = arith.constant 0 : index
    %c0_11 = arith.constant 0 : index
    %c0_12 = arith.constant 0 : index
    %c0_13 = arith.constant 0 : index
    %26 = vector.load %arg4[%c0_10, %c0_11, %c0_12, %c0_13] : memref<1x4x4x32xf32, #tpu.memory_space<vmem>>, vector<1x4x4x32xf32>
    %27 = vector.shape_cast %26 : vector<1x4x4x32xf32> to vector<4x4x32xf32>
    %28 = vector.shape_cast %25 : vector<4x4x32xf32> to vector<1x4x4x32xf32>
    tpu.vector_store %arg4[%c0_10, %c0_11, %c0_12, %c0_13], %28 {strides = array<i32>} : memref<1x4x4x32xf32, #tpu.memory_space<vmem>>, vector<1x4x4x32xf32>,
    return
  }
  func.func @transform_0(%arg0: i32) -> (i32, i32, i32, i32) {
    %c0_i32 = arith.constant 0 : i32
    %c0_i32_0 = arith.constant 0 : i32
    %c0_i32_1 = arith.constant 0 : i32
    %c0_i32_2 = arith.constant 0 : i32
    return %arg0, %c0_i32, %c0_i32_0, %c0_i32_1 : i32, i32, i32, i32
  }
  func.func @transform_1(%arg0: i32) -> (i32, i32) {
    %c0_i32 = arith.constant 0 : i32
    %c0_i32_0 = arith.constant 0 : i32
    %c0_i32_1 = arith.constant 0 : i32
    return %c0_i32, %c0_i32_0 : i32, i32
  }
  func.func @transform_2(%arg0: i32) -> (i32, i32) {
    %c0_i32 = arith.constant 0 : i32
    %c0_i32_0 = arith.constant 0 : i32
    %c0_i32_1 = arith.constant 0 : i32
    return %c0_i32, %c0_i32_0 : i32, i32
  }
  func.func @transform_3(%arg0: i32) -> (i32, i32, i32, i32) {
    %c0_i32 = arith.constant 0 : i32
    %c0_i32_0 = arith.constant 0 : i32
    %c0_i32_1 = arith.constant 0 : i32
    %c0_i32_2 = arith.constant 0 : i32
    return %arg0, %c0_i32, %c0_i32_0, %c0_i32_1 : i32, i32, i32, i32
  }
}

module attributes {stable_mosaic.version = 11 : i64} {
  func.func @gconv_pool_fc_kernel(%arg0: i32, %arg1: memref<1x6x6x128xbf16, #tpu.memory_space<vmem>>, %arg2: memref<1152x64xbf16, #tpu.memory_space<vmem>>, %arg3: memref<1x64xf32, #tpu.memory_space<vmem>>, %arg4: memref<4x64x128xf32, #tpu.memory_space<vmem>>, %arg5: memref<1x128xf32, #tpu.memory_space<vmem>>, %arg6: memref<128x128xf32, #tpu.memory_space<vmem>>, %arg7: memref<1x128xf32, #tpu.memory_space<vmem>>, %arg8: memref<1x1x128xf32, #tpu.memory_space<vmem>>) attributes {dimension_semantics = [#tpu.dimension_semantics<parallel>], iteration_bounds = array<i64: 2>, scalar_prefetch = 0 : i64, scratch_operands = 0 : i64, tpu.core_type = #tpu.core_type<tc>, window_params = [{transform_indices = @transform_0, window_bounds = array<i64: 1, 6, 6, 128>}, {pipeline_mode = #tpu.pipeline_mode<synchronous>, transform_indices = @transform_1, window_bounds = array<i64: 1152, 64>}, {pipeline_mode = #tpu.pipeline_mode<synchronous>, transform_indices = @transform_2, window_bounds = array<i64: 1, 64>}, {pipeline_mode = #tpu.pipeline_mode<synchronous>, transform_indices = @transform_3, window_bounds = array<i64: 4, 64, 128>}, {pipeline_mode = #tpu.pipeline_mode<synchronous>, transform_indices = @transform_4, window_bounds = array<i64: 1, 128>}, {pipeline_mode = #tpu.pipeline_mode<synchronous>, transform_indices = @transform_5, window_bounds = array<i64: 128, 128>}, {pipeline_mode = #tpu.pipeline_mode<synchronous>, transform_indices = @transform_6, window_bounds = array<i64: 1, 128>}, {transform_indices = @transform_7, window_bounds = array<i64: 1, 1, 128>}]} {
    %c0 = arith.constant 0 : index
    %c0_0 = arith.constant 0 : index
    %c0_1 = arith.constant 0 : index
    %c0_2 = arith.constant 0 : index
    %0 = vector.load %arg1[%c0, %c0_0, %c0_1, %c0_2] : memref<1x6x6x128xbf16, #tpu.memory_space<vmem>>, vector<1x6x6x128xbf16>
    %1 = vector.shape_cast %0 : vector<1x6x6x128xbf16> to vector<6x6x128xbf16>
    %2 = arith.extf %1 : vector<6x6x128xbf16> to vector<6x6x128xf32>
    %3 = vector.extract_strided_slice %2 {offsets = [0, 0, 0], sizes = [4, 4, 128], strides = [1, 1, 1]} : vector<6x6x128xf32> to vector<4x4x128xf32>
    %4 = vector.extract_strided_slice %2 {offsets = [0, 1, 0], sizes = [4, 4, 128], strides = [1, 1, 1]} : vector<6x6x128xf32> to vector<4x4x128xf32>
    %5 = vector.extract_strided_slice %2 {offsets = [0, 2, 0], sizes = [4, 4, 128], strides = [1, 1, 1]} : vector<6x6x128xf32> to vector<4x4x128xf32>
    %6 = vector.extract_strided_slice %2 {offsets = [1, 0, 0], sizes = [4, 4, 128], strides = [1, 1, 1]} : vector<6x6x128xf32> to vector<4x4x128xf32>
    %7 = vector.extract_strided_slice %2 {offsets = [1, 1, 0], sizes = [4, 4, 128], strides = [1, 1, 1]} : vector<6x6x128xf32> to vector<4x4x128xf32>
    %8 = vector.extract_strided_slice %2 {offsets = [1, 2, 0], sizes = [4, 4, 128], strides = [1, 1, 1]} : vector<6x6x128xf32> to vector<4x4x128xf32>
    %9 = vector.extract_strided_slice %2 {offsets = [2, 0, 0], sizes = [4, 4, 128], strides = [1, 1, 1]} : vector<6x6x128xf32> to vector<4x4x128xf32>
    %10 = vector.extract_strided_slice %2 {offsets = [2, 1, 0], sizes = [4, 4, 128], strides = [1, 1, 1]} : vector<6x6x128xf32> to vector<4x4x128xf32>
    %11 = vector.extract_strided_slice %2 {offsets = [2, 2, 0], sizes = [4, 4, 128], strides = [1, 1, 1]} : vector<6x6x128xf32> to vector<4x4x128xf32>
    %12 = tpu.concatenate %3, %4, %5, %6, %7, %8, %9, %10, %11 in 2 : vector<4x4x128xf32>, vector<4x4x128xf32>, vector<4x4x128xf32>, vector<4x4x128xf32>, vector<4x4x128xf32>, vector<4x4x128xf32>, vector<4x4x128xf32>, vector<4x4x128xf32>, vector<4x4x128xf32> -> vector<4x4x1152xf32>
    %13 = vector.shape_cast %12 : vector<4x4x1152xf32> to vector<16x1152xf32>
    %14 = arith.truncf %13 : vector<16x1152xf32> to vector<16x1152xbf16>
    %c0_3 = arith.constant 0 : index
    %c0_4 = arith.constant 0 : index
    %15 = vector.load %arg2[%c0_3, %c0_4] : memref<1152x64xbf16, #tpu.memory_space<vmem>>, vector<1152x64xbf16>
    %cst = arith.constant dense<0.000000e+00> : vector<16x64xf32>
    %16 = tpu.matmul %14, %15, %cst {dimension_numbers = #tpu.dot_dimension_numbers<[1], [0], [0], [1], [0, 0, 1, 1], [], []>} : vector<16x1152xbf16>, vector<1152x64xbf16>, vector<16x64xf32> -> vector<16x64xf32>
    %c0_5 = arith.constant 0 : index
    %c0_6 = arith.constant 0 : index
    %17 = vector.load %arg3[%c0_5, %c0_6] : memref<1x64xf32, #tpu.memory_space<vmem>>, vector<1x64xf32>
    %18 = vector.broadcast %17 : vector<1x64xf32> to vector<16x64xf32>
    %19 = arith.addf %16, %18 : vector<16x64xf32>
    %cst_7 = arith.constant 0.000000e+00 : f32
    %20 = vector.broadcast %cst_7 : f32 to vector<16x64xf32>
    %21 = arith.maximumf %19, %20 : vector<16x64xf32>
    %22 = vector.shape_cast %21 : vector<16x64xf32> to vector<8x2x64xf32>
    %cst_8 = arith.constant dense<0xFF800000> : vector<8x64xf32>
    %23 = vector.multi_reduction <maximumf>, %22, %cst_8 [1] : vector<8x2x64xf32> to vector<8x64xf32>
    %24 = vector.shape_cast %23 : vector<8x64xf32> to vector<2x2x2x64xf32>
    %cst_9 = arith.constant dense<0xFF800000> : vector<2x2x64xf32>
    %25 = vector.multi_reduction <maximumf>, %24, %cst_9 [1] : vector<2x2x2x64xf32> to vector<2x2x64xf32>
    %26 = vector.shape_cast %25 : vector<2x2x64xf32> to vector<4x64xf32>
    %cst_10 = arith.constant 0.000000e+00 : f32
    %27 = vector.broadcast %cst_10 : f32 to vector<1x128xf32>
    %28 = vector.extract_strided_slice %26 {offsets = [0, 0], sizes = [1, 64], strides = [1, 1]} : vector<4x64xf32> to vector<1x64xf32>
    %c0_11 = arith.constant 0 : index
    %c0_12 = arith.constant 0 : index
    %c0_13 = arith.constant 0 : index
    %29 = vector.load %arg4[%c0_11, %c0_12, %c0_13] : memref<4x64x128xf32, #tpu.memory_space<vmem>>, vector<1x64x128xf32>
    %30 = vector.shape_cast %29 : vector<1x64x128xf32> to vector<64x128xf32>
    %cst_14 = arith.constant dense<0.000000e+00> : vector<1x128xf32>
    %31 = tpu.matmul %28, %30, %cst_14 {dimension_numbers = #tpu.dot_dimension_numbers<[1], [0], [0], [1], [0, 0, 1, 1], [], []>} : vector<1x64xf32>, vector<64x128xf32>, vector<1x128xf32> -> vector<1x128xf32>
    %32 = arith.addf %27, %31 : vector<1x128xf32>
    %33 = vector.extract_strided_slice %26 {offsets = [1, 0], sizes = [1, 64], strides = [1, 1]} : vector<4x64xf32> to vector<1x64xf32>
    %c1 = arith.constant 1 : index
    %c0_15 = arith.constant 0 : index
    %c0_16 = arith.constant 0 : index
    %34 = vector.load %arg4[%c1, %c0_15, %c0_16] : memref<4x64x128xf32, #tpu.memory_space<vmem>>, vector<1x64x128xf32>
    %35 = vector.shape_cast %34 : vector<1x64x128xf32> to vector<64x128xf32>
    %cst_17 = arith.constant dense<0.000000e+00> : vector<1x128xf32>
    %36 = tpu.matmul %33, %35, %cst_17 {dimension_numbers = #tpu.dot_dimension_numbers<[1], [0], [0], [1], [0, 0, 1, 1], [], []>} : vector<1x64xf32>, vector<64x128xf32>, vector<1x128xf32> -> vector<1x128xf32>
    %37 = arith.addf %32, %36 : vector<1x128xf32>
    %38 = vector.extract_strided_slice %26 {offsets = [2, 0], sizes = [1, 64], strides = [1, 1]} : vector<4x64xf32> to vector<1x64xf32>
    %c2 = arith.constant 2 : index
    %c0_18 = arith.constant 0 : index
    %c0_19 = arith.constant 0 : index
    %39 = vector.load %arg4[%c2, %c0_18, %c0_19] : memref<4x64x128xf32, #tpu.memory_space<vmem>>, vector<1x64x128xf32>
    %40 = vector.shape_cast %39 : vector<1x64x128xf32> to vector<64x128xf32>
    %cst_20 = arith.constant dense<0.000000e+00> : vector<1x128xf32>
    %41 = tpu.matmul %38, %40, %cst_20 {dimension_numbers = #tpu.dot_dimension_numbers<[1], [0], [0], [1], [0, 0, 1, 1], [], []>} : vector<1x64xf32>, vector<64x128xf32>, vector<1x128xf32> -> vector<1x128xf32>
    %42 = arith.addf %37, %41 : vector<1x128xf32>
    %43 = vector.extract_strided_slice %26 {offsets = [3, 0], sizes = [1, 64], strides = [1, 1]} : vector<4x64xf32> to vector<1x64xf32>
    %c3 = arith.constant 3 : index
    %c0_21 = arith.constant 0 : index
    %c0_22 = arith.constant 0 : index
    %44 = vector.load %arg4[%c3, %c0_21, %c0_22] : memref<4x64x128xf32, #tpu.memory_space<vmem>>, vector<1x64x128xf32>
    %45 = vector.shape_cast %44 : vector<1x64x128xf32> to vector<64x128xf32>
    %cst_23 = arith.constant dense<0.000000e+00> : vector<1x128xf32>
    %46 = tpu.matmul %43, %45, %cst_23 {dimension_numbers = #tpu.dot_dimension_numbers<[1], [0], [0], [1], [0, 0, 1, 1], [], []>} : vector<1x64xf32>, vector<64x128xf32>, vector<1x128xf32> -> vector<1x128xf32>
    %47 = arith.addf %42, %46 : vector<1x128xf32>
    %c0_24 = arith.constant 0 : index
    %c0_25 = arith.constant 0 : index
    %48 = vector.load %arg5[%c0_24, %c0_25] : memref<1x128xf32, #tpu.memory_space<vmem>>, vector<1x128xf32>
    %49 = arith.addf %47, %48 : vector<1x128xf32>
    %cst_26 = arith.constant 0.000000e+00 : f32
    %50 = vector.broadcast %cst_26 : f32 to vector<1x128xf32>
    %51 = arith.maximumf %49, %50 : vector<1x128xf32>
    %c0_27 = arith.constant 0 : index
    %c0_28 = arith.constant 0 : index
    %52 = vector.load %arg6[%c0_27, %c0_28] : memref<128x128xf32, #tpu.memory_space<vmem>>, vector<128x128xf32>
    %cst_29 = arith.constant dense<0.000000e+00> : vector<1x128xf32>
    %53 = tpu.matmul %51, %52, %cst_29 {dimension_numbers = #tpu.dot_dimension_numbers<[1], [0], [0], [1], [0, 0, 1, 1], [], []>} : vector<1x128xf32>, vector<128x128xf32>, vector<1x128xf32> -> vector<1x128xf32>
    %c0_30 = arith.constant 0 : index
    %c0_31 = arith.constant 0 : index
    %54 = vector.load %arg7[%c0_30, %c0_31] : memref<1x128xf32, #tpu.memory_space<vmem>>, vector<1x128xf32>
    %55 = arith.addf %53, %54 : vector<1x128xf32>
    %c0_32 = arith.constant 0 : index
    %c0_33 = arith.constant 0 : index
    %c0_34 = arith.constant 0 : index
    %56 = vector.load %arg8[%c0_32, %c0_33, %c0_34] : memref<1x1x128xf32, #tpu.memory_space<vmem>>, vector<1x1x128xf32>
    %57 = vector.shape_cast %56 : vector<1x1x128xf32> to vector<1x128xf32>
    %58 = vector.shape_cast %55 : vector<1x128xf32> to vector<1x1x128xf32>
    tpu.vector_store %arg8[%c0_32, %c0_33, %c0_34], %58 {strides = array<i32>} : memref<1x1x128xf32, #tpu.memory_space<vmem>>, vector<1x1x128xf32>,
    return
  }
  func.func @transform_0(%arg0: i32) -> (i32, i32, i32, i32) {
    %c0_i32 = arith.constant 0 : i32
    %c0_i32_0 = arith.constant 0 : i32
    %c0_i32_1 = arith.constant 0 : i32
    %c0_i32_2 = arith.constant 0 : i32
    return %arg0, %c0_i32, %c0_i32_0, %c0_i32_1 : i32, i32, i32, i32
  }
  func.func @transform_1(%arg0: i32) -> (i32, i32) {
    %c0_i32 = arith.constant 0 : i32
    %c0_i32_0 = arith.constant 0 : i32
    %c0_i32_1 = arith.constant 0 : i32
    return %c0_i32, %c0_i32_0 : i32, i32
  }
  func.func @transform_2(%arg0: i32) -> (i32, i32) {
    %c0_i32 = arith.constant 0 : i32
    %c0_i32_0 = arith.constant 0 : i32
    %c0_i32_1 = arith.constant 0 : i32
    return %c0_i32, %c0_i32_0 : i32, i32
  }
  func.func @transform_3(%arg0: i32) -> (i32, i32, i32) {
    %c0_i32 = arith.constant 0 : i32
    %c0_i32_0 = arith.constant 0 : i32
    %c0_i32_1 = arith.constant 0 : i32
    %c0_i32_2 = arith.constant 0 : i32
    return %c0_i32, %c0_i32_0, %c0_i32_1 : i32, i32, i32
  }
  func.func @transform_4(%arg0: i32) -> (i32, i32) {
    %c0_i32 = arith.constant 0 : i32
    %c0_i32_0 = arith.constant 0 : i32
    %c0_i32_1 = arith.constant 0 : i32
    return %c0_i32, %c0_i32_0 : i32, i32
  }
  func.func @transform_5(%arg0: i32) -> (i32, i32) {
    %c0_i32 = arith.constant 0 : i32
    %c0_i32_0 = arith.constant 0 : i32
    %c0_i32_1 = arith.constant 0 : i32
    return %c0_i32, %c0_i32_0 : i32, i32
  }
  func.func @transform_6(%arg0: i32) -> (i32, i32) {
    %c0_i32 = arith.constant 0 : i32
    %c0_i32_0 = arith.constant 0 : i32
    %c0_i32_1 = arith.constant 0 : i32
    return %c0_i32, %c0_i32_0 : i32, i32
  }
  func.func @transform_7(%arg0: i32) -> (i32, i32, i32) {
    %c0_i32 = arith.constant 0 : i32
    %c0_i32_0 = arith.constant 0 : i32
    %c0_i32_1 = arith.constant 0 : i32
    return %arg0, %c0_i32, %c0_i32_0 : i32, i32, i32
  }
}

</mosaic_0001>

<bundles_post_ra>
// kernel: audio_gcnn_forward.3
= control target key start
LH: loop header
LB: loop body
LE: loop exit
PB: predicated region body
PF: predicated region fallthrough
CT: control target
= control target key end

     0   :  { %s4668_s12 = smov 0   ;;  %s6771_s0 = inlined_call_operand.vmem [shape: bf16[2,18,18,4], index: 0, kind: input, shape index: {}]   ;;  %s6772_s1 = inlined_call_operand.vmem [shape: bf16[36,16], index: 1, kind: input, shape index: {}]   ;;  %s6773_s2 = inlined_call_operand.vmem [shape: f32[1,16], index: 2, kind: input, shape index: {}]   ;;  %s6774_s3 = inlined_call_operand.vmem [shape: f32[2,8,8,16], index: 3, kind: output, shape index: {}]  }
   0x1 LB: > { %s3828_s13 = sadd.s32 4294967295, %s4637_s12   ;;  %p3832_p0 = scmp.ge.s32.totalorder %s4637_s12, 1  ;;  %s4637_s12 = sphi %s4668_s12, %s13_s12  }
   0x2   : > { %p137_p1 = scmp.lt.s32.totalorder %s4637_s12, 3 }
   0x4   : > { %p138_p2 = pnand %p3832_p0, %p137_p1 }
   0x6   : > { %141 = sbr.rel (%p138_p2) target bundleno = 838 (0x346), region = 32 }
   0xd   : > { %p161_p3 = scmp.lt.s32.totalorder %s3828_s13, 1  ;;  %vm328_vm0 = vcmask 1046528   ;;  %s4639_s18 = smov 4   ;;  %vm505_vm1 = vcmask 1045504   ;;  %vm1640_vm2 = vcmask 1041408   ;;  %vm1284_vm3 = vcmask 31744  }
   0xe   : > { %s4640_s19 = smov 8   ;;  %s4641_s20 = smov 12   ;;  %vm1317_vm4 = vcmask 64512   ;;  %vm1350_vm5 = vcmask 97280   ;;  %vm1383_vm6 = vcmask 130048   ;;  %vm1416_vm7 = vcmask 162816  }
   0xf   : > { %s6942_s13 = smov (!%p161_p3, %s3828_s13), 1  ;;  %s4642_s21 = smov 16   ;;  %vm1449_vm8 = vcmask 195584   ;;  %vm1482_vm9 = vcmask 228352   ;;  %vm1515_vm10 = vcmask 261120   ;;  %vm1591_vm11 = vcmask 293888  }
  0x10   : > { %s3968_s14 = smul.u32 216, %s6942_s13  ;;  %s4643_s22 = smov 20   ;;  %vm2541_vm12 = vcmask 123904   ;;  %vm3694_vm13 = vcmask 1041409   ;;  %vm3696_vm14 = vcmask 1042434   ;;  %vm3698_vm15 = vcmask 1043459  }
  0x11   : > { %s4644_s23 = smov 24   ;;  %s4645_s28 = smov 28  }
  0x12   : > { %s4682_s17 = scalar_lea.vmem %s6771_s0, %s3968_s14  ;;  %s4646_s4 = smov 32  }
  0x13   : > { %v3895_v0 = vld [vmem:[%s4682_s17 + $0x18] sm:$0xff]   ;;  %v4686_v1 = vld [vmem:[%s4682_s17 + $0x20] sm:$0x1]  ;;  %v4697_v7 = vld [vmem:[%s4682_s17 + $0x8] sm:$0x1]  ;;  %s3858_s7 = sshll.u32 %s6942_s13, 6 }
  0x14   : > { %v3860_v2 = vld [vmem:[%s4682_s17] sm:$0xff]   ;;  %v4689_v3 = vunpack.c.l.bf16 %v3895_v0  ;;  %v4691_v4 = vunpack.c.h.bf16 %v3895_v0  ;;  %v6781_v5 = vunpack.c.l.bf16 %v4686_v1  ;;  %v4701_v9 = vld [vmem:[%s4682_s17 + $0x2c] sm:$0x1]  ;;  %v6784_v11 = vunpack.c.l.bf16 %v4697_v7  ;;  %v4722_v23 = vld [vmem:[%s4682_s17 + $0x14] sm:$0x1]  ;;  %s6157_s10 = scalar_lea.vmem %s6774_s3, %s3858_s7 }
  0x15   : > { %v4694_v6 = vunpack.c.l.bf16 %v3860_v2  ;;  %v181_v8 = vld [vmem:[%s4682_s17 + $0x24] sm:$0xff]   ;;  %v4703_v10 = vunpack.c.h.bf16 %v3860_v2  ;;  %v175_v14 = vld [vmem:[%s4682_s17 + $0xc] sm:$0xff]   ;;  %v6783_v21 = vunpack.c.l.bf16 %v4701_v9  ;;  %v187_v28 = vld [vmem:[%s4682_s17 + $0x3c] sm:$0xff]   ;;  %v6785_v37 = vunpack.c.l.bf16 %v4722_v23 }
  0x16   : > { %6840 = vst [vmem:[#allocation2_spill] sm:$0xff] %v4689_v3  ;;  %6841 = vst [vmem:[#allocation3_spill] sm:$0xff] %v4691_v4  ;;  %v4706_v12 = vunpack.c.l.bf16 %v181_v8  ;;  %v4708_v13 = vunpack.c.h.bf16 %v181_v8  ;;  %v339_v15 = vrot.slane %v4689_v3, 1  ;;  %v340_v16 = vrot.slane %v4691_v4, 1  ;;  %v4737_v33 = vld [vmem:[%s4682_s17 + $0x44] sm:$0x1] }
  0x17   : > { %v342_v17 = vrot.slane %v6781_v5, 1  ;;  %v329_v18 = vrot.slane %v4694_v6, 1  ;;  %v330_v19 = vrot.slane %v4703_v10, 1  ;;  %v332_v20 = vrot.slane %v6784_v11, 1  ;;  %v3896_v38 = vld [vmem:[%s4682_s17 + $0x30] sm:$0xff]   ;;  %v3897_v58 = vld [vmem:[%s4682_s17 + $0x48] sm:$0xff]  }
  0x18   : > { %6842 = vst [vmem:[#allocation4_spill] sm:$0xff] %v4706_v12  ;;  %6843 = vst [vmem:[#allocation5_spill] sm:$0xff] %v4708_v13  ;;  %v344_v22 = vrot.slane %v4706_v12, 1  ;;  %v341_v24 = vsel %vm328_vm0, %v339_v15, %v340_v16  ;;  %v345_v26 = vrot.slane %v4708_v13, 1  ;;  %v4727_v27 = vunpack.c.l.bf16 %v175_v14  ;;  %v4753_v43 = vld [vmem:[%s4682_s17 + $0x38] sm:$0x1] }
  0x19   : > { %v343_v25 = vsel %vm328_vm0, %v340_v16, %v342_v17  ;;  %v331_v30 = vsel %vm328_vm0, %v329_v18, %v330_v19  ;;  %v333_v31 = vsel %vm328_vm0, %v330_v19, %v332_v20  ;;  %v347_v32 = vrot.slane %v6783_v21, 1  ;;  %v193_v52 = vld [vmem:[%s4682_s17 + $0x54] sm:$0xff]   ;;  %v4775_v57 = vld [vmem:[%s4682_s17 + $0x5c] sm:$0x1]  ;;  %v199_v19 = vld [vmem:[%s4682_s17 + $0x6c] sm:$0xff]  }
  0x1a   : > { %6844 = vst [vmem:[#allocation6_spill] sm:$0xff] %v4727_v27  ;;  %v4730_v29 = vpack.i.bf16 %v343_v25, %v341_v24  ;;  %v3986_v34 = vpack.i.bf16 %v333_v31, %v331_v30  ;;  %v346_v35 = vsel %vm328_vm0, %v344_v22, %v345_v26  ;;  %v4740_v36 = vunpack.c.h.bf16 %v175_v14  ;;  %v4793_v14 = vld [vmem:[%s4682_s17 + $0x50] sm:$0x1]  ;;  %v4904_v5 = vld [vmem:[%s4682_s17 + $0x98] sm:$0x1] }
  0x1b   : > { %v348_v39 = vsel %vm328_vm0, %v345_v26, %v347_v32  ;;  %v334_v40 = vrot.slane %v4727_v27, 1  ;;  %v4748_v41 = vunpack.c.l.bf16 %v187_v28  ;;  %v4750_v42 = vunpack.c.h.bf16 %v187_v28  ;;  %v4810_v26 = vld [vmem:[%s4682_s17 + $0x74] sm:$0x1]  ;;  %v3898_v28 = vld [vmem:[%s4682_s17 + $0x60] sm:$0xff]  }
  0x1c   : > { %6845 = vst [vmem:[#allocation7_spill] sm:$0xff] %v4730_v29  ;;  %6846 = vst [vmem:[#allocation8_spill] sm:$0xff] %v4740_v36  ;;  %3997 = vrot.lane.b32.xlu1 %v4730_v29, %s4639_s18  ;;  %3987 = vrot.lane.b32.xlu0 %v3986_v34, %s4639_s18  ;;  %v4756_v44 = vpack.i.bf16 %v348_v39, %v346_v35  ;;  %v335_v45 = vrot.slane %v4740_v36, 1  ;;  %v337_v46 = vrot.slane %v6785_v37, 1  ;;  %v6780_v47 = vunpack.c.l.bf16 %v4737_v33  ;;  %v217_v21 = vld [vmem:[%s4682_s17 + $0xb4] sm:$0xff]  }
  0x1d   : > { %v354_v48 = vrot.slane %v4748_v41, 1  ;;  %v355_v49 = vrot.slane %v4750_v42, 1  ;;  %v4764_v50 = vunpack.c.l.bf16 %v3896_v38  ;;  %v4766_v51 = vunpack.c.h.bf16 %v3896_v38 }
  0x1e   : > { %6847 = vst [vmem:[#allocation9_spill] sm:$0xff] %v4756_v44  ;;  %v336_v53 = vsel %vm328_vm0, %v334_v40, %v335_v45  ;;  %v338_v54 = vsel %vm328_vm0, %v335_v45, %v337_v46  ;;  %v357_v55 = vrot.slane %v6780_v47, 1  ;;  %v6779_v56 = vunpack.c.l.bf16 %v4753_v43  ;;  %v4828_v45 = vld [vmem:[%s4682_s17 + $0x68] sm:$0x1] }
  0x1f   : > { %v4780_v59 = vpack.i.bf16 %v338_v54, %v336_v53  ;;  %v356_v60 = vsel %vm328_vm0, %v354_v48, %v355_v49  ;;  %v349_v61 = vrot.slane %v4764_v50, 1  ;;  %v350_v62 = vrot.slane %v4766_v51, 1  ;;  %v205_v53 = vld [vmem:[%s4682_s17 + $0x84] sm:$0xff]  }
  0x20   : > { %4002 = vrot.lane.b32.xlu1 %v4756_v44, %s4639_s18  ;;  %v358_v63 = vsel %vm328_vm0, %v355_v49, %v357_v55  ;;  %v352_v0 = vrot.slane %v6779_v56, 1  ;;  %v4788_v2 = vunpack.c.l.bf16 %v193_v52  ;;  %v4790_v8 = vunpack.c.h.bf16 %v193_v52  ;;  %v4945_v44 = vld [vmem:[%s4682_s17 + $0xb0] sm:$0x1] }
  0x21   : > { %6848 = vst [vmem:[#allocation10_spill] sm:$0xff] %v4780_v59  ;;  %3992 = vrot.lane.b32.xlu0 %v4780_v59, %s4639_s18  ;;  %v4797_v15 = vpack.i.bf16 %v358_v63, %v356_v60  ;;  %v351_v16 = vsel %vm328_vm0, %v349_v61, %v350_v62  ;;  %v6778_v17 = vunpack.c.l.bf16 %v4775_v57  ;;  %v4801_v18 = vunpack.c.l.bf16 %v3897_v58 }
  0x22   : > { %v353_v20 = vsel %vm328_vm0, %v350_v62, %v352_v0  ;;  %v364_v22 = vrot.slane %v4788_v2, 1  ;;  %v365_v24 = vrot.slane %v4790_v8, 1  ;;  %v4807_v25 = vunpack.c.h.bf16 %v3897_v58 }
  0x23   : > { %6849 = vst [vmem:[#allocation11_spill] sm:$0xff] %v4797_v15  ;;  %v4815_v30 = vpack.i.bf16 %v353_v20, %v351_v16  ;;  %v367_v31 = vrot.slane %v6778_v17, 1  ;;  %v6777_v32 = vunpack.c.l.bf16 %v4793_v14  ;;  %v359_v34 = vrot.slane %v4801_v18, 1  ;;  %v4851_v16 = vld [vmem:[%s4682_s17 + $0x8c] sm:$0x1] }
  0x24   : > { %4012 = vrot.lane.b32.xlu1 %v4797_v15, %s4639_s18  ;;  %v366_v35 = vsel %vm328_vm0, %v364_v22, %v365_v24  ;;  %v360_v38 = vrot.slane %v4807_v25, 1  ;;  %v4823_v39 = vunpack.c.l.bf16 %v199_v19  ;;  %v4825_v40 = vunpack.c.h.bf16 %v199_v19  ;;  %v3899_v19 = vld [vmem:[%s4682_s17 + $0x78] sm:$0xff]  }
  0x25   : > { %6850 = vst [vmem:[#allocation12_spill] sm:$0xff] %v4815_v30  ;;  %4007 = vrot.lane.b32.xlu0 %v4815_v30, %s4639_s18  ;;  %v368_v46 = vsel %vm328_vm0, %v365_v24, %v367_v31  ;;  %v362_v48 = vrot.slane %v6777_v32, 1  ;;  %v6776_v49 = vunpack.c.l.bf16 %v4810_v26  ;;  %v4836_v52 = vunpack.c.l.bf16 %v3898_v28  ;;  %v4886_v32 = vld [vmem:[%s4682_s17 + $0xa4] sm:$0x1] }
  0x26   : > { %v4839_v54 = vpack.i.bf16 %v368_v46, %v366_v35  ;;  %v361_v55 = vsel %vm328_vm0, %v359_v34, %v360_v38  ;;  %v374_v58 = vrot.slane %v4823_v39, 1  ;;  %v375_v60 = vrot.slane %v4825_v40, 1  ;;  %v4869_v46 = vld [vmem:[%s4682_s17 + $0x80] sm:$0x1] }
  0x27   : > { %6851 = vst [vmem:[#allocation13_spill] sm:$0xff] %v4836_v52  ;;  %v363_v61 = vsel %vm328_vm0, %v360_v38, %v362_v48  ;;  %v377_v62 = vrot.slane %v6776_v49, 1  ;;  %v4847_v63 = vunpack.c.h.bf16 %v3898_v28  ;;  %v6775_v0 = vunpack.c.l.bf16 %v4828_v45 }
  0x28   : > { %6852 = vst [vmem:[#allocation14_spill] sm:$0xff] %v4839_v54  ;;  %4022 = vrot.lane.b32.xlu1 %v4839_v54, %s4639_s18  ;;  %v4856_v20 = vpack.i.bf16 %v363_v61, %v361_v55  ;;  %v376_v22 = vsel %vm328_vm0, %v374_v58, %v375_v60  ;;  %v369_v24 = vrot.slane %v4836_v52, 1  ;;  %v4860_v31 = vunpack.c.l.bf16 %v205_v53  ;;  %v211_v61 = vld [vmem:[%s4682_s17 + $0x9c] sm:$0xff]  }
  0x29   : > { %v378_v28 = vsel %vm328_vm0, %v375_v60, %v377_v62  ;;  %v370_v34 = vrot.slane %v4847_v63, 1  ;;  %v372_v35 = vrot.slane %v6775_v0, 1  ;;  %v4866_v38 = vunpack.c.h.bf16 %v205_v53 }
  0x2a   : > { %6853 = vst [vmem:[#allocation15_spill] sm:$0xff] %v4856_v20  ;;  %6854 = vst [vmem:[#allocation16_spill] sm:$0xff] %v4860_v31  ;;  %4017 = vrot.lane.b32.xlu0 %v4856_v20, %s4639_s18  ;;  %v4873_v48 = vpack.i.bf16 %v378_v28, %v376_v22  ;;  %v6782_v55 = vunpack.c.l.bf16 %v4851_v16  ;;  %v384_v58 = vrot.slane %v4860_v31, 1  ;;  %v4877_v60 = vunpack.c.l.bf16 %v3899_v19  ;;  %v3900_v22 = vld [vmem:[%s4682_s17 + $0x90] sm:$0xff]   ;;  %v4927_v20 = vld [vmem:[%s4682_s17 + $0xbc] sm:$0x1] }
  0x2b   : > { %6855 = vst [vmem:[#allocation17_spill] sm:$0xff] %v4866_v38  ;;  %v371_v62 = vsel %vm328_vm0, %v369_v24, %v370_v34  ;;  %v373_v53 = vsel %vm328_vm0, %v370_v34, %v372_v35  ;;  %v385_v0 = vrot.slane %v4866_v38, 1  ;;  %v4883_v49 = vunpack.c.h.bf16 %v3899_v19 }
  0x2c   : > { %6856 = vst [vmem:[#allocation18_spill] sm:$0xff] %v4873_v48  ;;  %6857 = vst [vmem:[#allocation19_spill] sm:$0xff] %v4877_v60  ;;  %4032 = vrot.lane.b32.xlu1 %v4873_v48, %s4639_s18  ;;  %v4891_v28 = vpack.i.bf16 %v373_v53, %v371_v62  ;;  %v387_v17 = vrot.slane %v6782_v55, 1  ;;  %v6790_v24 = vunpack.c.l.bf16 %v4869_v46  ;;  %v379_v34 = vrot.slane %v4877_v60, 1 }
  0x2d   : > { %6858 = vst [vmem:[#allocation20_spill] sm:$0xff] %v4883_v49  ;;  %v386_v35 = vsel %vm328_vm0, %v384_v58, %v385_v0  ;;  %v380_v19 = vrot.slane %v4883_v49, 1  ;;  %v4899_v56 = vunpack.c.l.bf16 %v211_v61  ;;  %v4901_v47 = vunpack.c.h.bf16 %v211_v61 }
  0x2e   : > { %6859 = vst [vmem:[#allocation21_spill] sm:$0xff] %v4891_v28  ;;  %4027 = vrot.lane.b32.xlu0 %v4891_v28, %s4639_s18  ;;  %v388_v62 = vsel %vm328_vm0, %v385_v0, %v387_v17  ;;  %v382_v53 = vrot.slane %v6790_v24, 1  ;;  %v6795_v58 = vunpack.c.l.bf16 %v4886_v32  ;;  %v4912_v55 = vunpack.c.l.bf16 %v3900_v22 }
  0x2f   : > { %v4915_v61 = vpack.i.bf16 %v388_v62, %v386_v35  ;;  %v381_v11 = vsel %vm328_vm0, %v379_v34, %v380_v19  ;;  %v394_v37 = vrot.slane %v4899_v56, 1  ;;  %v395_v54 = vrot.slane %v4901_v47, 1  ;;  %v3901_v35 = vld [vmem:[%s4682_s17 + $0xa8] sm:$0xff]  }
  0x30   : > { %v383_v28 = vsel %vm328_vm0, %v380_v19, %v382_v53  ;;  %v397_v17 = vrot.slane %v6795_v58, 1  ;;  %v4923_v0 = vunpack.c.h.bf16 %v3900_v22  ;;  %v6802_v24 = vunpack.c.l.bf16 %v4904_v5 }
  0x31   : > { %6860 = vst [vmem:[#allocation22_spill] sm:$0xff] %v4915_v61  ;;  %4042 = vrot.lane.b32.xlu1 %v4915_v61, %s4639_s18  ;;  %v4932_v34 = vpack.i.bf16 %v383_v28, %v381_v11  ;;  %v396_v62 = vsel %vm328_vm0, %v394_v37, %v395_v54  ;;  %v389_v15 = vrot.slane %v4912_v55, 1  ;;  %v4936_v19 = vunpack.c.l.bf16 %v217_v21 }
  0x32   : > { %v398_v53 = vsel %vm328_vm0, %v395_v54, %v397_v17  ;;  %v390_v22 = vrot.slane %v4923_v0, 1  ;;  %v392_v58 = vrot.slane %v6802_v24, 1  ;;  %v4942_v30 = vunpack.c.h.bf16 %v217_v21 }
  0x33   : > { %6861 = vst [vmem:[#allocation23_spill] sm:$0xff] %v4932_v34  ;;  %4037 = vrot.lane.b32.xlu0 %v4932_v34, %s4639_s18  ;;  %v4949_v11 = vpack.i.bf16 %v398_v53, %v396_v62  ;;  %v6807_v37 = vunpack.c.l.bf16 %v4927_v20  ;;  %v404_v28 = vrot.slane %v4936_v19, 1  ;;  %v4953_v61 = vunpack.c.l.bf16 %v3901_v35 }
  0x34   : > { %v391_v54 = vsel %vm328_vm0, %v389_v15, %v390_v22  ;;  %v393_v17 = vsel %vm328_vm0, %v390_v22, %v392_v58  ;;  %v405_v21 = vrot.slane %v4942_v30, 1  ;;  %v4958_v24 = vunpack.c.h.bf16 %v3901_v35 }
  0x35   : > { %6862 = vst [vmem:[#allocation24_spill] sm:$0xff] %v4949_v11  ;;  %4052 = vrot.lane.b32.xlu1 %v4949_v11, %s4639_s18  ;;  %v4962_v34 = vpack.i.bf16 %v393_v17, %v391_v54  ;;  %v407_v62 = vrot.slane %v6807_v37, 1  ;;  %v6819_v53 = vunpack.c.l.bf16 %v4945_v44  ;;  %v399_v48 = vrot.slane %v4953_v61, 1 }
  0x36   : > { %v406_v15 = vsel %vm328_vm0, %v404_v28, %v405_v21  ;;  %v400_v58 = vrot.slane %v4958_v24, 1  ;;  %v511_v22 = vrot.slane %v4727_v27, 2  ;;  %v512_v35 = vrot.slane %v4740_v36, 2 }
  0x37   : > { %6863 = vst [vmem:[#allocation25_spill] sm:$0xff] %v4962_v34  ;;  %4047 = vrot.lane.b32.xlu0 %v4962_v34, %s4639_s18  ;;  %v408_v54 = vsel %vm328_vm0, %v405_v21, %v407_v62  ;;  %v402_v17 = vrot.slane %v6819_v53, 1  ;;  %v6864_v37 = vunpack.c.l.bf16 %v4722_v23  ;;  %v506_v29 = vrot.slane %v4694_v6, 2 }
  0x38   : > { %v4980_v28 = vpack.i.bf16 %v408_v54, %v406_v15  ;;  %v401_v59 = vsel %vm328_vm0, %v399_v48, %v400_v58  ;;  %v513_v27 = vsel %vm505_vm1, %v511_v22, %v512_v35  ;;  %v507_v36 = vrot.slane %v4703_v10, 2 }
  0x39   : > { %v514_v11 = vrot.slane %v6864_v37, 2  ;;  %v403_v34 = vsel %vm328_vm0, %v400_v58, %v402_v17  ;;  %v6865_v62 = vunpack.c.l.bf16 %v4697_v7  ;;  %v521_v23 = vrot.slane %v4706_v12, 2 }
  0x3a   : > { %4062 = vrot.lane.b32.xlu1 %v4980_v28, %s4639_s18  ;;  %v4992_v37 = vpack.i.bf16 %v403_v34, %v401_v59  ;;  %v508_v48 = vsel %vm505_vm1, %v506_v29, %v507_v36  ;;  %v522_v22 = vrot.slane %v4708_v13, 2  ;;  %v516_v7 = vrot.slane %v4689_v3, 2 }
  0x3b   : > { %v515_v21 = vsel %vm505_vm1, %v512_v35, %v514_v11  ;;  %v509_v53 = vrot.slane %v6865_v62, 2  ;;  %v6866_v11 = vunpack.c.l.bf16 %v4701_v9  ;;  %v517_v54 = vrot.slane %v4691_v4, 2 }
  0x3c   : > { %v4994_v15 = vpack.i.bf16 %v515_v21, %v513_v27  ;;  %4057 = vrot.lane.b32.xlu0 %v4992_v37, %s4639_s18  ;;  %v523_v27 = vsel %vm505_vm1, %v521_v23, %v522_v22  ;;  %v6867_v34 = vunpack.c.l.bf16 %v4686_v1  ;;  %v531_v17 = vrot.slane %v4748_v41, 2 }
  0x3d   : > { %v510_v58 = vsel %vm505_vm1, %v507_v36, %v509_v53  ;;  %v524_v35 = vrot.slane %v6866_v11, 2  ;;  %v518_v9 = vsel %vm505_vm1, %v516_v7, %v517_v54  ;;  %v532_v53 = vrot.slane %v4750_v42, 2 }
  0x3e   : > { %v4066_v59 = vpack.i.bf16 %v510_v58, %v508_v48  ;;  %v519_v29 = vrot.slane %v6867_v34, 2  ;;  %v6868_v21 = vunpack.c.l.bf16 %v4737_v33  ;;  %4072 = vrot.lane.b32.xlu1 %v4994_v15, %s4640_s19  ;;  %v526_v23 = vrot.slane %v4764_v50, 2 }
  0x3f   : > { %v525_v36 = vsel %vm505_vm1, %v522_v22, %v524_v35  ;;  %v527_v58 = vrot.slane %v4766_v51, 2  ;;  %v533_v22 = vsel %vm505_vm1, %v531_v17, %v532_v53  ;;  %v6869_v35 = vunpack.c.l.bf16 %v4753_v43 }
  0x40   : > { %v534_v62 = vrot.slane %v6868_v21, 2  ;;  %v5016_v48 = vpack.i.bf16 %v525_v36, %v523_v27  ;;  %v520_v1 = vsel %vm505_vm1, %v517_v54, %v519_v29  ;;  %4067 = vrot.lane.b32.xlu0 %v4066_v59, %s4640_s19  ;;  %v541_v34 = vrot.slane %v4788_v2, 2 }
  0x41   : > { %v529_v33 = vrot.slane %v6869_v35, 2  ;;  %v5026_v7 = vpack.i.bf16 %v520_v1, %v518_v9  ;;  %v528_v27 = vsel %vm505_vm1, %v526_v23, %v527_v58  ;;  %v542_v54 = vrot.slane %v4790_v8, 2 }
  0x42   : > { %v535_v11 = vsel %vm505_vm1, %v532_v53, %v534_v62  ;;  %v6870_v36 = vunpack.c.l.bf16 %v4775_v57  ;;  %v536_v53 = vrot.slane %v4801_v18, 2  ;;  %v537_v43 = vrot.slane %v4807_v25, 2  ;;  %4082 = vrot.lane.b32.xlu1 %v5016_v48, %s4640_s19 }
  0x43   : > { %v530_v29 = vsel %vm505_vm1, %v527_v58, %v529_v33  ;;  %v5038_v59 = vpack.i.bf16 %v535_v11, %v533_v22  ;;  %v543_v9 = vsel %vm505_vm1, %v541_v34, %v542_v54  ;;  %v6871_v21 = vunpack.c.l.bf16 %v4793_v14 }
  0x44   : > { %v544_v17 = vrot.slane %v6870_v36, 2  ;;  %v551_v23 = vrot.slane %v4823_v39, 2  ;;  %v552_v57 = vrot.slane %v4825_v40, 2  ;;  %v6872_v58 = vunpack.c.l.bf16 %v4810_v26  ;;  %4077 = vrot.lane.b32.xlu0 %v5026_v7, %s4640_s19 }
  0x45   : > { %v539_v62 = vrot.slane %v6871_v21, 2  ;;  %v5050_v33 = vpack.i.bf16 %v530_v29, %v528_v27  ;;  %v546_v22 = vrot.slane %v4836_v52, 2  ;;  %v547_v11 = vrot.slane %v4847_v63, 2 }
  0x46   : > { %v545_v1 = vsel %vm505_vm1, %v542_v54, %v544_v17  ;;  %v554_v35 = vrot.slane %v6872_v58, 2  ;;  %v538_v14 = vsel %vm505_vm1, %v536_v53, %v537_v43  ;;  %v6873_v54 = vunpack.c.l.bf16 %v4828_v45  ;;  %4092 = vrot.lane.b32.xlu1 %v5038_v59, %s4640_s19 }
  0x47   : > { %v540_v34 = vsel %vm505_vm1, %v537_v43, %v539_v62  ;;  %v5060_v26 = vpack.i.bf16 %v545_v1, %v543_v9  ;;  %v561_v17 = vrot.slane %v4860_v31, 2  ;;  %v562_v27 = vrot.slane %v4866_v38, 2 }
  0x48   : > { %v549_v36 = vrot.slane %v6873_v54, 2  ;;  %v553_v29 = vsel %vm505_vm1, %v551_v23, %v552_v57  ;;  %v555_v21 = vsel %vm505_vm1, %v552_v57, %v554_v35  ;;  %v6874_v53 = vunpack.c.l.bf16 %v4851_v16  ;;  %4087 = vrot.lane.b32.xlu0 %v5050_v33, %s4640_s19 }
  0x49   : > { %v5070_v45 = vpack.i.bf16 %v540_v34, %v538_v14  ;;  %v548_v43 = vsel %vm505_vm1, %v546_v22, %v547_v11  ;;  %v556_v9 = vrot.slane %v4877_v60, 2  ;;  %v557_v62 = vrot.slane %v4883_v49, 2 }
  0x4a   : > { %v564_v58 = vrot.slane %v6874_v53, 2  ;;  %v550_v1 = vsel %vm505_vm1, %v547_v11, %v549_v36  ;;  %v563_v23 = vsel %vm505_vm1, %v561_v17, %v562_v27  ;;  %v6875_v16 = vunpack.c.l.bf16 %v4869_v46  ;;  %4102 = vrot.lane.b32.xlu1 %v5060_v26, %s4640_s19 }
  0x4b   : > { %v5082_v14 = vpack.i.bf16 %v555_v21, %v553_v29  ;;  %v571_v22 = vrot.slane %v4899_v56, 2  ;;  %v572_v34 = vrot.slane %v4901_v47, 2  ;;  %v6877_v54 = vunpack.c.l.bf16 %v4886_v32 }
  0x4c   : > { %v565_v57 = vsel %vm505_vm1, %v562_v27, %v564_v58  ;;  %v559_v35 = vrot.slane %v6875_v16, 2  ;;  %4097 = vrot.lane.b32.xlu0 %v5070_v45, %s4640_s19  ;;  %v5090_v11 = vpack.i.bf16 %v550_v1, %v548_v43  ;;  %v558_v46 = vsel %vm505_vm1, %v556_v9, %v557_v62 }
  0x4d   : > { %6876 = vst [vmem:[#allocation26_spill] sm:$0xff] %v5082_v14  ;;  %v574_v53 = vrot.slane %v6877_v54, 2  ;;  %v5092_v36 = vpack.i.bf16 %v565_v57, %v563_v23  ;;  %v566_v27 = vrot.slane %v4912_v55, 2  ;;  %v567_v29 = vrot.slane %v4923_v0, 2 }
  0x4e   : > { %6878 = vst [vmem:[#allocation27_spill] sm:$0xff] %v5090_v11  ;;  %v560_v17 = vsel %vm505_vm1, %v557_v62, %v559_v35  ;;  %v6879_v21 = vunpack.c.l.bf16 %v4904_v5  ;;  %4112 = vrot.lane.b32.xlu1 %v5082_v14, %s4640_s19  ;;  %v573_v32 = vsel %vm505_vm1, %v571_v22, %v572_v34  ;;  %v581_v43 = vrot.slane %v4936_v19, 2 }
  0x4f   : > { %v582_v1 = vrot.slane %v4942_v30, 2  ;;  %v6880_v9 = vunpack.c.l.bf16 %v4927_v20  ;;  %v575_v62 = vsel %vm505_vm1, %v572_v34, %v574_v53  ;;  %v576_v57 = vrot.slane %v4953_v61, 2 }
  0x50   : > { %v569_v58 = vrot.slane %v6879_v21, 2  ;;  %v577_v16 = vrot.slane %v4958_v24, 2  ;;  %v6881_v5 = vunpack.c.l.bf16 %v4945_v44  ;;  %4107 = vrot.lane.b32.xlu0 %v5090_v11, %s4640_s19  ;;  %v5114_v22 = vpack.i.bf16 %v560_v17, %v558_v46 }
  0x51   : > { %v584_v23 = vrot.slane %v6880_v9, 2  ;;  %v568_v54 = vsel %vm505_vm1, %v566_v27, %v567_v29  ;;  %v5120_v20 = vpack.i.bf16 %v575_v62, %v573_v32  ;;  %v583_v34 = vsel %vm505_vm1, %v581_v43, %v582_v1  ;;  %v6883_v32 = vld [vmem:[#allocation8_spill] sm:$0xff] }
  0x52   : > { %v579_v35 = vrot.slane %v6881_v5, 2  ;;  %v570_v21 = vsel %vm505_vm1, %v567_v29, %v569_v58  ;;  %4122 = vrot.lane.b32.xlu1 %v5092_v36, %s4640_s19  ;;  %v578_v44 = vsel %vm505_vm1, %v576_v57, %v577_v16  ;;  %v4151_v29 = vpack.i.bf16 %v4691_v4, %v4689_v3  ;;  %v6882_v58 = vld [vmem:[#allocation6_spill] sm:$0xff]  ;;  %v6897_v3 = vld [vmem:[#allocation25_spill] sm:$0xff] }
  0x53   : > { %v585_v53 = vsel %vm505_vm1, %v582_v1, %v584_v23  ;;  %v5128_v46 = vpack.i.bf16 %v570_v21, %v568_v54  ;;  %v4146_v43 = vpack.i.bf16 %v6883_v32, %v6882_v58  ;;  %v5149_v1 = vpack.i.bf16 %v4766_v51, %v4764_v50 }
  0x54   : > { %v580_v9 = vsel %vm505_vm1, %v577_v16, %v579_v35  ;;  %4117 = vrot.lane.b32.xlu0 %v5114_v22, %s4640_s19  ;;  %v5130_v17 = vpack.i.bf16 %v585_v53, %v583_v34  ;;  %v4156_v23 = vpack.i.bf16 %v4708_v13, %v4706_v12  ;;  %v5158_v62 = vpack.i.bf16 %v4807_v25, %v4801_v18  ;;  %v6894_v12 = vld [vmem:[#allocation12_spill] sm:$0xff] }
  0x55   : > { %v5134_v27 = vpack.i.bf16 %v580_v9, %v578_v44  ;;  %v5163_v57 = vpack.i.bf16 %v4750_v42, %v4748_v41  ;;  %v5169_v16 = vpack.i.bf16 %v4847_v63, %v4836_v52  ;;  %v5175_v5 = vpack.i.bf16 %v4790_v8, %v4788_v2  ;;  %v6886_v44 = vld [vmem:[#allocation10_spill] sm:$0xff]  ;;  %v6887_v9 = vld [vmem:[#allocation7_spill] sm:$0xff] }
  0x56   : > { %4132 = vrot.lane.b32.xlu1 %v5120_v20, %s4640_s19  ;;  %v4191_v35 = vpack.i.bf16 %v4883_v49, %v4877_v60  ;;  %v5185_v54 = vpack.i.bf16 %v4825_v40, %v4823_v39  ;;  %v5190_v21 = vpack.i.bf16 %v4923_v0, %v4912_v55  ;;  %v4196_v34 = vpack.i.bf16 %v4866_v38, %v4860_v31  ;;  %v6889_v60 = vld [vmem:[#allocation23_spill] sm:$0xff]  ;;  %v6892_v31 = vld [vmem:[#allocation9_spill] sm:$0xff] }
  0x57   : > { %6884 = vst [vmem:[#allocation6_spill] sm:$0xff] %v5169_v16  ;;  %v5201_v53 = vpack.i.bf16 %v4901_v47, %v4899_v56 }
  0x58   : > { %4127 = vrot.lane.b32.xlu0 %v5128_v46, %s4640_s19  ;;  %6885 = vst [vmem:[#allocation8_spill] sm:$0xff] %v5185_v54 }
  0x5a   : > { %4142 = vrot.lane.b32.xlu1 %v5130_v17, %s4640_s19 }
  0x5c   : > { %4137 = vrot.lane.b32.xlu0 %v5134_v27, %s4640_s19 }
  0x5e   : > { %4152 = vrot.lane.b32.xlu1 %v4151_v29, %s4641_s20 }
  0x60   : > { %4147 = vrot.lane.b32.xlu0 %v4146_v43, %s4641_s20  ;;  %v6888_v43 = vld [vmem:[#allocation18_spill] sm:$0xff] }
  0x62   : > { %4162 = vrot.lane.b32.xlu1 %v5149_v1, %s4641_s20 }
  0x64   : > { %4157 = vrot.lane.b32.xlu0 %v4156_v23, %s4641_s20 }
  0x66   : > { %4172 = vrot.lane.b32.xlu1 %v5158_v62, %s4641_s20 }
  0x68   : > { %4167 = vrot.lane.b32.xlu0 %v5163_v57, %s4641_s20 }
  0x6a   : > { %4182 = vrot.lane.b32.xlu1 %v5169_v16, %s4641_s20 }
  0x6c   : > { %4177 = vrot.lane.b32.xlu0 %v5175_v5, %s4641_s20 }
  0x6e   : > { %4192 = vrot.lane.b32.xlu1 %v4191_v35, %s4641_s20 }
  0x70   : > { %4187 = vrot.lane.b32.xlu0 %v5185_v54, %s4641_s20 }
  0x72   : > { %4202 = vrot.lane.b32.xlu1 %v5190_v21, %s4641_s20 }
  0x74   : > { %4197 = vrot.lane.b32.xlu0 %v4196_v34, %s4641_s20 }
  0x76   : > { %4212 = vrot.lane.b32.xlu1 %v6886_v44, %s4642_s21  ;;  %v4626_v44 = vld [vmem:[%s6772_s1] sm:$0xff]  }
  0x77   : > { %3922 = vmatprep.subr.bf16.mxu0 %v4626_v44  ;;  %3960 = vmatprep.subr.bf16.mxu1 %v4626_v44 }
  0x78   : > { %4207 = vrot.lane.b32.xlu0 %v5201_v53, %s4641_s20  ;;  %3923 = vmatpush3.bf16.msra.mxu0 %v4626_v44 }
  0x79   : > { %3963 = vmatpush3.bf16.msra.mxu1 %v4626_v44 }
  0x7a   : > { %4222 = vrot.lane.b32.xlu1 %v6887_v9, %s4642_s21 }
  0x7c   : > { %4217 = vrot.lane.b32.xlu0 %v6888_v43, %s4642_s21 }
  0x7e   : > { %4232 = vrot.lane.b32.xlu1 %v4994_v15, %s4643_s22  ;;  %v4627_v15 = vld [vmem:[%s6772_s1 + $0x8] sm:$0xff]  }
  0x7f   : > { %3924 = vmatprep.subr.bf16.mxu0 %v4627_v15  ;;  %3961 = vmatprep.subr.bf16.mxu1 %v4627_v15 }
  0x80   : > { %4227 = vrot.lane.b32.xlu0 %v6889_v60, %s4642_s21  ;;  %3925 = vmatpush3.bf16.msra.mxu0 %v4627_v15 }
  0x81   : > { %3964 = vmatpush3.bf16.msra.mxu1 %v4627_v15  ;;  %v6893_v15 = vld [vmem:[#allocation22_spill] sm:$0xff] }
  0x82   : > { %4242 = vrot.lane.b32.xlu1 %v5026_v7, %s4643_s22 }
  0x84   : > { %4237 = vrot.lane.b32.xlu0 %v5082_v14, %s4643_s22 }
  0x86   : > { %4252 = vrot.lane.b32.xlu1 %v4151_v29, %s4644_s23 }
  0x88   : > { %4247 = vrot.lane.b32.xlu0 %v5114_v22, %s4643_s22 }
  0x8a   : > { %4262 = vrot.lane.b32.xlu1 %v4156_v23, %s4644_s23  ;;  %v4628_v23 = vld [vmem:[%s6772_s1 + $0x10] ss:$0 sps:$4 sm:$0x33]  }
  0x8b   : > { %3966 = vmatprep.subr.msk.bf16.mxu0 %vm1640_vm2, %v4628_v23  ;;  %3967 = vmatprep.subr.msk.bf16.mxu1 %vm1640_vm2, %v4628_v23 }
  0x8c   : > { %4257 = vrot.lane.b32.xlu0 %v4191_v35, %s4644_s23  ;;  %v1642_v35 = vsel %vm1640_vm2, %v4628_v23, 0  ;;  %vm3704_vm2 = vcmask 1046534  }
  0x8d   : > { %3927 = vmatpush3.bf16.msra.mxu0 %v1642_v35  ;;  %3965 = vmatpush3.bf16.msra.mxu1 %v1642_v35 }
  0x8e   : > { %v5230_v29 = vpop.permute.xlu1 %3997  ;;  %4272 = vrot.lane.b32.xlu1 %v6887_v9, %s4645_s28  ;;  %v5234_v49 = vpop.permute.xlu0 %3987 }
  0x8f   : > { %6890 = vst [vmem:[#allocation10_spill] sm:$0xff] %v5230_v29 }
  0x90   : > { %4267 = vrot.lane.b32.xlu0 %v4196_v34, %s4644_s23 }
  0x92   : > { %v5240_v44 = vpop.permute.xlu1 %4002  ;;  %4282 = vrot.lane.b32.xlu1 %v6892_v31, %s4645_s28 }
  0x93   : > { %6891 = vst [vmem:[#allocation7_spill] sm:$0xff] %v5240_v44  ;;  %v5244_v9 = vpop.permute.xlu0 %3992 }
  0x94   : > { %4277 = vrot.lane.b32.xlu0 %v6889_v60, %s4645_s28 }
  0x96   : > { %v4013_v38 = vpop.permute.xlu1 %4012  ;;  %4292 = vrot.lane.b32.xlu1 %v5026_v7, %s4646_s4 }
  0x97   : > { %v4008_v34 = vpop.permute.xlu0 %4007  ;;  %v4014_v44 = vunpack.i.l.bf16 %v4013_v38 }
  0x98   : > { %4287 = vrot.lane.b32.xlu0 %v6893_v15, %s4645_s28  ;;  %v4009_v43 = vunpack.i.l.bf16 %v4008_v34 }
  0x9a   : > { %4302 = vrot.lane.b32.xlu1 %v5016_v48, %s4646_s4  ;;  %v4023_v23 = vpop.permute.xlu1 %4022 }
  0x9c   : > { %4297 = vrot.lane.b32.xlu0 %v5114_v22, %s4646_s4  ;;  %v5256_v35 = vpop.permute.xlu0 %4017 }
  0x9e   : > { %4312 = vrot.lane.b32.xlu1 %v6892_v31, %s4642_s21  ;;  %v5260_v60 = vpop.permute.xlu1 %4032 }
  0xa0   : > { %4307 = vrot.lane.b32.xlu0 %v5092_v36, %s4646_s4  ;;  %v5264_v7 = vpop.permute.xlu0 %4027 }
  0xa2   : > { %4322 = vrot.lane.b32.xlu1 %v6894_v12, %s4642_s21 }
  0xa3   : > { %v5268_v13 = vpop.permute.xlu1 %4042 }
  0xa4   : > { %6895 = vst [vmem:[#allocation23_spill] sm:$0xff] %v5268_v13  ;;  %4317 = vrot.lane.b32.xlu0 %v6893_v15, %s4642_s21  ;;  %v4015_v13 = vunpack.i.h.bf16 %v4013_v38  ;;  %v1295_v38 = vsel %vm1284_vm3, %v4748_v41, %v4014_v44  ;;  %v1293_v41 = vsel %vm1284_vm3, %v4764_v50, %v4009_v43  ;;  %v4019_v44 = vunpack.i.l.bf16 %v5256_v35 }
  0xa5   : > { %v5272_v22 = vpop.permute.xlu0 %4037 }
  0xa6   : > { %6896 = vst [vmem:[#allocation9_spill] sm:$0xff] %v5272_v22  ;;  %4332 = vrot.lane.b32.xlu1 %v5016_v48, %s4643_s22 }
  0xa7   : > { %v5276_v31 = vpop.permute.xlu1 %4052 }
  0xa8   : > { %4327 = vrot.lane.b32.xlu0 %v6897_v3, %s4642_s21 }
  0xa9   : > { %v5280_v4 = vpop.permute.xlu0 %4047 }
  0xaa   : > { %4342 = vrot.lane.b32.xlu1 %v5050_v33, %s4643_s22 }
  0xac   : > { %4337 = vrot.lane.b32.xlu0 %v5092_v36, %s4643_s22  ;;  %v5286_v14 = vpop.permute.xlu1 %4062 }
  0xae   : > { %v5288_v15 = vpop.permute.xlu0 %4057  ;;  %4352 = vrot.lane.b32.xlu1 %v5149_v1, %s4644_s23  ;;  %v4010_v1 = vunpack.i.h.bf16 %v4008_v34 }
  0xb0   : > { %4347 = vrot.lane.b32.xlu0 %v5128_v46, %s4643_s22  ;;  %v5294_v48 = vpop.permute.xlu1 %4072 }
  0xb2   : > { %v5296_v22 = vpop.permute.xlu0 %4067  ;;  %4362 = vrot.lane.b32.xlu1 %v5163_v57, %s4644_s23 }
  0xb4   : > { %4357 = vrot.lane.b32.xlu0 %v5190_v21, %s4644_s23  ;;  %v5302_v36 = vpop.permute.xlu1 %4082  ;;  %v1296_v21 = vsel %vm1284_vm3, %v4750_v42, %v4015_v13  ;;  %v1294_v13 = vsel %vm1284_vm3, %v4766_v51, %v4010_v1  ;;  %v4020_v42 = vunpack.i.h.bf16 %v5256_v35 }
  0xb5   : > { %6898 = vst [vmem:[#allocation22_spill] sm:$0xff] %v5302_v36  ;;  %v4024_v36 = vunpack.i.l.bf16 %v4023_v23 }
  0xb6   : > { %v5304_v29 = vpop.permute.xlu0 %4077  ;;  %4372 = vrot.lane.b32.xlu1 %v6894_v12, %s4645_s28  ;;  %v6900_v12 = vld [vmem:[#allocation11_spill] sm:$0xff] }
  0xb7   : > { %6899 = vst [vmem:[#allocation12_spill] sm:$0xff] %v5304_v29  ;;  %v4025_v29 = vunpack.i.h.bf16 %v4023_v23  ;;  %v1299_v50 = vsel %vm1284_vm3, %v4788_v2, %v4024_v36  ;;  %v6901_v2 = vld [vmem:[#allocation24_spill] sm:$0xff] }
  0xb8   : > { %4367 = vrot.lane.b32.xlu0 %v5201_v53, %s4644_s23  ;;  %v4093_v54 = vpop.permute.xlu1 %4092 }
  0xb9   : > { %v4095_v57 = vunpack.i.h.bf16 %v4093_v54  ;;  %v4094_v16 = vunpack.i.l.bf16 %v4093_v54  ;;  %v1300_v51 = vsel %vm1284_vm3, %v4790_v8, %v4025_v29  ;;  %v1297_v8 = vsel %vm1284_vm3, %v4801_v18, %v4019_v44 }
  0xba   : > { %v4088_v11 = vpop.permute.xlu0 %4087  ;;  %4382 = vrot.lane.b32.xlu1 %v6900_v12, %s4645_s28  ;;  %v4050_v44 = vunpack.i.h.bf16 %v5280_v4 }
  0xbb   : > { %v5317_v34 = vsel %vm1317_vm4, %v1296_v21, %v4095_v57  ;;  %v5320_v53 = vsel %vm1317_vm4, %v1295_v38, %v4094_v16  ;;  %v4090_v52 = vunpack.i.h.bf16 %v4088_v11  ;;  %v4089_v54 = vunpack.i.l.bf16 %v4088_v11 }
  0xbc   : > { %4377 = vrot.lane.b32.xlu0 %v6897_v3, %s4645_s28  ;;  %v4103_v23 = vpop.permute.xlu1 %4102  ;;  %v1298_v38 = vsel %vm1284_vm3, %v4807_v25, %v4020_v42  ;;  %v4411_v25 = vpack.i.bf16 %v4958_v24, %v4953_v61 }
  0xbd   : > { %v5331_v57 = vsel %vm1317_vm4, %v1293_v41, %v4089_v54  ;;  %v5334_v16 = vsel %vm1317_vm4, %v1294_v13, %v4090_v52  ;;  %v4105_v11 = vunpack.i.h.bf16 %v4103_v23  ;;  %v4104_v21 = vunpack.i.l.bf16 %v4103_v23 }
  0xbe   : > { %v4098_v43 = vpop.permute.xlu0 %4097  ;;  %4392 = vrot.lane.b32.xlu1 %v5050_v33, %s4646_s4  ;;  %v4055_v13 = vunpack.i.h.bf16 %v5276_v31  ;;  %v4054_v41 = vunpack.i.l.bf16 %v5276_v31  ;;  %v4049_v23 = vunpack.i.l.bf16 %v5280_v4 }
  0xbf   : > { %v5343_v3 = vsel %vm1317_vm4, %v1300_v51, %v4105_v11  ;;  %v5346_v35 = vsel %vm1317_vm4, %v1299_v50, %v4104_v21  ;;  %v4100_v52 = vunpack.i.h.bf16 %v4098_v43  ;;  %v4099_v1 = vunpack.i.l.bf16 %v4098_v43 }
  0xc0   : > { %4387 = vrot.lane.b32.xlu0 %v6901_v2, %s4645_s28  ;;  %v5354_v29 = vpop.permute.xlu1 %4112  ;;  %v1312_v51 = vsel %vm1284_vm3, %v4901_v47, %v4055_v13  ;;  %v1311_v31 = vsel %vm1284_vm3, %v4899_v56, %v4054_v41  ;;  %v4065_v50 = vunpack.i.h.bf16 %v5286_v14  ;;  %v4064_v43 = vunpack.i.l.bf16 %v5286_v14 }
  0xc1   : > { %v5357_v33 = vsel %vm1317_vm4, %v1297_v8, %v4099_v1  ;;  %v5360_v36 = vsel %vm1317_vm4, %v1298_v38, %v4100_v52  ;;  %v1310_v47 = vsel %vm1284_vm3, %v4923_v0, %v4050_v44  ;;  %v1309_v56 = vsel %vm1284_vm3, %v4912_v55, %v4049_v23 }
  0xc2   : > { %v5362_v54 = vpop.permute.xlu0 %4107  ;;  %4402 = vrot.lane.b32.xlu1 %v5038_v59, %s4646_s4  ;;  %v4060_v14 = vunpack.i.h.bf16 %v5288_v15  ;;  %v4059_v13 = vunpack.i.l.bf16 %v5288_v15  ;;  %v1316_v0 = vsel %vm1284_vm3, %v4942_v30, %v4065_v50  ;;  %v1315_v55 = vsel %vm1284_vm3, %v4936_v19, %v4064_v43  ;;  %v6903_v43 = vld [vmem:[#allocation15_spill] sm:$0xff] }
  0xc4   : > { %4397 = vrot.lane.b32.xlu0 %v5128_v46, %s4646_s4  ;;  %v5370_v18 = vpop.permute.xlu1 %4122  ;;  %v1313_v50 = vsel %vm1284_vm3, %v4953_v61, %v4059_v13 }
  0xc6   : > { %v5374_v42 = vpop.permute.xlu0 %4117  ;;  %4412 = vrot.lane.b32.xlu1 %v4411_v25, %s4641_s20 }
  0xc8   : > { %4407 = vrot.lane.b32.xlu0 %v5120_v20, %s4646_s4  ;;  %v4133_v11 = vpop.permute.xlu1 %4132 }
  0xc9   : > { %v4135_v21 = vunpack.i.h.bf16 %v4133_v11  ;;  %v4134_v46 = vunpack.i.l.bf16 %v4133_v11 }
  0xca   : > { %v4128_v52 = vpop.permute.xlu0 %4127  ;;  %4422 = vrot.lane.b32.xlu1 %v6901_v2, %s4642_s21 }
  0xcb   : > { %v5390_v4 = vsel %vm1317_vm4, %v1312_v51, %v4135_v21  ;;  %v5393_v1 = vsel %vm1317_vm4, %v1311_v31, %v4134_v46  ;;  %v4130_v38 = vunpack.i.h.bf16 %v4128_v52  ;;  %v4129_v8 = vunpack.i.l.bf16 %v4128_v52 }
  0xcc   : > { %4417 = vrot.lane.b32.xlu0 %v6900_v12, %s4642_s21  ;;  %v4143_v2 = vpop.permute.xlu1 %4142  ;;  %v1314_v31 = vsel %vm1284_vm3, %v4958_v24, %v4060_v14 }
  0xcd   : > { %v5404_v41 = vsel %vm1317_vm4, %v1309_v56, %v4129_v8  ;;  %v5407_v11 = vsel %vm1317_vm4, %v1310_v47, %v4130_v38  ;;  %v4145_v21 = vunpack.i.h.bf16 %v4143_v2  ;;  %v4144_v46 = vunpack.i.l.bf16 %v4143_v2 }
  0xce   : > { %v4138_v44 = vpop.permute.xlu0 %4137  ;;  %4432 = vrot.lane.b32.xlu1 %v4992_v37, %s4642_s21 }
  0xcf   : > { %v5416_v15 = vsel %vm1317_vm4, %v1316_v0, %v4145_v21  ;;  %v5419_v12 = vsel %vm1317_vm4, %v1315_v55, %v4144_v46  ;;  %v4140_v23 = vunpack.i.h.bf16 %v4138_v44  ;;  %v4139_v51 = vunpack.i.l.bf16 %v4138_v44 }
  0xd0   : > { %6902 = vst [vmem:[#allocation25_spill] sm:$0xff] %v5419_v12  ;;  %4427 = vrot.lane.b32.xlu0 %v6903_v43, %s4642_s21  ;;  %v5427_v52 = vpop.permute.xlu1 %4152  ;;  %v4034_v12 = vunpack.i.l.bf16 %v5260_v60 }
  0xd1   : > { %v5430_v38 = vsel %vm1317_vm4, %v1313_v50, %v4139_v51  ;;  %v5433_v8 = vsel %vm1317_vm4, %v1314_v31, %v4140_v23  ;;  %v222_v51 = vld [vmem:[%s4682_s17 + $0xc8] sm:$0x1] }
  0xd2   : > { %6904 = vst [vmem:[#allocation11_spill] sm:$0xff] %v5430_v38  ;;  %6905 = vst [vmem:[#allocation24_spill] sm:$0xff] %v5433_v8  ;;  %v5435_v47 = vpop.permute.xlu0 %4147  ;;  %4442 = vrot.lane.b32.xlu1 %v5120_v20, %s4643_s22 }
  0xd4   : > { %4437 = vrot.lane.b32.xlu0 %v5038_v59, %s4643_s22  ;;  %v5441_v24 = vpop.permute.xlu1 %4162  ;;  %v5452_v59 = vpack.i.bf16 %v4942_v30, %v4936_v19 }
  0xd6   : > { %v5443_v61 = vpop.permute.xlu0 %4157  ;;  %4452 = vrot.lane.b32.xlu1 %v5134_v27, %s4643_s22 }
  0xd8   : > { %4447 = vrot.lane.b32.xlu0 %v5070_v45, %s4643_s22  ;;  %v4173_v56 = vpop.permute.xlu1 %4172 }
  0xd9   : > { %v4175_v14 = vunpack.i.h.bf16 %v4173_v56  ;;  %v4174_v13 = vunpack.i.l.bf16 %v4173_v56  ;;  %v276_v56 = vunpack.c.l.bf16 %v222_v51 }
  0xda   : > { %v4168_v2 = vpop.permute.xlu0 %4167  ;;  %4462 = vrot.lane.b32.xlu1 %v4411_v25, %s4644_s23 }
  0xdb   : > { %v5456_v20 = vsel %vm1350_vm5, %v5320_v53, %v4174_v13  ;;  %v5460_v21 = vsel %vm1350_vm5, %v5317_v34, %v4175_v14  ;;  %v4170_v46 = vunpack.i.h.bf16 %v4168_v2  ;;  %v4169_v0 = vunpack.i.l.bf16 %v4168_v2 }
  0xdc   : > { %4457 = vrot.lane.b32.xlu0 %v5158_v62, %s4644_s23  ;;  %v4183_v55 = vpop.permute.xlu1 %4182 }
  0xdd   : > { %v5466_v25 = vsel %vm1350_vm5, %v5331_v57, %v4169_v0  ;;  %v5470_v30 = vsel %vm1350_vm5, %v5334_v16, %v4170_v46  ;;  %v4185_v19 = vunpack.i.h.bf16 %v4183_v55  ;;  %v4184_v53 = vunpack.i.l.bf16 %v4183_v55  ;;  %v225_v0 = vld [vmem:[%s4682_s17 + $0xd4] sm:$0x1] }
  0xde   : > { %v4178_v34 = vpop.permute.xlu0 %4177  ;;  %4472 = vrot.lane.b32.xlu1 %v5452_v59, %s4644_s23  ;;  %v784_v46 = vrot.slane %v276_v56, 1 }
  0xdf   : > { %v5476_v44 = vsel %vm1350_vm5, %v5346_v35, %v4184_v53  ;;  %v5480_v62 = vsel %vm1350_vm5, %v5343_v3, %v4185_v19  ;;  %v4180_v57 = vunpack.i.h.bf16 %v4178_v34  ;;  %v4179_v23 = vunpack.i.l.bf16 %v4178_v34  ;;  %v3902_v3 = vld [vmem:[%s4682_s17 + $0xc0] sm:$0xff]   ;;  %v223_v34 = vld [vmem:[%s4682_s17 + $0xcc] sm:$0xff]  }
  0xe0   : > { %6906 = vst [vmem:[#allocation15_spill] sm:$0xff] %v5476_v44  ;;  %6907 = vst [vmem:[#allocation28_spill] sm:$0xff] %v5480_v62  ;;  %4467 = vrot.lane.b32.xlu0 %v5175_v5, %s4644_s23  ;;  %v5484_v16 = vpop.permute.xlu1 %4192  ;;  %v3893_v14 = vunpack.c.l.bf16 %v3902_v3  ;;  %v885_v53 = vrot.slane %v276_v56, 2  ;;  %v5524_v8 = vunpack.c.l.bf16 %v223_v34  ;;  %v5526_v38 = vunpack.c.h.bf16 %v223_v34 }
  0xe1   : > { %v5489_v31 = vsel %vm1350_vm5, %v5357_v33, %v4179_v23  ;;  %v5493_v35 = vsel %vm1350_vm5, %v5360_v36, %v4180_v57  ;;  %v3894_v33 = vunpack.c.h.bf16 %v3902_v3  ;;  %v279_v23 = vunpack.c.l.bf16 %v225_v0 }
  0xe2   : > { %6908 = vst [vmem:[#allocation29_spill] sm:$0xff] %v5489_v31  ;;  %6909 = vst [vmem:[#allocation30_spill] sm:$0xff] %v5493_v35  ;;  %v5495_v50 = vpop.permute.xlu0 %4187  ;;  %4482 = vrot.lane.b32.xlu1 %v4992_v37, %s4645_s28  ;;  %v781_v36 = vrot.slane %v3893_v14, 1  ;;  %v6910_v37 = vld [vmem:[#allocation14_spill] sm:$0xff]  ;;  %v882_v19 = vrot.slane %v3893_v14, 2  ;;  %v1083_v0 = vrot.slane %v5526_v38, 1 }
  0xe3   : > { %v782_v2 = vrot.slane %v3894_v33, 1 }
  0xe4   : > { %4477 = vrot.lane.b32.xlu0 %v6903_v43, %s4645_s28  ;;  %v5502_v5 = vpop.permute.xlu1 %4202  ;;  %v883_v43 = vrot.slane %v3894_v33, 2 }
  0xe5   : > { %v783_v44 = vsel %vm328_vm0, %v781_v36, %v782_v2  ;;  %v785_v62 = vsel %vm328_vm0, %v782_v2, %v784_v46  ;;  %v5536_v2 = vpack.i.bf16 %v3894_v33, %v3893_v14  ;;  %v1082_v46 = vrot.slane %v5524_v8, 1 }
  0xe6   : > { %v5504_v13 = vpop.permute.xlu0 %4197  ;;  %4492 = vrot.lane.b32.xlu1 %v4980_v28, %s4645_s28  ;;  %v884_v31 = vsel %vm505_vm1, %v882_v19, %v883_v43  ;;  %v886_v56 = vsel %vm505_vm1, %v883_v43, %v885_v53  ;;  %v1085_v19 = vrot.slane %v279_v23, 1  ;;  %v5544_v43 = vpack.i.bf16 %v785_v62, %v783_v44 }
  0xe7   : > { %v3990_v53 = vunpack.i.h.bf16 %v5234_v49  ;;  %v3995_v33 = vunpack.i.h.bf16 %v5244_v9  ;;  %v5563_v62 = vsel %vm328_vm0, %v1082_v46, %v1083_v0 }
  0xe8   : > { %4487 = vrot.lane.b32.xlu0 %v6910_v37, %s4645_s28  ;;  %v5511_v55 = vpop.permute.xlu1 %4212 }
  0xea   : > { %v4208_v57 = vpop.permute.xlu0 %4207  ;;  %4502 = vrot.lane.b32.xlu1 %v5134_v27, %s4646_s4 }
  0xeb   : > { %v4210_v51 = vunpack.i.h.bf16 %v4208_v57  ;;  %v4209_v3 = vunpack.i.l.bf16 %v4208_v57  ;;  %v3994_v57 = vunpack.i.l.bf16 %v5244_v9  ;;  %v1286_v9 = vsel %vm1284_vm3, %v4703_v10, %v3990_v53 }
  0xec   : > { %4497 = vrot.lane.b32.xlu0 %v5070_v45, %s4646_s4  ;;  %v5520_v35 = vpop.permute.xlu1 %4222  ;;  %v4074_v53 = vunpack.i.l.bf16 %v5294_v48 }
  0xed   : > { %v5530_v27 = vsel %vm1350_vm5, %v5404_v41, %v4209_v3  ;;  %v5534_v36 = vsel %vm1350_vm5, %v5407_v11, %v4210_v51  ;;  %v5546_v41 = vpack.i.bf16 %v886_v56, %v884_v31  ;;  %v3989_v11 = vunpack.i.l.bf16 %v5234_v49 }
  0xee   : > { %v5538_v45 = vpop.permute.xlu0 %4217  ;;  %4512 = vrot.lane.b32.xlu1 %v5130_v17, %s4646_s4  ;;  %v5566_v49 = vsel %vm328_vm0, %v1083_v0, %v1085_v19  ;;  %v4035_v31 = vunpack.i.h.bf16 %v5260_v60  ;;  %v1183_v51 = vrot.slane %v5524_v8, 2  ;;  %v1184_v3 = vrot.slane %v5526_v38, 2 }
  0xef   : > { %v1186_v56 = vrot.slane %v279_v23, 2  ;;  %v1285_v34 = vsel %vm1284_vm3, %v4694_v6, %v3989_v11  ;;  %v1288_v0 = vsel %vm1284_vm3, %v6883_v32, %v3995_v33  ;;  %v4030_v19 = vunpack.i.h.bf16 %v5264_v7 }
  0xf0   : > { %4507 = vrot.lane.b32.xlu0 %v5060_v26, %s4646_s4  ;;  %v5552_v14 = vpop.permute.xlu1 %4232  ;;  %v4029_v23 = vunpack.i.l.bf16 %v5264_v7  ;;  %v1287_v6 = vsel %vm1284_vm3, %v6882_v58, %v3994_v57  ;;  %v4075_v60 = vunpack.i.h.bf16 %v5294_v48  ;;  %v1304_v32 = vsel %vm1284_vm3, %v4825_v40, %v4035_v31 }
  0xf1   : > { %v4069_v7 = vunpack.i.l.bf16 %v5296_v22  ;;  %v5598_v11 = vsel %vm505_vm1, %v1183_v51, %v1184_v3  ;;  %v5601_v58 = vsel %vm505_vm1, %v1184_v3, %v1186_v56  ;;  %v1303_v48 = vsel %vm1284_vm3, %v4823_v39, %v4034_v12  ;;  %v6911_v51 = vld [vmem:[#allocation13_spill] sm:$0xff] }
  0xf2   : > { %v5558_v44 = vpop.permute.xlu0 %4227  ;;  %4522 = vrot.lane.b32.xlu1 %v5536_v2, %s4641_s20  ;;  %v4070_v33 = vunpack.i.h.bf16 %v5296_v22  ;;  %v4115_v57 = vunpack.i.h.bf16 %v5354_v29  ;;  %v1302_v31 = vsel %vm1284_vm3, %v4847_v63, %v4030_v19  ;;  %v1301_v3 = vsel %vm1284_vm3, %v6911_v51, %v4029_v23 }
  0xf3   : > { %v4110_v56 = vunpack.i.h.bf16 %v5362_v54  ;;  %v4109_v39 = vunpack.i.l.bf16 %v5362_v54  ;;  %v1320_v22 = vsel %vm1317_vm4, %v1287_v6, %v4074_v53  ;;  %v1321_v12 = vsel %vm1317_vm4, %v1288_v0, %v4075_v60  ;;  %v6912_v53 = vld [vmem:[#allocation21_spill] sm:$0xff] }
  0xf4   : > { %4517 = vrot.lane.b32.xlu0 %v5452_v59, %s4641_s20  ;;  %v5578_v46 = vpop.permute.xlu1 %4242  ;;  %v1318_v63 = vsel %vm1317_vm4, %v1285_v34, %v4069_v7  ;;  %v4150_v19 = vunpack.i.h.bf16 %v5435_v47  ;;  %v4149_v54 = vunpack.i.l.bf16 %v5435_v47  ;;  %v4194_v23 = vunpack.i.l.bf16 %v5484_v16 }
  0xf5   : > { %v1319_v0 = vsel %vm1317_vm4, %v1286_v9, %v4070_v33  ;;  %v1337_v6 = vsel %vm1317_vm4, %v1304_v32, %v4115_v57  ;;  %v4195_v60 = vunpack.i.h.bf16 %v5484_v16  ;;  %v1334_v34 = vsel %vm1317_vm4, %v1301_v3, %v4109_v39 }
  0xf6   : > { %v5590_v59 = vpop.permute.xlu0 %4237  ;;  %4532 = vrot.lane.b32.xlu1 %v4980_v28, %s4642_s21  ;;  %v4114_v28 = vunpack.i.l.bf16 %v5354_v29  ;;  %v4155_v29 = vunpack.i.h.bf16 %v5427_v52  ;;  %v1335_v47 = vsel %vm1317_vm4, %v1302_v31, %v4110_v56  ;;  %v4190_v7 = vunpack.i.h.bf16 %v5495_v50 }
  0xf7   : > { %v4189_v9 = vunpack.i.l.bf16 %v5495_v50  ;;  %v4215_v16 = vunpack.i.h.bf16 %v5511_v55  ;;  %v4214_v33 = vunpack.i.l.bf16 %v5511_v55  ;;  %v1352_v31 = vsel %vm1350_vm5, %v1319_v0, %v4150_v19 }
  0xf8   : > { %4527 = vrot.lane.b32.xlu0 %v6910_v37, %s4642_s21  ;;  %v5610_v40 = vpop.permute.xlu1 %4252  ;;  %v4154_v37 = vunpack.i.l.bf16 %v5427_v52  ;;  %v1336_v52 = vsel %vm1317_vm4, %v1303_v48, %v4114_v28  ;;  %v1354_v48 = vsel %vm1350_vm5, %v1321_v12, %v4155_v29  ;;  %v1351_v28 = vsel %vm1350_vm5, %v1318_v63, %v4149_v54 }
  0xf9   : > { %v5653_v50 = vsel %vm1350_vm5, %v1336_v52, %v4194_v23  ;;  %v4224_v3 = vunpack.i.l.bf16 %v5520_v35  ;;  %v5657_v56 = vsel %vm1350_vm5, %v1337_v6, %v4195_v60  ;;  %v4225_v55 = vunpack.i.h.bf16 %v5520_v35 }
  0xfa   : > { %v5622_v10 = vpop.permute.xlu0 %4247  ;;  %4542 = vrot.lane.b32.xlu1 %v5544_v43, %s4642_s21  ;;  %v1353_v32 = vsel %vm1350_vm5, %v1320_v22, %v4154_v37  ;;  %v4220_v39 = vunpack.i.h.bf16 %v5538_v45  ;;  %v4219_v22 = vunpack.i.l.bf16 %v5538_v45  ;;  %v1367_v12 = vsel %vm1350_vm5, %v1334_v34, %v4189_v9 }
  0xfb   : > { %v1368_v29 = vsel %vm1350_vm5, %v1335_v47, %v4190_v7  ;;  %v4235_v37 = vunpack.i.h.bf16 %v5552_v14  ;;  %v4234_v63 = vunpack.i.l.bf16 %v5552_v14  ;;  %v1384_v19 = vsel %vm1383_vm6, %v1351_v28, %v4214_v33  ;;  %v6913_v47 = vld [vmem:[#allocation27_spill] sm:$0xff] }
  0xfc   : > { %4537 = vrot.lane.b32.xlu0 %v6912_v53, %s4642_s21  ;;  %v5636_v51 = vpop.permute.xlu1 %4262  ;;  %v1385_v35 = vsel %vm1383_vm6, %v1352_v31, %v4215_v16  ;;  %v4245_v54 = vunpack.i.h.bf16 %v5578_v46  ;;  %v4244_v45 = vunpack.i.l.bf16 %v5578_v46  ;;  %v4240_v0 = vunpack.i.h.bf16 %v5590_v59 }
  0xfd   : > { %v4239_v6 = vunpack.i.l.bf16 %v5590_v59  ;;  %v4254_v14 = vunpack.i.l.bf16 %v5610_v40  ;;  %v1387_v52 = vsel %vm1383_vm6, %v1354_v48, %v4225_v55  ;;  %v1400_v60 = vsel %vm1383_vm6, %v1367_v12, %v4219_v22 }
  0xfe   : > { %v5646_v57 = vpop.permute.xlu0 %4257  ;;  %4552 = vrot.lane.b32.xlu1 %v5130_v17, %s4643_s22  ;;  %v1401_v46 = vsel %vm1383_vm6, %v1368_v29, %v4220_v39  ;;  %v4255_v34 = vunpack.i.h.bf16 %v5610_v40  ;;  %v1417_v9 = vsel %vm1416_vm7, %v1384_v19, %v4234_v63  ;;  %v4230_v59 = vunpack.i.h.bf16 %v5558_v44 }
  0xff   : > { %v4229_v33 = vunpack.i.l.bf16 %v5558_v44  ;;  %v1420_v28 = vsel %vm1416_vm7, %v1387_v52, %v4245_v54  ;;  %v1433_v40 = vsel %vm1416_vm7, %v1400_v60, %v4239_v6  ;;  %v1434_v55 = vsel %vm1416_vm7, %v1401_v46, %v4240_v0 }
 0x100   : > { %4547 = vrot.lane.b32.xlu0 %v5060_v26, %s4643_s22  ;;  %v4273_v17 = vpop.permute.xlu1 %4272  ;;  %v1386_v26 = vsel %vm1383_vm6, %v1353_v32, %v4224_v3  ;;  %v1418_v32 = vsel %vm1416_vm7, %v1385_v35, %v4235_v37  ;;  %v1450_v39 = vsel %vm1449_vm8, %v1417_v9, %v4254_v14  ;;  %v4264_v22 = vunpack.i.l.bf16 %v5636_v51  ;;  %v6914_v37 = vld [vmem:[#allocation6_spill] sm:$0xff] }
 0x101   : > { %v4274_v16 = vunpack.i.l.bf16 %v4273_v17  ;;  %v1419_v48 = vsel %vm1416_vm7, %v1386_v26, %v4244_v45  ;;  %v4275_v31 = vunpack.i.h.bf16 %v4273_v17  ;;  %v1451_v12 = vsel %vm1449_vm8, %v1418_v32, %v4255_v34  ;;  %v6916_v32 = vld [vmem:[#allocation8_spill] sm:$0xff] }
 0x102   : > { %v5672_v23 = vpop.permute.xlu0 %4267  ;;  %4562 = vrot.lane.b32.xlu1 %v5546_v41, %s4643_s22  ;;  %v4250_v44 = vunpack.i.h.bf16 %v5622_v10  ;;  %v4265_v29 = vunpack.i.h.bf16 %v5636_v51  ;;  %v4259_v17 = vunpack.i.l.bf16 %v5646_v57  ;;  %v4260_v63 = vunpack.i.h.bf16 %v5646_v57 }
 0x103   : > { %v1483_v54 = vsel %vm1482_vm9, %v1450_v39, %v4274_v16  ;;  %v6915_v51 = vpack.i.bf16 %v5526_v38, %v5524_v8  ;;  %v1484_v14 = vsel %vm1482_vm9, %v1451_v12, %v4275_v31  ;;  %v4249_v52 = vunpack.i.l.bf16 %v5622_v10 }
 0x104   : > { %4557 = vrot.lane.b32.xlu0 %v6913_v47, %s4643_s22  ;;  %v4283_v7 = vpop.permute.xlu1 %4282  ;;  %v1452_v60 = vsel %vm1449_vm8, %v1419_v48, %v4264_v22  ;;  %v1453_v34 = vsel %vm1449_vm8, %v1420_v28, %v4265_v29  ;;  %v1467_v16 = vsel %vm1449_vm8, %v1434_v55, %v4260_v63  ;;  %v4270_v10 = vunpack.i.h.bf16 %v5672_v23 }
 0x105   : > { %v4285_v45 = vunpack.i.h.bf16 %v4283_v7  ;;  %v4284_v26 = vunpack.i.l.bf16 %v4283_v7  ;;  %v1466_v7 = vsel %vm1449_vm8, %v1433_v40, %v4259_v17  ;;  %v4269_v39 = vunpack.i.l.bf16 %v5672_v23 }
 0x106   : > { %v4278_v3 = vpop.permute.xlu0 %4277  ;;  %4572 = vrot.lane.b32.xlu1 %v5536_v2, %s4644_s23  ;;  %vm3700_vm0 = vcmask 1044484   ;;  %vm3702_vm1 = vcmask 1045509  }
 0x107   : > { %v4279_v0 = vunpack.i.l.bf16 %v4278_v3  ;;  %v4280_v9 = vunpack.i.h.bf16 %v4278_v3  ;;  %v1485_v22 = vsel %vm1482_vm9, %v1452_v60, %v4284_v26  ;;  %v1486_v28 = vsel %vm1482_vm9, %v1453_v34, %v4285_v45 }
 0x108   : > { %4567 = vrot.lane.b32.xlu0 %v6914_v37, %s4644_s23  ;;  %v4293_v2 = vpop.permute.xlu1 %4292  ;;  %v4621_v34 = vpack.i.bf16 %v5601_v58, %v5598_v11  ;;  %v6921_v11 = vld [vmem:[#allocation23_spill] sm:$0xff] }
 0x109   : > { %v4295_v19 = vunpack.i.h.bf16 %v4293_v2  ;;  %v4294_v35 = vunpack.i.l.bf16 %v4293_v2  ;;  %v1499_v3 = vsel %vm1482_vm9, %v1466_v7, %v4279_v0  ;;  %v4045_v58 = vunpack.i.h.bf16 %v6921_v11 }
 0x10a   : > { %v4288_v6 = vpop.permute.xlu0 %4287  ;;  %4582 = vrot.lane.b32.xlu1 %v6915_v51, %s4644_s23 }
 0x10b   : > { %v1516_v57 = vsel %vm1515_vm10, %v1483_v54, %v4294_v35  ;;  %v1517_v46 = vsel %vm1515_vm10, %v1484_v14, %v4295_v19  ;;  %v4290_v37 = vunpack.i.h.bf16 %v4288_v6  ;;  %v4289_v23 = vunpack.i.l.bf16 %v4288_v6 }
 0x10c   : > { %4577 = vrot.lane.b32.xlu0 %v6916_v32, %s4644_s23  ;;  %v4303_v38 = vpop.permute.xlu1 %4302  ;;  %v1548_v8 = vpack.c.bf16 %v1517_v46, %v1516_v57  ;;  %v1403_v19 = vsel %vm1383_vm6, %v5657_v56, %v4230_v59  ;;  %v1402_v35 = vsel %vm1383_vm6, %v5653_v50, %v4229_v33 }
 0x10d   : > { %v4305_v31 = vunpack.i.h.bf16 %v4303_v38  ;;  %v4304_v48 = vunpack.i.l.bf16 %v4303_v38  ;;  %v1435_v26 = vsel %vm1416_vm7, %v1402_v35, %v4249_v52  ;;  %v1436_v0 = vsel %vm1416_vm7, %v1403_v19, %v4250_v44  ;;  %v6918_v44 = vld [vmem:[#allocation18_spill] sm:$0xff]  ;;  %v6928_v19 = vld [vmem:[#allocation4_spill] sm:$0xff] }
 0x10e   : > { %v4298_v12 = vpop.permute.xlu0 %4297  ;;  %4592 = vrot.lane.b32.xlu1 %v5544_v43, %s4645_s28  ;;  %3928 = vmatprep.mubr.msk.bf16.mxu0 %vm1591_vm11, %v1548_v8  ;;  %v1500_v43 = vsel %vm1482_vm9, %v1467_v16, %v4280_v9  ;;  %v1468_v59 = vsel %vm1449_vm8, %v1435_v26, %v4269_v39  ;;  %v1469_v50 = vsel %vm1449_vm8, %v1436_v0, %v4270_v10  ;;  %v6919_v9 = vld [vmem:[#allocation10_spill] sm:$0xff]  ;;  %v6920_v16 = vld [vmem:[#allocation7_spill] sm:$0xff]  ;;  %v6923_v39 = vld [vmem:[#allocation9_spill] sm:$0xff] }
 0x10f   : > { %v1518_v40 = vsel %vm1515_vm10, %v1485_v22, %v4304_v48  ;;  %v1519_v55 = vsel %vm1515_vm10, %v1486_v28, %v4305_v31  ;;  %v4300_v29 = vunpack.i.h.bf16 %v4298_v12  ;;  %v4299_v17 = vunpack.i.l.bf16 %v4298_v12  ;;  %v6922_v31 = vld [vmem:[#allocation26_spill] sm:$0xff]  ;;  %v6924_v12 = vld [vmem:[#allocation3_spill] sm:$0xff]  ;;  %v6930_v26 = vld [vmem:[#allocation12_spill] sm:$0xff] }
 0x110   : > { %v1549_v2 = vpack.c.bf16 %v1519_v55, %v1518_v40  ;;  %4587 = vrot.lane.b32.xlu0 %v6912_v53, %s4645_s28  ;;  %v5732_v63 = vpop.permute.xlu1 %4312  ;;  %v6917_v53 = vpack.i.bf16 %v5566_v49, %v5563_v62  ;;  %v1501_v14 = vsel %vm1482_vm9, %v1468_v59, %v4289_v23  ;;  %v1502_v52 = vsel %vm1482_vm9, %v1469_v50, %v4290_v37  ;;  %v6925_v40 = vld [vmem:[#allocation2_spill] sm:$0xff] }
 0x111   : > { %v1532_v54 = vsel %vm1515_vm10, %v1499_v3, %v4299_v17  ;;  %v1533_v45 = vsel %vm1515_vm10, %v1500_v43, %v4300_v29  ;;  %v4000_v32 = vunpack.i.h.bf16 %v6919_v9  ;;  %v3999_v38 = vunpack.i.l.bf16 %v6919_v9  ;;  %v6926_v29 = vld [vmem:[#allocation22_spill] sm:$0xff] }
 0x112   : > { %v4308_v6 = vpop.permute.xlu0 %4307  ;;  %4602 = vrot.lane.b32.xlu1 %v6917_v53, %s4645_s28  ;;  %3929 = vmatmul.mubr.msk.bf16.vlgmr.msra.gmra.mrb[0].mxu0 %vm1591_vm11, %v1549_v2  ;;  %v1556_v56 = vpack.c.bf16 %v1533_v45, %v1532_v54  ;;  %v4004_v10 = vunpack.i.l.bf16 %v6920_v16  ;;  %v4040_v22 = vunpack.i.h.bf16 %v6923_v39  ;;  %v4039_v28 = vunpack.i.l.bf16 %v6923_v39  ;;  %v6927_v2 = vld [vmem:[#allocation5_spill] sm:$0xff] }
 0x113   : > { %v4310_v33 = vunpack.i.h.bf16 %v4308_v6  ;;  %v4309_v51 = vunpack.i.l.bf16 %v4308_v6  ;;  %v1290_v3 = vsel %vm1284_vm3, %v6924_v12, %v4000_v32  ;;  %v1289_v55 = vsel %vm1284_vm3, %v6925_v40, %v3999_v38  ;;  %v6929_v54 = vld [vmem:[#allocation17_spill] sm:$0xff]  ;;  %v6931_v6 = vld [vmem:[#allocation16_spill] sm:$0xff] }
 0x114   : > { %4597 = vrot.lane.b32.xlu0 %v6918_v44, %s4645_s28  ;;  %3944 = vmatprep.mubr.msk.bf16.mxu1 %vm1591_vm11, %v1556_v56  ;;  %v5755_v62 = vpop.permute.xlu1 %4322  ;;  %v4085_v17 = vunpack.i.h.bf16 %v6926_v29  ;;  %v4084_v37 = vunpack.i.l.bf16 %v6926_v29  ;;  %v1291_v35 = vsel %vm1284_vm3, %v6928_v19, %v4004_v10  ;;  %v1308_v45 = vsel %vm1284_vm3, %v6929_v54, %v4045_v58 }
 0x115   : > { %v1534_v49 = vsel %vm1515_vm10, %v1501_v14, %v4309_v51  ;;  %v1535_v60 = vsel %vm1515_vm10, %v1502_v52, %v4310_v33  ;;  %v4080_v0 = vunpack.i.h.bf16 %v6930_v26  ;;  %v4079_v56 = vunpack.i.l.bf16 %v6930_v26  ;;  %v6932_v51 = vld [vmem:[#allocation20_spill] sm:$0xff]  ;;  %v6933_v52 = vld [vmem:[#allocation19_spill] sm:$0xff] }
 0x116   : > { %v1557_v57 = vpack.c.bf16 %v1535_v60, %v1534_v49  ;;  %v5759_v46 = vpop.permute.xlu0 %4317  ;;  %4612 = vrot.lane.b32.xlu1 %v5546_v41, %s4646_s4  ;;  %v4005_v41 = vunpack.i.h.bf16 %v6920_v16  ;;  %v4125_v59 = vunpack.i.h.bf16 %v5370_v18  ;;  %v4124_v50 = vunpack.i.l.bf16 %v5370_v18 }
 0x117   : > { %v1306_v14 = vsel %vm1284_vm3, %v6932_v51, %v4040_v22  ;;  %v1305_v44 = vsel %vm1284_vm3, %v6933_v52, %v4039_v28  ;;  %v4120_v49 = vunpack.i.h.bf16 %v5374_v42  ;;  %v4119_v60 = vunpack.i.l.bf16 %v5374_v42 }
 0x118   : > { %4607 = vrot.lane.b32.xlu0 %v6913_v47, %s4646_s4  ;;  %3945 = vmatmul.mubr.msk.bf16.vlgmr.msra.gmra.mrb[0].mxu1 %vm1591_vm11, %v1557_v57  ;;  %v5768_v7 = vpop.permute.xlu1 %4332  ;;  %v4044_v47 = vunpack.i.l.bf16 %v6921_v11  ;;  %v1292_v43 = vsel %vm1284_vm3, %v6927_v2, %v4005_v41  ;;  %v4165_v9 = vunpack.i.h.bf16 %v5441_v24  ;;  %v4164_v18 = vunpack.i.l.bf16 %v5441_v24 }
 0x119   : > { %v1325_v57 = vsel %vm1317_vm4, %v1292_v43, %v4085_v17  ;;  %v1323_v38 = vsel %vm1317_vm4, %v1290_v3, %v4080_v0  ;;  %v4160_v16 = vunpack.i.h.bf16 %v5443_v61  ;;  %v4159_v41 = vunpack.i.l.bf16 %v5443_v61 }
 0x11a   : > { %v5772_v8 = vpop.permute.xlu0 %4327  ;;  %4622 = vrot.lane.b32.xlu1 %v4621_v34, %s4646_s4  ;;  %v1307_v53 = vsel %vm1284_vm3, %v6931_v6, %v4044_v47  ;;  %v1324_v34 = vsel %vm1317_vm4, %v1291_v35, %v4084_v37  ;;  %v4204_v10 = vunpack.i.l.bf16 %v5502_v5  ;;  %v1322_v42 = vsel %vm1317_vm4, %v1289_v55, %v4079_v56 }
 0x11b   : > { %v1341_v11 = vsel %vm1317_vm4, %v1308_v45, %v4125_v59  ;;  %v1340_v58 = vsel %vm1317_vm4, %v1307_v53, %v4124_v50  ;;  %v4205_v47 = vunpack.i.h.bf16 %v5502_v5  ;;  %v1338_v24 = vsel %vm1317_vm4, %v1305_v44, %v4119_v60 }
 0x11c   : > { %4617 = vrot.lane.b32.xlu0 %v6922_v31, %s4646_s4  ;;  %v5781_v48 = vpop.permute.xlu1 %4342  ;;  %v1339_v39 = vsel %vm1317_vm4, %v1306_v14, %v4120_v49  ;;  %v4200_v22 = vunpack.i.h.bf16 %v5504_v13  ;;  %v4199_v61 = vunpack.i.l.bf16 %v5504_v13  ;;  %v1357_v28 = vsel %vm1350_vm5, %v1324_v34, %v4164_v18 }
 0x11d   : > { %v1358_v12 = vsel %vm1350_vm5, %v1325_v57, %v4165_v9  ;;  %v4315_v3 = vunpack.i.h.bf16 %v5732_v63  ;;  %v4314_v40 = vunpack.i.l.bf16 %v5732_v63  ;;  %v1355_v5 = vsel %vm1350_vm5, %v1322_v42, %v4159_v41 }
 0x11e   : > { %v5791_v23 = vpop.permute.xlu0 %4337  ;;  %v1356_v29 = vsel %vm1350_vm5, %v1323_v38, %v4160_v16  ;;  %v5842_v17 = vsel %vm1350_vm5, %v1340_v58, %v4204_v10  ;;  %v4325_v37 = vunpack.i.h.bf16 %v5755_v62  ;;  %v5846_v13 = vsel %vm1350_vm5, %v1341_v11, %v4205_v47 }
 0x11f   : > { %v4324_v2 = vunpack.i.l.bf16 %v5755_v62  ;;  %v4320_v43 = vunpack.i.h.bf16 %v5759_v46  ;;  %v4319_v63 = vunpack.i.l.bf16 %v5759_v46  ;;  %v1371_v35 = vsel %vm1350_vm5, %v1338_v24, %v4199_v61 }
 0x120   : > { %v5805_v33 = vpop.permute.xlu1 %4352  ;;  %v1372_v54 = vsel %vm1350_vm5, %v1339_v39, %v4200_v22  ;;  %v4335_v45 = vunpack.i.h.bf16 %v5768_v7  ;;  %v4334_v26 = vunpack.i.l.bf16 %v5768_v7  ;;  %v1388_v0 = vsel %vm1383_vm6, %v1355_v5, %v4314_v40 }
 0x121   : > { %v1389_v6 = vsel %vm1383_vm6, %v1356_v29, %v4315_v3  ;;  %v4345_v53 = vunpack.i.h.bf16 %v5781_v48  ;;  %v4344_v62 = vunpack.i.l.bf16 %v5781_v48  ;;  %v1391_v46 = vsel %vm1383_vm6, %v1358_v12, %v4325_v37 }
 0x122   : > { %v5817_v32 = vpop.permute.xlu0 %4347  ;;  %v4340_v59 = vunpack.i.h.bf16 %v5791_v23  ;;  %v4339_v50 = vunpack.i.l.bf16 %v5791_v23  ;;  %v4354_v51 = vunpack.i.l.bf16 %v5805_v33  ;;  %v1390_v7 = vsel %vm1383_vm6, %v1357_v28, %v4324_v2 }
 0x123   : > { %v1404_v14 = vsel %vm1383_vm6, %v1371_v35, %v4319_v63  ;;  %v1405_v52 = vsel %vm1383_vm6, %v1372_v54, %v4320_v43  ;;  %v4355_v44 = vunpack.i.h.bf16 %v5805_v33  ;;  %v1421_v48 = vsel %vm1416_vm7, %v1388_v0, %v4334_v26 }
 0x124   : > { %v5827_v31 = vpop.permute.xlu1 %4362  ;;  %v1422_v60 = vsel %vm1416_vm7, %v1389_v6, %v4335_v45  ;;  %v4330_v57 = vunpack.i.h.bf16 %v5772_v8  ;;  %v4329_v23 = vunpack.i.l.bf16 %v5772_v8  ;;  %v1423_v9 = vsel %vm1416_vm7, %v1390_v7, %v4344_v62 }
 0x125   : > { %v1424_v18 = vsel %vm1416_vm7, %v1391_v46, %v4345_v53  ;;  %v1437_v41 = vsel %vm1416_vm7, %v1404_v14, %v4339_v50  ;;  %v1438_v33 = vsel %vm1416_vm7, %v1405_v52, %v4340_v59  ;;  %v1454_v10 = vsel %vm1449_vm8, %v1421_v48, %v4354_v51 }
 0x126   : > { %v5837_v55 = vpop.permute.xlu0 %4357  ;;  %v4364_v42 = vunpack.i.l.bf16 %v5827_v31  ;;  %v1455_v11 = vsel %vm1449_vm8, %v1422_v60, %v4355_v44  ;;  %v4350_v58 = vunpack.i.h.bf16 %v5817_v32  ;;  %v4365_v8 = vunpack.i.h.bf16 %v5827_v31 }
 0x127   : > { %v4359_v47 = vunpack.i.l.bf16 %v5837_v55  ;;  %v4360_v39 = vunpack.i.h.bf16 %v5837_v55  ;;  %v4349_v37 = vunpack.i.l.bf16 %v5817_v32  ;;  %v1407_v60 = vsel %vm1383_vm6, %v5846_v13, %v4330_v57 }
 0x128   : > { %v4373_v19 = vpop.permute.xlu1 %4372  ;;  %v1456_v2 = vsel %vm1449_vm8, %v1423_v9, %v4364_v42  ;;  %v1457_v55 = vsel %vm1449_vm8, %v1424_v18, %v4365_v8  ;;  %vm3706_vm3 = vcmask 1047559  }
 0x129   : > { %v4374_v34 = vunpack.i.l.bf16 %v4373_v19  ;;  %v4375_v38 = vunpack.i.h.bf16 %v4373_v19  ;;  %v1470_v63 = vsel %vm1449_vm8, %v1437_v41, %v4359_v47  ;;  %v1471_v45 = vsel %vm1449_vm8, %v1438_v33, %v4360_v39 }
 0x12a   : > { %v5859_v56 = vpop.permute.xlu0 %4367 }
 0x12b   : > { %v1487_v22 = vsel %vm1482_vm9, %v1454_v10, %v4374_v34  ;;  %v1488_v12 = vsel %vm1482_vm9, %v1455_v11, %v4375_v38  ;;  %v4370_v26 = vunpack.i.h.bf16 %v5859_v56  ;;  %v4369_v32 = vunpack.i.l.bf16 %v5859_v56 }
 0x12c   : > { %v4383_v49 = vpop.permute.xlu1 %4382  ;;  %v1406_v34 = vsel %vm1383_vm6, %v5842_v17, %v4329_v23 }
 0x12d   : > { %v4385_v3 = vunpack.i.h.bf16 %v4383_v49  ;;  %v4384_v40 = vunpack.i.l.bf16 %v4383_v49  ;;  %v1439_v38 = vsel %vm1416_vm7, %v1406_v34, %v4349_v37 }
 0x12e   : > { %v4378_v16 = vpop.permute.xlu0 %4377  ;;  %v1472_v10 = vsel %vm1449_vm8, %v1439_v38, %v4369_v32 }
 0x12f   : > { %v4379_v5 = vunpack.i.l.bf16 %v4378_v16  ;;  %v4380_v19 = vunpack.i.h.bf16 %v4378_v16  ;;  %v1489_v53 = vsel %vm1482_vm9, %v1456_v2, %v4384_v40  ;;  %v1490_v62 = vsel %vm1482_vm9, %v1457_v55, %v4385_v3 }
 0x130   : > { %v4393_v24 = vpop.permute.xlu1 %4392  ;;  %v1440_v16 = vsel %vm1416_vm7, %v1407_v60, %v4350_v58 }
 0x131   : > { %v4395_v61 = vunpack.i.h.bf16 %v4393_v24  ;;  %v4394_v28 = vunpack.i.l.bf16 %v4393_v24  ;;  %v1503_v46 = vsel %vm1482_vm9, %v1470_v63, %v4379_v5  ;;  %v1504_v52 = vsel %vm1482_vm9, %v1471_v45, %v4380_v19 }
 0x132   : > { %v4388_v29 = vpop.permute.xlu0 %4387  ;;  %v1473_v42 = vsel %vm1449_vm8, %v1440_v16, %v4370_v26 }
 0x133   : > { %v1520_v31 = vsel %vm1515_vm10, %v1487_v22, %v4394_v28  ;;  %v1521_v43 = vsel %vm1515_vm10, %v1488_v12, %v4395_v61  ;;  %v4390_v44 = vunpack.i.h.bf16 %v4388_v29  ;;  %v4389_v49 = vunpack.i.l.bf16 %v4388_v29 }
 0x134   : > { %v1550_v35 = vpack.c.bf16 %v1521_v43, %v1520_v31  ;;  %v4403_v54 = vpop.permute.xlu1 %4402 }
 0x135   : > { %v4405_v0 = vunpack.i.h.bf16 %v4403_v54  ;;  %v4404_v6 = vunpack.i.l.bf16 %v4403_v54  ;;  %v1505_v17 = vsel %vm1482_vm9, %v1472_v10, %v4389_v49  ;;  %v1506_v23 = vsel %vm1482_vm9, %v1473_v42, %v4390_v44 }
 0x136   : > { %v4398_v59 = vpop.permute.xlu0 %4397  ;;  %3932 = vmatprep.mubr.msk.bf16.mxu0 %vm1591_vm11, %v1550_v35 }
 0x137   : > { %v1522_v50 = vsel %vm1515_vm10, %v1489_v53, %v4404_v6  ;;  %v1523_v51 = vsel %vm1515_vm10, %v1490_v62, %v4405_v0  ;;  %v4400_v7 = vunpack.i.h.bf16 %v4398_v59  ;;  %v4399_v14 = vunpack.i.l.bf16 %v4398_v59 }
 0x138   : > { %v1551_v56 = vpack.c.bf16 %v1523_v51, %v1522_v50  ;;  %v4413_v48 = vpop.permute.xlu1 %4412 }
 0x139   : > { %v1536_v9 = vsel %vm1515_vm10, %v1503_v46, %v4399_v14  ;;  %v1537_v18 = vsel %vm1515_vm10, %v1504_v52, %v4400_v7  ;;  %v4415_v5 = vunpack.i.h.bf16 %v4413_v48  ;;  %v4414_v29 = vunpack.i.l.bf16 %v4413_v48 }
 0x13a   : > { %v1558_v41 = vpack.c.bf16 %v1537_v18, %v1536_v9  ;;  %v4408_v33 = vpop.permute.xlu0 %4407  ;;  %3933 = vmatmul.mubr.msk.bf16.gmra.mrb[4].mxu0 %vm1591_vm11, %v1551_v56 }
 0x13b   : > { %v4410_v13 = vunpack.i.h.bf16 %v4408_v33  ;;  %v4409_v57 = vunpack.i.l.bf16 %v4408_v33  ;;  %v1378_v26 = vsel %vm1350_vm5, %v5390_v4, %v4415_v5  ;;  %v1377_v0 = vsel %vm1350_vm5, %v5393_v1, %v4414_v29 }
 0x13c   : > { %3948 = vmatprep.mubr.msk.bf16.mxu1 %vm1591_vm11, %v1558_v41  ;;  %v4423_v11 = vpop.permute.xlu1 %4422 }
 0x13d   : > { %v1538_v8 = vsel %vm1515_vm10, %v1505_v17, %v4409_v57  ;;  %v1539_v58 = vsel %vm1515_vm10, %v1506_v23, %v4410_v13  ;;  %v4425_v2 = vunpack.i.h.bf16 %v4423_v11  ;;  %v4424_v31 = vunpack.i.l.bf16 %v4423_v11 }
 0x13e   : > { %v1559_v47 = vpack.c.bf16 %v1539_v58, %v1538_v8  ;;  %v4418_v24 = vpop.permute.xlu0 %4417 }
 0x13f   : > { %v4420_v43 = vunpack.i.h.bf16 %v4418_v24  ;;  %v4419_v55 = vunpack.i.l.bf16 %v4418_v24  ;;  %v1408_v62 = vsel %vm1383_vm6, %v5530_v27, %v4424_v31  ;;  %v1409_v46 = vsel %vm1383_vm6, %v5534_v36, %v4425_v2 }
 0x140   : > { %3949 = vmatmul.mubr.msk.bf16.gmra.mrb[4].mxu1 %vm1591_vm11, %v1559_v47  ;;  %v4433_v39 = vpop.permute.xlu1 %4432 }
 0x141   : > { %v4435_v63 = vunpack.i.h.bf16 %v4433_v39  ;;  %v4434_v19 = vunpack.i.l.bf16 %v4433_v39  ;;  %v1392_v59 = vsel %vm1383_vm6, %v5466_v25, %v4419_v55  ;;  %v1393_v50 = vsel %vm1383_vm6, %v5470_v30, %v4420_v43 }
 0x142   : > { %v4428_v22 = vpop.permute.xlu0 %4427 }
 0x143   : > { %v4430_v54 = vunpack.i.h.bf16 %v4428_v22  ;;  %v4429_v45 = vunpack.i.l.bf16 %v4428_v22  ;;  %v1410_v4 = vsel %vm1383_vm6, %v1377_v0, %v4434_v19  ;;  %v1411_v1 = vsel %vm1383_vm6, %v1378_v26, %v4435_v63 }
 0x144   : > { %v4443_v61 = vpop.permute.xlu1 %4442 }
 0x145   : > { %v4445_v6 = vunpack.i.h.bf16 %v4443_v61  ;;  %v4444_v32 = vunpack.i.l.bf16 %v4443_v61  ;;  %v1395_v52 = vsel %vm1383_vm6, %v5460_v21, %v4430_v54  ;;  %v1394_v27 = vsel %vm1383_vm6, %v5456_v20, %v4429_v45 }
 0x146   : > { %v4438_v28 = vpop.permute.xlu0 %4437 }
 0x147   : > { %v4440_v51 = vunpack.i.h.bf16 %v4438_v28  ;;  %v4439_v7 = vunpack.i.l.bf16 %v4438_v28  ;;  %v1441_v25 = vsel %vm1416_vm7, %v1408_v62, %v4444_v32  ;;  %v1442_v49 = vsel %vm1416_vm7, %v1409_v46, %v4445_v6 }
 0x148   : > { %v4453_v12 = vpop.permute.xlu1 %4452 }
 0x149   : > { %v4455_v36 = vunpack.i.h.bf16 %v4453_v12  ;;  %v4454_v44 = vunpack.i.l.bf16 %v4453_v12  ;;  %v1425_v38 = vsel %vm1416_vm7, %v1392_v59, %v4439_v7  ;;  %v1426_v21 = vsel %vm1416_vm7, %v1393_v50, %v4440_v51 }
 0x14a   : > { %v4448_v3 = vpop.permute.xlu0 %4447 }
 0x14b   : > { %v4450_v30 = vunpack.i.h.bf16 %v4448_v3  ;;  %v4449_v56 = vunpack.i.l.bf16 %v4448_v3  ;;  %v1443_v33 = vsel %vm1416_vm7, %v1410_v4, %v4454_v44  ;;  %v1444_v10 = vsel %vm1416_vm7, %v1411_v1, %v4455_v36 }
 0x14c   : > { %v4463_v40 = vpop.permute.xlu1 %4462 }
 0x14d   : > { %v4465_v60 = vunpack.i.h.bf16 %v4463_v40  ;;  %v4464_v34 = vunpack.i.l.bf16 %v4463_v40  ;;  %v1427_v57 = vsel %vm1416_vm7, %v1394_v27, %v4449_v56  ;;  %v1428_v17 = vsel %vm1416_vm7, %v1395_v52, %v4450_v30 }
 0x14e   : > { %v4458_v37 = vpop.permute.xlu0 %4457 }
 0x14f   : > { %v4460_v9 = vunpack.i.h.bf16 %v4458_v37  ;;  %v4459_v18 = vunpack.i.l.bf16 %v4458_v37  ;;  %v1474_v58 = vsel %vm1449_vm8, %v1441_v25, %v4464_v34  ;;  %v1475_v47 = vsel %vm1449_vm8, %v1442_v49, %v4465_v60 }
 0x150   : > { %v4473_v35 = vpop.permute.xlu1 %4472 }
 0x151   : > { %v4475_v16 = vunpack.i.h.bf16 %v4473_v35  ;;  %v4474_v41 = vunpack.i.l.bf16 %v4473_v35  ;;  %v1458_v24 = vsel %vm1449_vm8, %v1425_v38, %v4459_v18  ;;  %v1459_v39 = vsel %vm1449_vm8, %v1426_v21, %v4460_v9 }
 0x152   : > { %v5923_v53 = vpop.permute.xlu0 %4467 }
 0x153   : > { %v4469_v42 = vunpack.i.l.bf16 %v5923_v53  ;;  %v1476_v22 = vsel %vm1449_vm8, %v1443_v33, %v4474_v41  ;;  %v1477_v61 = vsel %vm1449_vm8, %v1444_v10, %v4475_v16  ;;  %v4470_v28 = vunpack.i.h.bf16 %v5923_v53 }
 0x154   : > { %v4483_v14 = vpop.permute.xlu1 %4482 }
 0x155   : > { %v4484_v13 = vunpack.i.l.bf16 %v4483_v14  ;;  %v4485_v23 = vunpack.i.h.bf16 %v4483_v14  ;;  %v1460_v40 = vsel %vm1449_vm8, %v1427_v57, %v4469_v42  ;;  %v1461_v4 = vsel %vm1449_vm8, %v1428_v17, %v4470_v28 }
 0x156   : > { %v4478_v48 = vpop.permute.xlu0 %4477 }
 0x157   : > { %v4479_v11 = vunpack.i.l.bf16 %v4478_v48  ;;  %v4480_v12 = vunpack.i.h.bf16 %v4478_v48  ;;  %v1507_v5 = vsel %vm1482_vm9, %v1474_v58, %v4484_v13  ;;  %v1508_v2 = vsel %vm1482_vm9, %v1475_v47, %v4485_v23 }
 0x158   : > { %v4493_v20 = vpop.permute.xlu1 %4492 }
 0x159   : > { %v1491_v31 = vsel %vm1482_vm9, %v1458_v24, %v4479_v11  ;;  %v4495_v43 = vunpack.i.h.bf16 %v4493_v20  ;;  %v4494_v55 = vunpack.i.l.bf16 %v4493_v20  ;;  %v1492_v26 = vsel %vm1482_vm9, %v1459_v39, %v4480_v12  ;;  %v6934_v12 = vld [vmem:[#allocation25_spill] sm:$0xff] }
 0x15a   : > { %v4488_v8 = vpop.permute.xlu0 %4487 }
 0x15b   : > { %v4490_v0 = vunpack.i.h.bf16 %v4488_v8  ;;  %v4489_v6 = vunpack.i.l.bf16 %v4488_v8  ;;  %v1509_v1 = vsel %vm1482_vm9, %v1476_v22, %v4494_v55  ;;  %v1510_v51 = vsel %vm1482_vm9, %v1477_v61, %v4495_v43 }
 0x15c   : > { %v4503_v3 = vpop.permute.xlu1 %4502 }
 0x15d   : > { %v4505_v29 = vunpack.i.h.bf16 %v4503_v3  ;;  %v4504_v37 = vunpack.i.l.bf16 %v4503_v3  ;;  %v1493_v25 = vsel %vm1482_vm9, %v1460_v40, %v4489_v6  ;;  %v1494_v49 = vsel %vm1482_vm9, %v1461_v4, %v4490_v0 }
 0x15e   : > { %v4498_v63 = vpop.permute.xlu0 %4497 }
 0x15f   : > { %v1540_v19 = vsel %vm1515_vm10, %v1507_v5, %v4504_v37  ;;  %v1541_v35 = vsel %vm1515_vm10, %v1508_v2, %v4505_v29  ;;  %v4500_v54 = vunpack.i.h.bf16 %v4498_v63  ;;  %v4499_v45 = vunpack.i.l.bf16 %v4498_v63  ;;  %v6935_v29 = vld [vmem:[#allocation11_spill] sm:$0xff]  ;;  %v6936_v2 = vld [vmem:[#allocation24_spill] sm:$0xff] }
 0x160   : > { %v1560_v32 = vpack.c.bf16 %v1541_v35, %v1540_v19  ;;  %v4513_v53 = vpop.permute.xlu1 %4512 }
 0x161   : > { %v1524_v62 = vsel %vm1515_vm10, %v1491_v31, %v4499_v45  ;;  %v1525_v46 = vsel %vm1515_vm10, %v1492_v26, %v4500_v54  ;;  %v4515_v59 = vunpack.i.h.bf16 %v4513_v53  ;;  %v4514_v50 = vunpack.i.l.bf16 %v4513_v53  ;;  %v6938_v45 = vld [vmem:[#allocation30_spill] sm:$0xff] }
 0x162   : > { %v1552_v7 = vpack.c.bf16 %v1525_v46, %v1524_v62  ;;  %v4508_v14 = vpop.permute.xlu0 %4507  ;;  %3952 = vmatprep.mubr.msk.bf16.mxu1 %vm1591_vm11, %v1560_v32  ;;  %v6939_v46 = vld [vmem:[#allocation28_spill] sm:$0xff] }
 0x163   : > { %v1542_v52 = vsel %vm1515_vm10, %v1509_v1, %v4514_v50  ;;  %v1543_v27 = vsel %vm1515_vm10, %v1510_v51, %v4515_v59  ;;  %v4510_v36 = vunpack.i.h.bf16 %v4508_v14  ;;  %v4509_v44 = vunpack.i.l.bf16 %v4508_v14  ;;  %v6940_v50 = vld [vmem:[#allocation15_spill] sm:$0xff] }
 0x164   : > { %v1561_v30 = vpack.c.bf16 %v1543_v27, %v1542_v52  ;;  %3936 = vmatprep.mubr.msk.bf16.mxu0 %vm1591_vm11, %v1552_v7  ;;  %v4523_v56 = vpop.permute.xlu1 %4522 }
 0x165   : > { %v1526_v48 = vsel %vm1515_vm10, %v1493_v25, %v4509_v44  ;;  %v1527_v60 = vsel %vm1515_vm10, %v1494_v49, %v4510_v36  ;;  %v4525_v13 = vunpack.i.h.bf16 %v4523_v56  ;;  %v4524_v57 = vunpack.i.l.bf16 %v4523_v56 }
 0x166   : > { %v1553_v34 = vpack.c.bf16 %v1527_v60, %v1526_v48  ;;  %v4518_v9 = vpop.permute.xlu0 %4517  ;;  %3953 = vmatmul.mubr.msk.bf16.gmra.mrb[8].mxu1 %vm1591_vm11, %v1561_v30 }
 0x167   : > { %v4520_v17 = vunpack.i.h.bf16 %v4518_v9  ;;  %v4519_v23 = vunpack.i.l.bf16 %v4518_v9  ;;  %v1382_v28 = vsel %vm1350_vm5, %v5416_v15, %v4525_v13  ;;  %v1381_v3 = vsel %vm1350_vm5, %v6934_v12, %v4524_v57  ;;  %v6937_v15 = vld [vmem:[#allocation29_spill] sm:$0xff] }
 0x168   : > { %3937 = vmatmul.mubr.msk.bf16.gmra.mrb[8].mxu0 %vm1591_vm11, %v1553_v34  ;;  %v4533_v18 = vpop.permute.xlu1 %4532 }
 0x169   : > { %v4535_v8 = vunpack.i.h.bf16 %v4533_v18  ;;  %v4534_v58 = vunpack.i.l.bf16 %v4533_v18  ;;  %v1379_v37 = vsel %vm1350_vm5, %v6935_v29, %v4519_v23  ;;  %v1380_v31 = vsel %vm1350_vm5, %v6936_v2, %v4520_v17 }
 0x16a   : > { %v4528_v38 = vpop.permute.xlu0 %4527 }
 0x16b   : > { %v4530_v47 = vunpack.i.h.bf16 %v4528_v38  ;;  %v4529_v24 = vunpack.i.l.bf16 %v4528_v38  ;;  %v1412_v19 = vsel %vm1383_vm6, %v1379_v37, %v4534_v58  ;;  %v1413_v35 = vsel %vm1383_vm6, %v1380_v31, %v4535_v8 }
 0x16c   : > { %v4543_v21 = vpop.permute.xlu1 %4542 }
 0x16d   : > { %v4545_v39 = vunpack.i.h.bf16 %v4543_v21  ;;  %v4544_v22 = vunpack.i.l.bf16 %v4543_v21  ;;  %v1396_v54 = vsel %vm1383_vm6, %v6937_v15, %v4529_v24  ;;  %v1397_v26 = vsel %vm1383_vm6, %v6938_v45, %v4530_v47 }
 0x16e   : > { %v4538_v16 = vpop.permute.xlu0 %4537 }
 0x16f   : > { %v4540_v40 = vunpack.i.h.bf16 %v4538_v16  ;;  %v4539_v5 = vunpack.i.l.bf16 %v4538_v16  ;;  %v1414_v0 = vsel %vm1383_vm6, %v1381_v3, %v4544_v22  ;;  %v1415_v6 = vsel %vm1383_vm6, %v1382_v28, %v4545_v39 }
 0x170   : > { %v4553_v41 = vpop.permute.xlu1 %4552 }
 0x171   : > { %v4555_v43 = vunpack.i.h.bf16 %v4553_v41  ;;  %v4554_v55 = vunpack.i.l.bf16 %v4553_v41  ;;  %v1399_v59 = vsel %vm1383_vm6, %v6939_v46, %v4540_v40  ;;  %v1398_v4 = vsel %vm1383_vm6, %v6940_v50, %v4539_v5 }
 0x172   : > { %v4548_v20 = vpop.permute.xlu0 %4547 }
 0x173   : > { %v4550_v32 = vunpack.i.h.bf16 %v4548_v20  ;;  %v4549_v53 = vunpack.i.l.bf16 %v4548_v20  ;;  %v1445_v7 = vsel %vm1416_vm7, %v1412_v19, %v4554_v55  ;;  %v1446_v14 = vsel %vm1416_vm7, %v1413_v35, %v4555_v43 }
 0x174   : > { %v4563_v33 = vpop.permute.xlu1 %4562 }
 0x175   : > { %v4565_v1 = vunpack.i.h.bf16 %v4563_v33  ;;  %v4564_v51 = vunpack.i.l.bf16 %v4563_v33  ;;  %v1429_v56 = vsel %vm1416_vm7, %v1396_v54, %v4549_v53  ;;  %v1430_v48 = vsel %vm1416_vm7, %v1397_v26, %v4550_v32 }
 0x176   : > { %v4558_v10 = vpop.permute.xlu0 %4557 }
 0x177   : > { %v4560_v52 = vunpack.i.h.bf16 %v4558_v10  ;;  %v4559_v27 = vunpack.i.l.bf16 %v4558_v10  ;;  %v1447_v18 = vsel %vm1416_vm7, %v1414_v0, %v4564_v51  ;;  %v1448_v38 = vsel %vm1416_vm7, %v1415_v6, %v4565_v1 }
 0x178   : > { %v4573_v42 = vpop.permute.xlu1 %4572 }
 0x179   : > { %v4575_v44 = vunpack.i.h.bf16 %v4573_v42  ;;  %v4574_v25 = vunpack.i.l.bf16 %v4573_v42  ;;  %v1431_v41 = vsel %vm1416_vm7, %v1398_v4, %v4559_v27  ;;  %v1432_v20 = vsel %vm1416_vm7, %v1399_v59, %v4560_v52 }
 0x17a   : > { %v4568_v11 = vpop.permute.xlu0 %4567 }
 0x17b   : > { %v4570_v49 = vunpack.i.h.bf16 %v4568_v11  ;;  %v4569_v30 = vunpack.i.l.bf16 %v4568_v11  ;;  %v1478_v13 = vsel %vm1449_vm8, %v1445_v7, %v4574_v25  ;;  %v1479_v57 = vsel %vm1449_vm8, %v1446_v14, %v4575_v44 }
 0x17c   : > { %v4583_v61 = vpop.permute.xlu1 %4582  ;;  %v4647_v44 = vmov 1983009808  }
 0x17d   : > { %v4585_v60 = vunpack.i.h.bf16 %v4583_v61  ;;  %v4584_v34 = vunpack.i.l.bf16 %v4583_v61  ;;  %v1462_v17 = vsel %vm1449_vm8, %v1429_v56, %v4569_v30  ;;  %v1463_v23 = vsel %vm1449_vm8, %v1430_v48, %v4570_v49  ;;  %v6040_v48 = vld [vmem:[%s6773_s2] ss:$0 sm:$0xff] }
 0x17e   : > { %v5985_v63 = vpop.permute.xlu0 %4577  ;;  %v1871_v25 = vunpack.c.l.s4 %v4647_v44  ;;  %v1873_v49 = vlaneseq }
 0x17f   : > { %v4579_v21 = vunpack.i.l.bf16 %v5985_v63  ;;  %v1480_v11 = vsel %vm1449_vm8, %v1447_v18, %v4584_v34  ;;  %v1481_v8 = vsel %vm1449_vm8, %v1448_v38, %v4585_v60  ;;  %v4580_v58 = vunpack.i.h.bf16 %v5985_v63 }
 0x180   : > { %v4593_v62 = vpop.permute.xlu1 %4592  ;;  %v1872_v30 = vunpack.c.0.s8 %v1871_v25  ;;  %v1874_v56 = vshrl.u32 %v1873_v49, 7 }
 0x181   : > { %v4594_v16 = vunpack.i.l.bf16 %v4593_v62  ;;  %v4595_v33 = vunpack.i.h.bf16 %v4593_v62  ;;  %v1464_v39 = vsel %vm1449_vm8, %v1431_v41, %v4579_v21  ;;  %v1465_v6 = vsel %vm1449_vm8, %v1432_v20, %v4580_v58 }
 0x182   : > { %v4588_v36 = vpop.permute.xlu0 %4587 }
 0x183   : > { %v4589_v10 = vunpack.i.l.bf16 %v4588_v36  ;;  %v4590_v47 = vunpack.i.h.bf16 %v4588_v36  ;;  %v1511_v22 = vsel %vm1482_vm9, %v1478_v13, %v4594_v16  ;;  %v1512_v12 = vsel %vm1482_vm9, %v1479_v57, %v4595_v33 }
 0x184   : > { %v4603_v9 = vpop.permute.xlu1 %4602 }
 0x185   : > { %v1495_v3 = vsel %vm1482_vm9, %v1462_v17, %v4589_v10  ;;  %v4605_v40 = vunpack.i.h.bf16 %v4603_v9  ;;  %v4604_v5 = vunpack.i.l.bf16 %v4603_v9  ;;  %v1496_v55 = vsel %vm1482_vm9, %v1463_v23, %v4590_v47 }
 0x186   : > { %v4598_v42 = vpop.permute.xlu0 %4597  ;;  %v6043_v9 = vsub.s32 %v1872_v30, %v1874_v56 }
 0x187   : > { %v4600_v63 = vunpack.i.h.bf16 %v4598_v42  ;;  %v4599_v19 = vunpack.i.l.bf16 %v4598_v42  ;;  %v1513_v32 = vsel %vm1482_vm9, %v1480_v11, %v4604_v5  ;;  %v1514_v53 = vsel %vm1482_vm9, %v1481_v8, %v4605_v40 }
 0x188   : > { %v4613_v24 = vpop.permute.xlu1 %4612 }
 0x189   : > { %v4615_v61 = vunpack.i.h.bf16 %v4613_v24  ;;  %v4614_v28 = vunpack.i.l.bf16 %v4613_v24  ;;  %v1497_v51 = vsel %vm1482_vm9, %v1464_v39, %v4599_v19  ;;  %v1498_v7 = vsel %vm1482_vm9, %v1465_v6, %v4600_v63 }
 0x18a   : > { %v4608_v29 = vpop.permute.xlu0 %4607 }
 0x18b   : > { %v1544_v37 = vsel %vm1515_vm10, %v1511_v22, %v4614_v28  ;;  %v1545_v2 = vsel %vm1515_vm10, %v1512_v12, %v4615_v61  ;;  %v4610_v31 = vunpack.i.h.bf16 %v4608_v29  ;;  %v4609_v43 = vunpack.i.l.bf16 %v4608_v29 }
 0x18c   : > { %v1562_v35 = vpack.c.bf16 %v1545_v2, %v1544_v37  ;;  %v4623_v15 = vpop.permute.xlu1 %4622 }
 0x18d   : > { %v1528_v54 = vsel %vm1515_vm10, %v1495_v3, %v4609_v43  ;;  %v1529_v45 = vsel %vm1515_vm10, %v1496_v55, %v4610_v31  ;;  %v4625_v26 = vunpack.i.h.bf16 %v4623_v15  ;;  %v4624_v0 = vunpack.i.l.bf16 %v4623_v15 }
 0x18e   : > { %v1554_v62 = vpack.c.bf16 %v1529_v45, %v1528_v54  ;;  %v4618_v46 = vpop.permute.xlu0 %4617  ;;  %3956 = vmatprep.mubr.msk.bf16.mxu1 %vm1591_vm11, %v1562_v35 }
 0x18f   : > { %v1546_v59 = vsel %vm1515_vm10, %v1513_v32, %v4624_v0  ;;  %v1547_v50 = vsel %vm1515_vm10, %v1514_v53, %v4625_v26  ;;  %v4620_v4 = vunpack.i.h.bf16 %v4618_v46  ;;  %v4619_v1 = vunpack.i.l.bf16 %v4618_v46 }
 0x190   : > { %v1563_v14 = vpack.c.bf16 %v1547_v50, %v1546_v59  ;;  %3940 = vmatprep.mubr.msk.bf16.mxu0 %vm1591_vm11, %v1554_v62 }
 0x191   : > { %v1530_v52 = vsel %vm1515_vm10, %v1497_v51, %v4619_v1  ;;  %v1531_v27 = vsel %vm1515_vm10, %v1498_v7, %v4620_v4 }
 0x192   : > { %v1555_v36 = vpack.c.bf16 %v1531_v27, %v1530_v52  ;;  %3957 = vmatmul.mubr.msk.bf16.gmra.mrb[12].mxu1 %vm1591_vm11, %v1563_v14 }
 0x194   : > { %3941 = vmatmul.mubr.msk.bf16.gmra.mrb[12].mxu0 %vm1591_vm11, %v1555_v36 }
 0x1e5   : > { %v3930_v60 = vpop.f32.mrb[0].mxu0 }
 0x1e6   : > { %v1687_v34 = vadd.f32 %v3930_v60, %v6040_v48  ;;  %v1678_v18 = vpop.f32.mrb[1].mxu0 }
 0x1e7   : > { %v1679_v38 = vadd.f32 %v6040_v48, %v1678_v18  ;;  %v3931_v21 = vpop.f32.mrb[2].mxu0 }
 0x1e8   : > { %v1807_v16 = vmax.f32 %v1687_v34, 0.0  ;;  %v1690_v41 = vadd.f32 %v3931_v21, %v6040_v48  ;;  %v1681_v20 = vpop.f32.mrb[3].mxu0 }
 0x1e9   : > { %v1805_v33 = vmax.f32 %v1679_v38, 0.0  ;;  %v1682_v10 = vadd.f32 %v6040_v48, %v1681_v20 }
 0x1ea   : > { %v1903_v42 = vcombine.high %v1807_v16, %v1807_v16  ;;  %v1910_v13 = vrot.slane %v1807_v16, %v6043_v9  ;;  %v6049_v57 = vmax.f32 %v1690_v41, 0.0 }
 0x1eb   : > { %v1869_v17 = vcombine.high %v1805_v33, %v1805_v33  ;;  %v1876_v23 = vrot.slane %v1805_v33, %v6043_v9  ;;  %v6052_v11 = vmax.f32 %v1682_v10, 0.0  ;;  %v6054_v8 = vpop.f32.mrb[0].mxu1 }
 0x1ec   : > { %v1917_v58 = vrot.slane %v1903_v42, %v6043_v9  ;;  %v1918_v47 = vcombine.high %v1910_v13, %v1910_v13  ;;  %v2598_v24 = vsel %vm2541_vm12, %v1910_v13, -inf  ;;  %v1920_v39 = vcombine.high %v6049_v57, %v6049_v57  ;;  %v6060_v22 = vpop.f32.mrb[1].mxu1 }
 0x1ed   : > { %v2599_v61 = vrot.slane %v2598_v24, 4  ;;  %v1883_v28 = vrot.slane %v1869_v17, %v6043_v9  ;;  %v1884_v12 = vcombine.high %v1876_v23, %v1876_v23  ;;  %v2542_v3 = vsel %vm2541_vm12, %v1876_v23, -inf  ;;  %v6064_v40 = vpop.f32.mrb[2].mxu1 }
 0x1ee   : > { %v1919_v5 = vcombine.high %v1917_v58, %v1917_v58  ;;  %v2605_v29 = vsel %vm2541_vm12, %v1918_v47, -inf  ;;  %v2612_v37 = vsel %vm2541_vm12, %v1917_v58, -inf  ;;  %v2543_v2 = vrot.slane %v2542_v3, 4  ;;  %v6068_v31 = vpop.f32.mrb[3].mxu1 }
 0x1ef   : > { %v2600_v43 = vmax.f32 %v2598_v24, %v2599_v61  ;;  %v2606_v55 = vrot.slane %v2605_v29, 4  ;;  %v2613_v63 = vrot.slane %v2612_v37, 4  ;;  %v1885_v19 = vcombine.high %v1883_v28, %v1883_v28 }
 0x1f0   : > { %v2619_v35 = vsel %vm2541_vm12, %v1919_v5, -inf  ;;  %v2544_v15 = vmax.f32 %v2542_v3, %v2543_v2  ;;  %v2549_v54 = vsel %vm2541_vm12, %v1884_v12, -inf  ;;  %v2556_v45 = vsel %vm2541_vm12, %v1883_v28, -inf }
 0x1f1   : > { %v2601_v26 = vrot.slane %v2600_v43, 2  ;;  %v2607_v0 = vmax.f32 %v2605_v29, %v2606_v55  ;;  %v2614_v6 = vmax.f32 %v2612_v37, %v2613_v63  ;;  %v2620_v32 = vrot.slane %v2619_v35, 4 }
 0x1f2   : > { %v2545_v53 = vrot.slane %v2544_v15, 2  ;;  %v2550_v62 = vrot.slane %v2549_v54, 4  ;;  %v2557_v46 = vrot.slane %v2556_v45, 4  ;;  %v2563_v59 = vsel %vm2541_vm12, %v1885_v19, -inf }
 0x1f3   : > { %v2602_v50 = vmax.f32 %v2600_v43, %v2601_v26  ;;  %v2608_v4 = vrot.slane %v2607_v0, 2  ;;  %v2615_v1 = vrot.slane %v2614_v6, 2  ;;  %v2621_v51 = vmax.f32 %v2619_v35, %v2620_v32 }
 0x1f4   : > { %v2546_v7 = vmax.f32 %v2544_v15, %v2545_v53  ;;  %v2551_v14 = vmax.f32 %v2549_v54, %v2550_v62  ;;  %v2558_v52 = vmax.f32 %v2556_v45, %v2557_v46  ;;  %v2564_v27 = vrot.slane %v2563_v59, 4 }
 0x1f5   : > { %v2603_v36 = vrot.slane %v2602_v50, 1  ;;  %v2609_v44 = vmax.f32 %v2607_v0, %v2608_v4  ;;  %v2616_v25 = vmax.f32 %v2614_v6, %v2615_v1  ;;  %v2622_v49 = vrot.slane %v2621_v51, 2 }
 0x1f6   : > { %v2547_v30 = vrot.slane %v2546_v7, 1  ;;  %v2552_v56 = vrot.slane %v2551_v14, 2  ;;  %v2559_v60 = vrot.slane %v2558_v52, 2  ;;  %v2565_v34 = vmax.f32 %v2563_v59, %v2564_v27 }
 0x1f7   : > { %v2604_v18 = vmax.f32 %v2602_v50, %v2603_v36  ;;  %v2610_v38 = vrot.slane %v2609_v44, 1  ;;  %v2617_v21 = vrot.slane %v2616_v25, 1  ;;  %v2623_v16 = vmax.f32 %v2621_v51, %v2622_v49 }
 0x1f8   : > { %v2548_v41 = vmax.f32 %v2546_v7, %v2547_v30  ;;  %v2553_v20 = vmax.f32 %v2551_v14, %v2552_v56  ;;  %v2560_v33 = vmax.f32 %v2558_v52, %v2559_v60  ;;  %v2566_v10 = vrot.slane %v2565_v34, 2 }
 0x1f9   : > { %v2611_v42 = vmax.f32 %v2609_v44, %v2610_v38  ;;  %v2618_v13 = vmax.f32 %v2616_v25, %v2617_v21  ;;  %v2624_v17 = vrot.slane %v2623_v16, 1  ;;  %v3439_v23 = vsel %vm1383_vm6, %v2604_v18, -inf }
 0x1fa   : > { %v2554_v58 = vrot.slane %v2553_v20, 1  ;;  %v2561_v47 = vrot.slane %v2560_v33, 1  ;;  %v2567_v24 = vmax.f32 %v2565_v34, %v2566_v10  ;;  %v3438_v61 = vsel %vm1383_vm6, %v2548_v41, -inf }
 0x1fb   : > { %v2625_v28 = vmax.f32 %v2623_v16, %v2624_v17  ;;  %v3442_v12 = vsel %vm1383_vm6, %v2611_v42, -inf  ;;  %v3445_v3 = vsel %vm1383_vm6, %v2618_v13, -inf  ;;  %v3440_v5 = vmax.f32 %v3438_v61, %v3439_v23 }
 0x1fc   : > { %v2555_v29 = vmax.f32 %v2553_v20, %v2554_v58  ;;  %v2562_v37 = vmax.f32 %v2560_v33, %v2561_v47  ;;  %v2568_v2 = vrot.slane %v2567_v24, 1  ;;  %v1927_v43 = vrot.slane %v6049_v57, %v6043_v9 }
 0x1fd   : > { %v6081_v55 = vsel %vm1383_vm6, %v2625_v28, -inf  ;;  %v1934_v63 = vrot.slane %v1920_v39, %v6043_v9  ;;  %v1886_v19 = vcombine.high %v6052_v11, %v6052_v11  ;;  %v1893_v35 = vrot.slane %v6052_v11, %v6043_v9 }
 0x1fe   : > { %v2569_v15 = vmax.f32 %v2567_v24, %v2568_v2  ;;  %v3441_v54 = vsel %vm1383_vm6, %v2555_v29, -inf  ;;  %v3444_v45 = vsel %vm1383_vm6, %v2562_v37, -inf  ;;  %v1935_v26 = vcombine.high %v1927_v43, %v1927_v43 }
 0x1ff   : > { %v3443_v0 = vmax.f32 %v3441_v54, %v3442_v12  ;;  %v3446_v6 = vmax.f32 %v3444_v45, %v3445_v3  ;;  %v1936_v32 = vcombine.high %v1934_v63, %v1934_v63  ;;  %v2626_v53 = vsel %vm2541_vm12, %v1927_v43, -inf }
 0x200   : > { %v6095_v57 = vsel %vm1383_vm6, %v2569_v15, -inf  ;;  %v2627_v39 = vrot.slane %v2626_v53, 4  ;;  %v2633_v62 = vsel %vm2541_vm12, %v1935_v26, -inf  ;;  %v2640_v46 = vsel %vm2541_vm12, %v1934_v63, -inf }
 0x201   : > { %v3449_v11 = vmax.f32 %v6095_v57, %v6081_v55  ;;  %v3695_v59 = vsel %vm3694_vm13, %v3443_v0, %v3440_v5  ;;  %v2634_v50 = vrot.slane %v2633_v62, 4  ;;  %v2641_v4 = vrot.slane %v2640_v46, 4 }
 0x202   : > { %v3697_v1 = vsel %vm3696_vm14, %v3446_v6, %v3695_v59  ;;  %v2628_v51 = vmax.f32 %v2626_v53, %v2627_v39  ;;  %v2647_v7 = vsel %vm2541_vm12, %v1936_v32, -inf  ;;  %v1900_v14 = vrot.slane %v1886_v19, %v6043_v9 }
 0x203   : > { %v2635_v52 = vmax.f32 %v2633_v62, %v2634_v50  ;;  %v2642_v27 = vmax.f32 %v2640_v46, %v2641_v4  ;;  %v2648_v36 = vrot.slane %v2647_v7, 4  ;;  %v1901_v44 = vcombine.high %v1893_v35, %v1893_v35 }
 0x204   : > { %v2629_v25 = vrot.slane %v2628_v51, 2  ;;  %v1902_v49 = vcombine.high %v1900_v14, %v1900_v14  ;;  %v2570_v30 = vsel %vm2541_vm12, %v1893_v35, -inf  ;;  %v2584_v56 = vsel %vm2541_vm12, %v1900_v14, -inf }
 0x205   : > { %v2636_v60 = vrot.slane %v2635_v52, 2  ;;  %v2643_v34 = vrot.slane %v2642_v27, 2  ;;  %v2649_v18 = vmax.f32 %v2647_v7, %v2648_v36  ;;  %v2571_v38 = vrot.slane %v2570_v30, 4 }
 0x206   : > { %v2630_v21 = vmax.f32 %v2628_v51, %v2629_v25  ;;  %v2577_v16 = vsel %vm2541_vm12, %v1901_v44, -inf  ;;  %v2585_v41 = vrot.slane %v2584_v56, 4  ;;  %v2591_v20 = vsel %vm2541_vm12, %v1902_v49, -inf }
 0x207   : > { %v2637_v33 = vmax.f32 %v2635_v52, %v2636_v60  ;;  %v2644_v10 = vmax.f32 %v2642_v27, %v2643_v34  ;;  %v2650_v42 = vrot.slane %v2649_v18, 2  ;;  %v2572_v13 = vmax.f32 %v2570_v30, %v2571_v38 }
 0x208   : > { %v2631_v17 = vrot.slane %v2630_v21, 1  ;;  %v2578_v23 = vrot.slane %v2577_v16, 4  ;;  %v2586_v58 = vmax.f32 %v2584_v56, %v2585_v41  ;;  %v2592_v47 = vrot.slane %v2591_v20, 4 }
 0x209   : > { %v2638_v24 = vrot.slane %v2637_v33, 1  ;;  %v2645_v61 = vrot.slane %v2644_v10, 1  ;;  %v2651_v28 = vmax.f32 %v2649_v18, %v2650_v42  ;;  %v2573_v12 = vrot.slane %v2572_v13, 2 }
 0x20a   : > { %v2632_v3 = vmax.f32 %v2630_v21, %v2631_v17  ;;  %v2579_v5 = vmax.f32 %v2577_v16, %v2578_v23  ;;  %v2587_v29 = vrot.slane %v2586_v58, 2  ;;  %v2593_v37 = vmax.f32 %v2591_v20, %v2592_v47 }
 0x20b   : > { %v2639_v2 = vmax.f32 %v2637_v33, %v2638_v24  ;;  %v2646_v43 = vmax.f32 %v2644_v10, %v2645_v61  ;;  %v2652_v55 = vrot.slane %v2651_v28, 1  ;;  %v2574_v63 = vmax.f32 %v2572_v13, %v2573_v12 }
 0x20c   : > { %v3451_v19 = vsel %vm1383_vm6, %v2632_v3, -inf  ;;  %v2580_v35 = vrot.slane %v2579_v5, 2  ;;  %v2588_v15 = vmax.f32 %v2586_v58, %v2587_v29  ;;  %v2594_v54 = vrot.slane %v2593_v37, 2 }
 0x20d   : > { %v2653_v45 = vmax.f32 %v2651_v28, %v2652_v55  ;;  %v3454_v26 = vsel %vm1383_vm6, %v2639_v2, -inf  ;;  %v3457_v0 = vsel %vm1383_vm6, %v2646_v43, -inf  ;;  %v2575_v6 = vrot.slane %v2574_v63, 1  ;;  %v6112_v32 = vpop.f32.mrb[4].mxu0 }
 0x20e   : > { %v2581_v53 = vmax.f32 %v2579_v5, %v2580_v35  ;;  %v2589_v57 = vrot.slane %v2588_v15, 1  ;;  %v2595_v39 = vmax.f32 %v2593_v37, %v2594_v54  ;;  %v3699_v62 = vsel %vm3698_vm15, %v3449_v11, %v3697_v1  ;;  %v6115_v46 = vpop.f32.mrb[5].mxu0 }
 0x20f   : > { %v3460_v59 = vsel %vm1383_vm6, %v2653_v45, -inf  ;;  %v2576_v50 = vmax.f32 %v2574_v63, %v2575_v6  ;;  %v1751_v4 = vadd.f32 %v6054_v8, %v6040_v48  ;;  %v1743_v51 = vadd.f32 %v6040_v48, %v6060_v22  ;;  %v6122_v7 = vpop.f32.mrb[6].mxu0 }
 0x210   : > { %v2582_v14 = vrot.slane %v2581_v53, 1  ;;  %v2590_v52 = vmax.f32 %v2588_v15, %v2589_v57  ;;  %v2596_v27 = vrot.slane %v2595_v39, 1  ;;  %v6126_v11 = vadd.f32 %v6064_v40, %v6040_v48  ;;  %v6128_v1 = vpop.f32.mrb[7].mxu0 }
 0x211   : > { %v3450_v36 = vsel %vm1383_vm6, %v2576_v50, -inf  ;;  %v1823_v44 = vmax.f32 %v1751_v4, 0.0  ;;  %v1821_v25 = vmax.f32 %v1743_v51, 0.0  ;;  %v6133_v8 = vadd.f32 %v6040_v48, %v6068_v31 }
 0x212   : > { %v2583_v22 = vmax.f32 %v2581_v53, %v2582_v14  ;;  %v2597_v49 = vmax.f32 %v2595_v39, %v2596_v27  ;;  %v3452_v30 = vmax.f32 %v3450_v36, %v3451_v19  ;;  %v3456_v56 = vsel %vm1383_vm6, %v2590_v52, -inf }
 0x213   : > { %v3458_v60 = vmax.f32 %v3456_v56, %v3457_v0  ;;  %v2175_v34 = vcombine.high %v1823_v44, %v1823_v44  ;;  %v2182_v40 = vrot.slane %v1823_v44, %v6043_v9  ;;  %v2141_v18 = vcombine.high %v1821_v25, %v1821_v25  ;;  %v6137_v38 = vpop.f32.mrb[4].mxu1 }
 0x214   : > { %v3453_v21 = vsel %vm1383_vm6, %v2583_v22, -inf  ;;  %v3459_v16 = vsel %vm1383_vm6, %v2597_v49, -inf  ;;  %v3701_v31 = vsel %vm3700_vm0, %v3452_v30, %v3699_v62  ;;  %v2148_v41 = vrot.slane %v1821_v25, %v6043_v9  ;;  %v6144_v20 = vpop.f32.mrb[5].mxu1 }
 0x215   : > { %v3455_v33 = vmax.f32 %v3453_v21, %v3454_v26  ;;  %v3461_v10 = vmax.f32 %v3459_v16, %v3460_v59  ;;  %v2189_v42 = vrot.slane %v2175_v34, %v6043_v9  ;;  %v2190_v13 = vcombine.high %v2182_v40, %v2182_v40  ;;  %v6147_v17 = vpop.f32.mrb[6].mxu1 }
 0x216   : > { %v3046_v23 = vsel %vm2541_vm12, %v2182_v40, -inf  ;;  %v2155_v58 = vrot.slane %v2141_v18, %v6043_v9  ;;  %v2156_v47 = vcombine.high %v2148_v41, %v2148_v41  ;;  %v2990_v24 = vsel %vm2541_vm12, %v2148_v41, -inf  ;;  %v6152_v61 = vpop.f32.mrb[7].mxu1 }
 0x217   : > { %v3703_v28 = vsel %vm3702_vm1, %v3455_v33, %v3701_v31  ;;  %v2191_v12 = vcombine.high %v2189_v42, %v2189_v42  ;;  %v3047_v3 = vrot.slane %v3046_v23, 4  ;;  %v3053_v5 = vsel %vm2541_vm12, %v2190_v13, -inf }
 0x218   : > { %v3705_v29 = vsel %vm3704_vm2, %v3458_v60, %v3703_v28  ;;  %v3054_v37 = vrot.slane %v3053_v5, 4  ;;  %v3060_v2 = vsel %vm2541_vm12, %v2189_v42, -inf  ;;  %v2157_v43 = vcombine.high %v2155_v58, %v2155_v58 }
 0x219   : > { %v3707_v55 = vsel %vm3706_vm3, %v3461_v10, %v3705_v29  ;;  %v3048_v63 = vmax.f32 %v3046_v23, %v3047_v3  ;;  %v3061_v19 = vrot.slane %v3060_v2, 4  ;;  %v3067_v35 = vsel %vm2541_vm12, %v2191_v12, -inf }
 0x21a   : > { %3765 = vst.msk [vmem:[%s6157_s10] sm:$0xff] %vm1383_vm6, %v3707_v55  ;;  %v3055_v15 = vmax.f32 %v3053_v5, %v3054_v37  ;;  %v3068_v54 = vrot.slane %v3067_v35, 4  ;;  %v2991_v45 = vrot.slane %v2990_v24, 4  ;;  %v2997_v26 = vsel %vm2541_vm12, %v2156_v47, -inf }
 0x21b   : > { %v3049_v0 = vrot.slane %v3048_v63, 2  ;;  %v3062_v6 = vmax.f32 %v3060_v2, %v3061_v19  ;;  %v2998_v53 = vrot.slane %v2997_v26, 4  ;;  %v3004_v57 = vsel %vm2541_vm12, %v2155_v58, -inf }
 0x21c   : > { %v3056_v39 = vrot.slane %v3055_v15, 2  ;;  %v3069_v62 = vmax.f32 %v3067_v35, %v3068_v54  ;;  %v2992_v59 = vmax.f32 %v2990_v24, %v2991_v45  ;;  %v3005_v50 = vrot.slane %v3004_v57, 4 }
 0x21d   : > { %v3050_v4 = vmax.f32 %v3048_v63, %v3049_v0  ;;  %v3063_v51 = vrot.slane %v3062_v6, 2  ;;  %v2999_v14 = vmax.f32 %v2997_v26, %v2998_v53  ;;  %v3011_v52 = vsel %vm2541_vm12, %v2157_v43, -inf }
 0x21e   : > { %v3057_v27 = vmax.f32 %v3055_v15, %v3056_v39  ;;  %v3070_v36 = vrot.slane %v3069_v62, 2  ;;  %v2993_v44 = vrot.slane %v2992_v59, 2  ;;  %v3006_v25 = vmax.f32 %v3004_v57, %v3005_v50 }
 0x21f   : > { %v3051_v22 = vrot.slane %v3050_v4, 1  ;;  %v3064_v49 = vmax.f32 %v3062_v6, %v3063_v51  ;;  %v3000_v30 = vrot.slane %v2999_v14, 2  ;;  %v3012_v56 = vrot.slane %v3011_v52, 4 }
 0x220   : > { %v3058_v60 = vrot.slane %v3057_v27, 1  ;;  %v3071_v34 = vmax.f32 %v3069_v62, %v3070_v36  ;;  %v2994_v40 = vmax.f32 %v2992_v59, %v2993_v44  ;;  %v3007_v18 = vrot.slane %v3006_v25, 2 }
 0x221   : > { %v3052_v21 = vmax.f32 %v3050_v4, %v3051_v22  ;;  %v3065_v16 = vrot.slane %v3064_v49, 1  ;;  %v3001_v31 = vmax.f32 %v2999_v14, %v3000_v30  ;;  %v3013_v41 = vmax.f32 %v3011_v52, %v3012_v56 }
 0x222   : > { %v3059_v33 = vmax.f32 %v3057_v27, %v3058_v60  ;;  %v3072_v10 = vrot.slane %v3071_v34, 1  ;;  %v2995_v42 = vrot.slane %v2994_v40, 1  ;;  %v3008_v13 = vmax.f32 %v3006_v25, %v3007_v18 }
 0x223   : > { %v3066_v23 = vmax.f32 %v3064_v49, %v3065_v16  ;;  %v3535_v58 = vsel %vm1383_vm6, %v3052_v21, -inf  ;;  %v3002_v47 = vrot.slane %v3001_v31, 1  ;;  %v3014_v24 = vrot.slane %v3013_v41, 2 }
 0x224   : > { %v3073_v28 = vmax.f32 %v3071_v34, %v3072_v10  ;;  %v3538_v12 = vsel %vm1383_vm6, %v3059_v33, -inf  ;;  %v2996_v3 = vmax.f32 %v2994_v40, %v2995_v42  ;;  %v3009_v5 = vrot.slane %v3008_v13, 1 }
 0x225   : > { %v3541_v29 = vsel %vm1383_vm6, %v3066_v23, -inf  ;;  %v3003_v37 = vmax.f32 %v3001_v31, %v3002_v47  ;;  %v3015_v2 = vmax.f32 %v3013_v41, %v3014_v24  ;;  %v1824_v43 = vmax.f32 %v6126_v11, 0.0 }
 0x226   : > { %v6175_v55 = vsel %vm1383_vm6, %v3073_v28, -inf  ;;  %v3010_v63 = vmax.f32 %v3008_v13, %v3009_v5  ;;  %v3534_v19 = vsel %vm1383_vm6, %v2996_v3, -inf  ;;  %v1822_v35 = vmax.f32 %v6133_v8, 0.0 }
 0x227   : > { %v3016_v15 = vrot.slane %v3015_v2, 1  ;;  %v3536_v54 = vmax.f32 %v3534_v19, %v3535_v58  ;;  %v3537_v45 = vsel %vm1383_vm6, %v3003_v37, -inf  ;;  %v2192_v26 = vcombine.high %v1824_v43, %v1824_v43 }
 0x228   : > { %v3539_v0 = vmax.f32 %v3537_v45, %v3538_v12  ;;  %v3540_v6 = vsel %vm1383_vm6, %v3010_v63, -inf  ;;  %v2199_v53 = vrot.slane %v1824_v43, %v6043_v9  ;;  %v2158_v57 = vcombine.high %v1822_v35, %v1822_v35 }
 0x229   : > { %v3017_v11 = vmax.f32 %v3015_v2, %v3016_v15  ;;  %v3542_v39 = vmax.f32 %v3540_v6, %v3541_v29  ;;  %v2206_v62 = vrot.slane %v2192_v26, %v6043_v9  ;;  %v2165_v59 = vrot.slane %v1822_v35, %v6043_v9 }
 0x22a   : > { %v3729_v50 = vsel %vm3694_vm13, %v3539_v0, %v3536_v54  ;;  %v2207_v8 = vcombine.high %v2199_v53, %v2199_v53  ;;  %v3074_v4 = vsel %vm2541_vm12, %v2199_v53, -inf  ;;  %v2172_v51 = vrot.slane %v2158_v57, %v6043_v9 }
 0x22b   : > { %v3543_v14 = vsel %vm1383_vm6, %v3017_v11, -inf  ;;  %v3730_v52 = vsel %vm3696_vm14, %v3542_v39, %v3729_v50  ;;  %v2208_v27 = vcombine.high %v2206_v62, %v2206_v62  ;;  %v3075_v36 = vrot.slane %v3074_v4, 4 }
 0x22c   : > { %v3545_v44 = vmax.f32 %v3543_v14, %v6175_v55  ;;  %v3081_v25 = vsel %vm2541_vm12, %v2207_v8, -inf  ;;  %v3088_v22 = vsel %vm2541_vm12, %v2206_v62, -inf  ;;  %v2173_v49 = vcombine.high %v2165_v59, %v2165_v59 }
 0x22d   : > { %v3076_v30 = vmax.f32 %v3074_v4, %v3075_v36  ;;  %v3082_v56 = vrot.slane %v3081_v25, 4  ;;  %v3089_v60 = vrot.slane %v3088_v22, 4  ;;  %v3095_v34 = vsel %vm2541_vm12, %v2208_v27, -inf }
 0x22e   : > { %v3096_v40 = vrot.slane %v3095_v34, 4  ;;  %v2174_v18 = vcombine.high %v2172_v51, %v2172_v51  ;;  %v3018_v21 = vsel %vm2541_vm12, %v2165_v59, -inf  ;;  %v3025_v16 = vsel %vm2541_vm12, %v2173_v49, -inf }
 0x22f   : > { %v3077_v31 = vrot.slane %v3076_v30, 2  ;;  %v3083_v41 = vmax.f32 %v3081_v25, %v3082_v56  ;;  %v3090_v33 = vmax.f32 %v3088_v22, %v3089_v60  ;;  %v3019_v10 = vrot.slane %v3018_v21, 4 }
 0x230   : > { %v3097_v42 = vmax.f32 %v3095_v34, %v3096_v40  ;;  %v3026_v13 = vrot.slane %v3025_v16, 4  ;;  %v3032_v23 = vsel %vm2541_vm12, %v2172_v51, -inf  ;;  %v3039_v58 = vsel %vm2541_vm12, %v2174_v18, -inf }
 0x231   : > { %v3078_v47 = vmax.f32 %v3076_v30, %v3077_v31  ;;  %v3084_v24 = vrot.slane %v3083_v41, 2  ;;  %v3091_v28 = vrot.slane %v3090_v33, 2  ;;  %v3020_v12 = vmax.f32 %v3018_v21, %v3019_v10 }
 0x232   : > { %v3098_v3 = vrot.slane %v3097_v42, 2  ;;  %v3027_v5 = vmax.f32 %v3025_v16, %v3026_v13  ;;  %v3033_v29 = vrot.slane %v3032_v23, 4  ;;  %v3040_v37 = vrot.slane %v3039_v58, 4 }
 0x233   : > { %v3079_v2 = vrot.slane %v3078_v47, 1  ;;  %v3085_v43 = vmax.f32 %v3083_v41, %v3084_v24  ;;  %v3092_v55 = vmax.f32 %v3090_v33, %v3091_v28  ;;  %v3021_v63 = vrot.slane %v3020_v12, 2 }
 0x234   : > { %v3099_v19 = vmax.f32 %v3097_v42, %v3098_v3  ;;  %v3028_v35 = vrot.slane %v3027_v5, 2  ;;  %v3034_v15 = vmax.f32 %v3032_v23, %v3033_v29  ;;  %v3041_v54 = vmax.f32 %v3039_v58, %v3040_v37 }
 0x235   : > { %v3080_v45 = vmax.f32 %v3078_v47, %v3079_v2  ;;  %v3086_v26 = vrot.slane %v3085_v43, 1  ;;  %v3093_v0 = vrot.slane %v3092_v55, 1  ;;  %v3022_v6 = vmax.f32 %v3020_v12, %v3021_v63 }
 0x236   : > { %v3100_v53 = vrot.slane %v3099_v19, 1  ;;  %v3029_v57 = vmax.f32 %v3027_v5, %v3028_v35  ;;  %v3035_v11 = vrot.slane %v3034_v15, 2  ;;  %v3042_v39 = vrot.slane %v3041_v54, 2 }
 0x237   : > { %v3087_v62 = vmax.f32 %v3085_v43, %v3086_v26  ;;  %v3094_v59 = vmax.f32 %v3092_v55, %v3093_v0  ;;  %v3547_v50 = vsel %vm1383_vm6, %v3080_v45, -inf  ;;  %v3023_v8 = vrot.slane %v3022_v6, 1 }
 0x238   : > { %v3101_v4 = vmax.f32 %v3099_v19, %v3100_v53  ;;  %v3030_v51 = vrot.slane %v3029_v57, 1  ;;  %v3036_v14 = vmax.f32 %v3034_v15, %v3035_v11  ;;  %v3043_v27 = vmax.f32 %v3041_v54, %v3042_v39 }
 0x239   : > { %v3550_v36 = vsel %vm1383_vm6, %v3087_v62, -inf  ;;  %v3553_v25 = vsel %vm1383_vm6, %v3094_v59, -inf  ;;  %v3024_v22 = vmax.f32 %v3022_v6, %v3023_v8  ;;  %v3731_v49 = vsel %vm3698_vm15, %v3545_v44, %v3730_v52  ;;  %v6201_v30 = vpop.f32.mrb[8].mxu1 }
 0x23a   : > { %v3556_v56 = vsel %vm1383_vm6, %v3101_v4, -inf  ;;  %v3031_v60 = vmax.f32 %v3029_v57, %v3030_v51  ;;  %v3037_v34 = vrot.slane %v3036_v14, 1  ;;  %v3044_v40 = vrot.slane %v3043_v27, 1  ;;  %v6204_v18 = vpop.f32.mrb[9].mxu1 }
 0x23b   : > { %v3546_v21 = vsel %vm1383_vm6, %v3024_v22, -inf  ;;  %v1703_v16 = vadd.f32 %v6112_v32, %v6040_v48  ;;  %v1695_v31 = vadd.f32 %v6040_v48, %v6115_v46  ;;  %v1706_v52 = vadd.f32 %v6122_v7, %v6040_v48  ;;  %v6213_v44 = vpop.f32.mrb[8].mxu0  ;;  %v6215_v41 = vpop.f32.mrb[10].mxu1 }
 0x23c   : > { %v3038_v33 = vmax.f32 %v3036_v14, %v3037_v34  ;;  %v3045_v10 = vmax.f32 %v3043_v27, %v3044_v40  ;;  %v3548_v42 = vmax.f32 %v3546_v21, %v3547_v50  ;;  %v3549_v13 = vsel %vm1383_vm6, %v3031_v60, -inf  ;;  %v6218_v23 = vpop.f32.mrb[9].mxu0 }
 0x23d   : > { %v3551_v58 = vmax.f32 %v3549_v13, %v3550_v36  ;;  %v1811_v47 = vmax.f32 %v1703_v16, 0.0  ;;  %v1809_v32 = vmax.f32 %v1695_v31, 0.0  ;;  %v6220_v24 = vmax.f32 %v1706_v52, 0.0  ;;  %v6222_v46 = vpop.f32.mrb[10].mxu0 }
 0x23e   : > { %v3552_v7 = vsel %vm1383_vm6, %v3038_v33, -inf  ;;  %v3555_v28 = vsel %vm1383_vm6, %v3045_v10, -inf  ;;  %v3732_v12 = vsel %vm3700_vm0, %v3548_v42, %v3731_v49  ;;  %v1698_v3 = vadd.f32 %v6040_v48, %v6128_v1  ;;  %v6245_v53 = vpop.f32.mrb[11].mxu0 }
 0x23f   : > { %v3554_v5 = vmax.f32 %v3552_v7, %v3553_v25  ;;  %v3557_v29 = vmax.f32 %v3555_v28, %v3556_v56  ;;  %v3733_v37 = vsel %vm3702_vm1, %v3551_v58, %v3732_v12  ;;  %v1971_v2 = vcombine.high %v1811_v47, %v1811_v47 }
 0x240   : > { %v1978_v43 = vrot.slane %v1811_v47, %v6043_v9  ;;  %v1937_v55 = vcombine.high %v1809_v32, %v1809_v32  ;;  %v1944_v63 = vrot.slane %v1809_v32, %v6043_v9  ;;  %v1988_v19 = vcombine.high %v6220_v24, %v6220_v24  ;;  %v6256_v47 = vpop.f32.mrb[11].mxu1 }
 0x241   : > { %v3734_v35 = vsel %vm3704_vm2, %v3554_v5, %v3733_v37  ;;  %v1985_v15 = vrot.slane %v1971_v2, %v6043_v9  ;;  %v6238_v1 = vrot.slane %v6220_v24, %v6043_v9  ;;  %v6240_v54 = vmax.f32 %v1698_v3, 0.0 }
 0x242   : > { %v3735_v45 = vsel %vm3706_vm3, %v3557_v29, %v3734_v35  ;;  %v1986_v26 = vcombine.high %v1978_v43, %v1978_v43  ;;  %v2710_v0 = vsel %vm2541_vm12, %v1978_v43, -inf  ;;  %v1951_v6 = vrot.slane %v1937_v55, %v6043_v9 }
 0x243   : > { %3769 = vst.msk [vmem:[%s6157_s10 + $0x20] sm:$0xff] %vm1383_vm6, %v3735_v45  ;;  %v1987_v57 = vcombine.high %v1985_v15, %v1985_v15  ;;  %v2711_v11 = vrot.slane %v2710_v0, 4  ;;  %v2724_v39 = vsel %vm2541_vm12, %v1985_v15, -inf  ;;  %v1952_v62 = vcombine.high %v1944_v63, %v1944_v63 }
 0x244   : > { %v2717_v59 = vsel %vm2541_vm12, %v1986_v26, -inf  ;;  %v2725_v50 = vrot.slane %v2724_v39, 4  ;;  %v1953_v8 = vcombine.high %v1951_v6, %v1951_v6  ;;  %v2654_v4 = vsel %vm2541_vm12, %v1944_v63, -inf }
 0x245   : > { %v2712_v51 = vmax.f32 %v2710_v0, %v2711_v11  ;;  %v2718_v14 = vrot.slane %v2717_v59, 4  ;;  %v2731_v27 = vsel %vm2541_vm12, %v1987_v57, -inf  ;;  %v2655_v36 = vrot.slane %v2654_v4, 4 }
 0x246   : > { %v2726_v25 = vmax.f32 %v2724_v39, %v2725_v50  ;;  %v2732_v22 = vrot.slane %v2731_v27, 4  ;;  %v2661_v49 = vsel %vm2541_vm12, %v1952_v62, -inf  ;;  %v2668_v56 = vsel %vm2541_vm12, %v1951_v6, -inf }
 0x247   : > { %v2713_v60 = vrot.slane %v2712_v51, 2  ;;  %v2719_v34 = vmax.f32 %v2717_v59, %v2718_v14  ;;  %v2656_v40 = vmax.f32 %v2654_v4, %v2655_v36  ;;  %v2662_v21 = vrot.slane %v2661_v49, 4 }
 0x248   : > { %v2727_v16 = vrot.slane %v2726_v25, 2  ;;  %v2733_v31 = vmax.f32 %v2731_v27, %v2732_v22  ;;  %v2669_v52 = vrot.slane %v2668_v56, 4  ;;  %v2675_v33 = vsel %vm2541_vm12, %v1953_v8, -inf }
 0x249   : > { %v2714_v10 = vmax.f32 %v2712_v51, %v2713_v60  ;;  %v2720_v42 = vrot.slane %v2719_v34, 2  ;;  %v2657_v13 = vrot.slane %v2656_v40, 2  ;;  %v2663_v58 = vmax.f32 %v2661_v49, %v2662_v21 }
 0x24a   : > { %v2728_v32 = vmax.f32 %v2726_v25, %v2727_v16  ;;  %v2734_v7 = vrot.slane %v2733_v31, 2  ;;  %v2670_v28 = vmax.f32 %v2668_v56, %v2669_v52  ;;  %v2676_v12 = vrot.slane %v2675_v33, 4 }
 0x24b   : > { %v2715_v3 = vrot.slane %v2714_v10, 1  ;;  %v2721_v5 = vmax.f32 %v2719_v34, %v2720_v42  ;;  %v2658_v29 = vmax.f32 %v2656_v40, %v2657_v13  ;;  %v2664_v37 = vrot.slane %v2663_v58, 2 }
 0x24c   : > { %v2729_v2 = vrot.slane %v2728_v32, 1  ;;  %v2735_v43 = vmax.f32 %v2733_v31, %v2734_v7  ;;  %v2671_v55 = vrot.slane %v2670_v28, 2  ;;  %v2677_v63 = vmax.f32 %v2675_v33, %v2676_v12 }
 0x24d   : > { %v2716_v35 = vmax.f32 %v2714_v10, %v2715_v3  ;;  %v2722_v15 = vrot.slane %v2721_v5, 1  ;;  %v2659_v45 = vrot.slane %v2658_v29, 1  ;;  %v2665_v26 = vmax.f32 %v2663_v58, %v2664_v37 }
 0x24e   : > { %v2730_v0 = vmax.f32 %v2728_v32, %v2729_v2  ;;  %v2736_v6 = vrot.slane %v2735_v43, 1  ;;  %v2672_v57 = vmax.f32 %v2670_v28, %v2671_v55  ;;  %v2678_v11 = vrot.slane %v2677_v63, 2 }
 0x24f   : > { %v2723_v39 = vmax.f32 %v2721_v5, %v2722_v15  ;;  %v3463_v62 = vsel %vm1383_vm6, %v2716_v35, -inf  ;;  %v2660_v59 = vmax.f32 %v2658_v29, %v2659_v45  ;;  %v2666_v50 = vrot.slane %v2665_v26, 1 }
 0x250   : > { %v2737_v8 = vmax.f32 %v2735_v43, %v2736_v6  ;;  %v3469_v4 = vsel %vm1383_vm6, %v2730_v0, -inf  ;;  %v2673_v51 = vrot.slane %v2672_v57, 1  ;;  %v2679_v14 = vmax.f32 %v2677_v63, %v2678_v11 }
 0x251   : > { %v3466_v27 = vsel %vm1383_vm6, %v2723_v39, -inf  ;;  %v2667_v36 = vmax.f32 %v2665_v26, %v2666_v50  ;;  %v3462_v25 = vsel %vm1383_vm6, %v2660_v59, -inf  ;;  %v2002_v22 = vrot.slane %v1988_v19, %v6043_v9 }
 0x252   : > { %v3472_v49 = vsel %vm1383_vm6, %v2737_v8, -inf  ;;  %v2674_v56 = vmax.f32 %v2672_v57, %v2673_v51  ;;  %v2680_v60 = vrot.slane %v2679_v14, 1  ;;  %v3464_v34 = vmax.f32 %v3462_v25, %v3463_v62 }
 0x253   : > { %v3465_v40 = vsel %vm1383_vm6, %v2667_v36, -inf  ;;  %v2003_v21 = vcombine.high %v6238_v1, %v6238_v1  ;;  %v2004_v16 = vcombine.high %v2002_v22, %v2002_v22  ;;  %v2738_v31 = vsel %vm2541_vm12, %v6238_v1, -inf }
 0x254   : > { %v2681_v52 = vmax.f32 %v2679_v14, %v2680_v60  ;;  %v3467_v33 = vmax.f32 %v3465_v40, %v3466_v27  ;;  %v3468_v10 = vsel %vm1383_vm6, %v2674_v56, -inf  ;;  %v2739_v24 = vrot.slane %v2738_v31, 4 }
 0x255   : > { %v3470_v19 = vmax.f32 %v3468_v10, %v3469_v4  ;;  %v2745_v42 = vsel %vm2541_vm12, %v2003_v21, -inf  ;;  %v2752_v13 = vsel %vm2541_vm12, %v2002_v22, -inf  ;;  %v2759_v58 = vsel %vm2541_vm12, %v2004_v16, -inf }
 0x256   : > { %v3471_v32 = vsel %vm1383_vm6, %v2681_v52, -inf  ;;  %v3708_v7 = vsel %vm3694_vm13, %v3467_v33, %v3464_v34  ;;  %v2740_v28 = vmax.f32 %v2738_v31, %v2739_v24  ;;  %v2746_v12 = vrot.slane %v2745_v42, 4 }
 0x257   : > { %v3473_v3 = vmax.f32 %v3471_v32, %v3472_v49  ;;  %v3709_v1 = vsel %vm3696_vm14, %v3470_v19, %v3708_v7  ;;  %v2753_v5 = vrot.slane %v2752_v13, 4  ;;  %v2760_v29 = vrot.slane %v2759_v58, 4 }
 0x258   : > { %v2741_v37 = vrot.slane %v2740_v28, 2  ;;  %v2747_v2 = vmax.f32 %v2745_v42, %v2746_v12  ;;  %v1954_v43 = vcombine.high %v6240_v54, %v6240_v54  ;;  %v1961_v55 = vrot.slane %v6240_v54, %v6043_v9 }
 0x259   : > { %v2754_v63 = vmax.f32 %v2752_v13, %v2753_v5  ;;  %v2761_v35 = vmax.f32 %v2759_v58, %v2760_v29  ;;  %v6284_v15 = vsel %vm3698_vm15, %v3473_v3, %v3709_v1  ;;  %v1767_v45 = vadd.f32 %v6137_v38, %v6040_v48 }
 0x25a   : > { %v2742_v26 = vmax.f32 %v2740_v28, %v2741_v37  ;;  %v2748_v0 = vrot.slane %v2747_v2, 2  ;;  %v1968_v6 = vrot.slane %v1954_v43, %v6043_v9  ;;  %v1969_v57 = vcombine.high %v1961_v55, %v1961_v55  ;;  %v6302_v43 = vld [vmem:[%s6773_s2] ss:$0 sm:$0xff] }
 0x25b   : > { %v2755_v11 = vrot.slane %v2754_v63, 2  ;;  %v2762_v39 = vrot.slane %v2761_v35, 2  ;;  %v2682_v62 = vsel %vm2541_vm12, %v1961_v55, -inf  ;;  %v1827_v59 = vmax.f32 %v1767_v45, 0.0 }
 0x25c   : > { %v2743_v50 = vrot.slane %v2742_v26, 1  ;;  %v2749_v54 = vmax.f32 %v2747_v2, %v2748_v0  ;;  %v1970_v8 = vcombine.high %v1968_v6, %v1968_v6  ;;  %v2683_v4 = vrot.slane %v2682_v62, 4 }
 0x25d   : > { %v2756_v51 = vmax.f32 %v2754_v63, %v2755_v11  ;;  %v2763_v14 = vmax.f32 %v2761_v35, %v2762_v39  ;;  %v2689_v27 = vsel %vm2541_vm12, %v1969_v57, -inf  ;;  %v2696_v48 = vsel %vm2541_vm12, %v1968_v6, -inf }
 0x25e   : > { %v2744_v38 = vmax.f32 %v2742_v26, %v2743_v50  ;;  %v2750_v36 = vrot.slane %v2749_v54, 1  ;;  %v2684_v25 = vmax.f32 %v2682_v62, %v2683_v4  ;;  %v2690_v22 = vrot.slane %v2689_v27, 4 }
 0x25f   : > { %v2757_v49 = vrot.slane %v2756_v51, 1  ;;  %v2764_v56 = vrot.slane %v2763_v14, 1  ;;  %v2697_v60 = vrot.slane %v2696_v48, 4  ;;  %v2703_v34 = vsel %vm2541_vm12, %v1970_v8, -inf }
 0x260   : > { %v2751_v40 = vmax.f32 %v2749_v54, %v2750_v36  ;;  %v3475_v21 = vsel %vm1383_vm6, %v2744_v38, -inf  ;;  %v2685_v16 = vrot.slane %v2684_v25, 2  ;;  %v2691_v31 = vmax.f32 %v2689_v27, %v2690_v22 }
 0x261   : > { %v2758_v52 = vmax.f32 %v2756_v51, %v2757_v49  ;;  %v2765_v33 = vmax.f32 %v2763_v14, %v2764_v56  ;;  %v2698_v10 = vmax.f32 %v2696_v48, %v2697_v60  ;;  %v2704_v24 = vrot.slane %v2703_v34, 4 }
 0x262   : > { %v3478_v19 = vsel %vm1383_vm6, %v2751_v40, -inf  ;;  %v2686_v42 = vmax.f32 %v2684_v25, %v2685_v16  ;;  %v2692_v13 = vrot.slane %v2691_v31, 2  ;;  %v2243_v58 = vcombine.high %v1827_v59, %v1827_v59 }
 0x263   : > { %v3481_v32 = vsel %vm1383_vm6, %v2758_v52, -inf  ;;  %v3484_v7 = vsel %vm1383_vm6, %v2765_v33, -inf  ;;  %v2699_v28 = vrot.slane %v2698_v10, 2  ;;  %v2705_v12 = vmax.f32 %v2703_v34, %v2704_v24 }
 0x264   : > { %v2687_v3 = vrot.slane %v2686_v42, 1  ;;  %v2693_v1 = vmax.f32 %v2691_v31, %v2692_v13  ;;  %v2250_v5 = vrot.slane %v1827_v59, %v6043_v9  ;;  %v2257_v29 = vrot.slane %v2243_v58, %v6043_v9 }
 0x265   : > { %v2700_v37 = vmax.f32 %v2698_v10, %v2699_v28  ;;  %v2706_v2 = vrot.slane %v2705_v12, 2  ;;  %v1759_v55 = vadd.f32 %v6302_v43, %v6144_v20  ;;  %v1770_v63 = vadd.f32 %v6302_v43, %v6147_v17 }
 0x266   : > { %v2688_v35 = vmax.f32 %v2686_v42, %v2687_v3  ;;  %v2694_v45 = vrot.slane %v2693_v1, 1  ;;  %v2258_v26 = vcombine.high %v2250_v5, %v2250_v5  ;;  %v2259_v0 = vcombine.high %v2257_v29, %v2257_v29 }
 0x267   : > { %v2701_v6 = vrot.slane %v2700_v37, 1  ;;  %v2707_v57 = vmax.f32 %v2705_v12, %v2706_v2  ;;  %v3158_v11 = vsel %vm2541_vm12, %v2250_v5, -inf  ;;  %v3172_v39 = vsel %vm2541_vm12, %v2257_v29, -inf }
 0x268   : > { %v2695_v62 = vmax.f32 %v2693_v1, %v2694_v45  ;;  %v3474_v59 = vsel %vm1383_vm6, %v2688_v35, -inf  ;;  %v3159_v50 = vrot.slane %v3158_v11, 4  ;;  %v3165_v54 = vsel %vm2541_vm12, %v2258_v26, -inf }
 0x269   : > { %v2702_v20 = vmax.f32 %v2700_v37, %v2701_v6  ;;  %v2708_v8 = vrot.slane %v2707_v57, 1  ;;  %v3476_v4 = vmax.f32 %v3474_v59, %v3475_v21  ;;  %v3166_v17 = vrot.slane %v3165_v54, 4  ;;  %v6326_v6 = vpop.f32.mrb[12].mxu0 }
 0x26a   : > { %v3477_v51 = vsel %vm1383_vm6, %v2695_v62, -inf  ;;  %v3160_v14 = vmax.f32 %v3158_v11, %v3159_v50  ;;  %v3173_v27 = vrot.slane %v3172_v39, 4  ;;  %v3179_v48 = vsel %vm2541_vm12, %v2259_v0, -inf }
 0x26b   : > { %v2709_v38 = vmax.f32 %v2707_v57, %v2708_v8  ;;  %v3479_v36 = vmax.f32 %v3477_v51, %v3478_v19  ;;  %v3480_v25 = vsel %vm1383_vm6, %v2702_v20, -inf  ;;  %v3711_v22 = vsel %vm3700_vm0, %v3476_v4, %v6284_v15  ;;  %v6338_v51 = vpop.f32.mrb[12].mxu1 }
 0x26c   : > { %v3482_v49 = vmax.f32 %v3480_v25, %v3481_v32  ;;  %v3161_v56 = vrot.slane %v3160_v14, 2  ;;  %v3167_v60 = vmax.f32 %v3165_v54, %v3166_v17  ;;  %v3174_v34 = vmax.f32 %v3172_v39, %v3173_v27 }
 0x26d   : > { %v3483_v40 = vsel %vm1383_vm6, %v2709_v38, -inf  ;;  %v3712_v21 = vsel %vm3702_vm1, %v3479_v36, %v3711_v22  ;;  %v3180_v16 = vrot.slane %v3179_v48, 4  ;;  %v1825_v31 = vmax.f32 %v1759_v55, 0.0 }
 0x26e   : > { %v3485_v52 = vmax.f32 %v3483_v40, %v3484_v7  ;;  %v3713_v33 = vsel %vm3704_vm2, %v3482_v49, %v3712_v21  ;;  %v3162_v10 = vmax.f32 %v3160_v14, %v3161_v56  ;;  %v3168_v24 = vrot.slane %v3167_v60, 2 }
 0x26f   : > { %v3175_v19 = vrot.slane %v3174_v34, 2  ;;  %v3181_v42 = vmax.f32 %v3179_v48, %v3180_v16  ;;  %v2209_v13 = vcombine.high %v1825_v31, %v1825_v31  ;;  %v2216_v15 = vrot.slane %v1825_v31, %v6043_v9 }
 0x270   : > { %v3714_v58 = vsel %vm3706_vm3, %v3485_v52, %v3713_v33  ;;  %v3163_v32 = vrot.slane %v3162_v10, 1  ;;  %v3169_v28 = vmax.f32 %v3167_v60, %v3168_v24  ;;  %v1828_v12 = vmax.f32 %v1770_v63, 0.0 }
 0x271   : > { %3766 = vst.msk [vmem:[%s6157_s10 + $0x8] sm:$0xff] %vm1383_vm6, %v3714_v58  ;;  %v3176_v3 = vmax.f32 %v3174_v34, %v3175_v19  ;;  %v3182_v1 = vrot.slane %v3181_v42, 2  ;;  %v2223_v7 = vrot.slane %v2209_v13, %v6043_v9  ;;  %v2224_v5 = vcombine.high %v2216_v15, %v2216_v15 }
 0x272   : > { %v3164_v29 = vmax.f32 %v3162_v10, %v3163_v32  ;;  %v3170_v37 = vrot.slane %v3169_v28, 1  ;;  %v3102_v2 = vsel %vm2541_vm12, %v2216_v15, -inf  ;;  %v2260_v55 = vcombine.high %v1828_v12, %v1828_v12 }
 0x273   : > { %v3177_v35 = vrot.slane %v3176_v3, 1  ;;  %v3183_v45 = vmax.f32 %v3181_v42, %v3182_v1  ;;  %v2225_v26 = vcombine.high %v2223_v7, %v2223_v7  ;;  %v3103_v0 = vrot.slane %v3102_v2, 4 }
 0x274   : > { %v3171_v57 = vmax.f32 %v3169_v28, %v3170_v37  ;;  %v6329_v63 = vsel %vm1383_vm6, %v3164_v29, -inf  ;;  %v3109_v11 = vsel %vm2541_vm12, %v2224_v5, -inf  ;;  %v3116_v39 = vsel %vm2541_vm12, %v2223_v7, -inf }
 0x275   : > { %v3178_v62 = vmax.f32 %v3176_v3, %v3177_v35  ;;  %v3184_v59 = vrot.slane %v3183_v45, 1  ;;  %v3104_v50 = vmax.f32 %v3102_v2, %v3103_v0  ;;  %v3110_v54 = vrot.slane %v3109_v11, 4 }
 0x276   : > { %v6334_v20 = vsel %vm1383_vm6, %v3171_v57, -inf  ;;  %v3117_v8 = vrot.slane %v3116_v39, 4  ;;  %v3123_v4 = vsel %vm2541_vm12, %v2225_v26, -inf  ;;  %v2267_v17 = vrot.slane %v1828_v12, %v6043_v9 }
 0x277   : > { %v3185_v14 = vmax.f32 %v3183_v45, %v3184_v59  ;;  %v3565_v27 = vsel %vm1383_vm6, %v3178_v62, -inf  ;;  %v3105_v48 = vrot.slane %v3104_v50, 2  ;;  %v3111_v38 = vmax.f32 %v3109_v11, %v3110_v54 }
 0x278   : > { %v3118_v36 = vmax.f32 %v3116_v39, %v3117_v8  ;;  %v3124_v25 = vrot.slane %v3123_v4, 4  ;;  %v2274_v22 = vrot.slane %v2260_v55, %v6043_v9  ;;  %v2275_v49 = vcombine.high %v2267_v17, %v2267_v17 }
 0x279   : > { %v6343_v56 = vsel %vm1383_vm6, %v3185_v14, -inf  ;;  %v3106_v60 = vmax.f32 %v3104_v50, %v3105_v48  ;;  %v3112_v34 = vrot.slane %v3111_v38, 2  ;;  %v3186_v40 = vsel %vm2541_vm12, %v2267_v17, -inf  ;;  %v6354_v17 = vpop.f32.mrb[13].mxu0  ;;  %v6356_v14 = vpop.f32.mrb[13].mxu1 }
 0x27a   : > { %v3119_v21 = vrot.slane %v3118_v36, 2  ;;  %v3125_v16 = vmax.f32 %v3123_v4, %v3124_v25  ;;  %v2276_v31 = vcombine.high %v2274_v22, %v2274_v22  ;;  %v3187_v52 = vrot.slane %v3186_v40, 4  ;;  %v6358_v25 = vpop.f32.mrb[14].mxu0 }
 0x27b   : > { %v3107_v33 = vrot.slane %v3106_v60, 1  ;;  %v3113_v10 = vmax.f32 %v3111_v38, %v3112_v34  ;;  %v3193_v24 = vsel %vm2541_vm12, %v2275_v49, -inf  ;;  %v3200_v19 = vsel %vm2541_vm12, %v2274_v22, -inf }
 0x27c   : > { %v3120_v42 = vmax.f32 %v3118_v36, %v3119_v21  ;;  %v3126_v13 = vrot.slane %v3125_v16, 2  ;;  %v3188_v15 = vmax.f32 %v3186_v40, %v3187_v52  ;;  %v3194_v58 = vrot.slane %v3193_v24, 4 }
 0x27d   : > { %v3108_v32 = vmax.f32 %v3106_v60, %v3107_v33  ;;  %v3114_v28 = vrot.slane %v3113_v10, 1  ;;  %v3201_v12 = vrot.slane %v3200_v19, 4  ;;  %v3207_v3 = vsel %vm2541_vm12, %v2276_v31, -inf }
 0x27e   : > { %v3121_v1 = vrot.slane %v3120_v42, 1  ;;  %v3127_v7 = vmax.f32 %v3125_v16, %v3126_v13  ;;  %v3189_v5 = vrot.slane %v3188_v15, 2  ;;  %v3195_v29 = vmax.f32 %v3193_v24, %v3194_v58 }
 0x27f   : > { %v3115_v37 = vmax.f32 %v3113_v10, %v3114_v28  ;;  %v3558_v2 = vsel %vm1383_vm6, %v3108_v32, -inf  ;;  %v3202_v55 = vmax.f32 %v3200_v19, %v3201_v12  ;;  %v3208_v35 = vrot.slane %v3207_v3, 4 }
 0x280   : > { %v3122_v45 = vmax.f32 %v3120_v42, %v3121_v1  ;;  %v3128_v26 = vrot.slane %v3127_v7, 1  ;;  %v3560_v0 = vmax.f32 %v3558_v2, %v6329_v63  ;;  %v3190_v57 = vmax.f32 %v3188_v15, %v3189_v5 }
 0x281   : > { %v3561_v11 = vsel %vm1383_vm6, %v3115_v37, -inf  ;;  %v3196_v39 = vrot.slane %v3195_v29, 2  ;;  %v3203_v62 = vrot.slane %v3202_v55, 2  ;;  %v3209_v59 = vmax.f32 %v3207_v3, %v3208_v35 }
 0x282   : > { %v3129_v50 = vmax.f32 %v3127_v7, %v3128_v26  ;;  %v3563_v54 = vmax.f32 %v3561_v11, %v6334_v20  ;;  %v3564_v8 = vsel %vm1383_vm6, %v3122_v45, -inf  ;;  %v3191_v4 = vrot.slane %v3190_v57, 1  ;;  %v6391_v7 = vpop.f32.mrb[14].mxu1 }
 0x283   : > { %v3566_v48 = vmax.f32 %v3564_v8, %v3565_v27  ;;  %v3197_v38 = vmax.f32 %v3195_v29, %v3196_v39  ;;  %v3204_v36 = vmax.f32 %v3202_v55, %v3203_v62  ;;  %v3210_v63 = vrot.slane %v3209_v59, 2 }
 0x284   : > { %v3567_v22 = vsel %vm1383_vm6, %v3129_v50, -inf  ;;  %v3736_v49 = vsel %vm3694_vm13, %v3563_v54, %v3560_v0  ;;  %v3192_v60 = vmax.f32 %v3190_v57, %v3191_v4  ;;  %v1762_v20 = vadd.f32 %v6302_v43, %v6152_v61 }
 0x285   : > { %v3569_v34 = vmax.f32 %v3567_v22, %v6343_v56  ;;  %v3737_v40 = vsel %vm3696_vm14, %v3566_v48, %v3736_v49  ;;  %v3198_v21 = vrot.slane %v3197_v38, 1  ;;  %v3205_v16 = vrot.slane %v3204_v36, 1 }
 0x286   : > { %v3211_v27 = vmax.f32 %v3209_v59, %v3210_v63  ;;  %v6367_v31 = vsel %vm1383_vm6, %v3192_v60, -inf  ;;  %v1826_v52 = vmax.f32 %v1762_v20, 0.0  ;;  %v1719_v33 = vadd.f32 %v6302_v43, %v6213_v44 }
 0x287   : > { %v3199_v10 = vmax.f32 %v3197_v38, %v3198_v21  ;;  %v3206_v24 = vmax.f32 %v3204_v36, %v3205_v16  ;;  %v6372_v19 = vsel %vm3698_vm15, %v3569_v34, %v3737_v40  ;;  %v1783_v61 = vadd.f32 %v6302_v43, %v6201_v30 }
 0x288   : > { %v3212_v56 = vrot.slane %v3211_v27, 1  ;;  %v2226_v42 = vcombine.high %v1826_v52, %v1826_v52  ;;  %v2233_v13 = vrot.slane %v1826_v52, %v6043_v9  ;;  %v1815_v15 = vmax.f32 %v1719_v33, 0.0 }
 0x289   : > { %v6378_v58 = vsel %vm1383_vm6, %v3199_v10, -inf  ;;  %v6381_v32 = vsel %vm1383_vm6, %v3206_v24, -inf  ;;  %v6383_v44 = vmax.f32 %v1783_v61, 0.0  ;;  %v6387_v28 = vadd.f32 %v6302_v43, %v6218_v23 }
 0x28a   : > { %v3213_v12 = vmax.f32 %v3211_v27, %v3212_v56  ;;  %v2240_v30 = vrot.slane %v2226_v42, %v6043_v9  ;;  %v2241_v3 = vcombine.high %v2233_v13, %v2233_v13  ;;  %v3130_v1 = vsel %vm2541_vm12, %v2233_v13, -inf }
 0x28b   : > { %v3131_v5 = vrot.slane %v3130_v1, 4  ;;  %v2039_v29 = vcombine.high %v1815_v15, %v1815_v15  ;;  %v2046_v37 = vrot.slane %v1815_v15, %v6043_v9  ;;  %v2311_v2 = vcombine.high %v6383_v44, %v6383_v44 }
 0x28c   : > { %v6397_v55 = vsel %vm1383_vm6, %v3213_v12, -inf  ;;  %v2242_v23 = vcombine.high %v2240_v30, %v2240_v30  ;;  %v3137_v35 = vsel %vm2541_vm12, %v2241_v3, -inf  ;;  %v3144_v45 = vsel %vm2541_vm12, %v2240_v30, -inf }
 0x28d   : > { %v3132_v26 = vmax.f32 %v3130_v1, %v3131_v5  ;;  %v3138_v0 = vrot.slane %v3137_v35, 4  ;;  %v3145_v57 = vrot.slane %v3144_v45, 4  ;;  %v2053_v11 = vrot.slane %v2039_v29, %v6043_v9 }
 0x28e   : > { %v3151_v39 = vsel %vm2541_vm12, %v2242_v23, -inf  ;;  %v2054_v62 = vcombine.high %v2046_v37, %v2046_v37  ;;  %v2822_v59 = vsel %vm2541_vm12, %v2046_v37, -inf  ;;  %v6406_v50 = vrot.slane %v6383_v44, %v6043_v9 }
 0x28f   : > { %v3133_v54 = vrot.slane %v3132_v26, 2  ;;  %v3139_v8 = vmax.f32 %v3137_v35, %v3138_v0  ;;  %v3146_v4 = vmax.f32 %v3144_v45, %v3145_v57  ;;  %v3152_v48 = vrot.slane %v3151_v39, 4 }
 0x290   : > { %v2055_v38 = vcombine.high %v2053_v11, %v2053_v11  ;;  %v2823_v36 = vrot.slane %v2822_v59, 4  ;;  %v2829_v63 = vsel %vm2541_vm12, %v2054_v62, -inf  ;;  %v2836_v22 = vsel %vm2541_vm12, %v2053_v11, -inf  ;;  %v6413_v62 = vpop.f32.mrb[15].mxu0 }
 0x291   : > { %v3134_v49 = vmax.f32 %v3132_v26, %v3133_v54  ;;  %v3140_v60 = vrot.slane %v3139_v8, 2  ;;  %v3147_v20 = vrot.slane %v3146_v4, 2  ;;  %v3153_v34 = vmax.f32 %v3151_v39, %v3152_v48 }
 0x292   : > { %v2824_v40 = vmax.f32 %v2822_v59, %v2823_v36  ;;  %v2830_v21 = vrot.slane %v2829_v63, 4  ;;  %v2837_v16 = vrot.slane %v2836_v22, 4  ;;  %v2843_v27 = vsel %vm2541_vm12, %v2055_v38, -inf }
 0x293   : > { %v3135_v52 = vrot.slane %v3134_v49, 1  ;;  %v3141_v33 = vmax.f32 %v3139_v8, %v3140_v60  ;;  %v3148_v10 = vmax.f32 %v3146_v4, %v3147_v20  ;;  %v3154_v24 = vrot.slane %v3153_v34, 2 }
 0x294   : > { %v2825_v61 = vrot.slane %v2824_v40, 2  ;;  %v2831_v56 = vmax.f32 %v2829_v63, %v2830_v21  ;;  %v2838_v42 = vmax.f32 %v2836_v22, %v2837_v16  ;;  %v2844_v13 = vrot.slane %v2843_v27, 4 }
 0x295   : > { %v3136_v15 = vmax.f32 %v3134_v49, %v3135_v52  ;;  %v3142_v12 = vrot.slane %v3141_v33, 1  ;;  %v3149_v30 = vrot.slane %v3148_v10, 1  ;;  %v3155_v3 = vmax.f32 %v3153_v34, %v3154_v24 }
 0x296   : > { %v2826_v1 = vmax.f32 %v2824_v40, %v2825_v61  ;;  %v2832_v5 = vrot.slane %v2831_v56, 2  ;;  %v2839_v29 = vrot.slane %v2838_v42, 2  ;;  %v2845_v37 = vmax.f32 %v2843_v27, %v2844_v13  ;;  %v6432_v27 = vpop.f32.mrb[15].mxu1 }
 0x297   : > { %v3143_v23 = vmax.f32 %v3141_v33, %v3142_v12  ;;  %v3150_v35 = vmax.f32 %v3148_v10, %v3149_v30  ;;  %v3156_v45 = vrot.slane %v3155_v3, 1  ;;  %v3570_v26 = vsel %vm1383_vm6, %v3136_v15, -inf }
 0x298   : > { %v3572_v0 = vmax.f32 %v3570_v26, %v6367_v31  ;;  %v2827_v57 = vrot.slane %v2826_v1, 1  ;;  %v2833_v11 = vmax.f32 %v2831_v56, %v2832_v5  ;;  %v2840_v39 = vmax.f32 %v2838_v42, %v2839_v29 }
 0x299   : > { %v3157_v59 = vmax.f32 %v3155_v3, %v3156_v45  ;;  %v3573_v54 = vsel %vm1383_vm6, %v3143_v23, -inf  ;;  %v3576_v8 = vsel %vm1383_vm6, %v3150_v35, -inf  ;;  %v2846_v4 = vrot.slane %v2845_v37, 2 }
 0x29a   : > { %v3575_v48 = vmax.f32 %v3573_v54, %v6378_v58  ;;  %v3578_v38 = vmax.f32 %v3576_v8, %v6381_v32  ;;  %v3739_v36 = vsel %vm3700_vm0, %v3572_v0, %v6372_v19  ;;  %v2828_v63 = vmax.f32 %v2826_v1, %v2827_v57 }
 0x29b   : > { %v3579_v31 = vsel %vm1383_vm6, %v3157_v59, -inf  ;;  %v2834_v22 = vrot.slane %v2833_v11, 1  ;;  %v2841_v49 = vrot.slane %v2840_v39, 1  ;;  %v2847_v60 = vmax.f32 %v2845_v37, %v2846_v4 }
 0x29c   : > { %v3581_v20 = vmax.f32 %v3579_v31, %v6397_v55  ;;  %v3740_v34 = vsel %vm3702_vm1, %v3575_v48, %v3739_v36  ;;  %v6425_v40 = vsel %vm1383_vm6, %v2828_v63, -inf  ;;  %v2325_v58 = vrot.slane %v2311_v2, %v6043_v9 }
 0x29d   : > { %v3741_v19 = vsel %vm3704_vm2, %v3578_v38, %v3740_v34  ;;  %v2835_v32 = vmax.f32 %v2833_v11, %v2834_v22  ;;  %v2842_v21 = vmax.f32 %v2840_v39, %v2841_v49  ;;  %v2848_v16 = vrot.slane %v2847_v60, 1 }
 0x29e   : > { %v3742_v52 = vsel %vm3706_vm3, %v3581_v20, %v3741_v19  ;;  %v2326_v55 = vcombine.high %v6406_v50, %v6406_v50  ;;  %v2327_v33 = vcombine.high %v2325_v58, %v2325_v58  ;;  %v3270_v10 = vsel %vm2541_vm12, %v6406_v50, -inf }
 0x29f   : > { %3770 = vst.msk [vmem:[%s6157_s10 + $0x28] sm:$0xff] %vm1383_vm6, %v3742_v52  ;;  %v2849_v44 = vmax.f32 %v2847_v60, %v2848_v16  ;;  %v6442_v2 = vsel %vm1383_vm6, %v2835_v32, -inf  ;;  %v6445_v24 = vsel %vm1383_vm6, %v2842_v21, -inf  ;;  %v3271_v61 = vrot.slane %v3270_v10, 4 }
 0x2a0   : > { %v3277_v56 = vsel %vm2541_vm12, %v2326_v55, -inf  ;;  %v3284_v42 = vsel %vm2541_vm12, %v2325_v58, -inf  ;;  %v3291_v13 = vsel %vm2541_vm12, %v2327_v33, -inf  ;;  %v1813_v15 = vmax.f32 %v6387_v28, 0.0 }
 0x2a1   : > { %v6452_v50 = vsel %vm1383_vm6, %v2849_v44, -inf  ;;  %v3272_v12 = vmax.f32 %v3270_v10, %v3271_v61  ;;  %v3278_v30 = vrot.slane %v3277_v56, 4  ;;  %v3285_v3 = vrot.slane %v3284_v42, 4 }
 0x2a2   : > { %v3292_v1 = vrot.slane %v3291_v13, 4  ;;  %v2005_v5 = vcombine.high %v1813_v15, %v1813_v15  ;;  %v2012_v29 = vrot.slane %v1813_v15, %v6043_v9  ;;  %v1775_v37 = vadd.f32 %v6302_v43, %v6204_v18 }
 0x2a3   : > { %v3273_v23 = vrot.slane %v3272_v12, 2  ;;  %v3279_v35 = vmax.f32 %v3277_v56, %v3278_v30  ;;  %v3286_v45 = vmax.f32 %v3284_v42, %v3285_v3  ;;  %v1722_v26 = vadd.f32 %v6302_v43, %v6222_v46 }
 0x2a4   : > { %v3293_v28 = vmax.f32 %v3291_v13, %v3292_v1  ;;  %v2019_v0 = vrot.slane %v2005_v5, %v6043_v9  ;;  %v2020_v57 = vcombine.high %v2012_v29, %v2012_v29  ;;  %v2766_v11 = vsel %vm2541_vm12, %v2012_v29, -inf }
 0x2a5   : > { %v3274_v39 = vmax.f32 %v3272_v12, %v3273_v23  ;;  %v3280_v59 = vrot.slane %v3279_v35, 2  ;;  %v3287_v54 = vrot.slane %v3286_v45, 2  ;;  %v2767_v8 = vrot.slane %v2766_v11, 4 }
 0x2a6   : > { %v3294_v4 = vrot.slane %v3293_v28, 2  ;;  %v2021_v48 = vcombine.high %v2019_v0, %v2019_v0  ;;  %v2773_v18 = vsel %vm2541_vm12, %v2020_v57, -inf  ;;  %v2780_v38 = vsel %vm2541_vm12, %v2019_v0, -inf }
 0x2a7   : > { %v3275_v36 = vrot.slane %v3274_v39, 1  ;;  %v3281_v63 = vmax.f32 %v3279_v35, %v3280_v59  ;;  %v3288_v31 = vmax.f32 %v3286_v45, %v3287_v54  ;;  %v2768_v46 = vmax.f32 %v2766_v11, %v2767_v8 }
 0x2a8   : > { %v3295_v22 = vmax.f32 %v3293_v28, %v3294_v4  ;;  %v2774_v49 = vrot.slane %v2773_v18, 4  ;;  %v2781_v60 = vrot.slane %v2780_v38, 4  ;;  %v2787_v20 = vsel %vm2541_vm12, %v2021_v48, -inf }
 0x2a9   : > { %v3276_v34 = vmax.f32 %v3274_v39, %v3275_v36  ;;  %v3282_v58 = vrot.slane %v3281_v63, 1  ;;  %v3289_v19 = vrot.slane %v3288_v31, 1  ;;  %v2769_v32 = vrot.slane %v2768_v46, 2 }
 0x2aa   : > { %v3296_v21 = vrot.slane %v3295_v22, 1  ;;  %v2775_v16 = vmax.f32 %v2773_v18, %v2774_v49  ;;  %v2782_v52 = vmax.f32 %v2780_v38, %v2781_v60  ;;  %v2788_v55 = vrot.slane %v2787_v20, 4 }
 0x2ab   : > { %v3283_v33 = vmax.f32 %v3281_v63, %v3282_v58  ;;  %v3290_v10 = vmax.f32 %v3288_v31, %v3289_v19  ;;  %v6465_v44 = vsel %vm1383_vm6, %v3276_v34, -inf  ;;  %v2770_v61 = vmax.f32 %v2768_v46, %v2769_v32 }
 0x2ac   : > { %v3297_v56 = vmax.f32 %v3295_v22, %v3296_v21  ;;  %v2776_v42 = vrot.slane %v2775_v16, 2  ;;  %v2783_v13 = vrot.slane %v2782_v52, 2  ;;  %v2789_v15 = vmax.f32 %v2787_v20, %v2788_v55 }
 0x2ad   : > { %v6468_v12 = vsel %vm1383_vm6, %v3283_v33, -inf  ;;  %v6471_v30 = vsel %vm1383_vm6, %v3290_v10, -inf  ;;  %v2771_v3 = vrot.slane %v2770_v61, 1  ;;  %v1829_v1 = vmax.f32 %v1775_v37, 0.0 }
 0x2ae   : > { %v6474_v5 = vsel %vm1383_vm6, %v3297_v56, -inf  ;;  %v2777_v29 = vmax.f32 %v2775_v16, %v2776_v42  ;;  %v2784_v23 = vmax.f32 %v2782_v52, %v2783_v13  ;;  %v2790_v35 = vrot.slane %v2789_v15, 2 }
 0x2af   : > { %v2772_v45 = vmax.f32 %v2770_v61, %v2771_v3  ;;  %v2277_v28 = vcombine.high %v1829_v1, %v1829_v1  ;;  %v2284_v0 = vrot.slane %v1829_v1, %v6043_v9  ;;  %v1816_v57 = vmax.f32 %v1722_v26, 0.0 }
 0x2b0   : > { %v2778_v11 = vrot.slane %v2777_v29, 1  ;;  %v2785_v39 = vrot.slane %v2784_v23, 1  ;;  %v2791_v59 = vmax.f32 %v2789_v15, %v2790_v35  ;;  %v1786_v54 = vadd.f32 %v6302_v43, %v6215_v41 }
 0x2b1   : > { %v3486_v8 = vsel %vm1383_vm6, %v2772_v45, -inf  ;;  %v2291_v37 = vrot.slane %v2277_v28, %v6043_v9  ;;  %v2292_v4 = vcombine.high %v2284_v0, %v2284_v0  ;;  %v3214_v48 = vsel %vm2541_vm12, %v2284_v0, -inf }
 0x2b2   : > { %v2779_v18 = vmax.f32 %v2777_v29, %v2778_v11  ;;  %v2786_v38 = vmax.f32 %v2784_v23, %v2785_v39  ;;  %v2792_v36 = vrot.slane %v2791_v59, 1  ;;  %v3488_v63 = vmax.f32 %v3486_v8, %v6425_v40 }
 0x2b3   : > { %v2293_v31 = vcombine.high %v2291_v37, %v2291_v37  ;;  %v3215_v26 = vrot.slane %v3214_v48, 4  ;;  %v3221_v46 = vsel %vm2541_vm12, %v2292_v4, -inf  ;;  %v3228_v22 = vsel %vm2541_vm12, %v2291_v37, -inf }
 0x2b4   : > { %v2793_v49 = vmax.f32 %v2791_v59, %v2792_v36  ;;  %v3489_v41 = vsel %vm1383_vm6, %v2779_v18, -inf  ;;  %v3492_v60 = vsel %vm1383_vm6, %v2786_v38, -inf  ;;  %v3222_v20 = vrot.slane %v3221_v46, 4 }
 0x2b5   : > { %v3491_v34 = vmax.f32 %v3489_v41, %v6442_v2  ;;  %v3494_v58 = vmax.f32 %v3492_v60, %v6445_v24  ;;  %v3216_v19 = vmax.f32 %v3214_v48, %v3215_v26  ;;  %v3229_v32 = vrot.slane %v3228_v22, 4 }
 0x2b6   : > { %v6490_v40 = vsel %vm1383_vm6, %v2793_v49, -inf  ;;  %v3223_v21 = vmax.f32 %v3221_v46, %v3222_v20  ;;  %v3235_v16 = vsel %vm2541_vm12, %v2293_v31, -inf  ;;  %v2056_v52 = vcombine.high %v1816_v57, %v1816_v57 }
 0x2b7   : > { %v3497_v55 = vmax.f32 %v6490_v40, %v6452_v50  ;;  %v3715_v33 = vsel %vm3694_vm13, %v3491_v34, %v3488_v63  ;;  %v3217_v10 = vrot.slane %v3216_v19, 2  ;;  %v3230_v61 = vmax.f32 %v3228_v22, %v3229_v32 }
 0x2b8   : > { %v6497_v2 = vsel %vm3696_vm14, %v3494_v58, %v3715_v33  ;;  %v3224_v24 = vrot.slane %v3223_v21, 2  ;;  %v3236_v56 = vrot.slane %v3235_v16, 4  ;;  %v2063_v42 = vrot.slane %v1816_v57, %v6043_v9 }
 0x2b9   : > { %v3218_v13 = vmax.f32 %v3216_v19, %v3217_v10  ;;  %v3231_v15 = vrot.slane %v3230_v61, 2  ;;  %v2070_v3 = vrot.slane %v2056_v52, %v6043_v9  ;;  %v1832_v1 = vmax.f32 %v1786_v54, 0.0 }
 0x2ba   : > { %v3225_v29 = vmax.f32 %v3223_v21, %v3224_v24  ;;  %v3237_v23 = vmax.f32 %v3235_v16, %v3236_v56  ;;  %v2071_v35 = vcombine.high %v2063_v42, %v2063_v42  ;;  %v2850_v45 = vsel %vm2541_vm12, %v2063_v42, -inf }
 0x2bb   : > { %v3219_v28 = vrot.slane %v3218_v13, 1  ;;  %v3232_v0 = vmax.f32 %v3230_v61, %v3231_v15  ;;  %v2072_v11 = vcombine.high %v2070_v3, %v2070_v3  ;;  %v2851_v39 = vrot.slane %v2850_v45, 4 }
 0x2bc   : > { %v3226_v59 = vrot.slane %v3225_v29, 1  ;;  %v3238_v8 = vrot.slane %v3237_v23, 2  ;;  %v2857_v37 = vsel %vm2541_vm12, %v2071_v35, -inf  ;;  %v2864_v57 = vsel %vm2541_vm12, %v2070_v3, -inf }
 0x2bd   : > { %v3220_v4 = vmax.f32 %v3218_v13, %v3219_v28  ;;  %v3233_v48 = vrot.slane %v3232_v0, 1  ;;  %v2852_v18 = vmax.f32 %v2850_v45, %v2851_v39  ;;  %v2858_v38 = vrot.slane %v2857_v37, 4 }
 0x2be   : > { %v3227_v54 = vmax.f32 %v3225_v29, %v3226_v59  ;;  %v3239_v36 = vmax.f32 %v3237_v23, %v3238_v8  ;;  %v2865_v63 = vrot.slane %v2864_v57, 4  ;;  %v2871_v31 = vsel %vm2541_vm12, %v2072_v11, -inf }
 0x2bf   : > { %v3234_v26 = vmax.f32 %v3232_v0, %v3233_v48  ;;  %v3582_v46 = vsel %vm1383_vm6, %v3220_v4, -inf  ;;  %v2853_v22 = vrot.slane %v2852_v18, 2  ;;  %v2859_v49 = vmax.f32 %v2857_v37, %v2858_v38 }
 0x2c0   : > { %v3240_v41 = vrot.slane %v3239_v36, 1  ;;  %v3584_v60 = vmax.f32 %v3582_v46, %v6465_v44  ;;  %v3585_v20 = vsel %vm1383_vm6, %v3227_v54, -inf  ;;  %v2866_v34 = vmax.f32 %v2864_v57, %v2865_v63 }
 0x2c1   : > { %v3587_v58 = vmax.f32 %v3585_v20, %v6468_v12  ;;  %v3588_v19 = vsel %vm1383_vm6, %v3234_v26, -inf  ;;  %v2854_v32 = vmax.f32 %v2852_v18, %v2853_v22  ;;  %v2860_v21 = vrot.slane %v2859_v49, 2 }
 0x2c2   : > { %v3241_v16 = vmax.f32 %v3239_v36, %v3240_v41  ;;  %v3590_v52 = vmax.f32 %v3588_v19, %v6471_v30  ;;  %v2867_v33 = vrot.slane %v2866_v34, 2  ;;  %v2872_v10 = vrot.slane %v2871_v31, 4 }
 0x2c3   : > { %v3743_v61 = vsel %vm3694_vm13, %v3587_v58, %v3584_v60  ;;  %v2855_v24 = vrot.slane %v2854_v32, 1  ;;  %v2861_v56 = vmax.f32 %v2859_v49, %v2860_v21  ;;  %v2328_v42 = vcombine.high %v1832_v1, %v1832_v1 }
 0x2c4   : > { %v6513_v44 = vsel %vm1383_vm6, %v3241_v16, -inf  ;;  %v6516_v13 = vsel %vm3696_vm14, %v3590_v52, %v3743_v61  ;;  %v2868_v12 = vmax.f32 %v2866_v34, %v2867_v33  ;;  %v2873_v15 = vmax.f32 %v2871_v31, %v2872_v10 }
 0x2c5   : > { %v3593_v3 = vmax.f32 %v6513_v44, %v6474_v5  ;;  %v2856_v29 = vmax.f32 %v2854_v32, %v2855_v24  ;;  %v2862_v30 = vrot.slane %v2861_v56, 1  ;;  %v2335_v23 = vrot.slane %v1832_v1, %v6043_v9 }
 0x2c6   : > { %v2869_v35 = vrot.slane %v2868_v12, 1  ;;  %v2874_v45 = vrot.slane %v2873_v15, 2  ;;  %v2342_v28 = vrot.slane %v2328_v42, %v6043_v9  ;;  %v1714_v0 = vadd.f32 %v6302_v43, %v6245_v53 }
 0x2c7   : > { %v2863_v11 = vmax.f32 %v2861_v56, %v2862_v30  ;;  %v6525_v39 = vsel %vm1383_vm6, %v2856_v29, -inf  ;;  %v2343_v59 = vcombine.high %v2335_v23, %v2335_v23  ;;  %v3298_v8 = vsel %vm2541_vm12, %v2335_v23, -inf }
 0x2c8   : > { %v2870_v37 = vmax.f32 %v2868_v12, %v2869_v35  ;;  %v2875_v57 = vmax.f32 %v2873_v15, %v2874_v45  ;;  %v2344_v4 = vcombine.high %v2342_v28, %v2342_v28  ;;  %v3299_v48 = vrot.slane %v3298_v8, 4 }
 0x2c9   : > { %v6529_v1 = vsel %vm1383_vm6, %v2863_v11, -inf  ;;  %v3305_v18 = vsel %vm2541_vm12, %v2343_v59, -inf  ;;  %v3312_v38 = vsel %vm2541_vm12, %v2342_v28, -inf  ;;  %v1814_v54 = vmax.f32 %v1714_v0, 0.0 }
 0x2ca   : > { %v2876_v53 = vrot.slane %v2875_v57, 1  ;;  %v6534_v36 = vsel %vm1383_vm6, %v2870_v37, -inf  ;;  %v3300_v63 = vmax.f32 %v3298_v8, %v3299_v48  ;;  %v3306_v31 = vrot.slane %v3305_v18, 4 }
 0x2cb   : > { %v3313_v26 = vrot.slane %v3312_v38, 4  ;;  %v3319_v46 = vsel %vm2541_vm12, %v2344_v4, -inf  ;;  %v2022_v22 = vcombine.high %v1814_v54, %v1814_v54  ;;  %v2029_v49 = vrot.slane %v1814_v54, %v6043_v9 }
 0x2cc   : > { %v2877_v41 = vmax.f32 %v2875_v57, %v2876_v53  ;;  %v3301_v60 = vrot.slane %v3300_v63, 2  ;;  %v3307_v20 = vmax.f32 %v3305_v18, %v3306_v31  ;;  %v3320_v34 = vrot.slane %v3319_v46, 4 }
 0x2cd   : > { %v3314_v58 = vmax.f32 %v3312_v38, %v3313_v26  ;;  %v2036_v19 = vrot.slane %v2022_v22, %v6043_v9  ;;  %v2037_v32 = vcombine.high %v2029_v49, %v2029_v49  ;;  %v2794_v21 = vsel %vm2541_vm12, %v2029_v49, -inf }
 0x2ce   : > { %v6541_v16 = vsel %vm1383_vm6, %v2877_v41, -inf  ;;  %v3302_v52 = vmax.f32 %v3300_v63, %v3301_v60  ;;  %v3308_v33 = vrot.slane %v3307_v20, 2  ;;  %v3321_v10 = vmax.f32 %v3319_v46, %v3320_v34 }
 0x2cf   : > { %v3315_v61 = vrot.slane %v3314_v58, 2  ;;  %v2038_v24 = vcombine.high %v2036_v19, %v2036_v19  ;;  %v2795_v56 = vrot.slane %v2794_v21, 4  ;;  %v2801_v42 = vsel %vm2541_vm12, %v2037_v32, -inf }
 0x2d0   : > { %v3303_v12 = vrot.slane %v3302_v52, 1  ;;  %v3309_v15 = vmax.f32 %v3307_v20, %v3308_v33  ;;  %v3322_v29 = vrot.slane %v3321_v10, 2  ;;  %v2802_v30 = vrot.slane %v2801_v42, 4 }
 0x2d1   : > { %v3316_v23 = vmax.f32 %v3314_v58, %v3315_v61  ;;  %v2796_v35 = vmax.f32 %v2794_v21, %v2795_v56  ;;  %v2808_v45 = vsel %vm2541_vm12, %v2036_v19, -inf  ;;  %v2815_v28 = vsel %vm2541_vm12, %v2038_v24, -inf }
 0x2d2   : > { %v3304_v0 = vmax.f32 %v3302_v52, %v3303_v12  ;;  %v3310_v11 = vrot.slane %v3309_v15, 1  ;;  %v3323_v59 = vmax.f32 %v3321_v10, %v3322_v29  ;;  %v2803_v8 = vmax.f32 %v2801_v42, %v2802_v30 }
 0x2d3   : > { %v3317_v37 = vrot.slane %v3316_v23, 1  ;;  %v2797_v57 = vrot.slane %v2796_v35, 2  ;;  %v2809_v4 = vrot.slane %v2808_v45, 4  ;;  %v2816_v48 = vrot.slane %v2815_v28, 4 }
 0x2d4   : > { %v3311_v18 = vmax.f32 %v3309_v15, %v3310_v11  ;;  %v3324_v38 = vrot.slane %v3323_v59, 1  ;;  %v6547_v54 = vsel %vm1383_vm6, %v3304_v0, -inf  ;;  %v2804_v53 = vrot.slane %v2803_v8, 2 }
 0x2d5   : > { %v3318_v63 = vmax.f32 %v3316_v23, %v3317_v37  ;;  %v2798_v31 = vmax.f32 %v2796_v35, %v2797_v57  ;;  %v2810_v26 = vmax.f32 %v2808_v45, %v2809_v4  ;;  %v2817_v46 = vmax.f32 %v2815_v28, %v2816_v48 }
 0x2d6   : > { %v3325_v22 = vmax.f32 %v3323_v59, %v3324_v38  ;;  %v6550_v49 = vsel %vm1383_vm6, %v3311_v18, -inf  ;;  %v2805_v41 = vmax.f32 %v2803_v8, %v2804_v53  ;;  %v3717_v60 = vsel %vm3698_vm15, %v3497_v55, %v6497_v2 }
 0x2d7   : > { %v6558_v20 = vsel %vm1383_vm6, %v3318_v63, -inf  ;;  %v2799_v34 = vrot.slane %v2798_v31, 1  ;;  %v2811_v58 = vrot.slane %v2810_v26, 2  ;;  %v2818_v19 = vrot.slane %v2817_v46, 2 }
 0x2d8   : > { %v6561_v32 = vsel %vm1383_vm6, %v3325_v22, -inf  ;;  %v2806_v21 = vrot.slane %v2805_v41, 1  ;;  %v1778_v52 = vadd.f32 %v6302_v43, %v6256_v47  ;;  %v6570_v50 = vsel %vm3698_vm15, %v3593_v3, %v6516_v13 }
 0x2d9   : > { %v2800_v40 = vmax.f32 %v2798_v31, %v2799_v34  ;;  %v2812_v55 = vmax.f32 %v2810_v26, %v2811_v58  ;;  %v2819_v2 = vmax.f32 %v2817_v46, %v2818_v19  ;;  %v1735_v33 = vadd.f32 %v6302_v43, %v6326_v6 }
 0x2da   : > { %v2807_v10 = vmax.f32 %v2805_v41, %v2806_v21  ;;  %v1830_v61 = vmax.f32 %v1778_v52, 0.0  ;;  %v6576_v24 = vadd.f32 %v6302_v43, %v6338_v51  ;;  %v6580_v47 = vadd.f32 %v6302_v43, %v6354_v17 }
 0x2db   : > { %v2813_v5 = vrot.slane %v2812_v55, 1  ;;  %v2820_v44 = vrot.slane %v2819_v2, 1  ;;  %v3498_v13 = vsel %vm1383_vm6, %v2800_v40, -inf  ;;  %v1819_v3 = vmax.f32 %v1735_v33, 0.0 }
 0x2dc   : > { %v3500_v56 = vmax.f32 %v3498_v13, %v6525_v39  ;;  %v3501_v42 = vsel %vm1383_vm6, %v2807_v10, -inf  ;;  %v2294_v6 = vcombine.high %v1830_v61, %v1830_v61  ;;  %v2301_v12 = vrot.slane %v1830_v61, %v6043_v9 }
 0x2dd   : > { %v2814_v15 = vmax.f32 %v2812_v55, %v2813_v5  ;;  %v2821_v29 = vmax.f32 %v2819_v2, %v2820_v44  ;;  %v3503_v51 = vmax.f32 %v3501_v42, %v6529_v1  ;;  %v2107_v30 = vcombine.high %v1819_v3, %v1819_v3 }
 0x2de   : > { %v3718_v43 = vsel %vm3700_vm0, %v3500_v56, %v3717_v60  ;;  %v2308_v17 = vrot.slane %v2294_v6, %v6043_v9  ;;  %v2309_v23 = vcombine.high %v2301_v12, %v2301_v12  ;;  %v3242_v35 = vsel %vm2541_vm12, %v2301_v12, -inf }
 0x2df   : > { %v3504_v45 = vsel %vm1383_vm6, %v2814_v15, -inf  ;;  %v3507_v39 = vsel %vm1383_vm6, %v2821_v29, -inf  ;;  %v3719_v28 = vsel %vm3702_vm1, %v3503_v51, %v3718_v43  ;;  %v3243_v0 = vrot.slane %v3242_v35, 4 }
 0x2e0   : > { %v3506_v11 = vmax.f32 %v3504_v45, %v6534_v36  ;;  %v3509_v1 = vmax.f32 %v3507_v39, %v6541_v16  ;;  %v2310_v59 = vcombine.high %v2308_v17, %v2308_v17  ;;  %v3249_v8 = vsel %vm2541_vm12, %v2309_v23, -inf }
 0x2e1   : > { %v3244_v37 = vmax.f32 %v3242_v35, %v3243_v0  ;;  %v3250_v57 = vrot.slane %v3249_v8, 4  ;;  %v3256_v4 = vsel %vm2541_vm12, %v2308_v17, -inf  ;;  %v2114_v48 = vrot.slane %v1819_v3, %v6043_v9 }
 0x2e2   : > { %v3720_v18 = vsel %vm3704_vm2, %v3506_v11, %v3719_v28  ;;  %v3257_v38 = vrot.slane %v3256_v4, 4  ;;  %v3263_v53 = vsel %vm2541_vm12, %v2310_v59, -inf  ;;  %v2121_v63 = vrot.slane %v2107_v30, %v6043_v9 }
 0x2e3   : > { %v3721_v36 = vsel %vm3706_vm3, %v3509_v1, %v3720_v18  ;;  %v3245_v31 = vrot.slane %v3244_v37, 2  ;;  %v3251_v16 = vmax.f32 %v3249_v8, %v3250_v57  ;;  %v3264_v26 = vrot.slane %v3263_v53, 4 }
 0x2e4   : > { %3767 = vst.msk [vmem:[%s6157_s10 + $0x10] sm:$0xff] %vm1383_vm6, %v3721_v36  ;;  %v3258_v46 = vmax.f32 %v3256_v4, %v3257_v38  ;;  %v2122_v22 = vcombine.high %v2114_v48, %v2114_v48  ;;  %v2123_v41 = vcombine.high %v2121_v63, %v2121_v63  ;;  %v2934_v60 = vsel %vm2541_vm12, %v2114_v48, -inf }
 0x2e5   : > { %v3246_v34 = vmax.f32 %v3244_v37, %v3245_v31  ;;  %v3252_v58 = vrot.slane %v3251_v16, 2  ;;  %v3265_v19 = vmax.f32 %v3263_v53, %v3264_v26  ;;  %v2935_v21 = vrot.slane %v2934_v60, 4 }
 0x2e6   : > { %v3259_v52 = vrot.slane %v3258_v46, 2  ;;  %v2941_v40 = vsel %vm2541_vm12, %v2122_v22, -inf  ;;  %v2948_v55 = vsel %vm2541_vm12, %v2121_v63, -inf  ;;  %v2955_v2 = vsel %vm2541_vm12, %v2123_v41, -inf }
 0x2e7   : > { %v3247_v33 = vrot.slane %v3246_v34, 1  ;;  %v3253_v10 = vmax.f32 %v3251_v16, %v3252_v58  ;;  %v3266_v61 = vrot.slane %v3265_v19, 2  ;;  %v2936_v5 = vmax.f32 %v2934_v60, %v2935_v21 }
 0x2e8   : > { %v3260_v44 = vmax.f32 %v3258_v46, %v3259_v52  ;;  %v2942_v13 = vrot.slane %v2941_v40, 4  ;;  %v2949_v3 = vrot.slane %v2948_v55, 4  ;;  %v2956_v56 = vrot.slane %v2955_v2, 4 }
 0x2e9   : > { %v3248_v42 = vmax.f32 %v3246_v34, %v3247_v33  ;;  %v3254_v6 = vrot.slane %v3253_v10, 1  ;;  %v3267_v12 = vmax.f32 %v3265_v19, %v3266_v61  ;;  %v2937_v15 = vrot.slane %v2936_v5, 2 }
 0x2ea   : > { %v3261_v29 = vrot.slane %v3260_v44, 1  ;;  %v2943_v51 = vmax.f32 %v2941_v40, %v2942_v13  ;;  %v2950_v30 = vmax.f32 %v2948_v55, %v2949_v3  ;;  %v2957_v43 = vmax.f32 %v2955_v2, %v2956_v56 }
 0x2eb   : > { %v3255_v17 = vmax.f32 %v3253_v10, %v3254_v6  ;;  %v3268_v23 = vrot.slane %v3267_v12, 1  ;;  %v3594_v35 = vsel %vm1383_vm6, %v3248_v42, -inf  ;;  %v2938_v45 = vmax.f32 %v2936_v5, %v2937_v15 }
 0x2ec   : > { %v3262_v39 = vmax.f32 %v3260_v44, %v3261_v29  ;;  %v3596_v28 = vmax.f32 %v3594_v35, %v6547_v54  ;;  %v2944_v0 = vrot.slane %v2943_v51, 2  ;;  %v2951_v11 = vrot.slane %v2950_v30, 2 }
 0x2ed   : > { %v3269_v1 = vmax.f32 %v3267_v12, %v3268_v23  ;;  %v3597_v59 = vsel %vm1383_vm6, %v3255_v17, -inf  ;;  %v2939_v8 = vrot.slane %v2938_v45, 1  ;;  %v2958_v37 = vrot.slane %v2957_v43, 2 }
 0x2ee   : > { %v3599_v57 = vmax.f32 %v3597_v59, %v6550_v49  ;;  %v3600_v4 = vsel %vm1383_vm6, %v3262_v39, -inf  ;;  %v3746_v48 = vsel %vm3700_vm0, %v3596_v28, %v6570_v50  ;;  %v2945_v18 = vmax.f32 %v2943_v51, %v2944_v0 }
 0x2ef   : > { %v3602_v38 = vmax.f32 %v3600_v4, %v6558_v20  ;;  %v3603_v54 = vsel %vm1383_vm6, %v3269_v1, -inf  ;;  %v2940_v36 = vmax.f32 %v2938_v45, %v2939_v8  ;;  %v2952_v31 = vmax.f32 %v2950_v30, %v2951_v11 }
 0x2f0   : > { %v3605_v53 = vmax.f32 %v3603_v54, %v6561_v32  ;;  %v3747_v63 = vsel %vm3702_vm1, %v3599_v57, %v3746_v48  ;;  %v2946_v49 = vrot.slane %v2945_v18, 1  ;;  %v1835_v26 = vmax.f32 %v6576_v24, 0.0 }
 0x2f1   : > { %v3748_v16 = vsel %vm3704_vm2, %v3602_v38, %v3747_v63  ;;  %v2959_v22 = vmax.f32 %v2957_v43, %v2958_v37  ;;  %v1817_v50 = vmax.f32 %v6580_v47, 0.0  ;;  %v2953_v32 = vrot.slane %v2952_v31, 1 }
 0x2f2   : > { %v3749_v46 = vsel %vm3706_vm3, %v3605_v53, %v3748_v16  ;;  %v2379_v20 = vcombine.high %v1835_v26, %v1835_v26  ;;  %v2386_v41 = vrot.slane %v1835_v26, %v6043_v9  ;;  %v6627_v60 = vsel %vm1383_vm6, %v2940_v36, -inf  ;;  %v6643_v26 = vld [vmem:[%s6773_s2] ss:$0 sm:$0xff] }
 0x2f3   : > { %3771 = vst.msk [vmem:[%s6157_s10 + $0x30] sm:$0xff] %vm1383_vm6, %v3749_v46  ;;  %v2073_v34 = vcombine.high %v1817_v50, %v1817_v50  ;;  %v2080_v58 = vrot.slane %v1817_v50, %v6043_v9  ;;  %v2947_v19 = vmax.f32 %v2945_v18, %v2946_v49  ;;  %v2960_v40 = vrot.slane %v2959_v22, 1 }
 0x2f4   : > { %v2393_v24 = vrot.slane %v2379_v20, %v6043_v9  ;;  %v2394_v21 = vcombine.high %v2386_v41, %v2386_v41  ;;  %v3382_v52 = vsel %vm2541_vm12, %v2386_v41, -inf  ;;  %v2954_v57 = vmax.f32 %v2952_v31, %v2953_v32 }
 0x2f5   : > { %v3383_v47 = vrot.slane %v3382_v52, 4  ;;  %v2087_v55 = vrot.slane %v2073_v34, %v6043_v9  ;;  %v2088_v2 = vcombine.high %v2080_v58, %v2080_v58  ;;  %v2878_v5 = vsel %vm2541_vm12, %v2080_v58, -inf }
 0x2f6   : > { %v2395_v33 = vcombine.high %v2393_v24, %v2393_v24  ;;  %v3389_v10 = vsel %vm2541_vm12, %v2394_v21, -inf  ;;  %v3396_v61 = vsel %vm2541_vm12, %v2393_v24, -inf  ;;  %v2879_v6 = vrot.slane %v2878_v5, 4 }
 0x2f7   : > { %v3384_v44 = vmax.f32 %v3382_v52, %v3383_v47  ;;  %v3390_v13 = vrot.slane %v3389_v10, 4  ;;  %v3397_v3 = vrot.slane %v3396_v61, 4  ;;  %v2089_v56 = vcombine.high %v2087_v55, %v2087_v55 }
 0x2f8   : > { %v3403_v42 = vsel %vm2541_vm12, %v2395_v33, -inf  ;;  %v2885_v12 = vsel %vm2541_vm12, %v2088_v2, -inf  ;;  %v2892_v15 = vsel %vm2541_vm12, %v2087_v55, -inf  ;;  %v2880_v17 = vmax.f32 %v2878_v5, %v2879_v6 }
 0x2f9   : > { %v3385_v29 = vrot.slane %v3384_v44, 2  ;;  %v3391_v51 = vmax.f32 %v3389_v10, %v3390_v13  ;;  %v3398_v30 = vmax.f32 %v3396_v61, %v3397_v3  ;;  %v3404_v43 = vrot.slane %v3403_v42, 4 }
 0x2fa   : > { %v2886_v23 = vrot.slane %v2885_v12, 4  ;;  %v2893_v35 = vrot.slane %v2892_v15, 4  ;;  %v2899_v45 = vsel %vm2541_vm12, %v2089_v56, -inf  ;;  %v2881_v1 = vrot.slane %v2880_v17, 2 }
 0x2fb   : > { %v3386_v39 = vmax.f32 %v3384_v44, %v3385_v29  ;;  %v3392_v28 = vrot.slane %v3391_v51, 2  ;;  %v3399_v0 = vrot.slane %v3398_v30, 2  ;;  %v3405_v11 = vmax.f32 %v3403_v42, %v3404_v43 }
 0x2fc   : > { %v2887_v59 = vmax.f32 %v2885_v12, %v2886_v23  ;;  %v2894_v8 = vmax.f32 %v2892_v15, %v2893_v35  ;;  %v2900_v37 = vrot.slane %v2899_v45, 4  ;;  %v2961_v4 = vmax.f32 %v2959_v22, %v2960_v40 }
 0x2fd   : > { %v3393_v48 = vmax.f32 %v3391_v51, %v3392_v28  ;;  %v3400_v18 = vmax.f32 %v3398_v30, %v3399_v0  ;;  %v2882_v38 = vmax.f32 %v2880_v17, %v2881_v1  ;;  %v3387_v36 = vrot.slane %v3386_v39, 1 }
 0x2fe   : > { %v2888_v54 = vrot.slane %v2887_v59, 2  ;;  %v2895_v53 = vrot.slane %v2894_v8, 2  ;;  %v2901_v63 = vmax.f32 %v2899_v45, %v2900_v37  ;;  %v3406_v49 = vrot.slane %v3405_v11, 2 }
 0x2ff   : > { %v3394_v16 = vrot.slane %v3393_v48, 1  ;;  %v1791_v46 = vadd.f32 %v6643_v26, %v6356_v14  ;;  %v2883_v50 = vrot.slane %v2882_v38, 1  ;;  %v3514_v41 = vsel %vm1383_vm6, %v2947_v19, -inf }
 0x300   : > { %v2889_v31 = vmax.f32 %v2887_v59, %v2888_v54  ;;  %v2896_v22 = vmax.f32 %v2894_v8, %v2895_v53  ;;  %v2902_v20 = vrot.slane %v2901_v63, 2  ;;  %v3517_v32 = vsel %vm1383_vm6, %v2954_v57, -inf }
 0x301   : > { %v6650_v34 = vsel %vm1383_vm6, %v2961_v4, -inf  ;;  %v3401_v58 = vrot.slane %v3400_v18, 1  ;;  %v2884_v24 = vmax.f32 %v2882_v38, %v2883_v50  ;;  %v3388_v47 = vmax.f32 %v3386_v39, %v3387_v36 }
 0x302   : > { %v2890_v21 = vrot.slane %v2889_v31, 1  ;;  %v2897_v52 = vrot.slane %v2896_v22, 1  ;;  %v2903_v40 = vmax.f32 %v2901_v63, %v2902_v20  ;;  %v6652_v55 = vmax.f32 %v3393_v48, %v3394_v16 }
 0x303   : > { %v3407_v14 = vmax.f32 %v3405_v11, %v3406_v49  ;;  %v1833_v2 = vmax.f32 %v1791_v46, 0.0  ;;  %v3510_v19 = vsel %vm1383_vm6, %v2884_v24, -inf  ;;  %v3402_v5 = vmax.f32 %v3400_v18, %v3401_v58 }
 0x304   : > { %v2891_v33 = vmax.f32 %v2889_v31, %v2890_v21  ;;  %v2898_v10 = vmax.f32 %v2896_v22, %v2897_v52  ;;  %v2904_v61 = vrot.slane %v2903_v40, 1  ;;  %v3512_v44 = vmax.f32 %v3510_v19, %v6627_v60 }
 0x305   : > { %v2345_v13 = vcombine.high %v1833_v2, %v1833_v2  ;;  %v2352_v3 = vrot.slane %v1833_v2, %v6043_v9  ;;  %v1738_v12 = vadd.f32 %v6643_v26, %v6358_v25  ;;  %v3408_v43 = vrot.slane %v3407_v14, 1 }
 0x306   : > { %v2905_v56 = vmax.f32 %v2903_v40, %v2904_v61  ;;  %v3513_v42 = vsel %vm1383_vm6, %v2891_v33, -inf  ;;  %v3516_v6 = vsel %vm1383_vm6, %v2898_v10, -inf  ;;  %v3607_v4 = vsel %vm1383_vm6, %v3388_v47, -inf }
 0x307   : > { %v3515_v15 = vmax.f32 %v3513_v42, %v3514_v41  ;;  %v3518_v29 = vmax.f32 %v3516_v6, %v3517_v32  ;;  %v2359_v51 = vrot.slane %v2345_v13, %v6043_v9  ;;  %v2360_v30 = vcombine.high %v2352_v3, %v2352_v3 }
 0x308   : > { %v6663_v17 = vsel %vm1383_vm6, %v2905_v56, -inf  ;;  %v3326_v60 = vsel %vm2541_vm12, %v2352_v3, -inf  ;;  %v1820_v23 = vmax.f32 %v1738_v12, 0.0  ;;  %v3409_v54 = vmax.f32 %v3407_v14, %v3408_v43 }
 0x309   : > { %v3521_v35 = vmax.f32 %v6663_v17, %v6650_v34  ;;  %v3722_v45 = vsel %vm3694_vm13, %v3515_v15, %v3512_v44  ;;  %v2361_v39 = vcombine.high %v2359_v51, %v2359_v51  ;;  %v3327_v28 = vrot.slane %v3326_v60, 4 }
 0x30a   : > { %v6670_v25 = vsel %vm3696_vm14, %v3518_v29, %v3722_v45  ;;  %v3333_v0 = vsel %vm2541_vm12, %v2360_v30, -inf  ;;  %v3340_v11 = vsel %vm2541_vm12, %v2359_v51, -inf  ;;  %v2124_v1 = vcombine.high %v1820_v23, %v1820_v23 }
 0x30b   : > { %v3328_v59 = vmax.f32 %v3326_v60, %v3327_v28  ;;  %v3334_v8 = vrot.slane %v3333_v0, 4  ;;  %v3341_v37 = vrot.slane %v3340_v11, 4  ;;  %v3347_v57 = vsel %vm2541_vm12, %v2361_v39, -inf }
 0x30c   : > { %v3348_v48 = vrot.slane %v3347_v57, 4  ;;  %v2131_v18 = vrot.slane %v1820_v23, %v6043_v9  ;;  %v2138_v38 = vrot.slane %v2124_v1, %v6043_v9  ;;  %v1802_v14 = vadd.f32 %v6643_v26, %v6391_v7 }
 0x30d   : > { %v3329_v53 = vrot.slane %v3328_v59, 2  ;;  %v3335_v63 = vmax.f32 %v3333_v0, %v3334_v8  ;;  %v3342_v36 = vmax.f32 %v3340_v11, %v3341_v37  ;;  %v3610_v56 = vsel %vm1383_vm6, %v6652_v55, -inf }
 0x30e   : > { %v3349_v16 = vmax.f32 %v3347_v57, %v3348_v48  ;;  %v2139_v49 = vcombine.high %v2131_v18, %v2131_v18  ;;  %v2140_v46 = vcombine.high %v2138_v38, %v2138_v38  ;;  %v2962_v50 = vsel %vm2541_vm12, %v2131_v18, -inf }
 0x30f   : > { %v3330_v31 = vmax.f32 %v3328_v59, %v3329_v53  ;;  %v3336_v22 = vrot.slane %v3335_v63, 2  ;;  %v3343_v20 = vrot.slane %v3342_v36, 2  ;;  %v2963_v41 = vrot.slane %v2962_v50, 4 }
 0x310   : > { %v3350_v32 = vrot.slane %v3349_v16, 2  ;;  %v2969_v58 = vsel %vm2541_vm12, %v2139_v49, -inf  ;;  %v2976_v24 = vsel %vm2541_vm12, %v2138_v38, -inf  ;;  %v2983_v21 = vsel %vm2541_vm12, %v2140_v46, -inf }
 0x311   : > { %v3331_v52 = vrot.slane %v3330_v31, 1  ;;  %v3337_v40 = vmax.f32 %v3335_v63, %v3336_v22  ;;  %v3344_v47 = vmax.f32 %v3342_v36, %v3343_v20  ;;  %v2964_v33 = vmax.f32 %v2962_v50, %v2963_v41 }
 0x312   : > { %v3351_v2 = vmax.f32 %v3349_v16, %v3350_v32  ;;  %v2970_v10 = vrot.slane %v2969_v58, 4  ;;  %v2977_v61 = vrot.slane %v2976_v24, 4  ;;  %v2984_v3 = vrot.slane %v2983_v21, 4 }
 0x313   : > { %v3332_v19 = vmax.f32 %v3330_v31, %v3331_v52  ;;  %v3338_v44 = vrot.slane %v3337_v40, 1  ;;  %v3345_v13 = vrot.slane %v3344_v47, 1  ;;  %v3613_v42 = vsel %vm1383_vm6, %v3402_v5, -inf }
 0x314   : > { %v3352_v6 = vrot.slane %v3351_v2, 1  ;;  %v2971_v12 = vmax.f32 %v2969_v58, %v2970_v10  ;;  %v2978_v7 = vmax.f32 %v2976_v24, %v2977_v61  ;;  %v6689_v30 = vsel %vm1383_vm6, %v3409_v54, -inf }
 0x315   : > { %v3339_v15 = vmax.f32 %v3337_v40, %v3338_v44  ;;  %v3346_v29 = vmax.f32 %v3344_v47, %v3345_v13  ;;  %v3606_v51 = vsel %vm1383_vm6, %v3332_v19, -inf  ;;  %v1836_v23 = vmax.f32 %v1802_v14, 0.0 }
 0x316   : > { %v3353_v43 = vmax.f32 %v3351_v2, %v3352_v6  ;;  %v3608_v60 = vmax.f32 %v3606_v51, %v3607_v4  ;;  %v2965_v55 = vrot.slane %v2964_v33, 2  ;;  %v2985_v28 = vmax.f32 %v2983_v21, %v2984_v3 }
 0x317   : > { %v3609_v45 = vsel %vm1383_vm6, %v3339_v15, -inf  ;;  %v3612_v39 = vsel %vm1383_vm6, %v3346_v29, -inf  ;;  %v2972_v59 = vrot.slane %v2971_v12, 2  ;;  %v2979_v8 = vrot.slane %v2978_v7, 2 }
 0x318   : > { %v3611_v5 = vmax.f32 %v3609_v45, %v3610_v56  ;;  %v3614_v0 = vmax.f32 %v3612_v39, %v3613_v42  ;;  %v6694_v11 = vsel %vm1383_vm6, %v3353_v43, -inf  ;;  %v1730_v37 = vadd.f32 %v6643_v26, %v6413_v62 }
 0x319   : > { %v3617_v1 = vmax.f32 %v6694_v11, %v6689_v30  ;;  %v2396_v4 = vcombine.high %v1836_v23, %v1836_v23  ;;  %v2403_v48 = vrot.slane %v1836_v23, %v6043_v9  ;;  %v2966_v38 = vmax.f32 %v2964_v33, %v2965_v55 }
 0x31a   : > { %v3750_v57 = vsel %vm3694_vm13, %v3611_v5, %v3608_v60  ;;  %v2986_v54 = vrot.slane %v2985_v28, 2  ;;  %v2973_v16 = vmax.f32 %v2971_v12, %v2972_v59  ;;  %v2980_v49 = vmax.f32 %v2978_v7, %v2979_v8 }
 0x31b   : > { %v6703_v18 = vsel %vm3696_vm14, %v3614_v0, %v3750_v57  ;;  %v2410_v53 = vrot.slane %v2396_v4, %v6043_v9  ;;  %v2411_v63 = vcombine.high %v2403_v48, %v2403_v48  ;;  %v3410_v36 = vsel %vm2541_vm12, %v2403_v48, -inf }
 0x31c   : > { %v3411_v46 = vrot.slane %v3410_v36, 4  ;;  %v1818_v50 = vmax.f32 %v1730_v37, 0.0  ;;  %v2967_v62 = vrot.slane %v2966_v38, 1  ;;  %v2987_v31 = vmax.f32 %v2985_v28, %v2986_v54 }
 0x31d   : > { %v3417_v22 = vsel %vm2541_vm12, %v2411_v63, -inf  ;;  %v2412_v20 = vcombine.high %v2410_v53, %v2410_v53  ;;  %v3424_v41 = vsel %vm2541_vm12, %v2410_v53, -inf  ;;  %v2974_v24 = vrot.slane %v2973_v16, 1 }
 0x31e   : > { %v2090_v32 = vcombine.high %v1818_v50, %v1818_v50  ;;  %v2097_v58 = vrot.slane %v1818_v50, %v6043_v9  ;;  %v2981_v21 = vrot.slane %v2980_v49, 1  ;;  %v3412_v52 = vmax.f32 %v3410_v36, %v3411_v46 }
 0x31f   : > { %v6715_v40 = vsel %vm3698_vm15, %v3521_v35, %v6670_v25  ;;  %v3418_v47 = vrot.slane %v3417_v22, 4  ;;  %v2968_v10 = vmax.f32 %v2966_v38, %v2967_v62  ;;  %v2988_v61 = vrot.slane %v2987_v31, 1 }
 0x320   : > { %v2104_v14 = vrot.slane %v2090_v32, %v6043_v9  ;;  %v2105_v2 = vcombine.high %v2097_v58, %v2097_v58  ;;  %v2906_v33 = vsel %vm2541_vm12, %v2097_v58, -inf  ;;  %v3425_v19 = vrot.slane %v3424_v41, 4 }
 0x321   : > { %v2907_v44 = vrot.slane %v2906_v33, 4  ;;  %v3431_v13 = vsel %vm2541_vm12, %v2412_v20, -inf  ;;  %v2975_v17 = vmax.f32 %v2973_v16, %v2974_v24  ;;  %v2982_v35 = vmax.f32 %v2980_v49, %v2981_v21 }
 0x322   : > { %v2106_v3 = vcombine.high %v2104_v14, %v2104_v14  ;;  %v2913_v56 = vsel %vm2541_vm12, %v2105_v2, -inf  ;;  %v2920_v34 = vsel %vm2541_vm12, %v2104_v14, -inf  ;;  %v3413_v25 = vrot.slane %v3412_v52, 2 }
 0x323   : > { %v2908_v42 = vmax.f32 %v2906_v33, %v2907_v44  ;;  %v3419_v6 = vmax.f32 %v3417_v22, %v3418_v47  ;;  %v2914_v12 = vrot.slane %v2913_v56, 4  ;;  %v2921_v15 = vrot.slane %v2920_v34, 4 }
 0x324   : > { %v2927_v29 = vsel %vm2541_vm12, %v2106_v3, -inf  ;;  %v2989_v51 = vmax.f32 %v2987_v31, %v2988_v61  ;;  %v3523_v7 = vsel %vm1383_vm6, %v2968_v10, -inf  ;;  %v3432_v43 = vrot.slane %v3431_v13, 4 }
 0x325   : > { %v2909_v60 = vrot.slane %v2908_v42, 2  ;;  %v3426_v23 = vmax.f32 %v3424_v41, %v3425_v19  ;;  %v2915_v45 = vmax.f32 %v2913_v56, %v2914_v12  ;;  %v2922_v39 = vmax.f32 %v2920_v34, %v2921_v15 }
 0x326   : > { %v2928_v55 = vrot.slane %v2927_v29, 4  ;;  %v3526_v28 = vsel %vm1383_vm6, %v2975_v17, -inf  ;;  %v3529_v5 = vsel %vm1383_vm6, %v2982_v35, -inf  ;;  %v3414_v0 = vmax.f32 %v3412_v52, %v3413_v25 }
 0x327   : > { %v2910_v59 = vmax.f32 %v2908_v42, %v2909_v60  ;;  %v3420_v8 = vrot.slane %v3419_v6, 2  ;;  %v2916_v37 = vrot.slane %v2915_v45, 2  ;;  %v2923_v57 = vrot.slane %v2922_v39, 2 }
 0x328   : > { %v2929_v4 = vmax.f32 %v2927_v29, %v2928_v55  ;;  %v3532_v48 = vsel %vm1383_vm6, %v2989_v51, -inf  ;;  %v3433_v38 = vmax.f32 %v3431_v13, %v3432_v43  ;;  %v1794_v53 = vadd.f32 %v6643_v26, %v6432_v27 }
 0x329   : > { %v2911_v54 = vrot.slane %v2910_v59, 1  ;;  %v3427_v63 = vrot.slane %v3426_v23, 2  ;;  %v2917_v36 = vmax.f32 %v2915_v45, %v2916_v37  ;;  %v2924_v16 = vmax.f32 %v2922_v39, %v2923_v57 }
 0x32a   : > { %v2930_v49 = vrot.slane %v2929_v4, 2  ;;  %v3415_v46 = vrot.slane %v3414_v0, 1  ;;  %v1834_v62 = vmax.f32 %v1794_v53, 0.0  ;;  %v6734_v31 = vsel %vm3698_vm15, %v3617_v1, %v6703_v18 }
 0x32b   : > { %v2912_v50 = vmax.f32 %v2910_v59, %v2911_v54  ;;  %v3421_v22 = vmax.f32 %v3419_v6, %v3420_v8  ;;  %v2918_v20 = vrot.slane %v2917_v36, 1  ;;  %v2925_v41 = vrot.slane %v2924_v16, 1 }
 0x32c   : > { %v2931_v32 = vmax.f32 %v2929_v4, %v2930_v49  ;;  %v3434_v58 = vrot.slane %v3433_v38, 2  ;;  %v2362_v26 = vcombine.high %v1834_v62, %v1834_v62  ;;  %v2369_v24 = vrot.slane %v1834_v62, %v6043_v9 }
 0x32d   : > { %v3522_v27 = vsel %vm1383_vm6, %v2912_v50, -inf  ;;  %v2919_v21 = vmax.f32 %v2917_v36, %v2918_v20  ;;  %v2926_v52 = vmax.f32 %v2924_v16, %v2925_v41  ;;  %v3428_v2 = vmax.f32 %v3426_v23, %v3427_v63 }
 0x32e   : > { %v2932_v47 = vrot.slane %v2931_v32, 1  ;;  %v3524_v14 = vmax.f32 %v3522_v27, %v3523_v7  ;;  %v2376_v30 = vrot.slane %v2362_v26, %v6043_v9  ;;  %v2377_v11 = vcombine.high %v2369_v24, %v2369_v24 }
 0x32f   : > { %v3354_v1 = vsel %vm2541_vm12, %v2369_v24, -inf  ;;  %v3525_v33 = vsel %vm1383_vm6, %v2919_v21, -inf  ;;  %v3528_v10 = vsel %vm1383_vm6, %v2926_v52, -inf  ;;  %v3435_v56 = vmax.f32 %v3433_v38, %v3434_v58 }
 0x330   : > { %v2933_v18 = vmax.f32 %v2931_v32, %v2932_v47  ;;  %v3725_v61 = vsel %vm3700_vm0, %v3524_v14, %v6715_v40  ;;  %v3527_v19 = vmax.f32 %v3525_v33, %v3526_v28  ;;  %v3530_v44 = vmax.f32 %v3528_v10, %v3529_v5 }
 0x331   : > { %v2378_v13 = vcombine.high %v2376_v30, %v2376_v30  ;;  %v3355_v3 = vrot.slane %v3354_v1, 4  ;;  %v3361_v9 = vsel %vm2541_vm12, %v2377_v11, -inf  ;;  %v3368_v17 = vsel %vm2541_vm12, %v2376_v30, -inf }
 0x332   : > { %v3531_v34 = vsel %vm1383_vm6, %v2933_v18, -inf  ;;  %v3726_v25 = vsel %vm3702_vm1, %v3527_v19, %v3725_v61  ;;  %v3362_v6 = vrot.slane %v3361_v9, 4  ;;  %v3422_v12 = vrot.slane %v3421_v22, 1 }
 0x333   : > { %v3533_v35 = vmax.f32 %v3531_v34, %v3532_v48  ;;  %v3356_v42 = vmax.f32 %v3354_v1, %v3355_v3  ;;  %v3727_v40 = vsel %vm3704_vm2, %v3530_v44, %v3726_v25  ;;  %v3369_v15 = vrot.slane %v3368_v17, 4 }
 0x334   : > { %v3375_v29 = vsel %vm2541_vm12, %v2378_v13, -inf  ;;  %v3363_v43 = vmax.f32 %v3361_v9, %v3362_v6  ;;  %v3416_v23 = vmax.f32 %v3414_v0, %v3415_v46  ;;  %v3429_v45 = vrot.slane %v3428_v2, 1 }
 0x335   : > { %v3728_v51 = vsel %vm3706_vm3, %v3533_v35, %v3727_v40  ;;  %v3357_v7 = vrot.slane %v3356_v42, 2  ;;  %v3376_v60 = vrot.slane %v3375_v29, 4  ;;  %v3370_v39 = vmax.f32 %v3368_v17, %v3369_v15 }
 0x336   : > { %3768 = vst.msk [vmem:[%s6157_s10 + $0x18] sm:$0xff] %vm1383_vm6, %v3728_v51  ;;  %v3436_v55 = vrot.slane %v3435_v56, 1  ;;  %v3364_v5 = vrot.slane %v3363_v43, 2  ;;  %v3423_v37 = vmax.f32 %v3421_v22, %v3422_v12  ;;  %v3430_v38 = vmax.f32 %v3428_v2, %v3429_v45 }
 0x337   : > { %v3358_v28 = vmax.f32 %v3356_v42, %v3357_v7  ;;  %v3377_v59 = vmax.f32 %v3375_v29, %v3376_v60  ;;  %v3371_v8 = vrot.slane %v3370_v39, 2  ;;  %v3619_v54 = vsel %vm1383_vm6, %v3416_v23, -inf }
 0x338   : > { %v3365_v4 = vmax.f32 %v3363_v43, %v3364_v5  ;;  %v3437_v63 = vmax.f32 %v3435_v56, %v3436_v55  ;;  %v3622_v46 = vsel %vm1383_vm6, %v3423_v37, -inf  ;;  %v3625_v22 = vsel %vm1383_vm6, %v3430_v38, -inf }
 0x339   : > { %v3359_v57 = vrot.slane %v3358_v28, 1  ;;  %v3378_v48 = vrot.slane %v3377_v59, 2  ;;  %v3372_v53 = vmax.f32 %v3370_v39, %v3371_v8 }
 0x33a   : > { %v3366_v0 = vrot.slane %v3365_v4, 1  ;;  %v3628_v58 = vsel %vm1383_vm6, %v3437_v63, -inf }
 0x33b   : > { %v3360_v36 = vmax.f32 %v3358_v28, %v3359_v57  ;;  %v3379_v16 = vmax.f32 %v3377_v59, %v3378_v48  ;;  %v3373_v49 = vrot.slane %v3372_v53, 1 }
 0x33c   : > { %v3367_v50 = vmax.f32 %v3365_v4, %v3366_v0 }
 0x33d   : > { %v3380_v62 = vrot.slane %v3379_v16, 1  ;;  %v3618_v20 = vsel %vm1383_vm6, %v3360_v36, -inf  ;;  %v3374_v41 = vmax.f32 %v3372_v53, %v3373_v49 }
 0x33e   : > { %v3620_v32 = vmax.f32 %v3618_v20, %v3619_v54  ;;  %v3621_v26 = vsel %vm1383_vm6, %v3367_v50, -inf }
 0x33f   : > { %v3381_v27 = vmax.f32 %v3379_v16, %v3380_v62  ;;  %v3623_v24 = vmax.f32 %v3621_v26, %v3622_v46  ;;  %v3624_v21 = vsel %vm1383_vm6, %v3374_v41, -inf }
 0x340   : > { %v3753_v52 = vsel %vm3700_vm0, %v3620_v32, %v6734_v31  ;;  %v3626_v47 = vmax.f32 %v3624_v21, %v3625_v22 }
 0x341   : > { %v3627_v14 = vsel %vm1383_vm6, %v3381_v27, -inf  ;;  %v3754_v30 = vsel %vm3702_vm1, %v3623_v24, %v3753_v52 }
 0x342   : > { %v3629_v2 = vmax.f32 %v3627_v14, %v3628_v58  ;;  %v3755_v11 = vsel %vm3704_vm2, %v3626_v47, %v3754_v30 }
 0x344   : > { %v3756_v1 = vsel %vm3706_vm3, %v3629_v2, %v3755_v11 }
 0x345   : > { %3772 = vst.msk [vmem:[%s6157_s10 + $0x38] sm:$0xff] %vm1383_vm6, %v3756_v1 }
 0x346 PF: > { %s13_s12 = sadd.s32 1, %s4637_s12  }
 0x347   : > { %p10_p4 = scmp.ge.s32.totalorder %s13_s12, 4  }
 0x349   :  { %12 = sbr.rel (!%p10_p4) target bundleno = 1 (0x1), region = 62 }

// kernel: audio_gcnn_forward.4
= control target key start
LH: loop header
LB: loop body
LE: loop exit
PB: predicated region body
PF: predicated region fallthrough
CT: control target
= control target key end

     0   :  { %s1795_s12 = smov 0   ;;  %s2347_s0 = inlined_call_operand.vmem [shape: bf16[2,10,10,64], index: 0, kind: input, shape index: {}]   ;;  %s2348_s1 = inlined_call_operand.vmem [shape: bf16[576,32], index: 1, kind: input, shape index: {}]   ;;  %s2349_s2 = inlined_call_operand.vmem [shape: f32[1,32], index: 2, kind: input, shape index: {}]   ;;  %s2350_s3 = inlined_call_operand.vmem [shape: f32[2,4,4,32], index: 3, kind: output, shape index: {}]  }
   0x1 LB: > { %s1489_s13 = sadd.s32 4294967295, %s1771_s12   ;;  %p1493_p0 = scmp.ge.s32.totalorder %s1771_s12, 1  ;;  %s1771_s12 = sphi %s1795_s12, %s13_s12  }
   0x2   : > { %p137_p1 = scmp.lt.s32.totalorder %s1771_s12, 3 }
   0x4   : > { %p138_p2 = pnand %p1493_p0, %p137_p1 }
   0x5   : > { %p161_p3 = scmp.lt.s32.totalorder (!%p138_p2), %s1489_s13, 1  ;;  %v1729_v0 = vld [vmem:[%s2348_s1 + $0x40] sm:$0xff] (!%p138_p2)   ;;  %vm228_vm0 = vcmask (!%p138_p2), 1046528   ;;  %v1733_v4 = vld [vmem:[%s2348_s1 + $0x48] sm:$0xff] (!%p138_p2)   ;;  %vm277_vm1 = vcmask (!%p138_p2), 1045504   ;;  %s1773_s7 = smov (!%p138_p2), 64  }
   0x6   : > { %141 = sbr.rel (%p138_p2) target bundleno = 487 (0x1e7), region = 32  ;;  %v1730_v1 = vld [vmem:[%s2348_s1 + $0xc0] sm:$0xff] (!%p138_p2)   ;;  %1541 = vmatprep.subr.bf16.mxu0 (!%p138_p2), %v1729_v0  ;;  %v1734_v5 = vld [vmem:[%s2348_s1 + $0xc8] sm:$0xff] (!%p138_p2)   ;;  %v1737_v56 = vld [vmem:[%s2348_s1 + $0x50] sm:$0xff] (!%p138_p2)   ;;  %vm390_vm2 = vcmask (!%p138_p2), 523264   ;;  %vm1120_vm3 = vcmask (!%p138_p2), 254976  }
   0x7   : > { %v1731_v2 = vld [vmem:[%s2348_s1] sm:$0xff] (!%p138_p2)   ;;  %1581 = vmatprep.subr.bf16.mxu1 (!%p138_p2), %v1730_v1  ;;  %v1735_v35 = vld [vmem:[%s2348_s1 + $0x8] sm:$0xff] (!%p138_p2)   ;;  %v1738_v61 = vld [vmem:[%s2348_s1 + $0xd0] sm:$0xff] (!%p138_p2)   ;;  %vm1345_vm4 = vcmask (!%p138_p2), 261120   ;;  %vm1410_vm5 = vcmask (!%p138_p2), 1041409   ;;  %vm1412_vm6 = vcmask (!%p138_p2), 1042434  }
   0x8   : > { %v1732_v3 = vld [vmem:[%s2348_s1 + $0x80] sm:$0xff] (!%p138_p2)   ;;  %1542 = vmatpush3.bf16.msra.mxu0 (!%p138_p2), %v1731_v2  ;;  %v1736_v40 = vld [vmem:[%s2348_s1 + $0x88] sm:$0xff] (!%p138_p2)   ;;  %vm1414_vm7 = vcmask (!%p138_p2), 1043459   ;;  %vm1429_vm8 = vcmask (!%p138_p2), 257024  }
   0x9   : > { %1582 = vmatpush3.bf16.msra.mxu1 (!%p138_p2), %v1732_v3  ;;  %1543 = vmatprep.subr.bf16.mxu0 (!%p138_p2), %v1733_v4 }
   0xa   : > { %1583 = vmatprep.subr.bf16.mxu1 (!%p138_p2), %v1734_v5 }
   0xc   : > { %1544 = vmatpush3.bf16.msra.mxu0 (!%p138_p2), %v1735_v35 }
   0xd   : > { %s2352_s13 = smov (!%p161_p3, %s1489_s13), 1  ;;  %1584 = vmatpush3.bf16.msra.mxu1 %v1736_v40  ;;  %1545 = vmatprep.subr.bf16.mxu0 %v1737_v56  ;;  %v1743_v40 = vld [vmem:[%s2348_s1 + $0x18] sm:$0xff]  }
   0xe   : > { %s1653_s20 = smul.u32 80, %s2352_s13  ;;  %1585 = vmatprep.subr.bf16.mxu1 %v1738_v61  ;;  %s1540_s19 = sshll.u32 %s2352_s13, 4 }
   0xf   : > { %s2275_s21 = scalar_lea.vmem %s2350_s3, %s1540_s19 }
  0x10   : > { %s1824_s27 = scalar_lea.vmem %s2347_s0, %s1653_s20 }
  0x11   : > { %v176_v6 = vld [vmem:[%s1824_s27 + $0x10] ss:$8 sps:$4 sm:$0xff]   ;;  %v177_v7 = vld [vmem:[%s1824_s27 + $0x14] sm:$0x1]  ;;  %v179_v8 = vld [vmem:[%s1824_s27 + $0x1c] sm:$0x1] }
  0x12   : > { %v1832_v9 = vunpack.c.l.bf16 %v176_v6  ;;  %v197_v10 = vunpack.c.l.bf16 %v177_v7  ;;  %v1834_v11 = vunpack.c.h.bf16 %v176_v6  ;;  %v199_v12 = vunpack.c.l.bf16 %v179_v8  ;;  %v172_v13 = vld [vmem:[%s1824_s27] ss:$8 sps:$4 sm:$0xff]   ;;  %v1838_v14 = vld [vmem:[%s1824_s27 + $0x4] sm:$0x1]  ;;  %v175_v15 = vld [vmem:[%s1824_s27 + $0xc] sm:$0x1] }
  0x13   : > { %v1841_v16 = vunpack.c.l.bf16 %v172_v13  ;;  %v193_v17 = vunpack.c.l.bf16 %v1838_v14  ;;  %v1844_v18 = vunpack.c.h.bf16 %v172_v13  ;;  %v195_v19 = vunpack.c.l.bf16 %v175_v15  ;;  %v180_v28 = vld [vmem:[%s1824_s27 + $0x20] ss:$8 sps:$4 sm:$0xff]   ;;  %v181_v33 = vld [vmem:[%s1824_s27 + $0x24] sm:$0x1]  ;;  %v1864_v34 = vld [vmem:[%s1824_s27 + $0x2c] sm:$0x1] }
  0x14   : > { %v235_v20 = vrot.slane %v1832_v9, 1  ;;  %v236_v21 = vrot.slane %v197_v10, 1  ;;  %v238_v22 = vrot.slane %v1834_v11, 1  ;;  %v239_v23 = vrot.slane %v199_v12, 1  ;;  %v184_v45 = vld [vmem:[%s1824_s27 + $0x30] ss:$8 sps:$4 sm:$0xff]  }
  0x15   : > { %v229_v24 = vrot.slane %v1841_v16, 1  ;;  %v230_v25 = vrot.slane %v193_v17, 1  ;;  %v232_v26 = vrot.slane %v1844_v18, 1  ;;  %v233_v27 = vrot.slane %v195_v19, 1  ;;  %v185_v46 = vld [vmem:[%s1824_s27 + $0x34] sm:$0x1] }
  0x16   : > { %v1854_v29 = vsel %vm228_vm0, %v235_v20, %v236_v21  ;;  %v1857_v30 = vsel %vm228_vm0, %v238_v22, %v239_v23  ;;  %v1669_v31 = vpack.i.bf16 %v1832_v9, %v1844_v18  ;;  %v281_v32 = vrot.slane %v1844_v18, 2  ;;  %v1892_v51 = vld [vmem:[%s1824_s27 + $0x3c] sm:$0x1]  ;;  %v188_v2 = vld [vmem:[%s1824_s27 + $0x40] ss:$8 sps:$4 sm:$0xff]   ;;  %v1739_v8 = vld [vmem:[%s2348_s1 + $0x10] sm:$0xff]  }
  0x17   : > { %v1664_v36 = vpack.i.bf16 %v1857_v30, %v1854_v29  ;;  %v231_v37 = vsel %vm228_vm0, %v229_v24, %v230_v25  ;;  %v1873_v38 = vsel %vm228_vm0, %v232_v26, %v233_v27  ;;  %v282_v39 = vrot.slane %v195_v19, 2  ;;  %v189_v7 = vld [vmem:[%s1824_s27 + $0x44] sm:$0x1]  ;;  %v1740_v19 = vld [vmem:[%s2348_s1 + $0x90] sm:$0xff]   ;;  %v191_v23 = vld [vmem:[%s1824_s27 + $0x4c] sm:$0x1]  ;;  %1546 = vmatpush3.bf16.msra.mxu0 %v1739_v8 }
  0x18   : > { %v1674_v41 = vpack.i.bf16 %v1873_v38, %v231_v37  ;;  %v284_v42 = vrot.slane %v1832_v9, 2  ;;  %v285_v43 = vrot.slane %v197_v10, 2  ;;  %v1880_v44 = vunpack.c.l.bf16 %v180_v28  ;;  %v1741_v24 = vld [vmem:[%s2348_s1 + $0x58] sm:$0xff]   ;;  %1586 = vmatpush3.bf16.msra.mxu1 %v1740_v19  ;;  %v1749_v19 = vld [vmem:[%s2348_s1 + $0x68] sm:$0xff]   ;;  %v1753_v14 = vld [vmem:[%s2348_s1 + $0x70] sm:$0xff]  }
  0x19   : > { %1665 = vrot.lane.b32.xlu0 %v1664_v36, %s1773_s7  ;;  %v1886_v47 = vsel %vm277_vm1, %v281_v32, %v282_v39  ;;  %v201_v48 = vunpack.c.l.bf16 %v181_v33  ;;  %v1888_v49 = vunpack.c.h.bf16 %v180_v28  ;;  %v203_v50 = vunpack.c.l.bf16 %v1864_v34  ;;  %v1742_v25 = vld [vmem:[%s2348_s1 + $0xd8] sm:$0xff]   ;;  %1547 = vmatprep.subr.bf16.mxu0 %v1741_v24  ;;  %v1750_v24 = vld [vmem:[%s2348_s1 + $0xe8] sm:$0xff]  }
  0x1a   : > { %1675 = vrot.lane.b32.xlu1 %v1674_v41, %s1773_s7  ;;  %v1896_v52 = vsel %vm277_vm1, %v284_v42, %v285_v43  ;;  %v241_v53 = vrot.slane %v1880_v44, 1  ;;  %v287_v54 = vrot.slane %v1834_v11, 2  ;;  %v288_v55 = vrot.slane %v199_v12, 2  ;;  %1587 = vmatprep.subr.bf16.mxu1 %v1742_v25 }
  0x1b   : > { %v1679_v57 = vpack.i.bf16 %v1896_v52, %v1886_v47  ;;  %v242_v58 = vrot.slane %v201_v48, 1  ;;  %v244_v59 = vrot.slane %v1888_v49, 1  ;;  %v245_v60 = vrot.slane %v203_v50, 1  ;;  %1548 = vmatpush3.bf16.msra.mxu0 %v1743_v40  ;;  %v1758_v40 = vld [vmem:[%s2348_s1 + $0xf8] sm:$0xff]  }
  0x1c   : > { %v1910_v62 = vsel %vm277_vm1, %v287_v54, %v288_v55  ;;  %v290_v63 = vrot.slane %v1880_v44, 2  ;;  %v291_v0 = vrot.slane %v201_v48, 2  ;;  %v1684_v1 = vpack.i.bf16 %v1880_v44, %v1834_v11  ;;  %v1746_v54 = vld [vmem:[%s2348_s1 + $0xe0] sm:$0xff]  }
  0x1d   : > { %1670 = vrot.lane.b32.xlu0 %v1669_v31, %s1773_s7  ;;  %v1918_v3 = vsel %vm228_vm0, %v241_v53, %v242_v58  ;;  %v1921_v4 = vsel %vm228_vm0, %v244_v59, %v245_v60  ;;  %v1923_v5 = vunpack.c.l.bf16 %v184_v45  ;;  %v205_v6 = vunpack.c.l.bf16 %v185_v46  ;;  %v1745_v53 = vld [vmem:[%s2348_s1 + $0x60] sm:$0xff]  }
  0x1e   : > { %1680 = vrot.lane.b32.xlu1 %v1679_v57, %s1773_s7  ;;  %v1689_v10 = vpack.i.bf16 %v1921_v4, %v1918_v3  ;;  %v1933_v12 = vsel %vm277_vm1, %v290_v63, %v291_v0  ;;  %v1935_v13 = vunpack.c.h.bf16 %v184_v45  ;;  %v207_v15 = vunpack.c.l.bf16 %v1892_v51  ;;  %v1744_v45 = vld [vmem:[%s2348_s1 + $0x98] sm:$0xff]   ;;  %1549 = vmatprep.subr.bf16.mxu0 %v1745_v53  ;;  %v1747_v0 = vld [vmem:[%s2348_s1 + $0x20] sm:$0xff]  }
  0x1f   : > { %v1694_v20 = vpack.i.bf16 %v1933_v12, %v1910_v62  ;;  %v247_v21 = vrot.slane %v1923_v5, 1  ;;  %v248_v22 = vrot.slane %v205_v6, 1  ;;  %v293_v28 = vrot.slane %v1888_v49, 2  ;;  %1588 = vmatpush3.bf16.msra.mxu1 %v1744_v45  ;;  %1550 = vmatpush3.bf16.msra.mxu0 %v1747_v0  ;;  %v1760_v45 = vld [vmem:[%s2348_s1 + $0xb8] sm:$0xff]  }
  0x20   : > { %v250_v26 = vrot.slane %v1935_v13, 1  ;;  %v251_v27 = vrot.slane %v207_v15, 1  ;;  %v294_v31 = vrot.slane %v203_v50, 2  ;;  %v296_v33 = vrot.slane %v1923_v5, 2  ;;  %1589 = vmatprep.subr.bf16.mxu1 %v1746_v54  ;;  %1551 = vmatprep.subr.bf16.mxu0 %v1749_v19 }
  0x21   : > { %1690 = vrot.lane.b32.xlu0 %v1689_v10, %s1773_s7  ;;  %v1955_v32 = vsel %vm228_vm0, %v247_v21, %v248_v22  ;;  %v297_v34 = vrot.slane %v205_v6, 2  ;;  %v1958_v35 = vunpack.c.l.bf16 %v188_v2  ;;  %v209_v37 = vunpack.c.l.bf16 %v189_v7  ;;  %v1748_v6 = vld [vmem:[%s2348_s1 + $0xa0] sm:$0xff]  }
  0x22   : > { %1685 = vrot.lane.b32.xlu1 %v1684_v1, %s1773_s7  ;;  %v1962_v36 = vsel %vm228_vm0, %v250_v26, %v251_v27  ;;  %v1964_v39 = vunpack.c.h.bf16 %v188_v2  ;;  %v1972_v42 = vsel %vm277_vm1, %v293_v28, %v294_v31  ;;  %v1699_v46 = vpack.i.bf16 %v1923_v5, %v1888_v49  ;;  %v1751_v26 = vld [vmem:[%s2348_s1 + $0x28] sm:$0xff]  }
  0x23   : > { %v1704_v41 = vpack.i.bf16 %v1962_v36, %v1955_v32  ;;  %v1975_v43 = vsel %vm277_vm1, %v296_v33, %v297_v34  ;;  %v211_v48 = vunpack.c.l.bf16 %v191_v23  ;;  %v336_v50 = vrot.slane %v1958_v35, 1  ;;  %1590 = vmatpush3.bf16.msra.mxu1 %v1748_v6  ;;  %v1752_v27 = vld [vmem:[%s2348_s1 + $0xa8] sm:$0xff]   ;;  %1552 = vmatpush3.bf16.msra.mxu0 %v1751_v26  ;;  %v1755_v33 = vld [vmem:[%s2348_s1 + $0x30] sm:$0xff]  }
  0x24   : > { %v337_v51 = vrot.slane %v209_v37, 1  ;;  %v376_v55 = vrot.slane %v1964_v39, 1  ;;  %v299_v56 = vrot.slane %v1935_v13, 2  ;;  %v300_v57 = vrot.slane %v207_v15, 2  ;;  %1591 = vmatprep.subr.bf16.mxu1 %v1750_v24  ;;  %1553 = vmatprep.subr.bf16.mxu0 %v1753_v14  ;;  %v1756_v34 = vld [vmem:[%s2348_s1 + $0xb0] sm:$0xff]  }
  0x25   : > { %1695 = vrot.lane.b32.xlu0 %v1694_v20, %s1773_s7  ;;  %v347_v58 = vrot.slane %v1958_v35, 2  ;;  %v1709_v59 = vpack.i.bf16 %v1975_v43, %v1972_v42  ;;  %v377_v60 = vrot.slane %v211_v48, 1  ;;  %v348_v61 = vrot.slane %v209_v37, 2  ;;  %v1757_v37 = vld [vmem:[%s2348_s1 + $0x78] sm:$0xff]  }
  0x26   : > { %1705 = vrot.lane.b32.xlu1 %v1704_v41, %s1773_s7  ;;  %v385_v63 = vrot.slane %v1964_v39, 2  ;;  %v2001_v1 = vsel %vm228_vm0, %v336_v50, %v337_v51  ;;  %v386_v2 = vrot.slane %v211_v48, 2  ;;  %v1714_v8 = vpack.i.bf16 %v1958_v35, %v1935_v13  ;;  %v1759_v41 = vld [vmem:[%s2348_s1 + $0x38] sm:$0xff]  }
  0x27   : > { %v378_v7 = vsel %vm228_vm0, %v376_v55, %v377_v60  ;;  %v2011_v10 = vsel %vm277_vm1, %v347_v58, %v348_v61  ;;  %v278_v20 = vrot.slane %v1841_v16, 2  ;;  %v2023_v22 = vsel %vm277_vm1, %v299_v56, %v300_v57  ;;  %1592 = vmatpush3.bf16.msra.mxu1 %v1752_v27  ;;  %1554 = vmatpush3.bf16.msra.mxu0 %v1755_v33 }
  0x28   : > { %v2014_v15 = vsel %vm277_vm1, %v385_v63, %v386_v2  ;;  %v1719_v21 = vpack.i.bf16 %v378_v7, %v2001_v1  ;;  %v279_v25 = vrot.slane %v193_v17, 2  ;;  %v1724_v31 = vpack.i.bf16 %v2011_v10, %v2023_v22  ;;  %v1754_v17 = vld [vmem:[%s2348_s1 + $0xf0] sm:$0xff]   ;;  %1555 = vmatprep.subr.bf16.mxu0 %v1757_v37 }
  0x29   : > { %1700 = vrot.lane.b32.xlu0 %v1699_v46, %s1773_s7  ;;  %v433_v23 = vpack.c.bf16 %v2014_v15, %v2011_v10  ;;  %1593 = vmatprep.subr.bf16.mxu1 %v1754_v17  ;;  %v1761_v46 = vld [vmem:[%s2348_s1 + $0x100] sm:$0xff]  }
  0x2a   : > { %1710 = vrot.lane.b32.xlu1 %v1709_v59, %s1773_s7  ;;  %v280_v28 = vsel %vm277_vm1, %v278_v20, %v279_v25 }
  0x2b   : > { %1594 = vmatpush3.bf16.msra.mxu1 %v1756_v34  ;;  %1556 = vmatpush3.bf16.msra.mxu0 %v1759_v41 }
  0x2c   : > { %1595 = vmatprep.subr.bf16.mxu1 %v1758_v40  ;;  %1629 = vmatprep.subr.bf16.mxu0 %v1761_v46 }
  0x2d   : > { %1715 = vrot.lane.b32.xlu0 %v1714_v8, %s1773_s7 }
  0x2e   : > { %1720 = vrot.lane.b32.xlu1 %v1719_v21, %s1773_s7 }
  0x2f   : > { %1596 = vmatpush3.bf16.msra.mxu1 %v1760_v45 }
  0x30   : > { %1645 = vmatprep.subr.bf16.mxu1 %v1761_v46 }
  0x31   : > { %1725 = vrot.lane.b32.xlu0 %v1724_v31, %s1773_s7 }
  0x8b   : > { %v1666_v48 = vpop.permute.xlu0 %1665 }
  0x8c   : > { %v1668_v50 = vunpack.i.h.bf16 %v1666_v48  ;;  %v1667_v51 = vunpack.i.l.bf16 %v1666_v48  ;;  %v1676_v53 = vpop.permute.xlu1 %1675 }
  0x8d   : > { %v1678_v54 = vunpack.i.h.bf16 %v1676_v53  ;;  %v1677_v55 = vunpack.i.l.bf16 %v1676_v53 }
  0x8e   : > { %v393_v56 = vsel %vm390_vm2, %v1832_v9, %v1667_v51  ;;  %v394_v57 = vsel %vm390_vm2, %v1834_v11, %v1668_v50 }
  0x8f   : > { %v1671_v58 = vpop.permute.xlu0 %1670  ;;  %v420_v59 = vpack.c.bf16 %v394_v57, %v393_v56  ;;  %v391_v6 = vsel %vm390_vm2, %v1841_v16, %v1677_v55  ;;  %v392_v7 = vsel %vm390_vm2, %v1844_v18, %v1678_v54  ;;  %v1762_v18 = vld [vmem:[%s2348_s1 + $0x108] sm:$0xff]  }
  0x90   : > { %v1673_v60 = vunpack.i.h.bf16 %v1671_v58  ;;  %v1672_v61 = vunpack.i.l.bf16 %v1671_v58  ;;  %v1681_v63 = vpop.permute.xlu1 %1680  ;;  %v417_v16 = vpack.c.bf16 %v392_v7, %v391_v6 }
  0x91   : > { %v1683_v0 = vunpack.i.h.bf16 %v1681_v63  ;;  %v1682_v2 = vunpack.i.l.bf16 %v1681_v63  ;;  %838 = vmatprep.mubr.bf16.mxu1 %v420_v59 }
  0x92   : > { %v399_v8 = vsel %vm390_vm2, %v280_v28, %v1672_v61  ;;  %v400_v9 = vsel %vm390_vm2, %v1886_v47, %v1673_v60 }
  0x93   : > { %v1691_v11 = vpop.permute.xlu0 %1690  ;;  %v418_v19 = vpack.c.bf16 %v400_v9, %v399_v8  ;;  %v407_v20 = vsel %vm390_vm2, %v1873_v38, %v1682_v2  ;;  %v408_v21 = vsel %vm390_vm2, %v1854_v29, %v1683_v0 }
  0x94   : > { %v1693_v24 = vunpack.i.h.bf16 %v1691_v11  ;;  %v1692_v25 = vunpack.i.l.bf16 %v1691_v11  ;;  %v419_v26 = vpack.c.bf16 %v408_v21, %v407_v20  ;;  %v1686_v27 = vpop.permute.xlu1 %1685 }
  0x95   : > { %773 = vmatprep.mubr.bf16.mxu0 %v418_v19  ;;  %v1688_v28 = vunpack.i.h.bf16 %v1686_v27  ;;  %v1687_v47 = vunpack.i.l.bf16 %v1686_v27 }
  0x96   : > { %839 = vmatmul.mubr.bf16.vlgmr.msra.gmra.mrb[0].mxu1 %v419_v26  ;;  %774 = vmatmul.mubr.bf16.vlgmr.msra.gmra.mrb[0].mxu0 %v417_v16  ;;  %v395_v38 = vsel %vm390_vm2, %v1880_v44, %v1692_v25  ;;  %v396_v29 = vsel %vm390_vm2, %v1888_v49, %v1693_v24  ;;  %v1763_v44 = vld [vmem:[%s2348_s1 + $0x110] sm:$0xff]  }
  0x97   : > { %1630 = vmatpush3.bf16.msra.mxu0 %v1761_v46  ;;  %1649 = vmatpush3.bf16.msra.mxu1 %v1761_v46  ;;  %v1696_v31 = vpop.permute.xlu0 %1695  ;;  %v424_v14 = vpack.c.bf16 %v396_v29, %v395_v38  ;;  %v401_v17 = vsel %vm390_vm2, %v1896_v52, %v1687_v47  ;;  %v402_v33 = vsel %vm390_vm2, %v1910_v62, %v1688_v28 }
  0x98   : > { %v1698_v34 = vunpack.i.h.bf16 %v1696_v31  ;;  %v1697_v37 = vunpack.i.l.bf16 %v1696_v31  ;;  %v1706_v40 = vpop.permute.xlu1 %1705  ;;  %v422_v41 = vpack.c.bf16 %v402_v33, %v401_v17  ;;  %1631 = vmatprep.subr.bf16.mxu0 %v1762_v18  ;;  %1646 = vmatprep.subr.bf16.mxu1 %v1762_v18  ;;  %v425_v47 = vpack.c.bf16 %v1972_v42, %v1933_v12 }
  0x99   : > { %846 = vmatprep.mubr.bf16.mxu1 %v424_v14  ;;  %v1708_v49 = vunpack.i.h.bf16 %v1706_v40  ;;  %v1707_v45 = vunpack.i.l.bf16 %v1706_v40 }
  0x9a   : > { %781 = vmatprep.mubr.bf16.mxu0 %v422_v41  ;;  %v409_v46 = vsel %vm390_vm2, %v1857_v30, %v1697_v37  ;;  %v410_v48 = vsel %vm390_vm2, %v1918_v3, %v1698_v34  ;;  %v1764_v30 = vld [vmem:[%s2348_s1 + $0x118] sm:$0xff]  }
  0x9b   : > { %v423_v50 = vpack.c.bf16 %v410_v48, %v409_v46  ;;  %1632 = vmatpush3.bf16.msra.mxu0 %v1762_v18  ;;  %1650 = vmatpush3.bf16.msra.mxu1 %v1762_v18  ;;  %v1701_v51 = vpop.permute.xlu0 %1700  ;;  %v397_v53 = vsel %vm390_vm2, %v1923_v5, %v1707_v45  ;;  %v398_v54 = vsel %vm390_vm2, %v1935_v13, %v1708_v49 }
  0x9c   : > { %v1703_v55 = vunpack.i.h.bf16 %v1701_v51  ;;  %v1702_v56 = vunpack.i.l.bf16 %v1701_v51  ;;  %v1711_v57 = vpop.permute.xlu1 %1710  ;;  %v428_v58 = vpack.c.bf16 %v398_v54, %v397_v53  ;;  %1633 = vmatprep.subr.bf16.mxu0 %v1763_v44  ;;  %1647 = vmatprep.subr.bf16.mxu1 %v1763_v44 }
  0x9d   : > { %v1713_v3 = vunpack.i.h.bf16 %v1711_v57  ;;  %v1712_v60 = vunpack.i.l.bf16 %v1711_v57 }
  0x9e   : > { %847 = vmatmul.mubr.bf16.gmra.mrb[4].mxu1 %v423_v50  ;;  %782 = vmatmul.mubr.bf16.gmra.mrb[4].mxu0 %v420_v59  ;;  %v403_v5 = vsel %vm390_vm2, %v1933_v12, %v1702_v56  ;;  %v404_v13 = vsel %vm390_vm2, %v1972_v42, %v1703_v55 }
  0x9f   : > { %854 = vmatprep.mubr.bf16.mxu1 %v428_v58  ;;  %v1716_v61 = vpop.permute.xlu0 %1715  ;;  %v426_v63 = vpack.c.bf16 %v404_v13, %v403_v5  ;;  %v411_v0 = vsel %vm390_vm2, %v1921_v4, %v1712_v60  ;;  %v412_v2 = vsel %vm390_vm2, %v1955_v32, %v1713_v3  ;;  %1634 = vmatpush3.bf16.msra.mxu0 %v1763_v44 }
  0xa0   : > { %v1718_v6 = vunpack.i.h.bf16 %v1716_v61  ;;  %v1717_v7 = vunpack.i.l.bf16 %v1716_v61  ;;  %v1721_v8 = vpop.permute.xlu1 %1720  ;;  %1651 = vmatpush3.bf16.msra.mxu1 %v1763_v44  ;;  %1635 = vmatprep.subr.bf16.mxu0 %v1764_v30  ;;  %v427_v11 = vpack.c.bf16 %v412_v2, %v411_v0 }
  0xa1   : > { %789 = vmatprep.mubr.bf16.mxu0 %v426_v63  ;;  %v1723_v59 = vunpack.i.h.bf16 %v1721_v8  ;;  %v1722_v9 = vunpack.i.l.bf16 %v1721_v8  ;;  %1648 = vmatprep.subr.bf16.mxu1 %v1764_v30 }
  0xa2   : > { %v405_v19 = vsel %vm390_vm2, %v1975_v43, %v1717_v7  ;;  %v406_v4 = vsel %vm390_vm2, %v2023_v22, %v1718_v6 }
  0xa3   : > { %v1726_v20 = vpop.permute.xlu0 %1725  ;;  %v430_v21 = vpack.c.bf16 %v406_v4, %v405_v19  ;;  %v415_v32 = vsel %vm390_vm2, %v1958_v35, %v1722_v9  ;;  %v416_v24 = vsel %vm390_vm2, %v1964_v39, %v1723_v59  ;;  %1636 = vmatpush3.bf16.msra.mxu0 %v1764_v30  ;;  %v429_v35 = vpack.c.bf16 %v2023_v22, %v1975_v43 }
  0xa4   : > { %v1728_v25 = vunpack.i.h.bf16 %v1726_v20  ;;  %v1727_v26 = vunpack.i.l.bf16 %v1726_v20  ;;  %v432_v16 = vpack.c.bf16 %v416_v24, %v415_v32  ;;  %1652 = vmatpush3.bf16.msra.mxu1 %v1764_v30  ;;  %v421_v39 = vpack.c.bf16 %v1910_v62, %v1896_v52  ;;  %v2147_v52 = vld [vmem:[%s2349_s2] ss:$0 sm:$0xff] }
  0xa5   : > { %v1774_v32 = vmov 1983009808  }
  0xa6   : > { %855 = vmatmul.mubr.bf16.gmra.mrb[8].mxu1 %v427_v11  ;;  %790 = vmatmul.mubr.bf16.gmra.mrb[8].mxu0 %v424_v14  ;;  %v413_v27 = vsel %vm390_vm2, %v1962_v36, %v1727_v26  ;;  %v414_v18 = vsel %vm390_vm2, %v2001_v1, %v1728_v25  ;;  %v954_v24 = vunpack.c.l.s4 %v1774_v32  ;;  %v956_v25 = vlaneseq }
  0xa7   : > { %797 = vmatprep.mubr.bf16.mxu0 %v430_v21  ;;  %862 = vmatprep.mubr.bf16.mxu1 %v432_v16  ;;  %v431_v28 = vpack.c.bf16 %v414_v18, %v413_v27 }
  0xae   : > { %863 = vmatmul.mubr.bf16.gmra.mrb[12].mxu1 %v431_v28  ;;  %798 = vmatmul.mubr.bf16.gmra.mrb[12].mxu0 %v428_v58 }
  0xaf   : > { %1641 = vmatprep.mubr.msk.bf16.mxu1 %vm390_vm2, %v429_v35  ;;  %1637 = vmatprep.mubr.msk.bf16.mxu0 %vm390_vm2, %v421_v39 }
  0xb6   : > { %1642 = vmatmul.mubr.msk.bf16.vlgmr.msra.gmra.mrb[16].mxu1 %vm390_vm2, %v433_v23  ;;  %1638 = vmatmul.mubr.msk.bf16.vlgmr.msra.gmra.mrb[16].mxu0 %vm390_vm2, %v425_v47 }
 0x169   : > { %v1597_v36 = vpop.f32.mrb[0].mxu1  ;;  %v1557_v43 = vpop.f32.mrb[0].mxu0 }
 0x16a   : > { %v1598_v1 = vpop.f32.mrb[1].mxu1  ;;  %v1558_v62 = vpop.f32.mrb[1].mxu0 }
 0x16b   : > { %v1599_v22 = vadd.f32 %v1598_v1, %v1597_v36  ;;  %v1559_v38 = vadd.f32 %v1558_v62, %v1557_v43  ;;  %v1600_v29 = vpop.f32.mrb[2].mxu1  ;;  %v1560_v12 = vpop.f32.mrb[2].mxu0  ;;  %v955_v43 = vunpack.c.0.s8 %v954_v24  ;;  %v957_v1 = vshrl.u32 %v956_v25, 7 }
 0x16c   : > { %v1601_v42 = vpop.f32.mrb[3].mxu1  ;;  %v1561_v31 = vpop.f32.mrb[3].mxu0 }
 0x16d   : > { %v776_v10 = vadd.f32 %v1559_v38, %v2147_v52  ;;  %v1602_v15 = vadd.f32 %v1601_v42, %v1600_v29  ;;  %v1562_v23 = vadd.f32 %v1561_v31, %v1560_v12  ;;  %v2161_v31 = vsub.s32 %v955_v43, %v957_v1 }
 0x16f   : > { %v779_v14 = vadd.f32 %v1562_v23, %v2147_v52  ;;  %v2151_v17 = vadd.f32 %v1599_v22, %v776_v10 }
 0x171   : > { %v1603_v33 = vpop.f32.mrb[4].mxu1  ;;  %v1563_v34 = vpop.f32.mrb[4].mxu0  ;;  %v2153_v37 = vadd.f32 %v1602_v15, %v779_v14 }
 0x172   : > { %v1604_v40 = vpop.f32.mrb[5].mxu1  ;;  %v1564_v41 = vpop.f32.mrb[5].mxu0 }
 0x173   : > { %v1605_v44 = vadd.f32 %v1604_v40, %v1603_v33  ;;  %v1565_v49 = vadd.f32 %v1564_v41, %v1563_v34  ;;  %v1606_v45 = vpop.f32.mrb[6].mxu1  ;;  %v1566_v46 = vpop.f32.mrb[6].mxu0 }
 0x174   : > { %v1607_v48 = vpop.f32.mrb[7].mxu1  ;;  %v1567_v50 = vpop.f32.mrb[7].mxu0 }
 0x175   : > { %v784_v51 = vadd.f32 %v1565_v49, %v2147_v52  ;;  %v1608_v53 = vadd.f32 %v1607_v48, %v1606_v45  ;;  %v1568_v54 = vadd.f32 %v1567_v50, %v1566_v46 }
 0x177   : > { %v787_v55 = vadd.f32 %v1568_v54, %v2147_v52  ;;  %v849_v56 = vadd.f32 %v1605_v44, %v784_v51 }
 0x179   : > { %v1609_v57 = vpop.f32.mrb[8].mxu1  ;;  %v1569_v58 = vpop.f32.mrb[8].mxu0  ;;  %v852_v30 = vadd.f32 %v1608_v53, %v787_v55 }
 0x17a   : > { %v1610_v3 = vpop.f32.mrb[9].mxu1  ;;  %v1570_v60 = vpop.f32.mrb[9].mxu0 }
 0x17b   : > { %v1611_v5 = vadd.f32 %v1610_v3, %v1609_v57  ;;  %v1571_v13 = vadd.f32 %v1570_v60, %v1569_v58  ;;  %v1612_v61 = vpop.f32.mrb[10].mxu1  ;;  %v1572_v63 = vpop.f32.mrb[10].mxu0 }
 0x17c   : > { %v1613_v0 = vpop.f32.mrb[11].mxu1  ;;  %v1573_v2 = vpop.f32.mrb[11].mxu0 }
 0x17d   : > { %v792_v6 = vadd.f32 %v1571_v13, %v2147_v52  ;;  %v1614_v7 = vadd.f32 %v1613_v0, %v1612_v61  ;;  %v1574_v8 = vadd.f32 %v1573_v2, %v1572_v63 }
 0x17f   : > { %v795_v59 = vadd.f32 %v1574_v8, %v2147_v52  ;;  %v857_v9 = vadd.f32 %v1611_v5, %v792_v6 }
 0x181   : > { %v1615_v11 = vpop.f32.mrb[12].mxu1  ;;  %v1575_v19 = vpop.f32.mrb[12].mxu0  ;;  %v860_v4 = vadd.f32 %v1614_v7, %v795_v59 }
 0x182   : > { %v1616_v20 = vpop.f32.mrb[13].mxu1  ;;  %v1576_v21 = vpop.f32.mrb[13].mxu0 }
 0x183   : > { %v1617_v26 = vadd.f32 %v1616_v20, %v1615_v11  ;;  %v1577_v16 = vadd.f32 %v1576_v21, %v1575_v19  ;;  %v1618_v27 = vpop.f32.mrb[14].mxu1  ;;  %v1578_v18 = vpop.f32.mrb[14].mxu0 }
 0x184   : > { %v1619_v28 = vpop.f32.mrb[15].mxu1  ;;  %v1579_v35 = vpop.f32.mrb[15].mxu0 }
 0x185   : > { %v800_v39 = vadd.f32 %v1577_v16, %v2147_v52  ;;  %v1620_v47 = vadd.f32 %v1619_v28, %v1618_v27  ;;  %v1580_v36 = vadd.f32 %v1579_v35, %v1578_v18 }
 0x187   : > { %v803_v62 = vadd.f32 %v1580_v36, %v2147_v52  ;;  %v865_v22 = vadd.f32 %v1617_v26, %v800_v39 }
 0x189   : > { %v1643_v38 = vpop.f32.mrb[16].mxu1  ;;  %v1639_v29 = vpop.f32.mrb[16].mxu0  ;;  %v868_v12 = vadd.f32 %v1620_v47, %v803_v62 }
 0x18a   : > { %v930_v42 = vadd.f32 %v1643_v38, %v865_v22  ;;  %v914_v10 = vadd.f32 %v1639_v29, %v849_v56  ;;  %v921_v15 = vpop.f32.mrb[17].mxu1  ;;  %v905_v23 = vpop.f32.mrb[17].mxu0 }
 0x18b   : > { %v922_v14 = vadd.f32 %v921_v15, %v857_v9  ;;  %v2164_v33 = vadd.f32 %v905_v23, %v2151_v17  ;;  %v1644_v34 = vpop.f32.mrb[18].mxu1  ;;  %v1640_v40 = vpop.f32.mrb[18].mxu0 }
 0x18c   : > { %v942_v41 = vmax.f32 %v930_v42, 0.0  ;;  %v938_v44 = vmax.f32 %v914_v10, 0.0  ;;  %v2166_v49 = vadd.f32 %v1644_v34, %v868_v12  ;;  %v2168_v52 = vadd.f32 %v1640_v40, %v852_v30  ;;  %v924_v45 = vpop.f32.mrb[19].mxu1  ;;  %v908_v46 = vpop.f32.mrb[19].mxu0 }
 0x18d   : > { %v940_v48 = vmax.f32 %v922_v14, 0.0  ;;  %v2170_v50 = vadd.f32 %v924_v45, %v860_v4  ;;  %v2173_v51 = vadd.f32 %v908_v46, %v2153_v37  ;;  %v936_v34 = vmax.f32 %v2164_v33, 0.0 }
 0x18e   : > { %v1054_v53 = vcombine.high %v942_v41, %v942_v41  ;;  %v1061_v17 = vrot.slane %v942_v41, %v2161_v31  ;;  %v986_v54 = vcombine.high %v938_v44, %v938_v44  ;;  %v993_v55 = vrot.slane %v938_v44, %v2161_v31 }
 0x18f   : > { %v1020_v13 = vcombine.high %v940_v48, %v940_v48  ;;  %v1027_v14 = vrot.slane %v940_v48, %v2161_v31 }
 0x190   : > { %v1068_v56 = vrot.slane %v1054_v53, %v2161_v31  ;;  %v1069_v57 = vcombine.high %v1061_v17, %v1061_v17  ;;  %v1289_v58 = vsel %vm1120_vm3, %v1061_v17, -inf  ;;  %v1000_v30 = vrot.slane %v986_v54, %v2161_v31 }
 0x191   : > { %v1290_v3 = vrot.slane %v1289_v58, 4  ;;  %v1001_v60 = vcombine.high %v993_v55, %v993_v55  ;;  %v1177_v5 = vsel %vm1120_vm3, %v993_v55, -inf  ;;  %v1034_v53 = vrot.slane %v1020_v13, %v2161_v31 }
 0x192   : > { %v1070_v37 = vcombine.high %v1068_v56, %v1068_v56  ;;  %v1296_v61 = vsel %vm1120_vm3, %v1069_v57, -inf  ;;  %v1303_v63 = vsel %vm1120_vm3, %v1068_v56, -inf  ;;  %v1002_v0 = vcombine.high %v1000_v30, %v1000_v30 }
 0x193   : > { %v1291_v2 = vmax.f32 %v1289_v58, %v1290_v3  ;;  %v1297_v6 = vrot.slane %v1296_v61, 4  ;;  %v1304_v7 = vrot.slane %v1303_v63, 4  ;;  %v1178_v8 = vrot.slane %v1177_v5, 4 }
 0x194   : > { %v1310_v59 = vsel %vm1120_vm3, %v1070_v37, -inf  ;;  %v1184_v9 = vsel %vm1120_vm3, %v1001_v60, -inf  ;;  %v1191_v11 = vsel %vm1120_vm3, %v1000_v30, -inf  ;;  %v1198_v19 = vsel %vm1120_vm3, %v1002_v0, -inf }
 0x195   : > { %v1292_v4 = vrot.slane %v1291_v2, 2  ;;  %v1298_v20 = vmax.f32 %v1296_v61, %v1297_v6  ;;  %v1305_v21 = vmax.f32 %v1303_v63, %v1304_v7  ;;  %v1311_v32 = vrot.slane %v1310_v59, 4 }
 0x196   : > { %v1179_v24 = vmax.f32 %v1177_v5, %v1178_v8  ;;  %v1185_v25 = vrot.slane %v1184_v9, 4  ;;  %v1192_v26 = vrot.slane %v1191_v11, 4  ;;  %v1199_v16 = vrot.slane %v1198_v19, 4 }
 0x197   : > { %v1293_v27 = vmax.f32 %v1291_v2, %v1292_v4  ;;  %v1299_v18 = vrot.slane %v1298_v20, 2  ;;  %v1306_v28 = vrot.slane %v1305_v21, 2  ;;  %v1312_v35 = vmax.f32 %v1310_v59, %v1311_v32 }
 0x198   : > { %v1180_v39 = vrot.slane %v1179_v24, 2  ;;  %v1186_v47 = vmax.f32 %v1184_v9, %v1185_v25  ;;  %v1193_v36 = vmax.f32 %v1191_v11, %v1192_v26  ;;  %v1200_v43 = vmax.f32 %v1198_v19, %v1199_v16 }
 0x199   : > { %v1294_v1 = vrot.slane %v1293_v27, 1  ;;  %v1300_v62 = vmax.f32 %v1298_v20, %v1299_v18  ;;  %v1307_v22 = vmax.f32 %v1305_v21, %v1306_v28  ;;  %v1313_v38 = vrot.slane %v1312_v35, 2 }
 0x19a   : > { %v1181_v29 = vmax.f32 %v1179_v24, %v1180_v39  ;;  %v1187_v12 = vrot.slane %v1186_v47, 2  ;;  %v1194_v42 = vrot.slane %v1193_v36, 2  ;;  %v1201_v10 = vrot.slane %v1200_v43, 2 }
 0x19b   : > { %v1295_v15 = vmax.f32 %v1293_v27, %v1294_v1  ;;  %v1314_v23 = vmax.f32 %v1312_v35, %v1313_v38  ;;  %v1301_v40 = vrot.slane %v1300_v62, 1  ;;  %v1308_v41 = vrot.slane %v1307_v22, 1 }
 0x19c   : > { %v1182_v44 = vrot.slane %v1181_v29, 1  ;;  %v1188_v45 = vmax.f32 %v1186_v47, %v1187_v12  ;;  %v1195_v46 = vmax.f32 %v1193_v36, %v1194_v42  ;;  %v1202_v55 = vmax.f32 %v1200_v43, %v1201_v10 }
 0x19d   : > { %v1315_v17 = vrot.slane %v1314_v23, 1  ;;  %v1035_v56 = vcombine.high %v1027_v14, %v1027_v14  ;;  %v952_v57 = vcombine.high %v936_v34, %v936_v34  ;;  %v959_v58 = vrot.slane %v936_v34, %v2161_v31 }
 0x19e   : > { %v1189_v54 = vrot.slane %v1188_v45, 1  ;;  %v1302_v30 = vmax.f32 %v1300_v62, %v1301_v40  ;;  %v1309_v3 = vmax.f32 %v1307_v22, %v1308_v41  ;;  %v2192_v48 = vsel %vm1345_vm4, %v1295_v15, -inf }
 0x19f   : > { %v1183_v33 = vmax.f32 %v1181_v29, %v1182_v44  ;;  %v1196_v60 = vrot.slane %v1195_v46, 1  ;;  %v1036_v5 = vcombine.high %v1034_v53, %v1034_v53  ;;  %v1233_v37 = vsel %vm1120_vm3, %v1027_v14, -inf }
 0x1a0   : > { %v1240_v61 = vsel %vm1120_vm3, %v1035_v56, -inf  ;;  %v1316_v13 = vmax.f32 %v1314_v23, %v1315_v17  ;;  %v1190_v63 = vmax.f32 %v1188_v45, %v1189_v54  ;;  %v1203_v0 = vrot.slane %v1202_v55, 1 }
 0x1a1   : > { %v1234_v2 = vrot.slane %v1233_v37, 4  ;;  %v1241_v6 = vrot.slane %v1240_v61, 4  ;;  %v1247_v7 = vsel %vm1120_vm3, %v1034_v53, -inf  ;;  %v1254_v8 = vsel %vm1120_vm3, %v1036_v5, -inf }
 0x1a2   : > { %v966_v59 = vrot.slane %v952_v57, %v2161_v31  ;;  %v1248_v11 = vrot.slane %v1247_v7, 4  ;;  %v1255_v19 = vrot.slane %v1254_v8, 4  ;;  %v967_v4 = vcombine.high %v959_v58, %v959_v58 }
 0x1a3   : > { %v1235_v9 = vmax.f32 %v1233_v37, %v1234_v2  ;;  %v1242_v20 = vmax.f32 %v1240_v61, %v1241_v6  ;;  %v1121_v32 = vsel %vm1120_vm3, %v959_v58, -inf  ;;  %v1197_v41 = vmax.f32 %v1195_v46, %v1196_v60 }
 0x1a4   : > { %v968_v21 = vcombine.high %v966_v59, %v966_v59  ;;  %v1135_v24 = vsel %vm1120_vm3, %v966_v59, -inf  ;;  %v1249_v26 = vmax.f32 %v1247_v7, %v1248_v11  ;;  %v1256_v16 = vmax.f32 %v1254_v8, %v1255_v19 }
 0x1a5   : > { %v1236_v25 = vrot.slane %v1235_v9, 2  ;;  %v1122_v27 = vrot.slane %v1121_v32, 4  ;;  %v1243_v18 = vrot.slane %v1242_v20, 2  ;;  %v1128_v28 = vsel %vm1120_vm3, %v967_v4, -inf }
 0x1a6   : > { %v1136_v35 = vrot.slane %v1135_v24, 4  ;;  %v1142_v39 = vsel %vm1120_vm3, %v968_v21, -inf  ;;  %v1250_v36 = vrot.slane %v1249_v26, 2  ;;  %v1257_v43 = vrot.slane %v1256_v16, 2 }
 0x1a7   : > { %v1237_v47 = vmax.f32 %v1235_v9, %v1236_v25  ;;  %v1123_v1 = vmax.f32 %v1121_v32, %v1122_v27  ;;  %v1244_v62 = vmax.f32 %v1242_v20, %v1243_v18  ;;  %v1129_v22 = vrot.slane %v1128_v28, 4 }
 0x1a8   : > { %v1137_v38 = vmax.f32 %v1135_v24, %v1136_v35  ;;  %v1143_v29 = vrot.slane %v1142_v39, 4  ;;  %v1251_v42 = vmax.f32 %v1249_v26, %v1250_v36  ;;  %v1258_v10 = vmax.f32 %v1256_v16, %v1257_v43 }
 0x1a9   : > { %v1238_v12 = vrot.slane %v1237_v47, 1  ;;  %v1124_v15 = vrot.slane %v1123_v1, 2  ;;  %v1245_v23 = vrot.slane %v1244_v62, 1  ;;  %v1130_v14 = vmax.f32 %v1128_v28, %v1129_v22 }
 0x1aa   : > { %v1138_v34 = vrot.slane %v1137_v38, 2  ;;  %v1144_v40 = vmax.f32 %v1142_v39, %v1143_v29  ;;  %v1204_v44 = vmax.f32 %v1202_v55, %v1203_v0  ;;  %v1252_v45 = vrot.slane %v1251_v42, 1 }
 0x1ab   : > { %v1259_v53 = vrot.slane %v1258_v10, 1  ;;  %v2204_v17 = vsel %vm1345_vm4, %v1302_v30, -inf  ;;  %v1239_v54 = vmax.f32 %v1237_v47, %v1238_v12  ;;  %v1246_v56 = vmax.f32 %v1244_v62, %v1245_v23 }
 0x1ac   : > { %v1125_v57 = vmax.f32 %v1123_v1, %v1124_v15  ;;  %v2207_v58 = vsel %vm1345_vm4, %v1309_v3, -inf  ;;  %v2210_v5 = vsel %vm1345_vm4, %v1183_v33, -inf  ;;  %v1131_v37 = vrot.slane %v1130_v14, 2 }
 0x1ad   : > { %v2212_v61 = vmax.f32 %v1137_v38, %v1138_v34  ;;  %v2215_v46 = vsel %vm1345_vm4, %v1316_v13, -inf  ;;  %v1253_v55 = vmax.f32 %v1251_v42, %v1252_v45  ;;  %v1260_v60 = vmax.f32 %v1258_v10, %v1259_v53 }
 0x1ae   : > { %v1145_v0 = vrot.slane %v1144_v40, 2  ;;  %v2218_v30 = vsel %vm1345_vm4, %v1190_v63, -inf  ;;  %v2221_v2 = vsel %vm1345_vm4, %v1197_v41, -inf  ;;  %v2224_v3 = vsel %vm1345_vm4, %v1204_v44, -inf }
 0x1af   : > { %v943_v33 = vmax.f32 %v2166_v49, 0.0  ;;  %v2228_v6 = vsel %vm1345_vm4, %v1239_v54, -inf  ;;  %v2231_v13 = vsel %vm1345_vm4, %v1246_v56, -inf  ;;  %v1126_v7 = vrot.slane %v1125_v57, 1 }
 0x1b0   : > { %v939_v8 = vmax.f32 %v2168_v52, 0.0  ;;  %v2234_v59 = vmax.f32 %v1130_v14, %v1131_v37  ;;  %v1140_v63 = vrot.slane %v2212_v61, 1  ;;  %v2239_v19 = vsel %vm1345_vm4, %v1253_v55, -inf }
 0x1b1   : > { %v1071_v9 = vcombine.high %v943_v33, %v943_v33  ;;  %v1078_v11 = vrot.slane %v943_v33, %v2161_v31  ;;  %v2242_v49 = vsel %vm1345_vm4, %v1260_v60, -inf  ;;  %v2244_v4 = vmax.f32 %v1144_v40, %v1145_v0 }
 0x1b2   : > { %v1003_v20 = vcombine.high %v939_v8, %v939_v8  ;;  %v1010_v24 = vrot.slane %v939_v8, %v2161_v31  ;;  %v2249_v25 = vmax.f32 %v1125_v57, %v1126_v7  ;;  %v2253_v27 = vmax.f32 %v2170_v50, 0.0 }
 0x1b3   : > { %v1085_v21 = vrot.slane %v1071_v9, %v2161_v31  ;;  %v1086_v32 = vcombine.high %v1078_v11, %v1078_v11  ;;  %v1317_v52 = vsel %vm1120_vm3, %v1078_v11, -inf }
 0x1b4   : > { %v1318_v26 = vrot.slane %v1317_v52, 4  ;;  %v1017_v16 = vrot.slane %v1003_v20, %v2161_v31  ;;  %v1018_v39 = vcombine.high %v1010_v24, %v1010_v24  ;;  %v1205_v22 = vsel %vm1120_vm3, %v1010_v24, -inf }
 0x1b5   : > { %v1087_v18 = vcombine.high %v1085_v21, %v1085_v21  ;;  %v1324_v28 = vsel %vm1120_vm3, %v1086_v32, -inf  ;;  %v1331_v35 = vsel %vm1120_vm3, %v1085_v21, -inf  ;;  %v1206_v15 = vrot.slane %v1205_v22, 4 }
 0x1b6   : > { %v1319_v47 = vmax.f32 %v1317_v52, %v1318_v26  ;;  %v1325_v36 = vrot.slane %v1324_v28, 4  ;;  %v1332_v43 = vrot.slane %v1331_v35, 4  ;;  %v1019_v1 = vcombine.high %v1017_v16, %v1017_v16 }
 0x1b7   : > { %v1338_v62 = vsel %vm1120_vm3, %v1087_v18, -inf  ;;  %v1212_v38 = vsel %vm1120_vm3, %v1018_v39, -inf  ;;  %v1219_v29 = vsel %vm1120_vm3, %v1017_v16, -inf  ;;  %v1207_v53 = vmax.f32 %v1205_v22, %v1206_v15 }
 0x1b8   : > { %v1320_v50 = vrot.slane %v1319_v47, 2  ;;  %v1326_v12 = vmax.f32 %v1324_v28, %v1325_v36  ;;  %v1333_v42 = vmax.f32 %v1331_v35, %v1332_v43  ;;  %v1339_v10 = vrot.slane %v1338_v62, 4 }
 0x1b9   : > { %v1213_v23 = vrot.slane %v1212_v38, 4  ;;  %v1220_v14 = vrot.slane %v1219_v29, 4  ;;  %v1226_v34 = vsel %vm1120_vm3, %v1019_v1, -inf  ;;  %v1208_v33 = vrot.slane %v1207_v53, 2 }
 0x1ba   : > { %v1321_v40 = vmax.f32 %v1319_v47, %v1320_v50  ;;  %v1327_v41 = vrot.slane %v1326_v12, 2  ;;  %v1334_v44 = vrot.slane %v1333_v42, 2  ;;  %v1340_v45 = vmax.f32 %v1338_v62, %v1339_v10 }
 0x1bb   : > { %v1214_v54 = vmax.f32 %v1212_v38, %v1213_v23  ;;  %v1221_v56 = vmax.f32 %v1219_v29, %v1220_v14  ;;  %v1227_v57 = vrot.slane %v1226_v34, 4  ;;  %v1209_v52 = vmax.f32 %v1207_v53, %v1208_v33 }
 0x1bc   : > { %v1322_v37 = vrot.slane %v1321_v40, 1  ;;  %v1328_v55 = vmax.f32 %v1326_v12, %v1327_v41  ;;  %v1335_v60 = vmax.f32 %v1333_v42, %v1334_v44  ;;  %v1341_v0 = vrot.slane %v1340_v45, 2 }
 0x1bd   : > { %v1215_v7 = vrot.slane %v1214_v54, 2  ;;  %v1222_v8 = vrot.slane %v1221_v56, 2  ;;  %v1228_v9 = vmax.f32 %v1226_v34, %v1227_v57  ;;  %v1210_v36 = vrot.slane %v1209_v52, 1 }
 0x1be   : > { %v1323_v11 = vmax.f32 %v1321_v40, %v1322_v37  ;;  %v1329_v20 = vrot.slane %v1328_v55, 1  ;;  %v1336_v21 = vrot.slane %v1335_v60, 1  ;;  %v1342_v32 = vmax.f32 %v1340_v45, %v1341_v0 }
 0x1bf   : > { %v1216_v24 = vmax.f32 %v1214_v54, %v1215_v7  ;;  %v1223_v26 = vmax.f32 %v1221_v56, %v1222_v8  ;;  %v1229_v16 = vrot.slane %v1228_v9, 2  ;;  %v1211_v42 = vmax.f32 %v1209_v52, %v1210_v36 }
 0x1c0   : > { %v1330_v18 = vmax.f32 %v1328_v55, %v1329_v20  ;;  %v1337_v28 = vmax.f32 %v1335_v60, %v1336_v21  ;;  %v1343_v35 = vrot.slane %v1342_v32, 1  ;;  %v1383_v39 = vsel %vm1345_vm4, %v1323_v11, -inf }
 0x1c1   : > { %v1384_v47 = vmax.f32 %v2192_v48, %v1383_v39  ;;  %v1217_v43 = vrot.slane %v1216_v24, 1  ;;  %v1224_v1 = vrot.slane %v1223_v26, 1  ;;  %v1230_v29 = vmax.f32 %v1228_v9, %v1229_v16 }
 0x1c2   : > { %v1344_v62 = vmax.f32 %v1342_v32, %v1343_v35  ;;  %v1386_v22 = vsel %vm1345_vm4, %v1330_v18, -inf  ;;  %v1389_v38 = vsel %vm1345_vm4, %v1337_v28, -inf  ;;  %v1037_v14 = vcombine.high %v2253_v27, %v2253_v27 }
 0x1c3   : > { %v1387_v50 = vmax.f32 %v2204_v17, %v1386_v22  ;;  %v1390_v12 = vmax.f32 %v2207_v58, %v1389_v38  ;;  %v1218_v10 = vmax.f32 %v1216_v24, %v1217_v43  ;;  %v1225_v23 = vmax.f32 %v1223_v26, %v1224_v1 }
 0x1c4   : > { %v1392_v15 = vsel %vm1345_vm4, %v1344_v62, -inf  ;;  %v1231_v48 = vrot.slane %v1230_v29, 1  ;;  %v1359_v58 = vsel %vm1345_vm4, %v1211_v42, -inf  ;;  %v1051_v57 = vrot.slane %v1037_v14, %v2161_v31 }
 0x1c5   : > { %v1393_v34 = vmax.f32 %v2215_v46, %v1392_v15  ;;  %v1422_v17 = vsel %vm1410_vm5, %v1387_v50, %v1384_v47  ;;  %v1362_v40 = vsel %vm1345_vm4, %v1218_v10, -inf  ;;  %v1360_v45 = vmax.f32 %v2210_v5, %v1359_v58 }
 0x1c6   : > { %v1423_v41 = vsel %vm1412_vm6, %v1390_v12, %v1422_v17  ;;  %v1232_v44 = vmax.f32 %v1230_v29, %v1231_v48  ;;  %v1363_v53 = vmax.f32 %v2218_v30, %v1362_v40  ;;  %v1365_v56 = vsel %vm1345_vm4, %v1225_v23, -inf }
 0x1c7   : > { %v1424_v54 = vsel %vm1414_vm7, %v1393_v34, %v1423_v41  ;;  %v1044_v46 = vrot.slane %v2253_v27, %v2161_v31  ;;  %v1366_v37 = vmax.f32 %v2221_v2, %v1365_v56  ;;  %v937_v30 = vmax.f32 %v2173_v51, 0.0 }
 0x1c8   : > { %1433 = vst.msk [vmem:[%s2275_s21 + $0xc] sm:$0xf] %vm1429_vm8, %v1424_v54  ;;  %v1368_v55 = vsel %vm1345_vm4, %v1232_v44, -inf  ;;  %v1416_v5 = vsel %vm1410_vm5, %v1363_v53, %v1360_v45  ;;  %v1053_v33 = vcombine.high %v1051_v57, %v1051_v57  ;;  %v1275_v9 = vsel %vm1120_vm3, %v1051_v57, -inf }
 0x1c9   : > { %v1369_v60 = vmax.f32 %v2224_v3, %v1368_v55  ;;  %v1052_v0 = vcombine.high %v1044_v46, %v1044_v46  ;;  %v1261_v7 = vsel %vm1120_vm3, %v1044_v46, -inf  ;;  %v1417_v27 = vsel %vm1412_vm6, %v1366_v37, %v1416_v5 }
 0x1ca   : > { %v1262_v8 = vrot.slane %v1261_v7, 4  ;;  %v969_v11 = vcombine.high %v937_v30, %v937_v30  ;;  %v1276_v21 = vrot.slane %v1275_v9, 4  ;;  %v1282_v32 = vsel %vm1120_vm3, %v1053_v33, -inf }
 0x1cb   : > { %v1418_v2 = vsel %vm1414_vm7, %v1369_v60, %v1417_v27  ;;  %v1268_v20 = vsel %vm1120_vm3, %v1052_v0, -inf  ;;  %v1283_v52 = vrot.slane %v1282_v32, 4  ;;  %v976_v24 = vrot.slane %v937_v30, %v2161_v31 }
 0x1cc   : > { %1431 = vst.msk [vmem:[%s2275_s21 + $0x4] sm:$0xf] %vm1429_vm8, %v1418_v2  ;;  %v1263_v51 = vmax.f32 %v1261_v7, %v1262_v8  ;;  %v1269_v3 = vrot.slane %v1268_v20, 4  ;;  %v1133_v26 = vrot.slane %v2234_v59, 1  ;;  %v1141_v16 = vmax.f32 %v2212_v61, %v1140_v63 }
 0x1cd   : > { %v1277_v18 = vmax.f32 %v1275_v9, %v1276_v21  ;;  %v983_v28 = vrot.slane %v969_v11, %v2161_v31  ;;  %v1284_v47 = vmax.f32 %v1282_v32, %v1283_v52  ;;  %v984_v36 = vcombine.high %v976_v24, %v976_v24 }
 0x1ce   : > { %v1264_v35 = vrot.slane %v1263_v51, 2  ;;  %v1270_v39 = vmax.f32 %v1268_v20, %v1269_v3  ;;  %v1149_v62 = vsel %vm1120_vm3, %v976_v24, -inf  ;;  %v1147_v32 = vrot.slane %v2244_v4, 1 }
 0x1cf   : > { %v1278_v43 = vrot.slane %v1277_v18, 2  ;;  %v985_v1 = vcombine.high %v983_v28, %v983_v28  ;;  %v1163_v22 = vsel %vm1120_vm3, %v983_v28, -inf  ;;  %v1285_v50 = vrot.slane %v1284_v47, 2 }
 0x1d0   : > { %v1265_v38 = vmax.f32 %v1263_v51, %v1264_v35  ;;  %v1271_v29 = vrot.slane %v1270_v39, 2  ;;  %v1150_v12 = vrot.slane %v1149_v62, 4  ;;  %v1156_v61 = vsel %vm1120_vm3, %v984_v36, -inf }
 0x1d1   : > { %v1279_v42 = vmax.f32 %v1277_v18, %v1278_v43  ;;  %v1164_v63 = vrot.slane %v1163_v22, 4  ;;  %v1170_v31 = vsel %vm1120_vm3, %v985_v1, -inf  ;;  %v1286_v23 = vmax.f32 %v1284_v47, %v1285_v50 }
 0x1d2   : > { %v1266_v10 = vrot.slane %v1265_v38, 1  ;;  %v1272_v15 = vmax.f32 %v1270_v39, %v1271_v29  ;;  %v1151_v48 = vmax.f32 %v1149_v62, %v1150_v12  ;;  %v1157_v34 = vrot.slane %v1156_v61, 4 }
 0x1d3   : > { %v1280_v14 = vrot.slane %v1279_v42, 1  ;;  %v1165_v17 = vmax.f32 %v1163_v22, %v1164_v63  ;;  %v1171_v58 = vrot.slane %v1170_v31, 4  ;;  %v1287_v44 = vrot.slane %v1286_v23, 1 }
 0x1d4   : > { %v1267_v40 = vmax.f32 %v1265_v38, %v1266_v10  ;;  %v1273_v41 = vrot.slane %v1272_v15, 1  ;;  %v1152_v45 = vrot.slane %v1151_v48, 2  ;;  %v1158_v54 = vmax.f32 %v1156_v61, %v1157_v34 }
 0x1d5   : > { %v1281_v53 = vmax.f32 %v1279_v42, %v1280_v14  ;;  %v1166_v56 = vrot.slane %v1165_v17, 2  ;;  %v1172_v46 = vmax.f32 %v1170_v31, %v1171_v58  ;;  %v1288_v37 = vmax.f32 %v1286_v23, %v1287_v44 }
 0x1d6   : > { %v1274_v57 = vmax.f32 %v1272_v15, %v1273_v41  ;;  %v1371_v55 = vsel %vm1345_vm4, %v1267_v40, -inf  ;;  %v1153_v5 = vmax.f32 %v1151_v48, %v1152_v45  ;;  %v1159_v0 = vrot.slane %v1158_v54, 2 }
 0x1d7   : > { %v1372_v30 = vmax.f32 %v2228_v6, %v1371_v55  ;;  %v1377_v60 = vsel %vm1345_vm4, %v1281_v53, -inf  ;;  %v1167_v33 = vmax.f32 %v1165_v17, %v1166_v56  ;;  %v1380_v8 = vsel %vm1345_vm4, %v1288_v37, -inf }
 0x1d8   : > { %v1374_v7 = vsel %vm1345_vm4, %v1274_v57, -inf  ;;  %v1378_v27 = vmax.f32 %v2239_v19, %v1377_v60  ;;  %v1154_v9 = vrot.slane %v1153_v5, 1  ;;  %v1381_v2 = vmax.f32 %v2242_v49, %v1380_v8 }
 0x1d9   : > { %v1375_v11 = vmax.f32 %v2231_v13, %v1374_v7  ;;  %v1160_v20 = vmax.f32 %v1158_v54, %v1159_v0  ;;  %v1168_v21 = vrot.slane %v1167_v33, 1  ;;  %v1346_v6 = vsel %vm1345_vm4, %v2249_v25, -inf }
 0x1da   : > { %v1155_v51 = vmax.f32 %v1153_v5, %v1154_v9  ;;  %v1173_v3 = vrot.slane %v1172_v46, 2  ;;  %v1134_v52 = vmax.f32 %v2234_v59, %v1133_v26  ;;  %v1352_v13 = vsel %vm1345_vm4, %v1141_v16, -inf }
 0x1db   : > { %v1419_v19 = vsel %vm1410_vm5, %v1375_v11, %v1372_v30  ;;  %v1161_v24 = vrot.slane %v1160_v20, 1  ;;  %v1169_v18 = vmax.f32 %v1167_v33, %v1168_v21  ;;  %v1148_v59 = vmax.f32 %v2244_v4, %v1147_v32 }
 0x1dc   : > { %v1420_v49 = vsel %vm1412_vm6, %v1378_v27, %v1419_v19  ;;  %v1174_v28 = vmax.f32 %v1172_v46, %v1173_v3  ;;  %v1347_v35 = vsel %vm1345_vm4, %v1155_v51, -inf  ;;  %v1349_v16 = vsel %vm1345_vm4, %v1134_v52, -inf }
 0x1dd   : > { %v1421_v39 = vsel %vm1414_vm7, %v1381_v2, %v1420_v49  ;;  %v1162_v47 = vmax.f32 %v1160_v20, %v1161_v24  ;;  %v1348_v25 = vmax.f32 %v1346_v6, %v1347_v35  ;;  %v1353_v36 = vsel %vm1345_vm4, %v1169_v18, -inf }
 0x1de   : > { %1432 = vst.msk [vmem:[%s2275_s21 + $0x8] sm:$0xf] %vm1429_vm8, %v1421_v39  ;;  %v1175_v26 = vrot.slane %v1174_v28, 1  ;;  %v1354_v43 = vmax.f32 %v1352_v13, %v1353_v36  ;;  %v1355_v38 = vsel %vm1345_vm4, %v1148_v59, -inf }
 0x1df   : > { %v1350_v1 = vsel %vm1345_vm4, %v1162_v47, -inf }
 0x1e0   : > { %v1176_v62 = vmax.f32 %v1174_v28, %v1175_v26  ;;  %v1351_v22 = vmax.f32 %v1349_v16, %v1350_v1 }
 0x1e2   : > { %v1356_v29 = vsel %vm1345_vm4, %v1176_v62, -inf  ;;  %v1411_v50 = vsel %vm1410_vm5, %v1351_v22, %v1348_v25 }
 0x1e3   : > { %v1357_v12 = vmax.f32 %v1355_v38, %v1356_v29  ;;  %v1413_v42 = vsel %vm1412_vm6, %v1354_v43, %v1411_v50 }
 0x1e5   : > { %v1415_v4 = vsel %vm1414_vm7, %v1357_v12, %v1413_v42 }
 0x1e6   : > { %1430 = vst.msk [vmem:[%s2275_s21] sm:$0xf] %vm1429_vm8, %v1415_v4 }
 0x1e7 PF: > { %s13_s12 = sadd.s32 1, %s1771_s12  }
 0x1e8   : > { %p10_p4 = scmp.ge.s32.totalorder %s13_s12, 4  }
 0x1ea   :  { %12 = sbr.rel (!%p10_p4) target bundleno = 1 (0x1), region = 62 }

// kernel: audio_gcnn_forward.5
= control target key start
LH: loop header
LB: loop body
LE: loop exit
PB: predicated region body
PF: predicated region fallthrough
CT: control target
= control target key end

     0   :  { %12 = vsyncpa [#allocation3], 0  ;;  %s3048_s0 = inlined_call_operand.vmem [shape: bf16[2,6,6,128], index: 0, kind: input, shape index: {}]   ;;  %s3049_s1 = inlined_call_operand.vmem [shape: bf16[1152,64], index: 1, kind: input, shape index: {}]   ;;  %s3050_s2 = inlined_call_operand.vmem [shape: f32[1,64], index: 2, kind: input, shape index: {}]   ;;  %s3051_s3 = inlined_call_operand.vmem [shape: f32[4,64,128], index: 3, kind: input, shape index: {}]   ;;  %s3052_s4 = inlined_call_operand.vmem [shape: f32[1,128], index: 4, kind: input, shape index: {}]   ;;  %s3053_s5 = inlined_call_operand.vmem [shape: f32[128,128], index: 5, kind: input, shape index: {}]   ;;  %s3054_s6 = inlined_call_operand.vmem [shape: f32[1,128], index: 6, kind: input, shape index: {}]   ;;  %s3055_s7 = inlined_call_operand.hbm [shape: f32[2,1,128], index: 7, kind: output, shape index: {}]  }
   0x1   :  { %14 = vsyncpa [#allocation3 + $0x1], 0  ;;  %s2455_s24 = smov 0   ;;  %s2457_s25 = smov 0  }
   0x2   :  { %s2459_s26 = smov 0   ;;  %s2461_s27 = smov 0  }
   0x3 LB: > { %s2476_s28 = sadd.s32 4294967295, %s2408_s27   ;;  %s1754_s29 = sadd.s32 4294967294, %s2408_s27   ;;  %s2408_s27 = sphi %s2461_s27, %s3061_s27   ;;  %s2404_s26 = sphi %s2459_s26, %s3060_s26   ;;  %s2400_s25 = sphi %s2457_s25, %s3059_s25   ;;  %s2396_s24 = sphi %s2455_s24, %s3058_s24  }
   0x4   : > { %s2480_s30 = sadd.s32 1, %s2408_s27   ;;  %s179_s8 = sadd.s32 1, %s2404_s26 }
   0x5   : > { %s176_s9 = ssub.s32 %s2408_s27, %s2480_s30  ;;  %p189_p0 = scmp.ne.s32.totalorder %s2404_s26, %s2400_s25 }
   0x6   : > { %p177_p1 = scmp.eq.s32.totalorder %s176_s9, 0  ;;  %p190_p2 = scmp.eq.s32.totalorder %s2476_s28, 1 }
   0x7   : > { %p195_p3 = scmp.ne.s32.totalorder %s2400_s25, %s2396_s24  ;;  %p196_p4 = scmp.eq.s32.totalorder %s1754_s29, 1 }
   0x8   : > { %s2491_s10 = scalar_select %p177_p1, %s2404_s26, %s179_s8  }
   0x9   : > { %p2493_p5 = por %p190_p2, %p189_p0  ;;  %p2497_p6 = por %p196_p4, %p195_p3 }
   0xa   : > { %p1757_p7 = scmp.ge.s32.totalorder %s2408_s27, 1  ;;  %p240_p8 = scmp.lt.s32.totalorder %s2408_s27, 3 }
   0xc   : > { %p241_p9 = pnand %p1757_p7, %p240_p8 }
   0xd   : > { %v2274_v0 = vld [vmem:[%s3049_s1 + $0x40] sm:$0xff] (!%p241_p9)   ;;  %v2278_v4 = vld [vmem:[%s3049_s1 + $0x48] sm:$0xff] (!%p241_p9)   ;;  %v2282_v8 = vld [vmem:[%s3049_s1 + $0x50] sm:$0xff] (!%p241_p9)   ;;  %p271_p10 = scmp.lt.s32.totalorder (!%p241_p9), %s2476_s28, 1  ;;  %vm2411_vm0 = vmmov (!%p241_p9), 0   ;;  %vm1196_vm1 = vcmask (!%p241_p9), 517120  }
   0xe   : > { %244 = sbr.rel (%p241_p9) target bundleno = 842 (0x34a), region = 48  ;;  %v2275_v1 = vld [vmem:[%s3049_s1] sm:$0xff] (!%p241_p9)   ;;  %1877 = vmatprep.subr.bf16.mxu0 (!%p241_p9), %v2274_v0  ;;  %v2279_v5 = vld [vmem:[%s3049_s1 + $0x8] sm:$0xff] (!%p241_p9)   ;;  %v2283_v9 = vld [vmem:[%s3049_s1 + $0x10] sm:$0xff] (!%p241_p9)   ;;  %vm1253_vm2 = vcmask (!%p241_p9), 523264   ;;  %s269_s15 = sand.u32 (!%p241_p9), 1, %s2400_s25  }
   0xf   : > { %v2276_v2 = vld [vmem:[%s3049_s1 + $0xc0] sm:$0xff] (!%p241_p9)   ;;  %1878 = vmatpush3.bf16.msra.mxu0 (!%p241_p9), %v2275_v1  ;;  %v2280_v6 = vld [vmem:[%s3049_s1 + $0xc8] sm:$0xff] (!%p241_p9)   ;;  %v2284_v10 = vld [vmem:[%s3049_s1 + $0xd0] sm:$0xff] (!%p241_p9)   ;;  %s270_s18 = scalar_lea.vmem (!%p241_p9), [#allocation2], %s269_s15 }
  0x10   : > { %v2277_v3 = vld [vmem:[%s3049_s1 + $0x80] sm:$0xff] (!%p241_p9)   ;;  %1899 = vmatprep.subr.bf16.mxu1 (!%p241_p9), %v2276_v2  ;;  %1879 = vmatprep.subr.bf16.mxu0 (!%p241_p9), %v2278_v4  ;;  %v2281_v7 = vld [vmem:[%s3049_s1 + $0x88] sm:$0xff] (!%p241_p9)   ;;  %v2285_v11 = vld [vmem:[%s3049_s1 + $0x90] sm:$0xff] (!%p241_p9)   ;;  %s1699_s20 = sshll.u32 (!%p241_p9), %s270_s18, 4  ;;  %s3008_s20 = int_to_ptr.vmem [resolvable:$true] %s1699_s20 }
  0x11   : > { %1900 = vmatpush3.bf16.msra.mxu1 (!%p241_p9), %v2277_v3  ;;  %v2286_v12 = vld [vmem:[%s3049_s1 + $0x58] sm:$0xff] (!%p241_p9)   ;;  %v2290_v16 = vld [vmem:[%s3049_s1 + $0x60] sm:$0xff] (!%p241_p9)   ;;  %v2294_v20 = vld [vmem:[%s3049_s1 + $0x68] sm:$0xff] (!%p241_p9)  }
  0x12   : > { %1901 = vmatprep.subr.bf16.mxu1 (!%p241_p9), %v2280_v6  ;;  %v2287_v13 = vld [vmem:[%s3049_s1 + $0x18] sm:$0xff] (!%p241_p9)   ;;  %v2291_v17 = vld [vmem:[%s3049_s1 + $0x20] sm:$0xff] (!%p241_p9)   ;;  %v2295_v21 = vld [vmem:[%s3049_s1 + $0x28] sm:$0xff] (!%p241_p9)  }
  0x13   : > { %1880 = vmatpush3.bf16.msra.mxu0 (!%p241_p9), %v2279_v5  ;;  %v2288_v14 = vld [vmem:[%s3049_s1 + $0xd8] sm:$0xff] (!%p241_p9)   ;;  %v2292_v18 = vld [vmem:[%s3049_s1 + $0xe0] sm:$0xff] (!%p241_p9)   ;;  %v2296_v22 = vld [vmem:[%s3049_s1 + $0xe8] sm:$0xff] (!%p241_p9)  }
  0x14   : > { %1881 = vmatprep.subr.bf16.mxu0 (!%p241_p9), %v2282_v8  ;;  %v2289_v15 = vld [vmem:[%s3049_s1 + $0x98] sm:$0xff] (!%p241_p9)   ;;  %v2293_v19 = vld [vmem:[%s3049_s1 + $0xa0] sm:$0xff] (!%p241_p9)   ;;  %v2297_v23 = vld [vmem:[%s3049_s1 + $0xa8] sm:$0xff] (!%p241_p9)  }
  0x15   : > { %1902 = vmatpush3.bf16.msra.mxu1 %v2281_v7  ;;  %s272_s13 = scalar_select %p271_p10, %s2476_s28, 1  ;;  %v2298_v24 = vld [vmem:[%s3049_s1 + $0x70] sm:$0xff]   ;;  %v2302_v28 = vld [vmem:[%s3049_s1 + $0x78] sm:$0xff]   ;;  %v2306_v46 = vld [vmem:[%s3049_s1 + $0x140] sm:$0xff]  }
  0x16   : > { %1903 = vmatprep.subr.bf16.mxu1 %v2284_v10  ;;  %v2299_v25 = vld [vmem:[%s3049_s1 + $0x30] sm:$0xff]   ;;  %v2303_v29 = vld [vmem:[%s3049_s1 + $0x38] sm:$0xff]   ;;  %v2308_v55 = vld [vmem:[%s3049_s1 + $0x1c0] sm:$0xff]  }
  0x17   : > { %1882 = vmatpush3.bf16.msra.mxu0 %v2283_v9  ;;  %s2230_s22 = smul.u32 24, %s272_s13  ;;  %v2300_v26 = vld [vmem:[%s3049_s1 + $0xf0] sm:$0xff]   ;;  %v2304_v30 = vld [vmem:[%s3049_s1 + $0xf8] sm:$0xff]   ;;  %v2307_v58 = vld [vmem:[%s3049_s1 + $0x100] sm:$0xff]   ;;  %s1874_s13 = sshll.u32 %s2476_s28, 4 }
  0x18   : > { %1883 = vmatprep.subr.bf16.mxu0 %v2286_v12  ;;  %v2301_v27 = vld [vmem:[%s3049_s1 + $0xb0] sm:$0xff]   ;;  %v2305_v41 = vld [vmem:[%s3049_s1 + $0xb8] sm:$0xff]   ;;  %v2310_v0 = vld [vmem:[%s3049_s1 + $0x148] sm:$0xff]   ;;  %s3006_s29 = scalar_lea.hbm %s3055_s7, %s1874_s13  ;;  %s2414_s28 = smov [#allocation2]  }
  0x19   : > { %1904 = vmatpush3.bf16.msra.mxu1 %v2285_v11  ;;  %s2595_s19 = scalar_lea.vmem %s3048_s0, %s2230_s22  ;;  %v2309_v3 = vld [vmem:[%s3049_s1 + $0x180] sm:$0xff]   ;;  %v2312_v5 = vld [vmem:[%s3049_s1 + $0x1c8] sm:$0xff]   ;;  %v2314_v8 = vld [vmem:[%s3049_s1 + $0x150] sm:$0xff]   ;;  %s1687_s22 = scalar_lea.sflag [#allocation3], %s269_s15 }
  0x1a   : > { %1905 = vmatprep.subr.bf16.mxu1 %v2288_v14  ;;  %v277_v31 = vld [vmem:[%s2595_s19] sm:$0x7]  ;;  %v278_v32 = vld [vmem:[%s2595_s19 + $0x4] sm:$0x7]  ;;  %v279_v33 = vld [vmem:[%s2595_s19 + $0x8] sm:$0x7] }
  0x1b   : > { %1884 = vmatpush3.bf16.msra.mxu0 %v2287_v13  ;;  %v280_v34 = vld [vmem:[%s2595_s19 + $0xc] sm:$0x7]  ;;  %v281_v35 = vld [vmem:[%s2595_s19 + $0x10] sm:$0x7]  ;;  %v283_v36 = vunpack.c.l.bf16 %v277_v31  ;;  %v2608_v37 = vunpack.c.l.bf16 %v278_v32  ;;  %v2610_v38 = vunpack.c.l.bf16 %v279_v33  ;;  %v2318_v13 = vld [vmem:[%s3049_s1 + $0x158] sm:$0xff]   ;;  %s2350_s8 = sshll.u32 %s2414_s28, 4  ;;  %s2351_s8 = int_to_ptr.vmem [resolvable:$false] %s2350_s8 }
  0x1c   : > { %1885 = vmatprep.subr.bf16.mxu0 %v2290_v16  ;;  %v2612_v39 = vunpack.c.l.bf16 %v280_v34  ;;  %v2614_v40 = vunpack.c.l.bf16 %v281_v35  ;;  %v2311_v7 = vld [vmem:[%s3049_s1 + $0x108] sm:$0xff]   ;;  %v2316_v11 = vld [vmem:[%s3049_s1 + $0x1d0] sm:$0xff]   ;;  %v2319_v16 = vld [vmem:[%s3049_s1 + $0x118] sm:$0xff]   ;;  %s2352_s9 = scalar_lea.vmem %s2351_s8, 32  ;;  %p2353_p0 = scmp.lt.s32.totalorder %s3008_s20, %s2351_s8 }
  0x1d   : > { %1906 = vmatpush3.bf16.msra.mxu1 %v2289_v15  ;;  %v293_v42 = vrot.slane %v283_v36, 1  ;;  %v294_v43 = vrot.slane %v2608_v37, 1  ;;  %v295_v44 = vrot.slane %v2610_v38, 1  ;;  %v1759_v45 = vcombine.low %v283_v36, %v2608_v37  ;;  %v2313_v10 = vld [vmem:[%s3049_s1 + $0x188] sm:$0xff]   ;;  %v2315_v12 = vld [vmem:[%s3049_s1 + $0x110] sm:$0xff]   ;;  %v2320_v15 = vld [vmem:[%s3049_s1 + $0x1d8] sm:$0xff]  }
  0x1e   : > { %1907 = vmatprep.subr.bf16.mxu1 %v2292_v18  ;;  %v296_v47 = vrot.slane %v2612_v39, 1  ;;  %v2628_v48 = vcombine.low %v2610_v38, %v2612_v39  ;;  %v1762_v49 = vcombine.low %v2608_v37, %v2610_v38  ;;  %v1768_v51 = vcombine.low %v2612_v39, %v2614_v40  ;;  %v2317_v14 = vld [vmem:[%s3049_s1 + $0x190] sm:$0xff]   ;;  %v2321_v18 = vld [vmem:[%s3049_s1 + $0x198] sm:$0xff]  }
  0x1f   : > { %1886 = vmatpush3.bf16.msra.mxu0 %v2291_v17  ;;  %v1760_v50 = vcombine.low %v293_v42, %v294_v43  ;;  %v297_v52 = vrot.slane %v283_v36, 2  ;;  %v298_v54 = vrot.slane %v2608_v37, 2  ;;  %v299_v59 = vrot.slane %v2610_v38, 2  ;;  %v2322_v17 = vld [vmem:[%s3049_s1 + $0x160] sm:$0xff]   ;;  %v2333_v31 = vld [vmem:[%s3049_s1 + $0x1b0] sm:$0xff]   ;;  %v2336_v34 = vld [vmem:[%s3049_s1 + $0x1f8] sm:$0xff]  }
  0x20   : > { %1887 = vmatprep.subr.bf16.mxu0 %v2294_v20  ;;  %v2640_v53 = vcombine.low %v295_v44, %v296_v47  ;;  %v353_v56 = vpack.c.bf16 %v2628_v48, %v1759_v45  ;;  %v356_v57 = vpack.c.bf16 %v1768_v51, %v1762_v49  ;;  %v300_v60 = vrot.slane %v2612_v39, 2  ;;  %v2323_v20 = vld [vmem:[%s3049_s1 + $0x120] sm:$0xff]   ;;  %v282_v35 = vld [vmem:[%s2595_s19 + $0x14] sm:$0x7]  ;;  %v2335_v36 = vld [vmem:[%s3049_s1 + $0x138] sm:$0xff]   ;;  %s2346_s19 = scalar_lea.vmem %s3008_s20, 16 }
  0x21   : > { %1908 = vmatpush3.bf16.msra.mxu1 %v2293_v19  ;;  %v1761_v62 = vcombine.low %v297_v52, %v298_v54  ;;  %v303_v1 = vrot.slane %v2614_v40, 2  ;;  %v1764_v2 = vcombine.low %v298_v54, %v299_v59  ;;  %v2324_v19 = vld [vmem:[%s3049_s1 + $0x1e0] sm:$0xff]   ;;  %v1763_v32 = vcombine.low %v294_v43, %v295_v44  ;;  %v2337_v37 = vld [vmem:[%s3049_s1 + $0x1b8] sm:$0xff]   ;;  %v2339_v49 = vld [vmem:[%s3049_s1 + $0x208] sm:$0xff]   ;;  %p2347_p11 = scmp.ne.s32.totalorder %s3008_s20, %s2346_s19  ;;  %p2354_p1 = scmp.lt.s32.totalorder %s2352_s9, %s2346_s19 }
  0x22   : > { %1909 = vmatprep.subr.bf16.mxu1 %v2296_v22  ;;  %v354_v61 = vpack.c.bf16 %v2640_v53, %v1760_v50  ;;  %1018 = vmatprep.mubr.bf16.mxu1 %v356_v57  ;;  %v2653_v63 = vcombine.low %v299_v59, %v300_v60  ;;  %v2325_v22 = vld [vmem:[%s3049_s1 + $0x1a0] sm:$0xff]   ;;  %v2410_v45 = vmov 0.0   ;;  %v2341_v50 = vld [vmem:[%s3049_s1 + $0x218] sm:$0xff]   ;;  %v2343_v52 = vld [vmem:[%s3049_s1 + $0x228] sm:$0xff]  }
  0x23   : > { %1888 = vmatpush3.bf16.msra.mxu0 %v2295_v21  ;;  %v1770_v6 = vcombine.low %v300_v60, %v303_v1  ;;  %v2326_v21 = vld [vmem:[%s3049_s1 + $0x168] sm:$0xff]   ;;  %v2338_v44 = vld [vmem:[%s3049_s1 + $0x200] sm:$0xff]   ;;  %v2344_v54 = vld [vmem:[%s3049_s1 + $0x230] sm:$0xff]   ;;  %v2412_v60 = vmov 0.0|0.0   ;;  %p2348_p12 = pnand %p2347_p11, %p2493_p5  ;;  %p2355_p2 = por %p2354_p1, %p2353_p0 }
  0x24   : > { %1889 = vmatprep.subr.bf16.mxu0 %v2298_v24  ;;  %977 = vmatprep.mubr.bf16.mxu0 %v354_v61  ;;  %v355_v4 = vpack.c.bf16 %v2653_v63, %v1761_v62  ;;  %v2327_v24 = vld [vmem:[%s3049_s1 + $0x128] sm:$0xff]   ;;  %v2342_v51 = vld [vmem:[%s3049_s1 + $0x220] sm:$0xff]   ;;  %v1848_v61 = vld [vmem:[%s3051_s3 + $0x50] sm:$0xff] }
  0x25   : > { %1910 = vmatpush3.bf16.msra.mxu1 %v2297_v23  ;;  %v358_v9 = vpack.c.bf16 %v1770_v6, %v1764_v2  ;;  %v2328_v23 = vld [vmem:[%s3049_s1 + $0x1e8] sm:$0xff]   ;;  %v1849_v62 = vld [vmem:[%s3051_s3 + $0x58] sm:$0xff]  ;;  %p2349_p13 = pneg %p2348_p12 }
  0x26   : > { %1911 = vmatprep.subr.bf16.mxu1 %v2300_v26  ;;  %v2329_v26 = vld [vmem:[%s3049_s1 + $0x1a8] sm:$0xff]  }
  0x27   : > { %1890 = vmatpush3.bf16.msra.mxu0 %v2299_v25  ;;  %v2330_v25 = vld [vmem:[%s3049_s1 + $0x170] sm:$0xff]   ;;  %p2356_p3 = pnand %p2355_p2, %p2349_p13 }
  0x28   : > { %1891 = vmatprep.subr.bf16.mxu0 %v2302_v28  ;;  %v2332_v28 = vld [vmem:[%s3049_s1 + $0x1f0] sm:$0xff]  }
  0x29   : > { %1912 = vmatpush3.bf16.msra.mxu1 %v2301_v27  ;;  %v302_v27 = vrot.slane %v2614_v40, 1 }
  0x2a   : > { %1913 = vmatprep.subr.bf16.mxu1 %v2304_v30  ;;  %v2334_v30 = vld [vmem:[%s3049_s1 + $0x178] sm:$0xff]  }
  0x2b   : > { %1892 = vmatpush3.bf16.msra.mxu0 %v2303_v29  ;;  %v2331_v29 = vld [vmem:[%s3049_s1 + $0x130] sm:$0xff]   ;;  %v1769_v33 = vcombine.low %v296_v47, %v302_v27 }
  0x2c   : > { %1921 = vmatprep.subr.bf16.mxu0 %v2306_v46 }
  0x2d   : > { %1914 = vmatpush3.bf16.msra.mxu1 %v2305_v41  ;;  %v288_v41 = vunpack.c.l.bf16 %v282_v35  ;;  %v357_v42 = vpack.c.bf16 %v1769_v33, %v1763_v32 }
  0x2e   : > { %1943 = vmatprep.subr.bf16.mxu1 %v2308_v55  ;;  %978 = vmatmul.mubr.bf16.vlgmr.msra.gmra.mrb[0].mxu0 %v353_v56  ;;  %v2345_v56 = vld [vmem:[%s3049_s1 + $0x238] sm:$0xff]  }
  0x2f   : > { %1922 = vmatpush3.bf16.msra.mxu0 %v2307_v58  ;;  %1059 = vmatprep.mubr.bf16.mxu0 %v358_v9  ;;  %v305_v38 = vrot.slane %v288_v41, 1  ;;  %v1771_v39 = vcombine.low %v2614_v40, %v288_v41  ;;  %v1846_v58 = vld [vmem:[%s3051_s3 + $0x40] sm:$0xff]  ;;  %v1847_v40 = vld [vmem:[%s3051_s3 + $0x48] sm:$0xff] }
  0x30   : > { %1019 = vmatmul.mubr.bf16.vlgmr.msra.gmra.mrb[0].mxu1 %v355_v4  ;;  %1923 = vmatprep.subr.bf16.mxu0 %v2310_v0  ;;  %v2159_v59 = vpack.c.bf16 %v1847_v40, %v1846_v58  ;;  %v1850_v0 = vld [vmem:[%s3051_s3 + $0x60] sm:$0xff]  ;;  %v1853_v4 = vld [vmem:[%s3051_s3 + $0x78] sm:$0xff] }
  0x31   : > { %1944 = vmatpush3.bf16.msra.mxu1 %v2309_v3  ;;  %v1772_v43 = vcombine.low %v302_v27, %v305_v38  ;;  %v359_v46 = vpack.c.bf16 %v1771_v39, %v2628_v48  ;;  %v2340_v48 = vld [vmem:[%s3049_s1 + $0x210] sm:$0xff]   ;;  %v2413_v38 = vmov 1983009808  }
  0x32   : > { %1945 = vmatprep.subr.bf16.mxu1 %v2312_v5  ;;  %v1852_v3 = vld [vmem:[%s3051_s3 + $0x70] sm:$0xff]  ;;  %v1156_v39 = vunpack.c.l.s4 %v2413_v38 }
  0x33   : > { %1924 = vmatpush3.bf16.msra.mxu0 %v2311_v7  ;;  %v360_v47 = vpack.c.bf16 %v1772_v43, %v2640_v53  ;;  %v306_v53 = vrot.slane %v288_v41, 2  ;;  %v2168_v5 = vpack.c.bf16 %v1853_v4, %v1852_v3  ;;  %v1773_v7 = vld [vmem:[%s3050_s2] ss:$0 sm:$0xff] }
  0x34   : > { %1925 = vmatprep.subr.bf16.mxu0 %v2314_v8  ;;  %v1157_v43 = vunpack.c.0.s8 %v1156_v39 }
  0x35   : > { %1946 = vmatpush3.bf16.msra.mxu1 %v2313_v10  ;;  %1100 = vmatprep.mubr.bf16.mxu1 %v360_v47  ;;  %v336_v55 = vcombine.low %v303_v1, %v306_v53  ;;  %v1851_v1 = vld [vmem:[%s3051_s3 + $0x68] sm:$0xff] }
  0x36   : > { %1947 = vmatprep.subr.bf16.mxu1 %v2316_v11  ;;  %v2165_v2 = vpack.c.bf16 %v1851_v1, %v1850_v0 }
  0x37   : > { %1926 = vmatpush3.bf16.msra.mxu0 %v2315_v12  ;;  %v361_v57 = vpack.c.bf16 %v336_v55, %v2653_v63  ;;  %v2162_v63 = vpack.c.bf16 %v1849_v62, %v1848_v61 }
  0x38   : > { %1927 = vmatprep.subr.bf16.mxu0 %v2318_v13 }
  0x39   : > { %1948 = vmatpush3.bf16.msra.mxu1 %v2317_v14 }
  0x3a   : > { %1949 = vmatprep.subr.bf16.mxu1 %v2320_v15 }
  0x3b   : > { %1928 = vmatpush3.bf16.msra.mxu0 %v2319_v16 }
  0x3c   : > { %1929 = vmatprep.subr.bf16.mxu0 %v2322_v17 }
  0x3d   : > { %1950 = vmatpush3.bf16.msra.mxu1 %v2321_v18 }
  0x3e   : > { %1951 = vmatprep.subr.bf16.mxu1 %v2324_v19 }
  0x3f   : > { %1930 = vmatpush3.bf16.msra.mxu0 %v2323_v20 }
  0x40   : > { %1931 = vmatprep.subr.bf16.mxu0 %v2326_v21 }
  0x41   : > { %1952 = vmatpush3.bf16.msra.mxu1 %v2325_v22 }
  0x42   : > { %1953 = vmatprep.subr.bf16.mxu1 %v2328_v23 }
  0x43   : > { %1932 = vmatpush3.bf16.msra.mxu0 %v2327_v24 }
  0x44   : > { %1933 = vmatprep.subr.bf16.mxu0 %v2330_v25 }
  0x45   : > { %1954 = vmatpush3.bf16.msra.mxu1 %v2329_v26 }
  0x46   : > { %1955 = vmatprep.subr.bf16.mxu1 %v2332_v28 }
  0x47   : > { %1934 = vmatpush3.bf16.msra.mxu0 %v2331_v29 }
  0x48   : > { %1935 = vmatprep.subr.bf16.mxu0 %v2334_v30 }
  0x49   : > { %1956 = vmatpush3.bf16.msra.mxu1 %v2333_v31 }
  0x4a   : > { %1957 = vmatprep.subr.bf16.mxu1 %v2336_v34 }
  0x4b   : > { %1936 = vmatpush3.bf16.msra.mxu0 %v2335_v36 }
  0x4c   : > { %2027 = vmatprep.subr.bf16.mxu0 %v2410_v45 }
  0x4d   : > { %1958 = vmatpush3.bf16.msra.mxu1 %v2337_v37 }
  0x4e   : > { %1060 = vmatmul.mubr.bf16.vlgmr.msra.gmra.mrb[4].mxu0 %v357_v42  ;;  %2158 = vmatprep.subr.bf16.mxu1 %v2412_v60  ;;  %v1158_v42 = vlaneseq }
  0x4f   : > { %2028 = vmatpush3.bf16.msra.mxu0 %v2338_v44  ;;  %2043 = vmatprep.mubr.msk.bf16.mxu0 %vm2411_vm0, %v2410_v45 }
  0x50   : > { %1101 = vmatmul.mubr.bf16.vlgmr.msra.gmra.mrb[4].mxu1 %v359_v46  ;;  %2029 = vmatprep.subr.bf16.mxu0 %v2410_v45  ;;  %v1159_v44 = vshrl.u32 %v1158_v42, 7  ;;  %v1272_v42 = vld [vmem:[%s3051_s3 + $0x30] sm:$0xff] }
  0x51   : > { %2063 = vmatprep.mubr.msk.f32.mxu1 %vm2411_vm0, %v2410_v45  ;;  %2160 = vmatpush3.bf16.msra.mxu1 %v2159_v59 }
  0x52   : > { %2161 = vmatprep.subr.bf16.mxu1 %v2412_v60 }
  0x53   : > { %2030 = vmatpush3.bf16.msra.mxu0 %v2339_v49  ;;  %v1160_v49 = vsub.s32 %v1157_v43, %v1159_v44  ;;  %v1273_v43 = vld [vmem:[%s3051_s3 + $0x38] sm:$0xff] }
  0x54   : > { %2031 = vmatprep.subr.bf16.mxu0 %v2410_v45 }
  0x55   : > { %2163 = vmatpush3.bf16.msra.mxu1 %v2162_v63 }
  0x56   : > { %2164 = vmatprep.subr.bf16.mxu1 %v2412_v60 }
  0x57   : > { %2032 = vmatpush3.bf16.msra.mxu0 %v2340_v48 }
  0x58   : > { %2033 = vmatprep.subr.bf16.mxu0 %v2410_v45 }
  0x59   : > { %2166 = vmatpush3.bf16.msra.mxu1 %v2165_v2 }
  0x5a   : > { %2167 = vmatprep.subr.bf16.mxu1 %v2412_v60 }
  0x5b   : > { %2034 = vmatpush3.bf16.msra.mxu0 %v2341_v50 }
  0x5c   : > { %2035 = vmatprep.subr.bf16.mxu0 %v2410_v45 }
  0x5d   : > { %2169 = vmatpush3.bf16.msra.mxu1 %v2168_v5 }
  0x5e   : > { %2170 = vmatprep.subr.bf16.mxu1 %v2412_v60 }
  0x5f   : > { %2036 = vmatpush3.bf16.msra.mxu0 %v2342_v51 }
  0x60   : > { %2037 = vmatprep.subr.bf16.mxu0 %v2410_v45 }
  0x63   : > { %2038 = vmatpush3.bf16.msra.mxu0 %v2343_v52 }
  0x64   : > { %2039 = vmatprep.subr.bf16.mxu0 %v2410_v45 }
  0x67   : > { %2040 = vmatpush3.bf16.msra.mxu0 %v2344_v54 }
  0x68   : > { %2041 = vmatprep.subr.bf16.mxu0 %v2410_v45 }
  0x6b   : > { %2042 = vmatpush3.bf16.msra.mxu0 %v2345_v56 }
  0x6c   : > { %2206 = vmatprep.subr.bf16.mxu0 %v2412_v60 }
  0x6e   : > { %2044 = vmatmul.mubr.bf16.vlgmr.msra.gmra.mrb[8].mxu0 %v361_v57 }
  0x6f   : > { %2155 = vmatprep.mubr.msk.f32.mxu0 %vm2411_vm0, %v2410_v45 }
 0x101   : > { %v1893_v6 = vpop.f32.mrb[0].mxu0 }
 0x102   : > { %v1894_v8 = vpop.f32.mrb[1].mxu0 }
 0x103   : > { %v1895_v9 = vadd.f32 %v1894_v8, %v1893_v6  ;;  %v1896_v10 = vpop.f32.mrb[2].mxu0  ;;  %v1915_v11 = vpop.f32.mrb[0].mxu1 }
 0x104   : > { %v1897_v12 = vpop.f32.mrb[3].mxu0  ;;  %v1916_v13 = vpop.f32.mrb[1].mxu1 }
 0x105   : > { %v980_v14 = vadd.f32 %v1895_v9, %v1773_v7  ;;  %v1898_v15 = vadd.f32 %v1897_v12, %v1896_v10  ;;  %v1917_v16 = vadd.f32 %v1916_v13, %v1915_v11  ;;  %v1918_v17 = vpop.f32.mrb[2].mxu1 }
 0x106   : > { %v1919_v18 = vpop.f32.mrb[3].mxu1 }
 0x107   : > { %v983_v19 = vadd.f32 %v1898_v15, %v1773_v7  ;;  %v1021_v20 = vadd.f32 %v1917_v16, %v980_v14  ;;  %v1920_v21 = vadd.f32 %v1919_v18, %v1918_v17  ;;  %v1266_v16 = vld [vmem:[%s3051_s3] sm:$0xff]  ;;  %v1267_v17 = vld [vmem:[%s3051_s3 + $0x8] sm:$0xff] }
 0x109   : > { %v1024_v22 = vadd.f32 %v1920_v21, %v983_v19 }
 0x121   : > { %v1937_v23 = vpop.f32.mrb[4].mxu0 }
 0x122   : > { %v1938_v24 = vpop.f32.mrb[5].mxu0 }
 0x123   : > { %v1939_v25 = vadd.f32 %v1938_v24, %v1937_v23  ;;  %v1940_v26 = vpop.f32.mrb[6].mxu0  ;;  %v1959_v27 = vpop.f32.mrb[4].mxu1  ;;  %v2171_v24 = vpack.c.bf16 %v1267_v17, %v1266_v16  ;;  %v1865_v17 = vld [vmem:[%s3051_s3 + $0xc0] sm:$0xff] }
 0x124   : > { %v1941_v28 = vpop.f32.mrb[7].mxu0  ;;  %v1960_v29 = vpop.f32.mrb[5].mxu1 }
 0x125   : > { %v1062_v30 = vadd.f32 %v1939_v25, %v1021_v20  ;;  %v1942_v31 = vadd.f32 %v1941_v28, %v1940_v26  ;;  %v1961_v32 = vadd.f32 %v1960_v29, %v1959_v27  ;;  %v1962_v33 = vpop.f32.mrb[6].mxu1  ;;  %v1268_v27 = vld [vmem:[%s3051_s3 + $0x10] sm:$0xff]  ;;  %v1269_v28 = vld [vmem:[%s3051_s3 + $0x18] sm:$0xff] }
 0x126   : > { %v1963_v34 = vpop.f32.mrb[7].mxu1 }
 0x127   : > { %v1065_v35 = vadd.f32 %v1942_v31, %v1024_v22  ;;  %v1964_v36 = vadd.f32 %v1963_v34, %v1962_v33  ;;  %v1103_v41 = vadd.f32 %v1961_v32, %v1062_v30  ;;  %v2174_v32 = vpack.c.bf16 %v1269_v28, %v1268_v27  ;;  %v1270_v34 = vld [vmem:[%s3051_s3 + $0x20] sm:$0xff] }
 0x129   : > { %v1106_v37 = vadd.f32 %v1964_v36, %v1065_v35  ;;  %v1271_v35 = vld [vmem:[%s3051_s3 + $0x28] sm:$0xff] }
 0x12a   : > { %v2177_v39 = vpack.c.bf16 %v1271_v35, %v1270_v34  ;;  %v1872_v35 = vld [vmem:[%s3051_s3 + $0xf8] sm:$0xff] }
 0x141   : > { %v1143_v46 = vpop.f32.mrb[8].mxu0 }
 0x142   : > { %v1144_v47 = vadd.f32 %v1143_v46, %v1103_v41  ;;  %v2045_v48 = vpop.f32.mrb[9].mxu0 }
 0x143   : > { %v1146_v50 = vpop.f32.mrb[10].mxu0  ;;  %v2180_v48 = vpack.c.bf16 %v1273_v43, %v1272_v42  ;;  %v1598_v43 = vld [vmem:[%s3053_s5] sm:$0xff] }
 0x144   : > { %v1150_v51 = vmax.f32 %v1144_v47, 0.0  ;;  %v1147_v52 = vadd.f32 %v1146_v50, %v1106_v37  ;;  %v2046_v53 = vpop.f32.mrb[11].mxu0  ;;  %v1856_v50 = vld [vmem:[%s3051_s3 + $0x80] sm:$0xff] }
 0x146   : > { %v1154_v54 = vcombine.high %v1150_v51, %v1150_v51  ;;  %v1161_v55 = vrot.slane %v1150_v51, %v1160_v49  ;;  %v1151_v5 = vmax.f32 %v1147_v52, 0.0  ;;  %v1857_v51 = vld [vmem:[%s3051_s3 + $0x88] sm:$0xff] }
 0x148   : > { %v1168_v56 = vrot.slane %v1154_v54, %v1160_v49  ;;  %v1169_v57 = vcombine.high %v1161_v55, %v1161_v55  ;;  %v1197_v1 = vsel %vm1196_vm1, %v1161_v55, -inf  ;;  %v1171_v12 = vcombine.high %v1151_v5, %v1151_v5 }
 0x149   : > { %v1198_v6 = vrot.slane %v1197_v1, 4  ;;  %v1178_v25 = vrot.slane %v1151_v5, %v1160_v49 }
 0x14a   : > { %v1170_v58 = vcombine.high %v1168_v56, %v1168_v56  ;;  %v1204_v40 = vsel %vm1196_vm1, %v1169_v57, -inf  ;;  %v1211_v61 = vsel %vm1196_vm1, %v1168_v56, -inf  ;;  %v1185_v20 = vrot.slane %v1171_v12, %v1160_v49 }
 0x14b   : > { %v1205_v59 = vrot.slane %v1204_v40, 4  ;;  %v1212_v3 = vrot.slane %v1211_v61, 4  ;;  %v1199_v13 = vmax.f32 %v1197_v1, %v1198_v6  ;;  %v1225_v33 = vsel %vm1196_vm1, %v1178_v25, -inf }
 0x14c   : > { %v1218_v62 = vsel %vm1196_vm1, %v1170_v58, -inf  ;;  %v1239_v30 = vsel %vm1196_vm1, %v1185_v20, -inf  ;;  %v1226_v38 = vrot.slane %v1225_v33, 4  ;;  %v1187_v54 = vcombine.high %v1185_v20, %v1185_v20 }
 0x14d   : > { %v1206_v63 = vmax.f32 %v1204_v40, %v1205_v59  ;;  %v1219_v0 = vrot.slane %v1218_v62, 4  ;;  %v1213_v10 = vmax.f32 %v1211_v61, %v1212_v3  ;;  %v1200_v21 = vrot.slane %v1199_v13, 2  ;;  %v1858_v59 = vld [vmem:[%s3051_s3 + $0x90] sm:$0xff]  ;;  %v1859_v61 = vld [vmem:[%s3051_s3 + $0x98] sm:$0xff]  ;;  %v1860_v3 = vld [vmem:[%s3051_s3 + $0xa0] sm:$0xff] }
 0x14e   : > { %v1240_v41 = vrot.slane %v1239_v30, 4  ;;  %v1227_v49 = vmax.f32 %v1225_v33, %v1226_v38  ;;  %v2183_v57 = vpack.c.bf16 %v1857_v51, %v1856_v50  ;;  %v1186_v58 = vcombine.high %v1178_v25, %v1178_v25  ;;  %v1867_v25 = vld [vmem:[%s3051_s3 + $0xd0] sm:$0xff]  ;;  %v1602_v50 = vld [vmem:[%s3053_s5 + $0x20] sm:$0xff]  ;;  %v1603_v51 = vld [vmem:[%s3053_s5 + $0x28] sm:$0xff] }
 0x14f   : > { %v1207_v2 = vrot.slane %v1206_v63, 2  ;;  %v1220_v4 = vmax.f32 %v1218_v62, %v1219_v0  ;;  %v1214_v18 = vrot.slane %v1213_v10, 2  ;;  %v1201_v31 = vmax.f32 %v1199_v13, %v1200_v21 }
 0x150   : > { %v1241_v46 = vmax.f32 %v1239_v30, %v1240_v41  ;;  %v1228_v56 = vrot.slane %v1227_v49, 2  ;;  %v2186_v1 = vpack.c.bf16 %v1859_v61, %v1858_v59  ;;  %v1869_v30 = vld [vmem:[%s3051_s3 + $0xe0] sm:$0xff]  ;;  %v1609_v59 = vld [vmem:[%s3053_s5 + $0x58] sm:$0xff] }
 0x151   : > { %v1208_v7 = vmax.f32 %v1206_v63, %v1207_v2  ;;  %v1221_v8 = vrot.slane %v1220_v4, 2  ;;  %v1215_v29 = vmax.f32 %v1213_v10, %v1214_v18  ;;  %v1202_v37 = vrot.slane %v1201_v31, 1  ;;  %v1862_v10 = vld [vmem:[%s3051_s3 + $0xb0] sm:$0xff]  ;;  %v1866_v18 = vld [vmem:[%s3051_s3 + $0xc8] sm:$0xff] }
 0x152   : > { %v1242_v52 = vrot.slane %v1241_v46, 2  ;;  %v1246_v63 = vsel %vm1196_vm1, %v1187_v54, -inf  ;;  %v1229_v0 = vmax.f32 %v1227_v49, %v1228_v56  ;;  %v1232_v2 = vsel %vm1196_vm1, %v1186_v58, -inf  ;;  %v1601_v49 = vld [vmem:[%s3053_s5 + $0x18] sm:$0xff]  ;;  %v1606_v56 = vld [vmem:[%s3053_s5 + $0x40] sm:$0xff] }
 0x153   : > { %v1209_v9 = vrot.slane %v1208_v7, 1  ;;  %v1222_v11 = vmax.f32 %v1220_v4, %v1221_v8  ;;  %v1216_v36 = vrot.slane %v1215_v29, 1  ;;  %v1203_v47 = vmax.f32 %v1201_v31, %v1202_v37  ;;  %v1861_v4 = vld [vmem:[%s3051_s3 + $0xa8] sm:$0xff]  ;;  %v1605_v54 = vld [vmem:[%s3053_s5 + $0x38] sm:$0xff] }
 0x154   : > { %v1243_v62 = vmax.f32 %v1241_v46, %v1242_v52  ;;  %v1247_v6 = vrot.slane %v1246_v63, 4  ;;  %v1233_v8 = vrot.slane %v1232_v2, 4  ;;  %v1870_v31 = vld [vmem:[%s3051_s3 + $0xe8] sm:$0xff]  ;;  %v1600_v46 = vld [vmem:[%s3053_s5 + $0x10] sm:$0xff]  ;;  %v2213_v52 = vpack.c.bf16 %v1603_v51, %v1602_v50 }
 0x155   : > { %v1210_v14 = vmax.f32 %v1208_v7, %v1209_v9  ;;  %v1223_v15 = vrot.slane %v1222_v11, 1  ;;  %v1217_v44 = vmax.f32 %v1215_v29, %v1216_v36  ;;  %v1254_v55 = vsel %vm1253_vm2, %v1203_v47, -inf }
 0x156   : > { %v1244_v5 = vrot.slane %v1243_v62, 1  ;;  %v1230_v7 = vrot.slane %v1229_v0, 1  ;;  %v2189_v9 = vpack.c.bf16 %v1861_v4, %v1860_v3  ;;  %v1248_v13 = vmax.f32 %v1246_v63, %v1247_v6  ;;  %v1611_v63 = vld [vmem:[%s3053_s5 + $0x68] sm:$0xff] }
 0x157   : > { %v1224_v19 = vmax.f32 %v1222_v11, %v1223_v15  ;;  %v1257_v22 = vsel %vm1253_vm2, %v1210_v14, -inf  ;;  %v1255_v53 = vsel %vm1253_vm2, %v1217_v44, -inf  ;;  %v1863_v11 = vld [vmem:[%s3051_s3 + $0xb8] sm:$0xff]  ;;  %v1234_v15 = vmax.f32 %v1232_v2, %v1233_v8  ;;  %v1599_v44 = vld [vmem:[%s3053_s5 + $0x8] sm:$0xff] }
 0x158   : > { %v1256_v40 = vmax.f32 %v1254_v55, %v1255_v53  ;;  %v1245_v12 = vmax.f32 %v1243_v62, %v1244_v5  ;;  %v1231_v14 = vmax.f32 %v1229_v0, %v1230_v7  ;;  %v2192_v16 = vpack.c.bf16 %v1863_v11, %v1862_v10  ;;  %v1604_v53 = vld [vmem:[%s3053_s5 + $0x30] sm:$0xff]  ;;  %v1610_v62 = vld [vmem:[%s3053_s5 + $0x60] sm:$0xff]  ;;  %v1613_v2 = vld [vmem:[%s3053_s5 + $0x78] sm:$0xff] }
 0x159   : > { %v1258_v23 = vsel %vm1253_vm2, %v1224_v19, -inf  ;;  %v1249_v19 = vrot.slane %v1248_v13, 2  ;;  %v1235_v21 = vrot.slane %v1234_v15, 2  ;;  %v2201_v34 = vpack.c.bf16 %v1870_v31, %v1869_v30 }
 0x15a   : > { %v1259_v26 = vmax.f32 %v1257_v22, %v1258_v23  ;;  %v1261_v20 = vsel %vm1253_vm2, %v1245_v12, -inf  ;;  %v1260_v22 = vsel %vm1253_vm2, %v1231_v14, -inf  ;;  %v2195_v23 = vpack.c.bf16 %v1866_v18, %v1865_v17  ;;  %v1595_v12 = vld [vmem:[%s3052_s4] sm:$0x1] }
 0x15b   : > { %v1250_v27 = vmax.f32 %v1248_v13, %v1249_v19  ;;  %v1236_v28 = vmax.f32 %v1234_v15, %v1235_v21  ;;  %v2207_v47 = vpack.c.bf16 %v1599_v44, %v1598_v43  ;;  %v2216_v55 = vpack.c.bf16 %v1605_v54, %v1604_v53  ;;  %v1614_v17 = vld [vmem:[%s3054_s6] sm:$0x1] }
 0x15c   : > { %2064 = vmatmul.mubr.msk.f32.vlgmr.msra.gmra.mrb[8].mxu1 %vm1253_vm2, %v1259_v26  ;;  %v1868_v26 = vld [vmem:[%s3051_s3 + $0xd8] sm:$0xff]  ;;  %v2225_v0 = vpack.c.bf16 %v1611_v63, %v1610_v62 }
 0x15d   : > { %2172 = vmatpush3.bf16.msra.mxu1 %v2171_v24  ;;  %2082 = vmatprep.mubr.msk.f32.mxu1 %vm2411_vm0, %v2410_v45  ;;  %v1262_v24 = vmax.f32 %v1260_v22, %v1261_v20  ;;  %v2198_v29 = vpack.c.bf16 %v1868_v26, %v1867_v25  ;;  %v1237_v33 = vrot.slane %v1236_v28, 1 }
 0x15e   : > { %2173 = vmatprep.subr.bf16.mxu1 %v2412_v60  ;;  %2208 = vmatpush3.bf16.msra.mxu0 %v2207_v47 }
 0x15f   : > { %v1238_v41 = vmax.f32 %v1236_v28, %v1237_v33  ;;  %2209 = vmatprep.subr.bf16.mxu0 %v2412_v60 }
 0x161   : > { %2175 = vmatpush3.bf16.msra.mxu1 %v2174_v32  ;;  %v1251_v32 = vrot.slane %v1250_v27, 1 }
 0x162   : > { %2176 = vmatprep.subr.bf16.mxu1 %v2412_v60 }
 0x163   : > { %v1252_v36 = vmax.f32 %v1250_v27, %v1251_v32 }
 0x165   : > { %2178 = vmatpush3.bf16.msra.mxu1 %v2177_v39  ;;  %v1264_v38 = vsel %vm1253_vm2, %v1252_v36, -inf  ;;  %v1263_v39 = vsel %vm1253_vm2, %v1238_v41, -inf }
 0x166   : > { %2179 = vmatprep.subr.bf16.mxu1 %v2412_v60  ;;  %v1265_v42 = vmax.f32 %v1263_v39, %v1264_v38 }
 0x169   : > { %2181 = vmatpush3.bf16.msra.mxu1 %v2180_v48  ;;  %v2210_v48 = vpack.c.bf16 %v1601_v49, %v1600_v46 }
 0x16a   : > { %2182 = vmatprep.subr.bf16.mxu1 %v2412_v60 }
 0x16b   : > { %2211 = vmatpush3.bf16.msra.mxu0 %v2210_v48 }
 0x16c   : > { %2083 = vmatmul.mubr.msk.f32.vlgmr.msra.gmra.mrb[10].mxu1 %vm1253_vm2, %v1256_v40  ;;  %2212 = vmatprep.subr.bf16.mxu0 %v2412_v60  ;;  %v1608_v40 = vld [vmem:[%s3053_s5 + $0x50] sm:$0xff] }
 0x16d   : > { %2184 = vmatpush3.bf16.msra.mxu1 %v2183_v57  ;;  %2101 = vmatprep.mubr.msk.f32.mxu1 %vm2411_vm0, %v2410_v45  ;;  %v1607_v57 = vld [vmem:[%s3053_s5 + $0x48] sm:$0xff]  ;;  %v2222_v61 = vpack.c.bf16 %v1609_v59, %v1608_v40 }
 0x16e   : > { %2185 = vmatprep.subr.bf16.mxu1 %v2412_v60  ;;  %v2219_v58 = vpack.c.bf16 %v1607_v57, %v1606_v56 }
 0x16f   : > { %2214 = vmatpush3.bf16.msra.mxu0 %v2213_v52 }
 0x170   : > { %2215 = vmatprep.subr.bf16.mxu0 %v2412_v60 }
 0x171   : > { %2187 = vmatpush3.bf16.msra.mxu1 %v2186_v1  ;;  %v1612_v1 = vld [vmem:[%s3053_s5 + $0x70] sm:$0xff] }
 0x172   : > { %2188 = vmatprep.subr.bf16.mxu1 %v2412_v60  ;;  %v2228_v3 = vpack.c.bf16 %v1613_v2, %v1612_v1 }
 0x173   : > { %2217 = vmatpush3.bf16.msra.mxu0 %v2216_v55 }
 0x174   : > { %2218 = vmatprep.subr.bf16.mxu0 %v2412_v60 }
 0x175   : > { %2190 = vmatpush3.bf16.msra.mxu1 %v2189_v9 }
 0x176   : > { %2191 = vmatprep.subr.bf16.mxu1 %v2412_v60 }
 0x177   : > { %2220 = vmatpush3.bf16.msra.mxu0 %v2219_v58 }
 0x178   : > { %2221 = vmatprep.subr.bf16.mxu0 %v2412_v60 }
 0x179   : > { %2193 = vmatpush3.bf16.msra.mxu1 %v2192_v16 }
 0x17a   : > { %2194 = vmatprep.subr.bf16.mxu1 %v2412_v60 }
 0x17b   : > { %2223 = vmatpush3.bf16.msra.mxu0 %v2222_v61 }
 0x17c   : > { %2102 = vmatmul.mubr.msk.f32.vlgmr.msra.gmra.mrb[12].mxu1 %vm1253_vm2, %v1262_v24  ;;  %2224 = vmatprep.subr.bf16.mxu0 %v2412_v60 }
 0x17d   : > { %2196 = vmatpush3.bf16.msra.mxu1 %v2195_v23  ;;  %2120 = vmatprep.mubr.msk.f32.mxu1 %vm2411_vm0, %v2410_v45  ;;  %v1871_v45 = vld [vmem:[%s3051_s3 + $0xf0] sm:$0xff] }
 0x17e   : > { %2197 = vmatprep.subr.bf16.mxu1 %v2412_v60  ;;  %v2204_v37 = vpack.c.bf16 %v1872_v35, %v1871_v45 }
 0x17f   : > { %2226 = vmatpush3.bf16.msra.mxu0 %v2225_v0 }
 0x180   : > { %2227 = vmatprep.subr.bf16.mxu0 %v2412_v60 }
 0x181   : > { %2199 = vmatpush3.bf16.msra.mxu1 %v2198_v29 }
 0x182   : > { %2200 = vmatprep.subr.bf16.mxu1 %v2412_v60 }
 0x183   : > { %2229 = vmatpush3.bf16.msra.mxu0 %v2228_v3 }
 0x185   : > { %2202 = vmatpush3.bf16.msra.mxu1 %v2201_v34 }
 0x186   : > { %2203 = vmatprep.subr.bf16.mxu1 %v2412_v60 }
 0x189   : > { %2205 = vmatpush3.bf16.msra.mxu1 %v2204_v37 }
 0x18c   : > { %2121 = vmatmul.mubr.msk.f32.vlgmr.msra.gmra.mrb[14].mxu1 %vm1253_vm2, %v1265_v42 }
 0x22f   : > { %v1352_v4 = vpop.f32.mrb[8].mxu1 }
 0x230   : > { %v2065_v5 = vpop.f32.mrb[9].mxu1 }
 0x23f   : > { %v1425_v6 = vpop.f32.mrb[10].mxu1 }
 0x240   : > { %v1426_v7 = vadd.f32 %v1425_v6, %v1352_v4  ;;  %v2084_v8 = vpop.f32.mrb[11].mxu1 }
 0x24f   : > { %v1507_v9 = vpop.f32.mrb[12].mxu1 }
 0x250   : > { %v1511_v10 = vadd.f32 %v1507_v9, %v1426_v7  ;;  %v2103_v60 = vpop.f32.mrb[13].mxu1 }
 0x25f   : > { %v1590_v11 = vpop.f32.mrb[14].mxu1 }
 0x260   : > { %v1594_v13 = vadd.f32 %v1590_v11, %v1511_v10  ;;  %v2122_v14 = vpop.f32.mrb[15].mxu1 }
 0x262   : > { %v1596_v15 = vadd.f32 %v1595_v12, %v1594_v13 }
 0x264   : > { %v1597_v16 = vmax.f32 %v1596_v15, 0.0 }
 0x266   : > { %2156 = vmatmul.mubr.f32.vlgmr.msra.gmra.mrb[12].mxu0 %v1597_v16 }
 0x339   : > { %v1681_v18 = vpop.f32.mrb[12].mxu0 }
 0x33a   : > { %v1682_v19 = vadd.f32 %v1681_v18, %v1614_v17  ;;  %v2157_v20 = vpop.f32.mrb[13].mxu0 }
 0x33c   : > { %1685 = vst [vmem:[%s270_s18] sm:$0x1] %v1682_v19 }
 0x33d   : > { %2359 = shalt.err (!%p2356_p3)
}
 0x33e   : > { %s2360_s14 = scalar_lea.hbm %s3006_s29, 16  ;;  %s2364_s17 = scalar_lea.hbm %s3055_s7, 32 }
 0x33f   : > { %p2361_p4 = scmp.ne.s32.totalorder %s3006_s29, %s2360_s14  ;;  %p2365_p9 = scmp.lt.u32.totalorder %s3006_s29, %s3055_s7 }
 0x340   : > { %p2366_p10 = scmp.lt.u32.totalorder %s2364_s17, %s2360_s14  ;;  %p2368_p12 = scmp.lt.u32.totalorder %s2360_s14, %s3006_s29 }
 0x341   : > { %p2362_p7 = pnand %p2361_p4, %p2493_p5 }
 0x342   : > { %p2367_p11 = por %p2366_p10, %p2365_p9 }
 0x343   : > { %p2363_p8 = pneg %p2362_p7 }
 0x344   : > { %p2369_p13 = por %p2368_p12, %p2367_p11 }
 0x346   : > { %p2370_p0 = pnand %p2369_p13, %p2363_p8 }
 0x348   : > { %2373 = shalt.err (!%p2370_p0)
}
 0x349   : > { %2231 = dma.vmem_to_hbm [thread:$0]  (%p2493_p5), %s3008_s20, 16, %s3006_s29, %s1687_s22  }
 0x34a PF: > { %p2237_p1 = scmp.ge.s32.totalorder %s2408_s27, 2  ;;  %s1711_s21 = sand.u32 1, %s2396_s24  }
 0x34b   : > { %s1712_s23 = scalar_lea.sflag [#allocation3], %s1711_s21 }
 0x34c   : > { %p2234_p2 = pnand %p2237_p1, %p2497_p6 }
 0x34e   : > { %2391 = dma.done.wait (!%p2234_p2), %s1712_s23, 16  }
 0x34f   : > { %2393 = vsyncadd (!%p2234_p2), %s1712_s23, 4294967280  ;;  %p17_p3 = scmp.ge.s32.totalorder %s2480_s30, 4   ;;  %s3058_s24 = smov %s2400_s25 }
 0x350   : > { %s3059_s25 = smov %s2404_s26  ;;  %s3060_s26 = smov %s2491_s10 }
 0x351   : > { %s3061_s27 = smov %s2480_s30  ;;  %19 = sbr.rel (!%p17_p3) target bundleno = 3 (0x3), region = 86 }
 0x358   :  { %1716 = vsyncpa [#allocation3], 1 }
 0x359   :  { %1718 = vsyncpa [#allocation3 + $0x1], 1 }

</bundles_post_ra>
